<compile_context>
chip_gen: v7x
topology: tpu7x:2x2x1
jax: 0.10.0
libtpu: 0.0.40
codegen_flags: <defaults>
</compile_context>

<pallas_src>
import functools

import jax
import jax.numpy as jnp
import numpy as np
from jax.experimental import pallas as pl
from jax.experimental.pallas import tpu as pltpu

BN_EPS = 1e-5


# ------------------------------ small helpers ------------------------------

def _round_up(n, m):
    return ((n + m - 1) // m) * m


def _pick_tile(M, candidates=(1024, 512, 256, 128), min_steps=2):
    """Largest tile dividing M; prefer one that yields >= min_steps grid steps."""
    best = None
    for c in candidates:
        if M % c == 0:
            if best is None:
                best = c
            if M // c >= min_steps:
                return c
    return best if best is not None else M


def fold_bn(w, conv_b, bn_params, eps=BN_EPS):
    """Fold eval-mode BatchNorm into the preceding conv (matmul layout w:(Cin,Cout))."""
    gamma, beta, mean, var = bn_params
    s = gamma / jnp.sqrt(var + eps)
    wf = w * s[None, :]
    b0 = conv_b if conv_b is not None else jnp.zeros_like(beta)
    bf = (b0 - mean) * s + beta
    return wf, bf


# ----------------------------- Pallas kernels -----------------------------

# --- A) fused aux head: relu(bn(x@w1+b1)) @ w2 + b2  (w2/b2 padded to 128) ---
def _aux_kernel(x_ref, w1_ref, b1_ref, w2_ref, b2_ref, o_ref):
    x = x_ref[...].astype(jnp.bfloat16)
    h = jnp.dot(x, w1_ref[...], preferred_element_type=jnp.float32) + b1_ref[...]
    h = jnp.maximum(h, 0.0)
    o_ref[...] = (jnp.dot(h.astype(jnp.bfloat16), w2_ref[...],
                          preferred_element_type=jnp.float32) + b2_ref[...])


def aux_head(xf, w1, b1, w2p, b2p, tm):
    M, Cin = xf.shape
    Np = w2p.shape[1]
    return pl.pallas_call(
        _aux_kernel,
        out_shape=jax.ShapeDtypeStruct((M, Np), jnp.float32),
        grid=(M // tm,),
        in_specs=[
            pl.BlockSpec((tm, Cin), lambda i: (i, 0)),
            pl.BlockSpec((Cin, Cin), lambda i: (0, 0)),
            pl.BlockSpec((1, Cin), lambda i: (0, 0)),
            pl.BlockSpec((Cin, Np), lambda i: (0, 0)),
            pl.BlockSpec((1, Np), lambda i: (0, 0)),
        ],
        out_specs=pl.BlockSpec((tm, Np), lambda i: (i, 0)),
        compiler_params=pltpu.CompilerParams(dimension_semantics=("parallel",)),
    )(xf, w1, b1, w2p, b2p)


# --- B) 3x3 conv + folded BN + ReLU: 9 shifted-tap matmuls on a padded, -----
#        flattened NHWC slab (avoids materialising 9x im2col patches in HBM).
def _conv3x3_kernel(x_ref, w_ref, b_ref, o_ref, *, cin, n_out, w_stride):
    acc = jnp.zeros(o_ref.shape, jnp.float32)
    for dh in range(3):
        for dw in range(3):
            off = dh * w_stride + dw          # static flat row offset of this tap
            tap = 3 * dh + dw
            xi = x_ref[pl.ds(off, n_out), :]                      # (n_out, Cin) bf16
            wt = w_ref[pl.ds(tap * cin, cin), :]                  # (Cin, mid) bf16
            acc = acc + jnp.dot(xi, wt, preferred_element_type=jnp.float32)
    acc = jnp.maximum(acc + b_ref[...], 0.0)
    o_ref[...] = acc.astype(o_ref.dtype)


def conv3x3_bn_relu(xin_flat, w, b, n_out, w_stride):
    B, Npad, Cin = xin_flat.shape
    mid = w.shape[1]
    return pl.pallas_call(
        functools.partial(_conv3x3_kernel, cin=Cin, n_out=n_out, w_stride=w_stride),
        out_shape=jax.ShapeDtypeStruct((B, n_out, mid), jnp.bfloat16),
        grid=(B,),
        in_specs=[
            pl.BlockSpec((None, Npad, Cin), lambda b: (b, 0, 0)),
            pl.BlockSpec((9 * Cin, mid), lambda b: (0, 0)),
            pl.BlockSpec((1, mid), lambda b: (0, 0)),
        ],
        out_specs=pl.BlockSpec((None, n_out, mid), lambda b: (b, 0, 0)),
        compiler_params=pltpu.CompilerParams(
            dimension_semantics=("parallel",),
            vmem_limit_bytes=32 * 1024 * 1024),
    )(xin_flat, w, b)


# --- C) SpatialGather: HW-tiled online softmax over spatial positions --------
def _gather_kernel(logit_ref, feat_ref, o_ref, m_sc, l_sc, acc_sc):
    t = pl.program_id(1)

    @pl.when(t == 0)
    def _():
        m_sc[...] = jnp.full_like(m_sc, -jnp.inf)
        l_sc[...] = jnp.zeros_like(l_sc)
        acc_sc[...] = jnp.zeros_like(acc_sc)

    s = logit_ref[...]                                            # (K, thw) f32
    m_prev = m_sc[...]
    m_new = jnp.maximum(m_prev, jnp.max(s, axis=-1, keepdims=True))
    alpha = jnp.exp(m_prev - m_new)
    p = jnp.exp(s - m_new)
    l_sc[...] = alpha * l_sc[...] + jnp.sum(p, axis=-1, keepdims=True)
    acc_sc[...] = alpha * acc_sc[...] + jnp.dot(
        p.astype(jnp.bfloat16), feat_ref[...], preferred_element_type=jnp.float32)
    m_sc[...] = m_new

    @pl.when(t == pl.num_programs(1) - 1)
    def _():
        o_ref[...] = acc_sc[...] * pl.reciprocal(l_sc[...], approx=True)


def spatial_gather(logits_bkl, feats_blc, thw):
    B, K, HW = logits_bkl.shape
    C = feats_blc.shape[2]
    return pl.pallas_call(
        _gather_kernel,
        out_shape=jax.ShapeDtypeStruct((B, K, C), jnp.float32),
        grid=(B, HW // thw),
        in_specs=[
            pl.BlockSpec((None, K, thw), lambda b, t: (b, 0, t)),
            pl.BlockSpec((None, thw, C), lambda b, t: (b, t, 0)),
        ],
        out_specs=pl.BlockSpec((None, K, C), lambda b, t: (b, 0, 0)),
        scratch_shapes=[pltpu.VMEM((K, 1), jnp.float32),
                        pltpu.VMEM((K, 1), jnp.float32),
                        pltpu.VMEM((K, C), jnp.float32)],
        compiler_params=pltpu.CompilerParams(
            dimension_semantics=("parallel", "arbitrary")),
    )(logits_bkl, feats_blc)


# --- D) object-side projections fused: k = fobj2(fobj1(ctx)), v = fdown(ctx) --
def _object_kv_kernel(c_ref, w1_ref, b1_ref, w2_ref, b2_ref, wd_ref, bd_ref,
                      k_ref, v_ref):
    c = c_ref[...].astype(jnp.bfloat16)
    k = jnp.maximum(jnp.dot(c, w1_ref[...], preferred_element_type=jnp.float32)
                    + b1_ref[...], 0.0)
    k = jnp.maximum(jnp.dot(k.astype(jnp.bfloat16), w2_ref[...],
                            preferred_element_type=jnp.float32) + b2_ref[...], 0.0)
    v = jnp.maximum(jnp.dot(c, wd_ref[...], preferred_element_type=jnp.float32)
                    + bd_ref[...], 0.0)
    k_ref[...] = k.astype(k_ref.dtype)
    v_ref[...] = v.astype(v_ref.dtype)


def object_kv(ctx_flat, w1, b1, w2, b2, wd, bd, tm):
    M, mid = ctx_flat.shape
    key = w1.shape[1]
    return pl.pallas_call(
        _object_kv_kernel,
        out_shape=(jax.ShapeDtypeStruct((M, key), jnp.bfloat16),
                   jax.ShapeDtypeStruct((M, key), jnp.bfloat16)),
        grid=(M // tm,),
        in_specs=[
            pl.BlockSpec((tm, mid), lambda i: (i, 0)),
            pl.BlockSpec((mid, key), lambda i: (0, 0)),
            pl.BlockSpec((1, key), lambda i: (0, 0)),
            pl.BlockSpec((key, key), lambda i: (0, 0)),
            pl.BlockSpec((1, key), lambda i: (0, 0)),
            pl.BlockSpec((mid, key), lambda i: (0, 0)),
            pl.BlockSpec((1, key), lambda i: (0, 0)),
        ],
        out_specs=[pl.BlockSpec((tm, key), lambda i: (i, 0)),
                   pl.BlockSpec((tm, key), lambda i: (i, 0))],
        compiler_params=pltpu.CompilerParams(dimension_semantics=("parallel",)),
    )(ctx_flat, w1, b1, w2, b2, wd, bd)


# --- E) mega pixel kernel: fpix1 -> fpix2 -> attention -> f_up -> bottleneck
#        (split-concat) -> cls.  Activation tile never leaves VMEM. -----------
def _pixel_mega_kernel(f_ref, kt_ref, v_ref,
                       wq1_ref, bq1_ref, wq2_ref, bq2_ref,
                       wu_ref, bu_ref, wbc_ref, wbf_ref, bb_ref,
                       wc_ref, bc_ref, o_ref, *, num_real_k, scale):
    f = f_ref[...]                                                # (tq, mid) bf16
    q = jnp.maximum(jnp.dot(f, wq1_ref[...], preferred_element_type=jnp.float32)
                    + bq1_ref[...], 0.0)
    q = jnp.maximum(jnp.dot(q.astype(jnp.bfloat16), wq2_ref[...],
                            preferred_element_type=jnp.float32) + bq2_ref[...], 0.0)

    # attention over the (zero-padded, lane-dense) object axis
    sim = jnp.dot(q.astype(jnp.bfloat16), kt_ref[...],
                  preferred_element_type=jnp.float32) * scale     # (tq, KPAD)
    col = jax.lax.broadcasted_iota(jnp.int32, sim.shape, 1)
    sim = jnp.where(col < num_real_k, sim, -1e30)                 # mask padded objects
    m = jnp.max(sim, axis=-1, keepdims=True)
    p = jnp.exp(sim - m)
    p = p * pl.reciprocal(jnp.sum(p, axis=-1, keepdims=True), approx=True)
    attn = jnp.dot(p.astype(jnp.bfloat16), v_ref[...],
                   preferred_element_type=jnp.float32)            # (tq, key)

    ctx_up = jnp.maximum(jnp.dot(attn.astype(jnp.bfloat16), wu_ref[...],
                                 preferred_element_type=jnp.float32)
                         + bu_ref[...], 0.0)                      # (tq, mid)

    # bottleneck conv on concat([ctx_up, feats]) == split weight, two matmuls
    pre = (jnp.dot(ctx_up.astype(jnp.bfloat16), wbc_ref[...],
                   preferred_element_type=jnp.float32)
           + jnp.dot(f, wbf_ref[...], preferred_element_type=jnp.float32)
           + bb_ref[...])
    out_feats = jnp.maximum(pre, 0.0)
    # TODO(synk): nn.Dropout2d(0.05) is identity in eval/inference mode; no RNG mask.
    o_ref[...] = (jnp.dot(out_feats.astype(jnp.bfloat16), wc_ref[...],
                          preferred_element_type=jnp.float32) + bc_ref[...])


def pixel_mega(feats_blc, kT_bck, v_bkc, wq1, bq1, wq2, bq2, wu, bu,
               wbc, wbf, bb, wc, bc, num_classes, scale, tq):
    B, HW, mid = feats_blc.shape
    key, KPAD = kT_bck.shape[1], kT_bck.shape[2]
    Np = wc.shape[1]
    kern = functools.partial(_pixel_mega_kernel, num_real_k=num_classes, scale=scale)
    return pl.pallas_call(
        kern,
        out_shape=jax.ShapeDtypeStruct((B, HW, Np), jnp.float32),
        grid=(B, HW // tq),
        in_specs=[
            pl.BlockSpec((None, tq, mid), lambda b, i: (b, i, 0)),
            pl.BlockSpec((None, key, KPAD), lambda b, i: (b, 0, 0)),
            pl.BlockSpec((None, KPAD, key), lambda b, i: (b, 0, 0)),
            pl.BlockSpec((mid, key), lambda b, i: (0, 0)),
            pl.BlockSpec((1, key), lambda b, i: (0, 0)),
            pl.BlockSpec((key, key), lambda b, i: (0, 0)),
            pl.BlockSpec((1, key), lambda b, i: (0, 0)),
            pl.BlockSpec((key, mid), lambda b, i: (0, 0)),
            pl.BlockSpec((1, mid), lambda b, i: (0, 0)),
            pl.BlockSpec((mid, mid), lambda b, i: (0, 0)),
            pl.BlockSpec((mid, mid), lambda b, i: (0, 0)),
            pl.BlockSpec((1, mid), lambda b, i: (0, 0)),
            pl.BlockSpec((mid, Np), lambda b, i: (0, 0)),
            pl.BlockSpec((1, Np), lambda b, i: (0, 0)),
        ],
        out_specs=pl.BlockSpec((None, tq, Np), lambda b, i: (b, i, 0)),
        compiler_params=pltpu.CompilerParams(
            dimension_semantics=("parallel", "parallel"),
            vmem_limit_bytes=32 * 1024 * 1024),
    )(feats_blc, kT_bck, v_bkc, wq1, bq1, wq2, bq2, wu, bu, wbc, wbf, bb, wc, bc)


# ------------------------------- params (JAX) -------------------------------

def init_params(key, in_channels, num_classes, mid=512, key_ch=256):
    keys = iter(jax.random.split(key, 64))
    nk = lambda: next(keys)

    def conv_w(cin, cout):
        return jax.random.normal(nk(), (cin, cout), jnp.float32) / np.sqrt(cin)

    def bias(c):
        return 0.1 * jax.random.normal(nk(), (c,), jnp.float32)

    def bn(c):
        gamma = 1.0 + 0.1 * jax.random.normal(nk(), (c,), jnp.float32)
        beta = 0.1 * jax.random.normal(nk(), (c,), jnp.float32)
        mean = 0.1 * jax.random.normal(nk(), (c,), jnp.float32)
        var = jax.random.uniform(nk(), (c,), jnp.float32, minval=0.5, maxval=1.5)
        return (gamma, beta, mean, var)

    P = {}
    # aux_head: conv1x1+BN+ReLU, conv1x1(bias)
    P['aux1_w'] = conv_w(in_channels, in_channels); P['aux1_b'] = bias(in_channels)
    P['aux1_bn'] = bn(in_channels)
    P['aux2_w'] = conv_w(in_channels, num_classes); P['aux2_b'] = bias(num_classes)
    # conv3x3_ocr: 3x3 conv weight kept in PyTorch OIHW layout, + BN + ReLU
    P['ocr3_w'] = (jax.random.normal(nk(), (mid, in_channels, 3, 3), jnp.float32)
                   / np.sqrt(in_channels * 9))
    P['ocr3_b'] = bias(mid); P['ocr3_bn'] = bn(mid)
    # ObjectAttentionBlock2D transforms (all conv1x1, bias=False, +BN+ReLU)
    P['fpix1_w'] = conv_w(mid, key_ch);    P['fpix1_bn'] = bn(key_ch)
    P['fpix2_w'] = conv_w(key_ch, key_ch); P['fpix2_bn'] = bn(key_ch)
    P['fobj1_w'] = conv_w(mid, key_ch);    P['fobj1_bn'] = bn(key_ch)
    P['fobj2_w'] = conv_w(key_ch, key_ch); P['fobj2_bn'] = bn(key_ch)
    P['fdown_w'] = conv_w(mid, key_ch);    P['fdown_bn'] = bn(key_ch)
    P['fup_w'] = conv_w(key_ch, mid);      P['fup_bn'] = bn(mid)
    # SpatialOCR bottleneck conv (2*mid -> mid) + BN + ReLU (+ Dropout2d eval=id)
    P['bottle_w'] = conv_w(2 * mid, mid);  P['bottle_bn'] = bn(mid)
    # cls_head
    P['cls_w'] = conv_w(mid, num_classes); P['cls_b'] = bias(num_classes)
    return P


# ------------------------------ forward (Pallas) -----------------------------

def ocr_forward(x_nchw, P, num_classes, mid=512, key_ch=256):
    B, Cin, H, W = x_nchw.shape
    HW = H * W
    KPAD = _round_up(num_classes, 128)     # lane-dense attention K axis
    NPAD = _round_up(num_classes, 128)     # lane-dense class logits
    bf16 = jnp.bfloat16

    x_nhwc = jnp.transpose(x_nchw, (0, 2, 3, 1)).astype(bf16)
    xf = x_nhwc.reshape(B * HW, Cin)

    # ---- A) aux head (fused), output padded to NPAD lanes ----
    w1, b1 = fold_bn(P['aux1_w'], P['aux1_b'], P['aux1_bn'])
    w2p = jnp.zeros((Cin, NPAD), jnp.float32).at[:, :num_classes].set(P['aux2_w'])
    b2p = jnp.zeros((NPAD,), jnp.float32).at[:num_classes].set(P['aux2_b'])
    out_aux_p = aux_head(xf, w1.astype(bf16), b1.reshape(1, -1),
                         w2p.astype(bf16), b2p.reshape(1, -1),
                         tm=_pick_tile(B * HW))                       # (B*HW, NPAD) f32
    logits = (out_aux_p[:, :num_classes]
              .reshape(B, HW, num_classes).transpose(0, 2, 1))        # (B, K, HW)

    # ---- B) conv3x3 + BN + ReLU (Pallas shifted-tap conv, no im2col) ----
    # Weight (mid, Cin, 3, 3) -> per-tap (Cin, mid) blocks, tap-major.
    wc_flat = jnp.transpose(P['ocr3_w'], (2, 3, 1, 0)).reshape(9 * Cin, mid)
    wc, bc = fold_bn(wc_flat, P['ocr3_b'], P['ocr3_bn'])
    xin = jnp.pad(x_nhwc, ((0, 0), (2, 4), (2, 2), (0, 0)))           # (B, H+6, W+4, Cin)
    xin_flat = xin.reshape(B, (H + 6) * (W + 4), Cin)
    n_out = (H + 2) * (W + 4)
    feats_pad = conv3x3_bn_relu(xin_flat, wc.astype(bf16), bc.reshape(1, -1),
                                n_out=n_out, w_stride=W + 4)          # (B, n_out, mid) bf16
    feats = (feats_pad.reshape(B, H + 2, W + 4, mid)[:, 1:H + 1, 1:W + 1, :]
             .reshape(B, HW, mid))                                    # (B, HW, mid) bf16

    # ---- C) SpatialGather (HW-tiled online softmax) ----
    context = spatial_gather(logits, feats, thw=_pick_tile(HW, min_steps=1))  # (B,K,mid) f32

    # ---- D) object projections (fobj1->fobj2, fdown) fused; padded to KPAD ----
    ctx_pad = jnp.zeros((B, KPAD, mid), jnp.float32).at[:, :num_classes, :].set(context)
    ctx_flat = ctx_pad.reshape(B * KPAD, mid)
    wk1, bk1 = fold_bn(P['fobj1_w'], None, P['fobj1_bn'])
    wk2, bk2 = fold_bn(P['fobj2_w'], None, P['fobj2_bn'])
    wv, bv = fold_bn(P['fdown_w'], None, P['fdown_bn'])
    k_flat, v_flat = object_kv(ctx_flat,
                               wk1.astype(bf16), bk1.reshape(1, -1),
                               wk2.astype(bf16), bk2.reshape(1, -1),
                               wv.astype(bf16), bv.reshape(1, -1),
                               tm=_pick_tile(B * KPAD))
    kT = k_flat.reshape(B, KPAD, key_ch).transpose(0, 2, 1)           # (B, key, KPAD) bf16
    v = v_flat.reshape(B, KPAD, key_ch)                               # (B, KPAD, key) bf16

    # ---- E) mega pixel kernel: fpix -> attention -> f_up -> bottleneck -> cls ----
    wq1, bq1 = fold_bn(P['fpix1_w'], None, P['fpix1_bn'])
    wq2, bq2 = fold_bn(P['fpix2_w'], None, P['fpix2_bn'])
    wu, bu = fold_bn(P['fup_w'], None, P['fup_bn'])
    wb, bb = fold_bn(P['bottle_w'], None, P['bottle_bn'])
    wbc, wbf = wb[:mid, :], wb[mid:, :]            # concat([ctx_up, feats]) split
    wcls = jnp.zeros((mid, NPAD), jnp.float32).at[:, :num_classes].set(P['cls_w'])
    bcls = jnp.zeros((NPAD,), jnp.float32).at[:num_classes].set(P['cls_b'])

    out_p = pixel_mega(feats, kT, v,
                       wq1.astype(bf16), bq1.reshape(1, -1),
                       wq2.astype(bf16), bq2.reshape(1, -1),
                       wu.astype(bf16), bu.reshape(1, -1),
                       wbc.astype(bf16), wbf.astype(bf16), bb.reshape(1, -1),
                       wcls.astype(bf16), bcls.reshape(1, -1),
                       num_classes=num_classes, scale=key_ch ** (-0.5),
                       tq=_pick_tile(HW))                             # (B, HW, NPAD) f32

    out = out_p[:, :, :num_classes].reshape(B, H, W, num_classes)
    return jnp.transpose(out, (0, 3, 1, 2))                           # NCHW


# --------------------------- pure-JAX f32 reference --------------------------

def reference_forward(x_nchw, P, num_classes, mid=512, key_ch=256):
    B, Cin, H, W = x_nchw.shape
    HW = H * W
    relu = lambda t: jnp.maximum(t, 0.0)

    def bn(t, p):
        g, bta, m, v = p
        return (t - m) / jnp.sqrt(v + BN_EPS) * g + bta

    xf = jnp.transpose(x_nchw, (0, 2, 3, 1)).reshape(B * HW, Cin)
    a = relu(bn(xf @ P['aux1_w'] + P['aux1_b'], P['aux1_bn']))
    out_aux = a @ P['aux2_w'] + P['aux2_b']

    conv = jax.lax.conv_general_dilated(
        x_nchw, P['ocr3_w'], window_strides=(1, 1), padding='SAME',
        dimension_numbers=('NCHW', 'OIHW', 'NCHW'))
    conv = jnp.transpose(conv, (0, 2, 3, 1)).reshape(B * HW, mid) + P['ocr3_b']
    feats = relu(bn(conv, P['ocr3_bn']))

    logits = out_aux.reshape(B, HW, num_classes).transpose(0, 2, 1)
    probs = jax.nn.softmax(logits, axis=-1)
    context = jnp.einsum('bkl,blc->bkc', probs, feats.reshape(B, HW, mid))

    q = relu(bn(feats @ P['fpix1_w'], P['fpix1_bn']))
    q = relu(bn(q @ P['fpix2_w'], P['fpix2_bn']))
    ctx_flat = context.reshape(B * num_classes, mid)
    k = relu(bn(ctx_flat @ P['fobj1_w'], P['fobj1_bn']))
    k = relu(bn(k @ P['fobj2_w'], P['fobj2_bn']))
    v = relu(bn(ctx_flat @ P['fdown_w'], P['fdown_bn']))

    sim = jnp.einsum('bqc,bkc->bqk', q.reshape(B, HW, key_ch),
                     k.reshape(B, num_classes, key_ch)) * key_ch ** (-0.5)
    sim = jax.nn.softmax(sim, axis=-1)
    attn = jnp.einsum('bqk,bkc->bqc', sim, v.reshape(B, num_classes, key_ch))

    ctx_up = relu(bn(attn.reshape(B * HW, key_ch) @ P['fup_w'], P['fup_bn']))
    cat = jnp.concatenate([ctx_up, feats], axis=-1)
    out_feats = relu(bn(cat @ P['bottle_w'], P['bottle_bn']))
    out = out_feats @ P['cls_w'] + P['cls_b']
    return out.reshape(B, H, W, num_classes).transpose(0, 3, 1, 2)


# ----------------------------------- main -----------------------------------

if __name__ == "__main__":
    B, Cin, H, W = 2, 32, 16, 16
    NUM_CLASSES = 8
    MID, KEY = 512, 256          # hard-coded in OCR.__init__ (ocr_mid/key_channels)

    root = jax.random.PRNGKey(0)
    kx, kp = jax.random.split(root)
    x = jax.random.normal(kx, (B, Cin, H, W), jnp.float32)
    P = init_params(kp, Cin, NUM_CLASSES, MID, KEY)

    fwd = jax.jit(functools.partial(ocr_forward, num_classes=NUM_CLASSES,
                                    mid=MID, key_ch=KEY))
    out = jax.block_until_ready(fwd(x, P))

    assert out.shape == (B, NUM_CLASSES, H, W)
    ref = reference_forward(x, P, NUM_CLASSES, MID, KEY)
    diff = jnp.abs(out - ref)
    max_diff = float(jnp.max(diff))
    mean_diff = float(jnp.mean(diff))
    assert max_diff < 2e-1, f"max abs diff too large: {max_diff}"
    assert mean_diff < 4e-2, f"mean abs diff too large: {mean_diff}"

    print("KERNEL_OK")
</pallas_src>

<mosaic_0001>
module attributes {stable_mosaic.version = 11 : i64} {
  func.func @_conv3x3_kernel(%arg0: i32, %arg1: memref<1x440x32xbf16, #tpu.memory_space<vmem>>, %arg2: memref<288x512xbf16, #tpu.memory_space<vmem>>, %arg3: memref<1x512xf32, #tpu.memory_space<vmem>>, %arg4: memref<1x360x512xbf16, #tpu.memory_space<vmem>>) attributes {dimension_semantics = [#tpu.dimension_semantics<parallel>], iteration_bounds = array<i64: 2>, scalar_prefetch = 0 : i64, scratch_operands = 0 : i64, tpu.core_type = #tpu.core_type<tc>, window_params = [{transform_indices = @transform_0, window_bounds = array<i64: 1, 440, 32>}, {pipeline_mode = #tpu.pipeline_mode<synchronous>, transform_indices = @transform_1, window_bounds = array<i64: 288, 512>}, {pipeline_mode = #tpu.pipeline_mode<synchronous>, transform_indices = @transform_2, window_bounds = array<i64: 1, 512>}, {transform_indices = @transform_3, window_bounds = array<i64: 1, 360, 512>}]} {
    %cst = arith.constant 0.000000e+00 : f32
    %0 = vector.broadcast %cst : f32 to vector<360x512xf32>
    %c0 = arith.constant 0 : index
    %c0_0 = arith.constant 0 : index
    %c0_1 = arith.constant 0 : index
    %1 = vector.load %arg1[%c0, %c0_0, %c0_1] : memref<1x440x32xbf16, #tpu.memory_space<vmem>>, vector<1x360x32xbf16>
    %2 = vector.shape_cast %1 : vector<1x360x32xbf16> to vector<360x32xbf16>
    %c0_2 = arith.constant 0 : index
    %c0_3 = arith.constant 0 : index
    %3 = vector.load %arg2[%c0_2, %c0_3] : memref<288x512xbf16, #tpu.memory_space<vmem>>, vector<32x512xbf16>
    %cst_4 = arith.constant dense<0.000000e+00> : vector<360x512xf32>
    %4 = tpu.matmul %2, %3, %cst_4 {dimension_numbers = #tpu.dot_dimension_numbers<[1], [0], [0], [1], [0, 0, 1, 1], [], []>} : vector<360x32xbf16>, vector<32x512xbf16>, vector<360x512xf32> -> vector<360x512xf32>
    %5 = arith.addf %0, %4 : vector<360x512xf32>
    %c0_5 = arith.constant 0 : index
    %c1 = arith.constant 1 : index
    %c0_6 = arith.constant 0 : index
    %6 = vector.load %arg1[%c0_5, %c1, %c0_6] : memref<1x440x32xbf16, #tpu.memory_space<vmem>>, vector<1x360x32xbf16>
    %7 = vector.shape_cast %6 : vector<1x360x32xbf16> to vector<360x32xbf16>
    %c32 = arith.constant 32 : index
    %c0_7 = arith.constant 0 : index
    %8 = vector.load %arg2[%c32, %c0_7] : memref<288x512xbf16, #tpu.memory_space<vmem>>, vector<32x512xbf16>
    %cst_8 = arith.constant dense<0.000000e+00> : vector<360x512xf32>
    %9 = tpu.matmul %7, %8, %cst_8 {dimension_numbers = #tpu.dot_dimension_numbers<[1], [0], [0], [1], [0, 0, 1, 1], [], []>} : vector<360x32xbf16>, vector<32x512xbf16>, vector<360x512xf32> -> vector<360x512xf32>
    %10 = arith.addf %5, %9 : vector<360x512xf32>
    %c0_9 = arith.constant 0 : index
    %c2 = arith.constant 2 : index
    %c0_10 = arith.constant 0 : index
    %11 = vector.load %arg1[%c0_9, %c2, %c0_10] : memref<1x440x32xbf16, #tpu.memory_space<vmem>>, vector<1x360x32xbf16>
    %12 = vector.shape_cast %11 : vector<1x360x32xbf16> to vector<360x32xbf16>
    %c64 = arith.constant 64 : index
    %c0_11 = arith.constant 0 : index
    %13 = vector.load %arg2[%c64, %c0_11] : memref<288x512xbf16, #tpu.memory_space<vmem>>, vector<32x512xbf16>
    %cst_12 = arith.constant dense<0.000000e+00> : vector<360x512xf32>
    %14 = tpu.matmul %12, %13, %cst_12 {dimension_numbers = #tpu.dot_dimension_numbers<[1], [0], [0], [1], [0, 0, 1, 1], [], []>} : vector<360x32xbf16>, vector<32x512xbf16>, vector<360x512xf32> -> vector<360x512xf32>
    %15 = arith.addf %10, %14 : vector<360x512xf32>
    %c0_13 = arith.constant 0 : index
    %c20 = arith.constant 20 : index
    %c0_14 = arith.constant 0 : index
    %16 = vector.load %arg1[%c0_13, %c20, %c0_14] : memref<1x440x32xbf16, #tpu.memory_space<vmem>>, vector<1x360x32xbf16>
    %17 = vector.shape_cast %16 : vector<1x360x32xbf16> to vector<360x32xbf16>
    %c96 = arith.constant 96 : index
    %c0_15 = arith.constant 0 : index
    %18 = vector.load %arg2[%c96, %c0_15] : memref<288x512xbf16, #tpu.memory_space<vmem>>, vector<32x512xbf16>
    %cst_16 = arith.constant dense<0.000000e+00> : vector<360x512xf32>
    %19 = tpu.matmul %17, %18, %cst_16 {dimension_numbers = #tpu.dot_dimension_numbers<[1], [0], [0], [1], [0, 0, 1, 1], [], []>} : vector<360x32xbf16>, vector<32x512xbf16>, vector<360x512xf32> -> vector<360x512xf32>
    %20 = arith.addf %15, %19 : vector<360x512xf32>
    %c0_17 = arith.constant 0 : index
    %c21 = arith.constant 21 : index
    %c0_18 = arith.constant 0 : index
    %21 = vector.load %arg1[%c0_17, %c21, %c0_18] : memref<1x440x32xbf16, #tpu.memory_space<vmem>>, vector<1x360x32xbf16>
    %22 = vector.shape_cast %21 : vector<1x360x32xbf16> to vector<360x32xbf16>
    %c128 = arith.constant 128 : index
    %c0_19 = arith.constant 0 : index
    %23 = vector.load %arg2[%c128, %c0_19] : memref<288x512xbf16, #tpu.memory_space<vmem>>, vector<32x512xbf16>
    %cst_20 = arith.constant dense<0.000000e+00> : vector<360x512xf32>
    %24 = tpu.matmul %22, %23, %cst_20 {dimension_numbers = #tpu.dot_dimension_numbers<[1], [0], [0], [1], [0, 0, 1, 1], [], []>} : vector<360x32xbf16>, vector<32x512xbf16>, vector<360x512xf32> -> vector<360x512xf32>
    %25 = arith.addf %20, %24 : vector<360x512xf32>
    %c0_21 = arith.constant 0 : index
    %c22 = arith.constant 22 : index
    %c0_22 = arith.constant 0 : index
    %26 = vector.load %arg1[%c0_21, %c22, %c0_22] : memref<1x440x32xbf16, #tpu.memory_space<vmem>>, vector<1x360x32xbf16>
    %27 = vector.shape_cast %26 : vector<1x360x32xbf16> to vector<360x32xbf16>
    %c160 = arith.constant 160 : index
    %c0_23 = arith.constant 0 : index
    %28 = vector.load %arg2[%c160, %c0_23] : memref<288x512xbf16, #tpu.memory_space<vmem>>, vector<32x512xbf16>
    %cst_24 = arith.constant dense<0.000000e+00> : vector<360x512xf32>
    %29 = tpu.matmul %27, %28, %cst_24 {dimension_numbers = #tpu.dot_dimension_numbers<[1], [0], [0], [1], [0, 0, 1, 1], [], []>} : vector<360x32xbf16>, vector<32x512xbf16>, vector<360x512xf32> -> vector<360x512xf32>
    %30 = arith.addf %25, %29 : vector<360x512xf32>
    %c0_25 = arith.constant 0 : index
    %c40 = arith.constant 40 : index
    %c0_26 = arith.constant 0 : index
    %31 = vector.load %arg1[%c0_25, %c40, %c0_26] : memref<1x440x32xbf16, #tpu.memory_space<vmem>>, vector<1x360x32xbf16>
    %32 = vector.shape_cast %31 : vector<1x360x32xbf16> to vector<360x32xbf16>
    %c192 = arith.constant 192 : index
    %c0_27 = arith.constant 0 : index
    %33 = vector.load %arg2[%c192, %c0_27] : memref<288x512xbf16, #tpu.memory_space<vmem>>, vector<32x512xbf16>
    %cst_28 = arith.constant dense<0.000000e+00> : vector<360x512xf32>
    %34 = tpu.matmul %32, %33, %cst_28 {dimension_numbers = #tpu.dot_dimension_numbers<[1], [0], [0], [1], [0, 0, 1, 1], [], []>} : vector<360x32xbf16>, vector<32x512xbf16>, vector<360x512xf32> -> vector<360x512xf32>
    %35 = arith.addf %30, %34 : vector<360x512xf32>
    %c0_29 = arith.constant 0 : index
    %c41 = arith.constant 41 : index
    %c0_30 = arith.constant 0 : index
    %36 = vector.load %arg1[%c0_29, %c41, %c0_30] : memref<1x440x32xbf16, #tpu.memory_space<vmem>>, vector<1x360x32xbf16>
    %37 = vector.shape_cast %36 : vector<1x360x32xbf16> to vector<360x32xbf16>
    %c224 = arith.constant 224 : index
    %c0_31 = arith.constant 0 : index
    %38 = vector.load %arg2[%c224, %c0_31] : memref<288x512xbf16, #tpu.memory_space<vmem>>, vector<32x512xbf16>
    %cst_32 = arith.constant dense<0.000000e+00> : vector<360x512xf32>
    %39 = tpu.matmul %37, %38, %cst_32 {dimension_numbers = #tpu.dot_dimension_numbers<[1], [0], [0], [1], [0, 0, 1, 1], [], []>} : vector<360x32xbf16>, vector<32x512xbf16>, vector<360x512xf32> -> vector<360x512xf32>
    %40 = arith.addf %35, %39 : vector<360x512xf32>
    %c0_33 = arith.constant 0 : index
    %c42 = arith.constant 42 : index
    %c0_34 = arith.constant 0 : index
    %41 = vector.load %arg1[%c0_33, %c42, %c0_34] : memref<1x440x32xbf16, #tpu.memory_space<vmem>>, vector<1x360x32xbf16>
    %42 = vector.shape_cast %41 : vector<1x360x32xbf16> to vector<360x32xbf16>
    %c256 = arith.constant 256 : index
    %c0_35 = arith.constant 0 : index
    %43 = vector.load %arg2[%c256, %c0_35] : memref<288x512xbf16, #tpu.memory_space<vmem>>, vector<32x512xbf16>
    %cst_36 = arith.constant dense<0.000000e+00> : vector<360x512xf32>
    %44 = tpu.matmul %42, %43, %cst_36 {dimension_numbers = #tpu.dot_dimension_numbers<[1], [0], [0], [1], [0, 0, 1, 1], [], []>} : vector<360x32xbf16>, vector<32x512xbf16>, vector<360x512xf32> -> vector<360x512xf32>
    %45 = arith.addf %40, %44 : vector<360x512xf32>
    %c0_37 = arith.constant 0 : index
    %c0_38 = arith.constant 0 : index
    %46 = vector.load %arg3[%c0_37, %c0_38] : memref<1x512xf32, #tpu.memory_space<vmem>>, vector<1x512xf32>
    %47 = vector.broadcast %46 : vector<1x512xf32> to vector<360x512xf32>
    %48 = arith.addf %45, %47 : vector<360x512xf32>
    %cst_39 = arith.constant 0.000000e+00 : f32
    %49 = vector.broadcast %cst_39 : f32 to vector<360x512xf32>
    %50 = arith.maximumf %48, %49 : vector<360x512xf32>
    %51 = arith.truncf %50 : vector<360x512xf32> to vector<360x512xbf16>
    %c0_40 = arith.constant 0 : index
    %c0_41 = arith.constant 0 : index
    %c0_42 = arith.constant 0 : index
    %52 = vector.load %arg4[%c0_40, %c0_41, %c0_42] : memref<1x360x512xbf16, #tpu.memory_space<vmem>>, vector<1x360x512xbf16>
    %53 = vector.shape_cast %52 : vector<1x360x512xbf16> to vector<360x512xbf16>
    %54 = vector.shape_cast %51 : vector<360x512xbf16> to vector<1x360x512xbf16>
    tpu.vector_store %arg4[%c0_40, %c0_41, %c0_42], %54 {strides = array<i32>} : memref<1x360x512xbf16, #tpu.memory_space<vmem>>, vector<1x360x512xbf16>,
    return
  }
  func.func @transform_0(%arg0: i32) -> (i32, i32, i32) {
    %c0_i32 = arith.constant 0 : i32
    %c0_i32_0 = arith.constant 0 : i32
    %c0_i32_1 = arith.constant 0 : i32
    return %arg0, %c0_i32, %c0_i32_0 : i32, i32, i32
  }
  func.func @transform_1(%arg0: i32) -> (i32, i32) {
    %c0_i32 = arith.constant 0 : i32
    %c0_i32_0 = arith.constant 0 : i32
    %c0_i32_1 = arith.constant 0 : i32
    return %c0_i32, %c0_i32_0 : i32, i32
  }
  func.func @transform_2(%arg0: i32) -> (i32, i32) {
    %c0_i32 = arith.constant 0 : i32
    %c0_i32_0 = arith.constant 0 : i32
    %c0_i32_1 = arith.constant 0 : i32
    return %c0_i32, %c0_i32_0 : i32, i32
  }
  func.func @transform_3(%arg0: i32) -> (i32, i32, i32) {
    %c0_i32 = arith.constant 0 : i32
    %c0_i32_0 = arith.constant 0 : i32
    %c0_i32_1 = arith.constant 0 : i32
    return %arg0, %c0_i32, %c0_i32_0 : i32, i32, i32
  }
}

module attributes {stable_mosaic.version = 11 : i64} {
  func.func @_aux_kernel(%arg0: i32, %arg1: memref<256x32xbf16, #tpu.memory_space<vmem>>, %arg2: memref<32x32xbf16, #tpu.memory_space<vmem>>, %arg3: memref<1x32xf32, #tpu.memory_space<vmem>>, %arg4: memref<32x128xbf16, #tpu.memory_space<vmem>>, %arg5: memref<1x128xf32, #tpu.memory_space<vmem>>, %arg6: memref<256x128xf32, #tpu.memory_space<vmem>>) attributes {dimension_semantics = [#tpu.dimension_semantics<parallel>], iteration_bounds = array<i64: 2>, scalar_prefetch = 0 : i64, scratch_operands = 0 : i64, tpu.core_type = #tpu.core_type<tc>, window_params = [{transform_indices = @transform_0, window_bounds = array<i64: 256, 32>}, {pipeline_mode = #tpu.pipeline_mode<synchronous>, transform_indices = @transform_1, window_bounds = array<i64: 32, 32>}, {pipeline_mode = #tpu.pipeline_mode<synchronous>, transform_indices = @transform_2, window_bounds = array<i64: 1, 32>}, {pipeline_mode = #tpu.pipeline_mode<synchronous>, transform_indices = @transform_3, window_bounds = array<i64: 32, 128>}, {pipeline_mode = #tpu.pipeline_mode<synchronous>, transform_indices = @transform_4, window_bounds = array<i64: 1, 128>}, {transform_indices = @transform_5, window_bounds = array<i64: 256, 128>}]} {
    %c0 = arith.constant 0 : index
    %c0_0 = arith.constant 0 : index
    %0 = vector.load %arg1[%c0, %c0_0] : memref<256x32xbf16, #tpu.memory_space<vmem>>, vector<256x32xbf16>
    %c0_1 = arith.constant 0 : index
    %c0_2 = arith.constant 0 : index
    %1 = vector.load %arg2[%c0_1, %c0_2] : memref<32x32xbf16, #tpu.memory_space<vmem>>, vector<32x32xbf16>
    %cst = arith.constant dense<0.000000e+00> : vector<256x32xf32>
    %2 = tpu.matmul %0, %1, %cst {dimension_numbers = #tpu.dot_dimension_numbers<[1], [0], [0], [1], [0, 0, 1, 1], [], []>} : vector<256x32xbf16>, vector<32x32xbf16>, vector<256x32xf32> -> vector<256x32xf32>
    %c0_3 = arith.constant 0 : index
    %c0_4 = arith.constant 0 : index
    %3 = vector.load %arg3[%c0_3, %c0_4] : memref<1x32xf32, #tpu.memory_space<vmem>>, vector<1x32xf32>
    %4 = vector.broadcast %3 : vector<1x32xf32> to vector<256x32xf32>
    %5 = arith.addf %2, %4 : vector<256x32xf32>
    %cst_5 = arith.constant 0.000000e+00 : f32
    %6 = vector.broadcast %cst_5 : f32 to vector<256x32xf32>
    %7 = arith.maximumf %5, %6 : vector<256x32xf32>
    %8 = arith.truncf %7 : vector<256x32xf32> to vector<256x32xbf16>
    %c0_6 = arith.constant 0 : index
    %c0_7 = arith.constant 0 : index
    %9 = vector.load %arg4[%c0_6, %c0_7] : memref<32x128xbf16, #tpu.memory_space<vmem>>, vector<32x128xbf16>
    %cst_8 = arith.constant dense<0.000000e+00> : vector<256x128xf32>
    %10 = tpu.matmul %8, %9, %cst_8 {dimension_numbers = #tpu.dot_dimension_numbers<[1], [0], [0], [1], [0, 0, 1, 1], [], []>} : vector<256x32xbf16>, vector<32x128xbf16>, vector<256x128xf32> -> vector<256x128xf32>
    %c0_9 = arith.constant 0 : index
    %c0_10 = arith.constant 0 : index
    %11 = vector.load %arg5[%c0_9, %c0_10] : memref<1x128xf32, #tpu.memory_space<vmem>>, vector<1x128xf32>
    %12 = vector.broadcast %11 : vector<1x128xf32> to vector<256x128xf32>
    %13 = arith.addf %10, %12 : vector<256x128xf32>
    %c0_11 = arith.constant 0 : index
    %c0_12 = arith.constant 0 : index
    %14 = vector.load %arg6[%c0_11, %c0_12] : memref<256x128xf32, #tpu.memory_space<vmem>>, vector<256x128xf32>
    tpu.vector_store %arg6[%c0_11, %c0_12], %13 {strides = array<i32>} : memref<256x128xf32, #tpu.memory_space<vmem>>, vector<256x128xf32>,
    return
  }
  func.func @transform_0(%arg0: i32) -> (i32, i32) {
    %c0_i32 = arith.constant 0 : i32
    %c0_i32_0 = arith.constant 0 : i32
    return %arg0, %c0_i32 : i32, i32
  }
  func.func @transform_1(%arg0: i32) -> (i32, i32) {
    %c0_i32 = arith.constant 0 : i32
    %c0_i32_0 = arith.constant 0 : i32
    %c0_i32_1 = arith.constant 0 : i32
    return %c0_i32, %c0_i32_0 : i32, i32
  }
  func.func @transform_2(%arg0: i32) -> (i32, i32) {
    %c0_i32 = arith.constant 0 : i32
    %c0_i32_0 = arith.constant 0 : i32
    %c0_i32_1 = arith.constant 0 : i32
    return %c0_i32, %c0_i32_0 : i32, i32
  }
  func.func @transform_3(%arg0: i32) -> (i32, i32) {
    %c0_i32 = arith.constant 0 : i32
    %c0_i32_0 = arith.constant 0 : i32
    %c0_i32_1 = arith.constant 0 : i32
    return %c0_i32, %c0_i32_0 : i32, i32
  }
  func.func @transform_4(%arg0: i32) -> (i32, i32) {
    %c0_i32 = arith.constant 0 : i32
    %c0_i32_0 = arith.constant 0 : i32
    %c0_i32_1 = arith.constant 0 : i32
    return %c0_i32, %c0_i32_0 : i32, i32
  }
  func.func @transform_5(%arg0: i32) -> (i32, i32) {
    %c0_i32 = arith.constant 0 : i32
    %c0_i32_0 = arith.constant 0 : i32
    return %arg0, %c0_i32 : i32, i32
  }
}

module attributes {stable_mosaic.version = 11 : i64} {
  func.func @_gather_kernel(%arg0: i32, %arg1: i32, %arg2: memref<1x8x256xf32, #tpu.memory_space<vmem>>, %arg3: memref<1x256x512xbf16, #tpu.memory_space<vmem>>, %arg4: memref<1x8x512xf32, #tpu.memory_space<vmem>>, %arg5: memref<8x1xf32, #tpu.memory_space<vmem>>, %arg6: memref<8x1xf32, #tpu.memory_space<vmem>>, %arg7: memref<8x512xf32, #tpu.memory_space<vmem>>) attributes {dimension_semantics = [#tpu.dimension_semantics<parallel>, #tpu.dimension_semantics<arbitrary>], iteration_bounds = array<i64: 2, 1>, scalar_prefetch = 0 : i64, scratch_operands = 3 : i64, tpu.core_type = #tpu.core_type<tc>, window_params = [{transform_indices = @transform_0, window_bounds = array<i64: 1, 8, 256>}, {transform_indices = @transform_1, window_bounds = array<i64: 1, 256, 512>}, {transform_indices = @transform_2, window_bounds = array<i64: 1, 8, 512>}]} {
    %c0_i32 = arith.constant 0 : i32
    %0 = arith.cmpi eq, %arg1, %c0_i32 : i32
    %1 = arith.extui %0 : i1 to i32
    %c0_i32_0 = arith.constant 0 : i32
    %2 = arith.cmpi ne, %1, %c0_i32_0 : i32
    scf.if %2 {
      %cst_22 = arith.constant 0xFF800000 : f32
      %33 = vector.broadcast %cst_22 : f32 to vector<8x1xf32>
      %c0_23 = arith.constant 0 : index
      %c0_24 = arith.constant 0 : index
      %34 = vector.load %arg5[%c0_23, %c0_24] : memref<8x1xf32, #tpu.memory_space<vmem>>, vector<8x1xf32>
      tpu.vector_store %arg5[%c0_23, %c0_24], %33 {strides = array<i32>} : memref<8x1xf32, #tpu.memory_space<vmem>>, vector<8x1xf32>,
      %cst_25 = arith.constant 0.000000e+00 : f32
      %35 = vector.broadcast %cst_25 : f32 to vector<8x1xf32>
      %c0_26 = arith.constant 0 : index
      %c0_27 = arith.constant 0 : index
      %36 = vector.load %arg6[%c0_26, %c0_27] : memref<8x1xf32, #tpu.memory_space<vmem>>, vector<8x1xf32>
      tpu.vector_store %arg6[%c0_26, %c0_27], %35 {strides = array<i32>} : memref<8x1xf32, #tpu.memory_space<vmem>>, vector<8x1xf32>,
      %cst_28 = arith.constant 0.000000e+00 : f32
      %37 = vector.broadcast %cst_28 : f32 to vector<8x512xf32>
      %c0_29 = arith.constant 0 : index
      %c0_30 = arith.constant 0 : index
      %38 = vector.load %arg7[%c0_29, %c0_30] : memref<8x512xf32, #tpu.memory_space<vmem>>, vector<8x512xf32>
      tpu.vector_store %arg7[%c0_29, %c0_30], %37 {strides = array<i32>} : memref<8x512xf32, #tpu.memory_space<vmem>>, vector<8x512xf32>,
    } else {
    }
    %c0 = arith.constant 0 : index
    %c0_1 = arith.constant 0 : index
    %c0_2 = arith.constant 0 : index
    %3 = vector.load %arg2[%c0, %c0_1, %c0_2] : memref<1x8x256xf32, #tpu.memory_space<vmem>>, vector<1x8x256xf32>
    %4 = vector.shape_cast %3 : vector<1x8x256xf32> to vector<8x256xf32>
    %c0_3 = arith.constant 0 : index
    %c0_4 = arith.constant 0 : index
    %5 = vector.load %arg5[%c0_3, %c0_4] : memref<8x1xf32, #tpu.memory_space<vmem>>, vector<8x1xf32>
    %cst = arith.constant dense<0xFF800000> : vector<8xf32>
    %6 = vector.multi_reduction <maximumf>, %4, %cst [1] : vector<8x256xf32> to vector<8xf32>
    %7 = vector.shape_cast %6 : vector<8xf32> to vector<8x1xf32>
    %8 = arith.maximumf %5, %7 : vector<8x1xf32>
    %9 = arith.subf %5, %8 : vector<8x1xf32>
    %10 = math.exp %9 : vector<8x1xf32>
    %11 = vector.broadcast %8 : vector<8x1xf32> to vector<8x256xf32>
    %12 = arith.subf %4, %11 : vector<8x256xf32>
    %13 = math.exp %12 : vector<8x256xf32>
    %c0_5 = arith.constant 0 : index
    %c0_6 = arith.constant 0 : index
    %14 = vector.load %arg6[%c0_5, %c0_6] : memref<8x1xf32, #tpu.memory_space<vmem>>, vector<8x1xf32>
    %15 = arith.mulf %10, %14 : vector<8x1xf32>
    %cst_7 = arith.constant dense<0.000000e+00> : vector<8xf32>
    %16 = vector.multi_reduction <add>, %13, %cst_7 [1] : vector<8x256xf32> to vector<8xf32>
    %17 = vector.shape_cast %16 : vector<8xf32> to vector<8x1xf32>
    %18 = arith.addf %15, %17 : vector<8x1xf32>
    %c0_8 = arith.constant 0 : index
    %c0_9 = arith.constant 0 : index
    %19 = vector.load %arg6[%c0_8, %c0_9] : memref<8x1xf32, #tpu.memory_space<vmem>>, vector<8x1xf32>
    tpu.vector_store %arg6[%c0_8, %c0_9], %18 {strides = array<i32>} : memref<8x1xf32, #tpu.memory_space<vmem>>, vector<8x1xf32>,
    %c0_10 = arith.constant 0 : index
    %c0_11 = arith.constant 0 : index
    %20 = vector.load %arg7[%c0_10, %c0_11] : memref<8x512xf32, #tpu.memory_space<vmem>>, vector<8x512xf32>
    %21 = vector.broadcast %10 : vector<8x1xf32> to vector<8x512xf32>
    %22 = arith.mulf %21, %20 : vector<8x512xf32>
    %23 = arith.truncf %13 : vector<8x256xf32> to vector<8x256xbf16>
    %c0_12 = arith.constant 0 : index
    %c0_13 = arith.constant 0 : index
    %c0_14 = arith.constant 0 : index
    %24 = vector.load %arg3[%c0_12, %c0_13, %c0_14] : memref<1x256x512xbf16, #tpu.memory_space<vmem>>, vector<1x256x512xbf16>
    %25 = vector.shape_cast %24 : vector<1x256x512xbf16> to vector<256x512xbf16>
    %cst_15 = arith.constant dense<0.000000e+00> : vector<8x512xf32>
    %26 = tpu.matmul %23, %25, %cst_15 {dimension_numbers = #tpu.dot_dimension_numbers<[1], [0], [0], [1], [0, 0, 1, 1], [], []>} : vector<8x256xbf16>, vector<256x512xbf16>, vector<8x512xf32> -> vector<8x512xf32>
    %27 = arith.addf %22, %26 : vector<8x512xf32>
    %c0_16 = arith.constant 0 : index
    %c0_17 = arith.constant 0 : index
    %28 = vector.load %arg7[%c0_16, %c0_17] : memref<8x512xf32, #tpu.memory_space<vmem>>, vector<8x512xf32>
    tpu.vector_store %arg7[%c0_16, %c0_17], %27 {strides = array<i32>} : memref<8x512xf32, #tpu.memory_space<vmem>>, vector<8x512xf32>,
    %c0_18 = arith.constant 0 : index
    %c0_19 = arith.constant 0 : index
    %29 = vector.load %arg5[%c0_18, %c0_19] : memref<8x1xf32, #tpu.memory_space<vmem>>, vector<8x1xf32>
    tpu.vector_store %arg5[%c0_18, %c0_19], %8 {strides = array<i32>} : memref<8x1xf32, #tpu.memory_space<vmem>>, vector<8x1xf32>,
    %c0_i32_20 = arith.constant 0 : i32
    %30 = arith.cmpi eq, %arg1, %c0_i32_20 : i32
    %31 = arith.extui %30 : i1 to i32
    %c0_i32_21 = arith.constant 0 : i32
    %32 = arith.cmpi ne, %31, %c0_i32_21 : i32
    scf.if %32 {
      %c0_22 = arith.constant 0 : index
      %c0_23 = arith.constant 0 : index
      %33 = vector.load %arg7[%c0_22, %c0_23] : memref<8x512xf32, #tpu.memory_space<vmem>>, vector<8x512xf32>
      %c0_24 = arith.constant 0 : index
      %c0_25 = arith.constant 0 : index
      %34 = vector.load %arg6[%c0_24, %c0_25] : memref<8x1xf32, #tpu.memory_space<vmem>>, vector<8x1xf32>
      %35 = tpu.reciprocal %34 {approx = true} : vector<8x1xf32> -> vector<8x1xf32>
      %36 = vector.broadcast %35 : vector<8x1xf32> to vector<8x512xf32>
      %37 = arith.mulf %33, %36 : vector<8x512xf32>
      %c0_26 = arith.constant 0 : index
      %c0_27 = arith.constant 0 : index
      %c0_28 = arith.constant 0 : index
      %38 = vector.load %arg4[%c0_26, %c0_27, %c0_28] : memref<1x8x512xf32, #tpu.memory_space<vmem>>, vector<1x8x512xf32>
      %39 = vector.shape_cast %38 : vector<1x8x512xf32> to vector<8x512xf32>
      %40 = vector.shape_cast %37 : vector<8x512xf32> to vector<1x8x512xf32>
      tpu.vector_store %arg4[%c0_26, %c0_27, %c0_28], %40 {strides = array<i32>} : memref<1x8x512xf32, #tpu.memory_space<vmem>>, vector<1x8x512xf32>,
    } else {
    }
    return
  }
  func.func @transform_0(%arg0: i32, %arg1: i32) -> (i32, i32, i32) {
    %c0_i32 = arith.constant 0 : i32
    %c0_i32_0 = arith.constant 0 : i32
    return %arg0, %c0_i32, %arg1 : i32, i32, i32
  }
  func.func @transform_1(%arg0: i32, %arg1: i32) -> (i32, i32, i32) {
    %c0_i32 = arith.constant 0 : i32
    %c0_i32_0 = arith.constant 0 : i32
    return %arg0, %arg1, %c0_i32 : i32, i32, i32
  }
  func.func @transform_2(%arg0: i32, %arg1: i32) -> (i32, i32, i32) {
    %c0_i32 = arith.constant 0 : i32
    %c0_i32_0 = arith.constant 0 : i32
    %c0_i32_1 = arith.constant 0 : i32
    return %arg0, %c0_i32, %c0_i32_0 : i32, i32, i32
  }
}

module attributes {stable_mosaic.version = 11 : i64} {
  func.func @_object_kv_kernel(%arg0: i32, %arg1: memref<128x512xf32, #tpu.memory_space<vmem>>, %arg2: memref<512x256xbf16, #tpu.memory_space<vmem>>, %arg3: memref<1x256xf32, #tpu.memory_space<vmem>>, %arg4: memref<256x256xbf16, #tpu.memory_space<vmem>>, %arg5: memref<1x256xf32, #tpu.memory_space<vmem>>, %arg6: memref<512x256xbf16, #tpu.memory_space<vmem>>, %arg7: memref<1x256xf32, #tpu.memory_space<vmem>>, %arg8: memref<128x256xbf16, #tpu.memory_space<vmem>>, %arg9: memref<128x256xbf16, #tpu.memory_space<vmem>>) attributes {dimension_semantics = [#tpu.dimension_semantics<parallel>], iteration_bounds = array<i64: 2>, scalar_prefetch = 0 : i64, scratch_operands = 0 : i64, tpu.core_type = #tpu.core_type<tc>, window_params = [{transform_indices = @transform_0, window_bounds = array<i64: 128, 512>}, {pipeline_mode = #tpu.pipeline_mode<synchronous>, transform_indices = @transform_1, window_bounds = array<i64: 512, 256>}, {pipeline_mode = #tpu.pipeline_mode<synchronous>, transform_indices = @transform_2, window_bounds = array<i64: 1, 256>}, {pipeline_mode = #tpu.pipeline_mode<synchronous>, transform_indices = @transform_3, window_bounds = array<i64: 256, 256>}, {pipeline_mode = #tpu.pipeline_mode<synchronous>, transform_indices = @transform_4, window_bounds = array<i64: 1, 256>}, {pipeline_mode = #tpu.pipeline_mode<synchronous>, transform_indices = @transform_5, window_bounds = array<i64: 512, 256>}, {pipeline_mode = #tpu.pipeline_mode<synchronous>, transform_indices = @transform_6, window_bounds = array<i64: 1, 256>}, {transform_indices = @transform_7, window_bounds = array<i64: 128, 256>}, {transform_indices = @transform_8, window_bounds = array<i64: 128, 256>}]} {
    %c0 = arith.constant 0 : index
    %c0_0 = arith.constant 0 : index
    %0 = vector.load %arg1[%c0, %c0_0] : memref<128x512xf32, #tpu.memory_space<vmem>>, vector<128x512xf32>
    %1 = arith.truncf %0 : vector<128x512xf32> to vector<128x512xbf16>
    %c0_1 = arith.constant 0 : index
    %c0_2 = arith.constant 0 : index
    %2 = vector.load %arg2[%c0_1, %c0_2] : memref<512x256xbf16, #tpu.memory_space<vmem>>, vector<512x256xbf16>
    %cst = arith.constant dense<0.000000e+00> : vector<128x256xf32>
    %3 = tpu.matmul %1, %2, %cst {dimension_numbers = #tpu.dot_dimension_numbers<[1], [0], [0], [1], [0, 0, 1, 1], [], []>} : vector<128x512xbf16>, vector<512x256xbf16>, vector<128x256xf32> -> vector<128x256xf32>
    %c0_3 = arith.constant 0 : index
    %c0_4 = arith.constant 0 : index
    %4 = vector.load %arg3[%c0_3, %c0_4] : memref<1x256xf32, #tpu.memory_space<vmem>>, vector<1x256xf32>
    %5 = vector.broadcast %4 : vector<1x256xf32> to vector<128x256xf32>
    %6 = arith.addf %3, %5 : vector<128x256xf32>
    %cst_5 = arith.constant 0.000000e+00 : f32
    %7 = vector.broadcast %cst_5 : f32 to vector<128x256xf32>
    %8 = arith.maximumf %6, %7 : vector<128x256xf32>
    %9 = arith.truncf %8 : vector<128x256xf32> to vector<128x256xbf16>
    %c0_6 = arith.constant 0 : index
    %c0_7 = arith.constant 0 : index
    %10 = vector.load %arg4[%c0_6, %c0_7] : memref<256x256xbf16, #tpu.memory_space<vmem>>, vector<256x256xbf16>
    %cst_8 = arith.constant dense<0.000000e+00> : vector<128x256xf32>
    %11 = tpu.matmul %9, %10, %cst_8 {dimension_numbers = #tpu.dot_dimension_numbers<[1], [0], [0], [1], [0, 0, 1, 1], [], []>} : vector<128x256xbf16>, vector<256x256xbf16>, vector<128x256xf32> -> vector<128x256xf32>
    %c0_9 = arith.constant 0 : index
    %c0_10 = arith.constant 0 : index
    %12 = vector.load %arg5[%c0_9, %c0_10] : memref<1x256xf32, #tpu.memory_space<vmem>>, vector<1x256xf32>
    %13 = vector.broadcast %12 : vector<1x256xf32> to vector<128x256xf32>
    %14 = arith.addf %11, %13 : vector<128x256xf32>
    %cst_11 = arith.constant 0.000000e+00 : f32
    %15 = vector.broadcast %cst_11 : f32 to vector<128x256xf32>
    %16 = arith.maximumf %14, %15 : vector<128x256xf32>
    %c0_12 = arith.constant 0 : index
    %c0_13 = arith.constant 0 : index
    %17 = vector.load %arg6[%c0_12, %c0_13] : memref<512x256xbf16, #tpu.memory_space<vmem>>, vector<512x256xbf16>
    %cst_14 = arith.constant dense<0.000000e+00> : vector<128x256xf32>
    %18 = tpu.matmul %1, %17, %cst_14 {dimension_numbers = #tpu.dot_dimension_numbers<[1], [0], [0], [1], [0, 0, 1, 1], [], []>} : vector<128x512xbf16>, vector<512x256xbf16>, vector<128x256xf32> -> vector<128x256xf32>
    %c0_15 = arith.constant 0 : index
    %c0_16 = arith.constant 0 : index
    %19 = vector.load %arg7[%c0_15, %c0_16] : memref<1x256xf32, #tpu.memory_space<vmem>>, vector<1x256xf32>
    %20 = vector.broadcast %19 : vector<1x256xf32> to vector<128x256xf32>
    %21 = arith.addf %18, %20 : vector<128x256xf32>
    %cst_17 = arith.constant 0.000000e+00 : f32
    %22 = vector.broadcast %cst_17 : f32 to vector<128x256xf32>
    %23 = arith.maximumf %21, %22 : vector<128x256xf32>
    %24 = arith.truncf %16 : vector<128x256xf32> to vector<128x256xbf16>
    %c0_18 = arith.constant 0 : index
    %c0_19 = arith.constant 0 : index
    %25 = vector.load %arg8[%c0_18, %c0_19] : memref<128x256xbf16, #tpu.memory_space<vmem>>, vector<128x256xbf16>
    tpu.vector_store %arg8[%c0_18, %c0_19], %24 {strides = array<i32>} : memref<128x256xbf16, #tpu.memory_space<vmem>>, vector<128x256xbf16>,
    %26 = arith.truncf %23 : vector<128x256xf32> to vector<128x256xbf16>
    %c0_20 = arith.constant 0 : index
    %c0_21 = arith.constant 0 : index
    %27 = vector.load %arg9[%c0_20, %c0_21] : memref<128x256xbf16, #tpu.memory_space<vmem>>, vector<128x256xbf16>
    tpu.vector_store %arg9[%c0_20, %c0_21], %26 {strides = array<i32>} : memref<128x256xbf16, #tpu.memory_space<vmem>>, vector<128x256xbf16>,
    return
  }
  func.func @transform_0(%arg0: i32) -> (i32, i32) {
    %c0_i32 = arith.constant 0 : i32
    %c0_i32_0 = arith.constant 0 : i32
    return %arg0, %c0_i32 : i32, i32
  }
  func.func @transform_1(%arg0: i32) -> (i32, i32) {
    %c0_i32 = arith.constant 0 : i32
    %c0_i32_0 = arith.constant 0 : i32
    %c0_i32_1 = arith.constant 0 : i32
    return %c0_i32, %c0_i32_0 : i32, i32
  }
  func.func @transform_2(%arg0: i32) -> (i32, i32) {
    %c0_i32 = arith.constant 0 : i32
    %c0_i32_0 = arith.constant 0 : i32
    %c0_i32_1 = arith.constant 0 : i32
    return %c0_i32, %c0_i32_0 : i32, i32
  }
  func.func @transform_3(%arg0: i32) -> (i32, i32) {
    %c0_i32 = arith.constant 0 : i32
    %c0_i32_0 = arith.constant 0 : i32
    %c0_i32_1 = arith.constant 0 : i32
    return %c0_i32, %c0_i32_0 : i32, i32
  }
  func.func @transform_4(%arg0: i32) -> (i32, i32) {
    %c0_i32 = arith.constant 0 : i32
    %c0_i32_0 = arith.constant 0 : i32
    %c0_i32_1 = arith.constant 0 : i32
    return %c0_i32, %c0_i32_0 : i32, i32
  }
  func.func @transform_5(%arg0: i32) -> (i32, i32) {
    %c0_i32 = arith.constant 0 : i32
    %c0_i32_0 = arith.constant 0 : i32
    %c0_i32_1 = arith.constant 0 : i32
    return %c0_i32, %c0_i32_0 : i32, i32
  }
  func.func @transform_6(%arg0: i32) -> (i32, i32) {
    %c0_i32 = arith.constant 0 : i32
    %c0_i32_0 = arith.constant 0 : i32
    %c0_i32_1 = arith.constant 0 : i32
    return %c0_i32, %c0_i32_0 : i32, i32
  }
  func.func @transform_7(%arg0: i32) -> (i32, i32) {
    %c0_i32 = arith.constant 0 : i32
    %c0_i32_0 = arith.constant 0 : i32
    return %arg0, %c0_i32 : i32, i32
  }
  func.func @transform_8(%arg0: i32) -> (i32, i32) {
    %c0_i32 = arith.constant 0 : i32
    %c0_i32_0 = arith.constant 0 : i32
    return %arg0, %c0_i32 : i32, i32
  }
}

module attributes {stable_mosaic.version = 11 : i64} {
  func.func @_pixel_mega_kernel(%arg0: i32, %arg1: i32, %arg2: memref<1x128x512xbf16, #tpu.memory_space<vmem>>, %arg3: memref<1x256x128xbf16, #tpu.memory_space<vmem>>, %arg4: memref<1x128x256xbf16, #tpu.memory_space<vmem>>, %arg5: memref<512x256xbf16, #tpu.memory_space<vmem>>, %arg6: memref<1x256xf32, #tpu.memory_space<vmem>>, %arg7: memref<256x256xbf16, #tpu.memory_space<vmem>>, %arg8: memref<1x256xf32, #tpu.memory_space<vmem>>, %arg9: memref<256x512xbf16, #tpu.memory_space<vmem>>, %arg10: memref<1x512xf32, #tpu.memory_space<vmem>>, %arg11: memref<512x512xbf16, #tpu.memory_space<vmem>>, %arg12: memref<512x512xbf16, #tpu.memory_space<vmem>>, %arg13: memref<1x512xf32, #tpu.memory_space<vmem>>, %arg14: memref<512x128xbf16, #tpu.memory_space<vmem>>, %arg15: memref<1x128xf32, #tpu.memory_space<vmem>>, %arg16: memref<1x128x128xf32, #tpu.memory_space<vmem>>) attributes {dimension_semantics = [#tpu.dimension_semantics<parallel>, #tpu.dimension_semantics<parallel>], iteration_bounds = array<i64: 2, 2>, scalar_prefetch = 0 : i64, scratch_operands = 0 : i64, tpu.core_type = #tpu.core_type<tc>, window_params = [{transform_indices = @transform_0, window_bounds = array<i64: 1, 128, 512>}, {transform_indices = @transform_1, window_bounds = array<i64: 1, 256, 128>}, {transform_indices = @transform_2, window_bounds = array<i64: 1, 128, 256>}, {pipeline_mode = #tpu.pipeline_mode<synchronous>, transform_indices = @transform_3, window_bounds = array<i64: 512, 256>}, {pipeline_mode = #tpu.pipeline_mode<synchronous>, transform_indices = @transform_4, window_bounds = array<i64: 1, 256>}, {pipeline_mode = #tpu.pipeline_mode<synchronous>, transform_indices = @transform_5, window_bounds = array<i64: 256, 256>}, {pipeline_mode = #tpu.pipeline_mode<synchronous>, transform_indices = @transform_6, window_bounds = array<i64: 1, 256>}, {pipeline_mode = #tpu.pipeline_mode<synchronous>, transform_indices = @transform_7, window_bounds = array<i64: 256, 512>}, {pipeline_mode = #tpu.pipeline_mode<synchronous>, transform_indices = @transform_8, window_bounds = array<i64: 1, 512>}, {pipeline_mode = #tpu.pipeline_mode<synchronous>, transform_indices = @transform_9, window_bounds = array<i64: 512, 512>}, {pipeline_mode = #tpu.pipeline_mode<synchronous>, transform_indices = @transform_10, window_bounds = array<i64: 512, 512>}, {pipeline_mode = #tpu.pipeline_mode<synchronous>, transform_indices = @transform_11, window_bounds = array<i64: 1, 512>}, {pipeline_mode = #tpu.pipeline_mode<synchronous>, transform_indices = @transform_12, window_bounds = array<i64: 512, 128>}, {pipeline_mode = #tpu.pipeline_mode<synchronous>, transform_indices = @transform_13, window_bounds = array<i64: 1, 128>}, {transform_indices = @transform_14, window_bounds = array<i64: 1, 128, 128>}]} {
    %c0 = arith.constant 0 : index
    %c0_0 = arith.constant 0 : index
    %c0_1 = arith.constant 0 : index
    %0 = vector.load %arg2[%c0, %c0_0, %c0_1] : memref<1x128x512xbf16, #tpu.memory_space<vmem>>, vector<1x128x512xbf16>
    %1 = vector.shape_cast %0 : vector<1x128x512xbf16> to vector<128x512xbf16>
    %c0_2 = arith.constant 0 : index
    %c0_3 = arith.constant 0 : index
    %2 = vector.load %arg5[%c0_2, %c0_3] : memref<512x256xbf16, #tpu.memory_space<vmem>>, vector<512x256xbf16>
    %cst = arith.constant dense<0.000000e+00> : vector<128x256xf32>
    %3 = tpu.matmul %1, %2, %cst {dimension_numbers = #tpu.dot_dimension_numbers<[1], [0], [0], [1], [0, 0, 1, 1], [], []>} : vector<128x512xbf16>, vector<512x256xbf16>, vector<128x256xf32> -> vector<128x256xf32>
    %c0_4 = arith.constant 0 : index
    %c0_5 = arith.constant 0 : index
    %4 = vector.load %arg6[%c0_4, %c0_5] : memref<1x256xf32, #tpu.memory_space<vmem>>, vector<1x256xf32>
    %5 = vector.broadcast %4 : vector<1x256xf32> to vector<128x256xf32>
    %6 = arith.addf %3, %5 : vector<128x256xf32>
    %cst_6 = arith.constant 0.000000e+00 : f32
    %7 = vector.broadcast %cst_6 : f32 to vector<128x256xf32>
    %8 = arith.maximumf %6, %7 : vector<128x256xf32>
    %9 = arith.truncf %8 : vector<128x256xf32> to vector<128x256xbf16>
    %c0_7 = arith.constant 0 : index
    %c0_8 = arith.constant 0 : index
    %10 = vector.load %arg7[%c0_7, %c0_8] : memref<256x256xbf16, #tpu.memory_space<vmem>>, vector<256x256xbf16>
    %cst_9 = arith.constant dense<0.000000e+00> : vector<128x256xf32>
    %11 = tpu.matmul %9, %10, %cst_9 {dimension_numbers = #tpu.dot_dimension_numbers<[1], [0], [0], [1], [0, 0, 1, 1], [], []>} : vector<128x256xbf16>, vector<256x256xbf16>, vector<128x256xf32> -> vector<128x256xf32>
    %c0_10 = arith.constant 0 : index
    %c0_11 = arith.constant 0 : index
    %12 = vector.load %arg8[%c0_10, %c0_11] : memref<1x256xf32, #tpu.memory_space<vmem>>, vector<1x256xf32>
    %13 = vector.broadcast %12 : vector<1x256xf32> to vector<128x256xf32>
    %14 = arith.addf %11, %13 : vector<128x256xf32>
    %cst_12 = arith.constant 0.000000e+00 : f32
    %15 = vector.broadcast %cst_12 : f32 to vector<128x256xf32>
    %16 = arith.maximumf %14, %15 : vector<128x256xf32>
    %17 = arith.truncf %16 : vector<128x256xf32> to vector<128x256xbf16>
    %c0_13 = arith.constant 0 : index
    %c0_14 = arith.constant 0 : index
    %c0_15 = arith.constant 0 : index
    %18 = vector.load %arg3[%c0_13, %c0_14, %c0_15] : memref<1x256x128xbf16, #tpu.memory_space<vmem>>, vector<1x256x128xbf16>
    %19 = vector.shape_cast %18 : vector<1x256x128xbf16> to vector<256x128xbf16>
    %cst_16 = arith.constant dense<0.000000e+00> : vector<128x128xf32>
    %20 = tpu.matmul %17, %19, %cst_16 {dimension_numbers = #tpu.dot_dimension_numbers<[1], [0], [0], [1], [0, 0, 1, 1], [], []>} : vector<128x256xbf16>, vector<256x128xbf16>, vector<128x128xf32> -> vector<128x128xf32>
    %cst_17 = arith.constant 6.250000e-02 : f32
    %21 = vector.broadcast %cst_17 : f32 to vector<128x128xf32>
    %22 = arith.mulf %20, %21 : vector<128x128xf32>
    %23 = tpu.iota {dimensions = array<i32: 1>} : vector<128x128xi32>
    %c8_i32 = arith.constant 8 : i32
    %24 = vector.broadcast %c8_i32 : i32 to vector<128x128xi32>
    %25 = arith.cmpi slt, %23, %24 : vector<128x128xi32>
    %cst_18 = arith.constant -1.000000e+30 : f32
    %26 = vector.broadcast %cst_18 : f32 to vector<128x128xf32>
    %27 = arith.select %25, %22, %26 : vector<128x128xi1>, vector<128x128xf32>
    %cst_19 = arith.constant dense<0xFF800000> : vector<128xf32>
    %28 = vector.multi_reduction <maximumf>, %27, %cst_19 [1] : vector<128x128xf32> to vector<128xf32>
    %29 = vector.shape_cast %28 : vector<128xf32> to vector<128x1xf32>
    %30 = vector.broadcast %29 : vector<128x1xf32> to vector<128x128xf32>
    %31 = arith.subf %27, %30 : vector<128x128xf32>
    %32 = math.exp %31 : vector<128x128xf32>
    %cst_20 = arith.constant dense<0.000000e+00> : vector<128xf32>
    %33 = vector.multi_reduction <add>, %32, %cst_20 [1] : vector<128x128xf32> to vector<128xf32>
    %34 = vector.shape_cast %33 : vector<128xf32> to vector<128x1xf32>
    %35 = tpu.reciprocal %34 {approx = true} : vector<128x1xf32> -> vector<128x1xf32>
    %36 = vector.broadcast %35 : vector<128x1xf32> to vector<128x128xf32>
    %37 = arith.mulf %32, %36 : vector<128x128xf32>
    %38 = arith.truncf %37 : vector<128x128xf32> to vector<128x128xbf16>
    %c0_21 = arith.constant 0 : index
    %c0_22 = arith.constant 0 : index
    %c0_23 = arith.constant 0 : index
    %39 = vector.load %arg4[%c0_21, %c0_22, %c0_23] : memref<1x128x256xbf16, #tpu.memory_space<vmem>>, vector<1x128x256xbf16>
    %40 = vector.shape_cast %39 : vector<1x128x256xbf16> to vector<128x256xbf16>
    %cst_24 = arith.constant dense<0.000000e+00> : vector<128x256xf32>
    %41 = tpu.matmul %38, %40, %cst_24 {dimension_numbers = #tpu.dot_dimension_numbers<[1], [0], [0], [1], [0, 0, 1, 1], [], []>} : vector<128x128xbf16>, vector<128x256xbf16>, vector<128x256xf32> -> vector<128x256xf32>
    %42 = arith.truncf %41 : vector<128x256xf32> to vector<128x256xbf16>
    %c0_25 = arith.constant 0 : index
    %c0_26 = arith.constant 0 : index
    %43 = vector.load %arg9[%c0_25, %c0_26] : memref<256x512xbf16, #tpu.memory_space<vmem>>, vector<256x512xbf16>
    %cst_27 = arith.constant dense<0.000000e+00> : vector<128x512xf32>
    %44 = tpu.matmul %42, %43, %cst_27 {dimension_numbers = #tpu.dot_dimension_numbers<[1], [0], [0], [1], [0, 0, 1, 1], [], []>} : vector<128x256xbf16>, vector<256x512xbf16>, vector<128x512xf32> -> vector<128x512xf32>
    %c0_28 = arith.constant 0 : index
    %c0_29 = arith.constant 0 : index
    %45 = vector.load %arg10[%c0_28, %c0_29] : memref<1x512xf32, #tpu.memory_space<vmem>>, vector<1x512xf32>
    %46 = vector.broadcast %45 : vector<1x512xf32> to vector<128x512xf32>
    %47 = arith.addf %44, %46 : vector<128x512xf32>
    %cst_30 = arith.constant 0.000000e+00 : f32
    %48 = vector.broadcast %cst_30 : f32 to vector<128x512xf32>
    %49 = arith.maximumf %47, %48 : vector<128x512xf32>
    %50 = arith.truncf %49 : vector<128x512xf32> to vector<128x512xbf16>
    %c0_31 = arith.constant 0 : index
    %c0_32 = arith.constant 0 : index
    %51 = vector.load %arg11[%c0_31, %c0_32] : memref<512x512xbf16, #tpu.memory_space<vmem>>, vector<512x512xbf16>
    %cst_33 = arith.constant dense<0.000000e+00> : vector<128x512xf32>
    %52 = tpu.matmul %50, %51, %cst_33 {dimension_numbers = #tpu.dot_dimension_numbers<[1], [0], [0], [1], [0, 0, 1, 1], [], []>} : vector<128x512xbf16>, vector<512x512xbf16>, vector<128x512xf32> -> vector<128x512xf32>
    %c0_34 = arith.constant 0 : index
    %c0_35 = arith.constant 0 : index
    %53 = vector.load %arg12[%c0_34, %c0_35] : memref<512x512xbf16, #tpu.memory_space<vmem>>, vector<512x512xbf16>
    %cst_36 = arith.constant dense<0.000000e+00> : vector<128x512xf32>
    %54 = tpu.matmul %1, %53, %cst_36 {dimension_numbers = #tpu.dot_dimension_numbers<[1], [0], [0], [1], [0, 0, 1, 1], [], []>} : vector<128x512xbf16>, vector<512x512xbf16>, vector<128x512xf32> -> vector<128x512xf32>
    %55 = arith.addf %52, %54 : vector<128x512xf32>
    %c0_37 = arith.constant 0 : index
    %c0_38 = arith.constant 0 : index
    %56 = vector.load %arg13[%c0_37, %c0_38] : memref<1x512xf32, #tpu.memory_space<vmem>>, vector<1x512xf32>
    %57 = vector.broadcast %56 : vector<1x512xf32> to vector<128x512xf32>
    %58 = arith.addf %55, %57 : vector<128x512xf32>
    %cst_39 = arith.constant 0.000000e+00 : f32
    %59 = vector.broadcast %cst_39 : f32 to vector<128x512xf32>
    %60 = arith.maximumf %58, %59 : vector<128x512xf32>
    %61 = arith.truncf %60 : vector<128x512xf32> to vector<128x512xbf16>
    %c0_40 = arith.constant 0 : index
    %c0_41 = arith.constant 0 : index
    %62 = vector.load %arg14[%c0_40, %c0_41] : memref<512x128xbf16, #tpu.memory_space<vmem>>, vector<512x128xbf16>
    %cst_42 = arith.constant dense<0.000000e+00> : vector<128x128xf32>
    %63 = tpu.matmul %61, %62, %cst_42 {dimension_numbers = #tpu.dot_dimension_numbers<[1], [0], [0], [1], [0, 0, 1, 1], [], []>} : vector<128x512xbf16>, vector<512x128xbf16>, vector<128x128xf32> -> vector<128x128xf32>
    %c0_43 = arith.constant 0 : index
    %c0_44 = arith.constant 0 : index
    %64 = vector.load %arg15[%c0_43, %c0_44] : memref<1x128xf32, #tpu.memory_space<vmem>>, vector<1x128xf32>
    %65 = vector.broadcast %64 : vector<1x128xf32> to vector<128x128xf32>
    %66 = arith.addf %63, %65 : vector<128x128xf32>
    %c0_45 = arith.constant 0 : index
    %c0_46 = arith.constant 0 : index
    %c0_47 = arith.constant 0 : index
    %67 = vector.load %arg16[%c0_45, %c0_46, %c0_47] : memref<1x128x128xf32, #tpu.memory_space<vmem>>, vector<1x128x128xf32>
    %68 = vector.shape_cast %67 : vector<1x128x128xf32> to vector<128x128xf32>
    %69 = vector.shape_cast %66 : vector<128x128xf32> to vector<1x128x128xf32>
    tpu.vector_store %arg16[%c0_45, %c0_46, %c0_47], %69 {strides = array<i32>} : memref<1x128x128xf32, #tpu.memory_space<vmem>>, vector<1x128x128xf32>,
    return
  }
  func.func @transform_0(%arg0: i32, %arg1: i32) -> (i32, i32, i32) {
    %c0_i32 = arith.constant 0 : i32
    %c0_i32_0 = arith.constant 0 : i32
    return %arg0, %arg1, %c0_i32 : i32, i32, i32
  }
  func.func @transform_1(%arg0: i32, %arg1: i32) -> (i32, i32, i32) {
    %c0_i32 = arith.constant 0 : i32
    %c0_i32_0 = arith.constant 0 : i32
    %c0_i32_1 = arith.constant 0 : i32
    return %arg0, %c0_i32, %c0_i32_0 : i32, i32, i32
  }
  func.func @transform_2(%arg0: i32, %arg1: i32) -> (i32, i32, i32) {
    %c0_i32 = arith.constant 0 : i32
    %c0_i32_0 = arith.constant 0 : i32
    %c0_i32_1 = arith.constant 0 : i32
    return %arg0, %c0_i32, %c0_i32_0 : i32, i32, i32
  }
  func.func @transform_3(%arg0: i32, %arg1: i32) -> (i32, i32) {
    %c0_i32 = arith.constant 0 : i32
    %c0_i32_0 = arith.constant 0 : i32
    %c0_i32_1 = arith.constant 0 : i32
    return %c0_i32, %c0_i32_0 : i32, i32
  }
  func.func @transform_4(%arg0: i32, %arg1: i32) -> (i32, i32) {
    %c0_i32 = arith.constant 0 : i32
    %c0_i32_0 = arith.constant 0 : i32
    %c0_i32_1 = arith.constant 0 : i32
    return %c0_i32, %c0_i32_0 : i32, i32
  }
  func.func @transform_5(%arg0: i32, %arg1: i32) -> (i32, i32) {
    %c0_i32 = arith.constant 0 : i32
    %c0_i32_0 = arith.constant 0 : i32
    %c0_i32_1 = arith.constant 0 : i32
    return %c0_i32, %c0_i32_0 : i32, i32
  }
  func.func @transform_6(%arg0: i32, %arg1: i32) -> (i32, i32) {
    %c0_i32 = arith.constant 0 : i32
    %c0_i32_0 = arith.constant 0 : i32
    %c0_i32_1 = arith.constant 0 : i32
    return %c0_i32, %c0_i32_0 : i32, i32
  }
  func.func @transform_7(%arg0: i32, %arg1: i32) -> (i32, i32) {
    %c0_i32 = arith.constant 0 : i32
    %c0_i32_0 = arith.constant 0 : i32
    %c0_i32_1 = arith.constant 0 : i32
    return %c0_i32, %c0_i32_0 : i32, i32
  }
  func.func @transform_8(%arg0: i32, %arg1: i32) -> (i32, i32) {
    %c0_i32 = arith.constant 0 : i32
    %c0_i32_0 = arith.constant 0 : i32
    %c0_i32_1 = arith.constant 0 : i32
    return %c0_i32, %c0_i32_0 : i32, i32
  }
  func.func @transform_9(%arg0: i32, %arg1: i32) -> (i32, i32) {
    %c0_i32 = arith.constant 0 : i32
    %c0_i32_0 = arith.constant 0 : i32
    %c0_i32_1 = arith.constant 0 : i32
    return %c0_i32, %c0_i32_0 : i32, i32
  }
  func.func @transform_10(%arg0: i32, %arg1: i32) -> (i32, i32) {
    %c0_i32 = arith.constant 0 : i32
    %c0_i32_0 = arith.constant 0 : i32
    %c0_i32_1 = arith.constant 0 : i32
    return %c0_i32, %c0_i32_0 : i32, i32
  }
  func.func @transform_11(%arg0: i32, %arg1: i32) -> (i32, i32) {
    %c0_i32 = arith.constant 0 : i32
    %c0_i32_0 = arith.constant 0 : i32
    %c0_i32_1 = arith.constant 0 : i32
    return %c0_i32, %c0_i32_0 : i32, i32
  }
  func.func @transform_12(%arg0: i32, %arg1: i32) -> (i32, i32) {
    %c0_i32 = arith.constant 0 : i32
    %c0_i32_0 = arith.constant 0 : i32
    %c0_i32_1 = arith.constant 0 : i32
    return %c0_i32, %c0_i32_0 : i32, i32
  }
  func.func @transform_13(%arg0: i32, %arg1: i32) -> (i32, i32) {
    %c0_i32 = arith.constant 0 : i32
    %c0_i32_0 = arith.constant 0 : i32
    %c0_i32_1 = arith.constant 0 : i32
    return %c0_i32, %c0_i32_0 : i32, i32
  }
  func.func @transform_14(%arg0: i32, %arg1: i32) -> (i32, i32, i32) {
    %c0_i32 = arith.constant 0 : i32
    %c0_i32_0 = arith.constant 0 : i32
    return %arg0, %arg1, %c0_i32 : i32, i32, i32
  }
}

</mosaic_0001>

<bundles_post_ra>
// kernel: ocr_forward.5
= control target key start
LH: loop header
LB: loop body
LE: loop exit
PB: predicated region body
PF: predicated region fallthrough
CT: control target
= control target key end

     0   :  { %s1181_s18 = smov 0   ;;  %s1372_s0 = inlined_call_operand.vmem [shape: bf16[512,32], index: 0, kind: input, shape index: {}]   ;;  %s1373_s1 = inlined_call_operand.vmem [shape: bf16[32,32], index: 1, kind: input, shape index: {}]   ;;  %s1374_s2 = inlined_call_operand.vmem [shape: f32[1,32], index: 2, kind: input, shape index: {}]   ;;  %s1375_s3 = inlined_call_operand.vmem [shape: bf16[32,128], index: 3, kind: input, shape index: {}]   ;;  %s1376_s4 = inlined_call_operand.vmem [shape: f32[1,128], index: 4, kind: input, shape index: {}]   ;;  %s1377_s5 = inlined_call_operand.vmem [shape: f32[512,128], index: 5, kind: output, shape index: {}]  }
   0x1 LB: > { %s942_s19 = sadd.s32 4294967295, %s1149_s18   ;;  %p946_p0 = scmp.ge.s32.totalorder %s1149_s18, 1  ;;  %s1149_s18 = sphi %s1181_s18, %s15_s18  }
   0x2   : > { %p188_p1 = scmp.lt.s32.totalorder %s1149_s18, 3 }
   0x4   : > { %p189_p2 = pnand %p946_p0, %p188_p1 }
   0x5   : > { %v1123_v0 = vld [vmem:[%s1373_s1] sm:$0xff] (!%p189_p2)   ;;  %s947_s22 = sshll.u32 (!%p189_p2), %s942_s19, 5  ;;  %v1124_v1 = vld [vmem:[%s1373_s1 + $0x8] sm:$0xff] (!%p189_p2)   ;;  %vm364_vm0 = vcmask (!%p189_p2), 261120  }
   0x6   : > { %192 = sbr.rel (%p189_p2) target bundleno = 514 (0x202), region = 40  ;;  %p217_p3 = scmp.lt.s32.totalorder (!%p189_p2), %s947_s22, 63  ;;  %1043 = vmatprep.subr.bf16.mxu0 (!%p189_p2), %v1123_v0  ;;  %v1141_v18 = vld [vmem:[%s1375_s3] sm:$0xff] (!%p189_p2)   ;;  %v1142_v19 = vld [vmem:[%s1375_s3 + $0x8] sm:$0xff] (!%p189_p2)  }
   0x7   : > { %1044 = vmatpush3.bf16.msra.mxu0 (!%p189_p2), %v1123_v0  ;;  %1079 = vmatprep.subr.bf16.mxu1 (!%p189_p2), %v1141_v18  ;;  %v1244_v20 = vld [vmem:[%s1374_s2] ss:$0 sm:$0xff] (!%p189_p2) }
   0x8   : > { %1045 = vmatprep.subr.bf16.mxu0 (!%p189_p2), %v1124_v1  ;;  %1080 = vmatpush3.bf16.msra.mxu1 (!%p189_p2), %v1141_v18 }
   0x9   : > { %1081 = vmatprep.subr.bf16.mxu1 (!%p189_p2), %v1142_v19 }
   0xb   : > { %1046 = vmatpush3.bf16.msra.mxu0 (!%p189_p2), %v1124_v1 }
   0xc   : > { %1082 = vmatpush3.bf16.msra.mxu1 (!%p189_p2), %v1142_v19 }
   0xd   : > { %s1379_s22 = smov (!%p217_p3, %s947_s22), 63 }
   0xe   : > { %s948_s25 = sshll.u32 %s1379_s22, 2  ;;  %s950_s10 = sshll.u32 %s1379_s22, 3 }
   0xf   : > { %s1201_s28 = scalar_lea.vmem %s1372_s0, %s948_s25  ;;  %s1303_s15 = scalar_lea.vmem %s1377_s5, %s950_s10 }
  0x10   : > { %v1125_v2 = vld [vmem:[%s1201_s28] sm:$0xff]   ;;  %v1126_v3 = vld [vmem:[%s1201_s28 + $0x8] sm:$0xff]   ;;  %v1127_v4 = vld [vmem:[%s1201_s28 + $0x10] sm:$0xff]  }
  0x11   : > { %1047 = vmatprep.mubr.msk.bf16.mxu0 %vm364_vm0, %v1125_v2  ;;  %v1128_v5 = vld [vmem:[%s1201_s28 + $0x18] sm:$0xff]   ;;  %v1129_v6 = vld [vmem:[%s1201_s28 + $0x20] sm:$0xff]   ;;  %v1130_v7 = vld [vmem:[%s1201_s28 + $0x28] sm:$0xff]  }
  0x12   : > { %1048 = vmatmul.mubr.msk.bf16.vlgmr.msra.gmra.mrb[0].mxu0 %vm364_vm0, %v1126_v3  ;;  %v1131_v8 = vld [vmem:[%s1201_s28 + $0x30] sm:$0xff]   ;;  %v1132_v9 = vld [vmem:[%s1201_s28 + $0x38] sm:$0xff]   ;;  %v1133_v10 = vld [vmem:[%s1201_s28 + $0x40] sm:$0xff]  }
  0x13   : > { %1051 = vmatprep.mubr.msk.bf16.mxu0 %vm364_vm0, %v1127_v4  ;;  %v1134_v11 = vld [vmem:[%s1201_s28 + $0x48] sm:$0xff]   ;;  %v1135_v12 = vld [vmem:[%s1201_s28 + $0x50] sm:$0xff]   ;;  %v1136_v13 = vld [vmem:[%s1201_s28 + $0x58] sm:$0xff]  }
  0x14   : > { %v1137_v14 = vld [vmem:[%s1201_s28 + $0x60] sm:$0xff]   ;;  %v1138_v15 = vld [vmem:[%s1201_s28 + $0x68] sm:$0xff]   ;;  %v1139_v16 = vld [vmem:[%s1201_s28 + $0x70] sm:$0xff]  }
  0x15   : > { %v1140_v17 = vld [vmem:[%s1201_s28 + $0x78] sm:$0xff]  }
  0x1a   : > { %1052 = vmatmul.mubr.msk.bf16.gmra.mrb[4].mxu0 %vm364_vm0, %v1128_v5 }
  0x1b   : > { %1055 = vmatprep.mubr.msk.bf16.mxu0 %vm364_vm0, %v1129_v6 }
  0x22   : > { %1056 = vmatmul.mubr.msk.bf16.gmra.mrb[8].mxu0 %vm364_vm0, %v1130_v7 }
  0x23   : > { %1059 = vmatprep.mubr.msk.bf16.mxu0 %vm364_vm0, %v1131_v8 }
  0x2a   : > { %1060 = vmatmul.mubr.msk.bf16.gmra.mrb[12].mxu0 %vm364_vm0, %v1132_v9 }
  0x2b   : > { %1063 = vmatprep.mubr.msk.bf16.mxu0 %vm364_vm0, %v1133_v10 }
  0x32   : > { %1064 = vmatmul.mubr.msk.bf16.gmra.mrb[16].mxu0 %vm364_vm0, %v1134_v11 }
  0x33   : > { %1067 = vmatprep.mubr.msk.bf16.mxu0 %vm364_vm0, %v1135_v12 }
  0x3a   : > { %1068 = vmatmul.mubr.msk.bf16.gmra.mrb[20].mxu0 %vm364_vm0, %v1136_v13 }
  0x3b   : > { %1071 = vmatprep.mubr.msk.bf16.mxu0 %vm364_vm0, %v1137_v14 }
  0x42   : > { %1072 = vmatmul.mubr.msk.bf16.gmra.mrb[24].mxu0 %vm364_vm0, %v1138_v15 }
  0x43   : > { %1075 = vmatprep.mubr.msk.bf16.mxu0 %vm364_vm0, %v1139_v16 }
  0x4a   : > { %1076 = vmatmul.mubr.msk.bf16.gmra.mrb[28].mxu0 %vm364_vm0, %v1140_v17 }
  0xe5   : > { %v1049_v21 = vpop.f32.mrb[0].mxu0 }
  0xe6   : > { %v456_v22 = vadd.f32 %v1049_v21, %v1244_v20  ;;  %v447_v23 = vpop.f32.mrb[1].mxu0 }
  0xe7   : > { %v448_v24 = vadd.f32 %v1244_v20, %v447_v23  ;;  %v1050_v25 = vpop.f32.mrb[2].mxu0 }
  0xe8   : > { %v459_v26 = vadd.f32 %v1050_v25, %v1244_v20  ;;  %v450_v27 = vpop.f32.mrb[3].mxu0  ;;  %v576_v29 = vmax.f32 %v456_v22, 0.0 }
  0xe9   : > { %v451_v28 = vadd.f32 %v1244_v20, %v450_v27  ;;  %v574_v31 = vmax.f32 %v448_v24, 0.0 }
  0xea   : > { %v577_v30 = vmax.f32 %v459_v26, 0.0 }
  0xeb   : > { %v575_v32 = vmax.f32 %v451_v28, 0.0 }
  0xec   : > { %v607_v33 = vpack.c.bf16 %v577_v30, %v576_v29 }
  0xed   : > { %v1053_v34 = vpop.f32.mrb[4].mxu0  ;;  %v606_v35 = vpack.c.bf16 %v575_v32, %v574_v31 }
  0xee   : > { %v472_v36 = vadd.f32 %v1053_v34, %v1244_v20  ;;  %v463_v37 = vpop.f32.mrb[5].mxu0 }
  0xef   : > { %v464_v38 = vadd.f32 %v1244_v20, %v463_v37  ;;  %v1054_v39 = vpop.f32.mrb[6].mxu0  ;;  %1083 = vmatprep.mubr.msk.bf16.mxu1 %vm364_vm0, %v606_v35 }
  0xf0   : > { %v475_v40 = vadd.f32 %v1054_v39, %v1244_v20  ;;  %v466_v41 = vpop.f32.mrb[7].mxu0  ;;  %1084 = vmatmul.mubr.msk.bf16.vlgmr.msra.gmra.mrb[0].mxu1 %vm364_vm0, %v607_v33  ;;  %v580_v43 = vmax.f32 %v472_v36, 0.0 }
  0xf1   : > { %v467_v42 = vadd.f32 %v1244_v20, %v466_v41  ;;  %v578_v45 = vmax.f32 %v464_v38, 0.0 }
  0xf2   : > { %v581_v44 = vmax.f32 %v475_v40, 0.0 }
  0xf3   : > { %v579_v46 = vmax.f32 %v467_v42, 0.0 }
  0xf4   : > { %v609_v47 = vpack.c.bf16 %v581_v44, %v580_v43 }
  0xf5   : > { %v608_v48 = vpack.c.bf16 %v579_v46, %v578_v45  ;;  %v1057_v49 = vpop.f32.mrb[8].mxu0 }
  0xf6   : > { %v488_v50 = vadd.f32 %v1057_v49, %v1244_v20  ;;  %v479_v51 = vpop.f32.mrb[9].mxu0 }
  0xf7   : > { %v480_v52 = vadd.f32 %v1244_v20, %v479_v51  ;;  %v1058_v53 = vpop.f32.mrb[10].mxu0  ;;  %1087 = vmatprep.mubr.msk.bf16.mxu1 %vm364_vm0, %v608_v48 }
  0xf8   : > { %v491_v54 = vadd.f32 %v1058_v53, %v1244_v20  ;;  %v482_v55 = vpop.f32.mrb[11].mxu0  ;;  %1088 = vmatmul.mubr.msk.bf16.gmra.mrb[4].mxu1 %vm364_vm0, %v609_v47  ;;  %v584_v57 = vmax.f32 %v488_v50, 0.0 }
  0xf9   : > { %v483_v56 = vadd.f32 %v1244_v20, %v482_v55  ;;  %v582_v59 = vmax.f32 %v480_v52, 0.0 }
  0xfa   : > { %v585_v58 = vmax.f32 %v491_v54, 0.0 }
  0xfb   : > { %v583_v60 = vmax.f32 %v483_v56, 0.0 }
  0xfc   : > { %v611_v61 = vpack.c.bf16 %v585_v58, %v584_v57 }
  0xfd   : > { %v610_v62 = vpack.c.bf16 %v583_v60, %v582_v59  ;;  %v1061_v63 = vpop.f32.mrb[12].mxu0 }
  0xfe   : > { %v504_v0 = vadd.f32 %v1061_v63, %v1244_v20  ;;  %v495_v1 = vpop.f32.mrb[13].mxu0 }
  0xff   : > { %v496_v2 = vadd.f32 %v1244_v20, %v495_v1  ;;  %v1062_v3 = vpop.f32.mrb[14].mxu0  ;;  %1091 = vmatprep.mubr.msk.bf16.mxu1 %vm364_vm0, %v610_v62 }
 0x100   : > { %v507_v4 = vadd.f32 %v1062_v3, %v1244_v20  ;;  %v498_v5 = vpop.f32.mrb[15].mxu0  ;;  %1092 = vmatmul.mubr.msk.bf16.gmra.mrb[8].mxu1 %vm364_vm0, %v611_v61  ;;  %v588_v7 = vmax.f32 %v504_v0, 0.0 }
 0x101   : > { %v499_v6 = vadd.f32 %v1244_v20, %v498_v5  ;;  %v586_v9 = vmax.f32 %v496_v2, 0.0 }
 0x102   : > { %v589_v8 = vmax.f32 %v507_v4, 0.0 }
 0x103   : > { %v587_v10 = vmax.f32 %v499_v6, 0.0  ;;  %v1298_v6 = vld [vmem:[%s1376_s4] ss:$0 sm:$0xff] }
 0x104   : > { %v613_v11 = vpack.c.bf16 %v589_v8, %v588_v7 }
 0x105   : > { %v612_v12 = vpack.c.bf16 %v587_v10, %v586_v9  ;;  %v1065_v13 = vpop.f32.mrb[16].mxu0 }
 0x106   : > { %v520_v14 = vadd.f32 %v1065_v13, %v1244_v20  ;;  %v511_v15 = vpop.f32.mrb[17].mxu0 }
 0x107   : > { %v512_v16 = vadd.f32 %v1244_v20, %v511_v15  ;;  %v1066_v17 = vpop.f32.mrb[18].mxu0  ;;  %1095 = vmatprep.mubr.msk.bf16.mxu1 %vm364_vm0, %v612_v12 }
 0x108   : > { %v523_v18 = vadd.f32 %v1066_v17, %v1244_v20  ;;  %v514_v19 = vpop.f32.mrb[19].mxu0  ;;  %1096 = vmatmul.mubr.msk.bf16.gmra.mrb[12].mxu1 %vm364_vm0, %v613_v11  ;;  %v592_v22 = vmax.f32 %v520_v14, 0.0 }
 0x109   : > { %v515_v21 = vadd.f32 %v1244_v20, %v514_v19  ;;  %v590_v24 = vmax.f32 %v512_v16, 0.0 }
 0x10a   : > { %v593_v23 = vmax.f32 %v523_v18, 0.0 }
 0x10b   : > { %v591_v25 = vmax.f32 %v515_v21, 0.0 }
 0x10c   : > { %v615_v26 = vpack.c.bf16 %v593_v23, %v592_v22 }
 0x10d   : > { %v614_v27 = vpack.c.bf16 %v591_v25, %v590_v24  ;;  %v1069_v28 = vpop.f32.mrb[20].mxu0 }
 0x10e   : > { %v536_v29 = vadd.f32 %v1069_v28, %v1244_v20  ;;  %v527_v30 = vpop.f32.mrb[21].mxu0 }
 0x10f   : > { %v528_v31 = vadd.f32 %v1244_v20, %v527_v30  ;;  %v1070_v32 = vpop.f32.mrb[22].mxu0  ;;  %1099 = vmatprep.mubr.msk.bf16.mxu1 %vm364_vm0, %v614_v27 }
 0x110   : > { %v539_v33 = vadd.f32 %v1070_v32, %v1244_v20  ;;  %v530_v34 = vpop.f32.mrb[23].mxu0  ;;  %1100 = vmatmul.mubr.msk.bf16.gmra.mrb[16].mxu1 %vm364_vm0, %v615_v26  ;;  %v596_v36 = vmax.f32 %v536_v29, 0.0 }
 0x111   : > { %v531_v35 = vadd.f32 %v1244_v20, %v530_v34  ;;  %v594_v38 = vmax.f32 %v528_v31, 0.0 }
 0x112   : > { %v597_v37 = vmax.f32 %v539_v33, 0.0 }
 0x113   : > { %v595_v39 = vmax.f32 %v531_v35, 0.0 }
 0x114   : > { %v617_v40 = vpack.c.bf16 %v597_v37, %v596_v36 }
 0x115   : > { %v616_v41 = vpack.c.bf16 %v595_v39, %v594_v38  ;;  %v1073_v42 = vpop.f32.mrb[24].mxu0 }
 0x116   : > { %v552_v43 = vadd.f32 %v1073_v42, %v1244_v20  ;;  %v543_v44 = vpop.f32.mrb[25].mxu0 }
 0x117   : > { %v544_v45 = vadd.f32 %v1244_v20, %v543_v44  ;;  %v1074_v46 = vpop.f32.mrb[26].mxu0  ;;  %1103 = vmatprep.mubr.msk.bf16.mxu1 %vm364_vm0, %v616_v41 }
 0x118   : > { %v555_v47 = vadd.f32 %v1074_v46, %v1244_v20  ;;  %v546_v48 = vpop.f32.mrb[27].mxu0  ;;  %1104 = vmatmul.mubr.msk.bf16.gmra.mrb[20].mxu1 %vm364_vm0, %v617_v40  ;;  %v600_v50 = vmax.f32 %v552_v43, 0.0 }
 0x119   : > { %v547_v49 = vadd.f32 %v1244_v20, %v546_v48  ;;  %v598_v52 = vmax.f32 %v544_v45, 0.0 }
 0x11a   : > { %v601_v51 = vmax.f32 %v555_v47, 0.0 }
 0x11b   : > { %v599_v53 = vmax.f32 %v547_v49, 0.0 }
 0x11c   : > { %v619_v54 = vpack.c.bf16 %v601_v51, %v600_v50 }
 0x11d   : > { %v618_v55 = vpack.c.bf16 %v599_v53, %v598_v52  ;;  %v1077_v56 = vpop.f32.mrb[28].mxu0 }
 0x11e   : > { %v568_v57 = vadd.f32 %v1077_v56, %v1244_v20  ;;  %v559_v58 = vpop.f32.mrb[29].mxu0 }
 0x11f   : > { %v560_v59 = vadd.f32 %v1244_v20, %v559_v58  ;;  %v1078_v60 = vpop.f32.mrb[30].mxu0  ;;  %1107 = vmatprep.mubr.msk.bf16.mxu1 %vm364_vm0, %v618_v55 }
 0x120   : > { %v571_v61 = vadd.f32 %v1078_v60, %v1244_v20  ;;  %v562_v62 = vpop.f32.mrb[31].mxu0  ;;  %1108 = vmatmul.mubr.msk.bf16.gmra.mrb[24].mxu1 %vm364_vm0, %v619_v54  ;;  %v604_v0 = vmax.f32 %v568_v57, 0.0 }
 0x121   : > { %v563_v63 = vadd.f32 %v1244_v20, %v562_v62  ;;  %v602_v2 = vmax.f32 %v560_v59, 0.0 }
 0x122   : > { %v605_v1 = vmax.f32 %v571_v61, 0.0 }
 0x123   : > { %v603_v3 = vmax.f32 %v563_v63, 0.0 }
 0x124   : > { %v621_v4 = vpack.c.bf16 %v605_v1, %v604_v0 }
 0x125   : > { %v620_v5 = vpack.c.bf16 %v603_v3, %v602_v2 }
 0x127   : > { %1111 = vmatprep.mubr.msk.bf16.mxu1 %vm364_vm0, %v620_v5 }
 0x128   : > { %1112 = vmatmul.mubr.msk.bf16.gmra.mrb[28].mxu1 %vm364_vm0, %v621_v4 }
 0x1c3   : > { %v1085_v20 = vpop.f32.mrb[0].mxu1 }
 0x1c4   : > { %v736_v7 = vadd.f32 %v1085_v20, %v1298_v6  ;;  %v727_v8 = vpop.f32.mrb[1].mxu1 }
 0x1c5   : > { %v728_v9 = vadd.f32 %v1298_v6, %v727_v8  ;;  %v1086_v10 = vpop.f32.mrb[2].mxu1 }
 0x1c6   : > { %856 = vst [vmem:[%s1303_s15 + $0x10] sm:$0xff] %v736_v7  ;;  %v739_v11 = vadd.f32 %v1086_v10, %v1298_v6  ;;  %v730_v12 = vpop.f32.mrb[3].mxu1 }
 0x1c7   : > { %854 = vst [vmem:[%s1303_s15] sm:$0xff] %v728_v9  ;;  %v731_v13 = vadd.f32 %v1298_v6, %v730_v12 }
 0x1c8   : > { %857 = vst [vmem:[%s1303_s15 + $0x18] sm:$0xff] %v739_v11 }
 0x1c9   : > { %855 = vst [vmem:[%s1303_s15 + $0x8] sm:$0xff] %v731_v13 }
 0x1cb   : > { %v1089_v14 = vpop.f32.mrb[4].mxu1 }
 0x1cc   : > { %v752_v15 = vadd.f32 %v1089_v14, %v1298_v6  ;;  %v743_v16 = vpop.f32.mrb[5].mxu1 }
 0x1cd   : > { %v744_v17 = vadd.f32 %v1298_v6, %v743_v16  ;;  %v1090_v18 = vpop.f32.mrb[6].mxu1 }
 0x1ce   : > { %860 = vst [vmem:[%s1303_s15 + $0x30] sm:$0xff] %v752_v15  ;;  %v755_v19 = vadd.f32 %v1090_v18, %v1298_v6  ;;  %v746_v21 = vpop.f32.mrb[7].mxu1 }
 0x1cf   : > { %858 = vst [vmem:[%s1303_s15 + $0x20] sm:$0xff] %v744_v17  ;;  %v747_v22 = vadd.f32 %v1298_v6, %v746_v21 }
 0x1d0   : > { %861 = vst [vmem:[%s1303_s15 + $0x38] sm:$0xff] %v755_v19 }
 0x1d1   : > { %859 = vst [vmem:[%s1303_s15 + $0x28] sm:$0xff] %v747_v22 }
 0x1d3   : > { %v1093_v23 = vpop.f32.mrb[8].mxu1 }
 0x1d4   : > { %v768_v24 = vadd.f32 %v1093_v23, %v1298_v6  ;;  %v759_v25 = vpop.f32.mrb[9].mxu1 }
 0x1d5   : > { %v760_v26 = vadd.f32 %v1298_v6, %v759_v25  ;;  %v1094_v27 = vpop.f32.mrb[10].mxu1 }
 0x1d6   : > { %864 = vst [vmem:[%s1303_s15 + $0x50] sm:$0xff] %v768_v24  ;;  %v771_v28 = vadd.f32 %v1094_v27, %v1298_v6  ;;  %v762_v29 = vpop.f32.mrb[11].mxu1 }
 0x1d7   : > { %862 = vst [vmem:[%s1303_s15 + $0x40] sm:$0xff] %v760_v26  ;;  %v763_v30 = vadd.f32 %v1298_v6, %v762_v29 }
 0x1d8   : > { %865 = vst [vmem:[%s1303_s15 + $0x58] sm:$0xff] %v771_v28 }
 0x1d9   : > { %863 = vst [vmem:[%s1303_s15 + $0x48] sm:$0xff] %v763_v30 }
 0x1db   : > { %v1097_v31 = vpop.f32.mrb[12].mxu1 }
 0x1dc   : > { %v784_v32 = vadd.f32 %v1097_v31, %v1298_v6  ;;  %v775_v33 = vpop.f32.mrb[13].mxu1 }
 0x1dd   : > { %v776_v34 = vadd.f32 %v1298_v6, %v775_v33  ;;  %v1098_v35 = vpop.f32.mrb[14].mxu1 }
 0x1de   : > { %868 = vst [vmem:[%s1303_s15 + $0x70] sm:$0xff] %v784_v32  ;;  %v787_v36 = vadd.f32 %v1098_v35, %v1298_v6  ;;  %v778_v37 = vpop.f32.mrb[15].mxu1 }
 0x1df   : > { %866 = vst [vmem:[%s1303_s15 + $0x60] sm:$0xff] %v776_v34  ;;  %v779_v38 = vadd.f32 %v1298_v6, %v778_v37 }
 0x1e0   : > { %869 = vst [vmem:[%s1303_s15 + $0x78] sm:$0xff] %v787_v36 }
 0x1e1   : > { %867 = vst [vmem:[%s1303_s15 + $0x68] sm:$0xff] %v779_v38 }
 0x1e3   : > { %v1101_v39 = vpop.f32.mrb[16].mxu1 }
 0x1e4   : > { %v800_v40 = vadd.f32 %v1101_v39, %v1298_v6  ;;  %v791_v41 = vpop.f32.mrb[17].mxu1 }
 0x1e5   : > { %v792_v42 = vadd.f32 %v1298_v6, %v791_v41  ;;  %v1102_v43 = vpop.f32.mrb[18].mxu1 }
 0x1e6   : > { %872 = vst [vmem:[%s1303_s15 + $0x90] sm:$0xff] %v800_v40  ;;  %v803_v44 = vadd.f32 %v1102_v43, %v1298_v6  ;;  %v794_v45 = vpop.f32.mrb[19].mxu1 }
 0x1e7   : > { %870 = vst [vmem:[%s1303_s15 + $0x80] sm:$0xff] %v792_v42  ;;  %v795_v46 = vadd.f32 %v1298_v6, %v794_v45 }
 0x1e8   : > { %873 = vst [vmem:[%s1303_s15 + $0x98] sm:$0xff] %v803_v44 }
 0x1e9   : > { %871 = vst [vmem:[%s1303_s15 + $0x88] sm:$0xff] %v795_v46 }
 0x1eb   : > { %v1105_v47 = vpop.f32.mrb[20].mxu1 }
 0x1ec   : > { %v816_v48 = vadd.f32 %v1105_v47, %v1298_v6  ;;  %v807_v49 = vpop.f32.mrb[21].mxu1 }
 0x1ed   : > { %v808_v50 = vadd.f32 %v1298_v6, %v807_v49  ;;  %v1106_v51 = vpop.f32.mrb[22].mxu1 }
 0x1ee   : > { %876 = vst [vmem:[%s1303_s15 + $0xb0] sm:$0xff] %v816_v48  ;;  %v819_v52 = vadd.f32 %v1106_v51, %v1298_v6  ;;  %v810_v53 = vpop.f32.mrb[23].mxu1 }
 0x1ef   : > { %874 = vst [vmem:[%s1303_s15 + $0xa0] sm:$0xff] %v808_v50  ;;  %v811_v54 = vadd.f32 %v1298_v6, %v810_v53 }
 0x1f0   : > { %877 = vst [vmem:[%s1303_s15 + $0xb8] sm:$0xff] %v819_v52 }
 0x1f1   : > { %875 = vst [vmem:[%s1303_s15 + $0xa8] sm:$0xff] %v811_v54 }
 0x1f3   : > { %v1109_v55 = vpop.f32.mrb[24].mxu1 }
 0x1f4   : > { %v832_v56 = vadd.f32 %v1109_v55, %v1298_v6  ;;  %v823_v57 = vpop.f32.mrb[25].mxu1 }
 0x1f5   : > { %v824_v58 = vadd.f32 %v1298_v6, %v823_v57  ;;  %v1110_v59 = vpop.f32.mrb[26].mxu1 }
 0x1f6   : > { %880 = vst [vmem:[%s1303_s15 + $0xd0] sm:$0xff] %v832_v56  ;;  %v835_v60 = vadd.f32 %v1110_v59, %v1298_v6  ;;  %v826_v61 = vpop.f32.mrb[27].mxu1 }
 0x1f7   : > { %878 = vst [vmem:[%s1303_s15 + $0xc0] sm:$0xff] %v824_v58  ;;  %v827_v62 = vadd.f32 %v1298_v6, %v826_v61 }
 0x1f8   : > { %881 = vst [vmem:[%s1303_s15 + $0xd8] sm:$0xff] %v835_v60 }
 0x1f9   : > { %879 = vst [vmem:[%s1303_s15 + $0xc8] sm:$0xff] %v827_v62 }
 0x1fb   : > { %v1113_v63 = vpop.f32.mrb[28].mxu1 }
 0x1fc   : > { %v848_v0 = vadd.f32 %v1113_v63, %v1298_v6  ;;  %v839_v1 = vpop.f32.mrb[29].mxu1 }
 0x1fd   : > { %v840_v2 = vadd.f32 %v1298_v6, %v839_v1  ;;  %v1114_v3 = vpop.f32.mrb[30].mxu1 }
 0x1fe   : > { %884 = vst [vmem:[%s1303_s15 + $0xf0] sm:$0xff] %v848_v0  ;;  %v851_v4 = vadd.f32 %v1114_v3, %v1298_v6  ;;  %v842_v5 = vpop.f32.mrb[31].mxu1 }
 0x1ff   : > { %882 = vst [vmem:[%s1303_s15 + $0xe0] sm:$0xff] %v840_v2  ;;  %v843_v20 = vadd.f32 %v1298_v6, %v842_v5 }
 0x200   : > { %885 = vst [vmem:[%s1303_s15 + $0xf8] sm:$0xff] %v851_v4 }
 0x201   : > { %883 = vst [vmem:[%s1303_s15 + $0xe8] sm:$0xff] %v843_v20 }
 0x202 PF: > { %s15_s18 = sadd.s32 1, %s1149_s18  }
 0x203   : > { %p12_p4 = scmp.ge.s32.totalorder %s15_s18, 4  }
 0x205   :  { %14 = sbr.rel (!%p12_p4) target bundleno = 1 (0x1), region = 70 }

// kernel: ocr_forward.7
= control target key start
LH: loop header
LB: loop body
LE: loop exit
PB: predicated region body
PF: predicated region fallthrough
CT: control target
= control target key end

     0   :  { %s1108_s9 = smov 0   ;;  %s1110_s10 = smov 0   ;;  %s1227_s0 = inlined_call_operand.vmem [shape: f32[2,8,256], index: 0, kind: input, shape index: {}]   ;;  %s1228_s1 = inlined_call_operand.vmem [shape: bf16[2,256,512], index: 1, kind: input, shape index: {}]   ;;  %s1229_s2 = inlined_call_operand.vmem [shape: f32[2,8,512], index: 2, kind: output, shape index: {}]  }
   0x1   :  { %s1112_s11 = smov 0  }
   0x2 LB: > { %s24_s12 = sadd.s32 1, %s1084_s10  ;;  %p857_p0 = scmp.ge.s32.totalorder %s1088_s11, 1  ;;  %s1088_s11 = sphi %s1112_s11, %s12_s11   ;;  %s1084_s10 = sphi %s1110_s10, %s1231_s10   ;;  %s1080_s9 = sphi %s1108_s9, %s1230_s9  }
   0x3   : > { %p26_p1 = scmp.ge.s32.totalorder %s24_s12, 2  ;;  %p149_p2 = scmp.lt.s32.totalorder %s1088_s11, 3 }
   0x5   : > { %s1233_s12 = smov (%p26_p1, %s24_s12), 0  ;;  %p150_p3 = pnand %p857_p0, %p149_p2 }
   0x6   : > { %p186_p4 = scmp.lt.s32.totalorder (!%p150_p3), %s1080_s9, 1  ;;  %vm215_vm0 = vcmask (!%p150_p3), 7168   ;;  %v1090_v0 = vmov (!%p150_p3), -inf   ;;  %v1091_v4 = vmov (!%p150_p3), 0   ;;  %v1092_v27 = vmov (!%p150_p3), 0.0  }
   0x7   : > { %153 = sbr.rel (%p150_p3) target bundleno = 606 (0x25e), region = 28  ;;  %216 = vst.msk [vmem:[#allocation2] sm:$0xff] (!%p150_p3), %vm215_vm0, %v1090_v0  ;;  %960 = vset.pattern.permute.xlu0 (!%p150_p3), %v1091_v4  ;;  %961 = vset.pattern.permute.xlu1 (!%p150_p3), %v1091_v4  ;;  %217 = vst.msk [vmem:[#allocation3] sm:$0xff] (!%p150_p3), %vm215_vm0, %v1092_v27 }
   0xe   : > { %s1235_s9 = smov (!%p186_p4, %s1080_s9), 1  ;;  %v224_v54 = vld [vmem:[#allocation2] sm:$0xff] }
   0xf   : > { %s930_s13 = sshll.u32 %s1235_s9, 4  ;;  %s931_s14 = sshll.u32 %s1235_s9, 9 }
  0x10   : > { %s193_s17 = scalar_lea.vmem %s1227_s0, %s930_s13  ;;  %s1137_s20 = scalar_lea.vmem %s1228_s1, %s931_s14 }
  0x11   : > { %v1139_v1 = vld [vmem:[%s193_s17] sm:$0xff]  ;;  %v1141_v2 = vld [vmem:[%s193_s17 + $0x8] sm:$0xff]  ;;  %s932_s21 = sshll.u32 %s1235_s9, 5 }
  0x12   : > { %v225_v3 = vmax.f32 %v1139_v1, %v1141_v2  ;;  %v962_v5 = vld [vmem:[%s1137_s20 + $0x4] ss:$16 sps:$4 sm:$0xff]   ;;  %v964_v6 = vld [vmem:[%s1137_s20 + $0xc] ss:$16 sps:$4 sm:$0xff]   ;;  %v966_v7 = vld [vmem:[%s1137_s20] ss:$16 sps:$4 sm:$0xff]   ;;  %s210_s24 = scalar_lea.vmem %s1229_s2, %s932_s21 }
  0x13   : > { %v967_v8 = vld [vmem:[%s1137_s20 + $0x8] ss:$16 sps:$4 sm:$0xff]   ;;  %v968_v9 = vld [vmem:[%s1137_s20 + $0x24] ss:$16 sps:$4 sm:$0xff]   ;;  %v970_v10 = vld [vmem:[%s1137_s20 + $0x2c] ss:$16 sps:$4 sm:$0xff]   ;;  %650 = vmatprep.subr.bf16.mxu0 %v962_v5  ;;  %691 = vmatprep.subr.bf16.mxu1 %v964_v6 }
  0x14   : > { %226 = vmax.xlane.f32.xlu0 %v225_v3  ;;  %651 = vmatpush1.bf16.msra.mxu0 %v966_v7  ;;  %v972_v11 = vld [vmem:[%s1137_s20 + $0x20] ss:$16 sps:$4 sm:$0xff]   ;;  %v973_v12 = vld [vmem:[%s1137_s20 + $0x28] ss:$16 sps:$4 sm:$0xff]   ;;  %v974_v13 = vld [vmem:[%s1137_s20 + $0x44] ss:$16 sps:$4 sm:$0xff]  }
  0x15   : > { %692 = vmatpush1.bf16.msra.mxu1 %v967_v8  ;;  %652 = vmatprep.subr.bf16.mxu0 %v968_v9  ;;  %v976_v14 = vld [vmem:[%s1137_s20 + $0x4c] ss:$16 sps:$4 sm:$0xff]   ;;  %v978_v15 = vld [vmem:[%s1137_s20 + $0x40] ss:$16 sps:$4 sm:$0xff]   ;;  %v979_v16 = vld [vmem:[%s1137_s20 + $0x48] ss:$16 sps:$4 sm:$0xff]  }
  0x16   : > { %693 = vmatprep.subr.bf16.mxu1 %v970_v10  ;;  %v980_v17 = vld [vmem:[%s1137_s20 + $0x64] ss:$16 sps:$4 sm:$0xff]   ;;  %v982_v18 = vld [vmem:[%s1137_s20 + $0x6c] ss:$16 sps:$4 sm:$0xff]   ;;  %v984_v19 = vld [vmem:[%s1137_s20 + $0x60] ss:$16 sps:$4 sm:$0xff]  }
  0x17   : > { %v985_v20 = vld [vmem:[%s1137_s20 + $0x68] ss:$16 sps:$4 sm:$0xff]   ;;  %v986_v21 = vld [vmem:[%s1137_s20 + $0x84] ss:$16 sps:$4 sm:$0xff]   ;;  %v988_v22 = vld [vmem:[%s1137_s20 + $0x8c] ss:$16 sps:$4 sm:$0xff]  }
  0x18   : > { %653 = vmatpush1.bf16.msra.mxu0 %v972_v11  ;;  %v990_v23 = vld [vmem:[%s1137_s20 + $0x80] ss:$16 sps:$4 sm:$0xff]   ;;  %v991_v24 = vld [vmem:[%s1137_s20 + $0x88] ss:$16 sps:$4 sm:$0xff]   ;;  %v992_v25 = vld [vmem:[%s1137_s20 + $0xa4] ss:$16 sps:$4 sm:$0xff]  }
  0x19   : > { %694 = vmatpush1.bf16.msra.mxu1 %v973_v12  ;;  %654 = vmatprep.subr.bf16.mxu0 %v974_v13  ;;  %v994_v26 = vld [vmem:[%s1137_s20 + $0xac] ss:$16 sps:$4 sm:$0xff]   ;;  %v996_v28 = vld [vmem:[%s1137_s20 + $0xa0] ss:$16 sps:$4 sm:$0xff]   ;;  %v997_v29 = vld [vmem:[%s1137_s20 + $0xa8] ss:$16 sps:$4 sm:$0xff]  }
  0x1a   : > { %695 = vmatprep.subr.bf16.mxu1 %v976_v14  ;;  %v998_v30 = vld [vmem:[%s1137_s20 + $0xc4] ss:$16 sps:$4 sm:$0xff]   ;;  %v1000_v31 = vld [vmem:[%s1137_s20 + $0xcc] ss:$16 sps:$4 sm:$0xff]   ;;  %v1002_v32 = vld [vmem:[%s1137_s20 + $0xc0] ss:$16 sps:$4 sm:$0xff]  }
  0x1b   : > { %v1003_v33 = vld [vmem:[%s1137_s20 + $0xc8] ss:$16 sps:$4 sm:$0xff]   ;;  %v1004_v34 = vld [vmem:[%s1137_s20 + $0xe4] ss:$16 sps:$4 sm:$0xff]   ;;  %v1006_v35 = vld [vmem:[%s1137_s20 + $0xec] ss:$16 sps:$4 sm:$0xff]  }
  0x1c   : > { %655 = vmatpush1.bf16.msra.mxu0 %v978_v15  ;;  %v1008_v36 = vld [vmem:[%s1137_s20 + $0xe0] ss:$16 sps:$4 sm:$0xff]   ;;  %v1009_v37 = vld [vmem:[%s1137_s20 + $0xe8] ss:$16 sps:$4 sm:$0xff]   ;;  %v1010_v38 = vld [vmem:[%s1137_s20 + $0x104] ss:$16 sps:$4 sm:$0xff]  }
  0x1d   : > { %696 = vmatpush1.bf16.msra.mxu1 %v979_v16  ;;  %656 = vmatprep.subr.bf16.mxu0 %v980_v17  ;;  %v1012_v39 = vld [vmem:[%s1137_s20 + $0x10c] ss:$16 sps:$4 sm:$0xff]   ;;  %v1014_v40 = vld [vmem:[%s1137_s20 + $0x100] ss:$16 sps:$4 sm:$0xff]   ;;  %v1015_v41 = vld [vmem:[%s1137_s20 + $0x108] ss:$16 sps:$4 sm:$0xff]  }
  0x1e   : > { %697 = vmatprep.subr.bf16.mxu1 %v982_v18  ;;  %v1016_v42 = vld [vmem:[%s1137_s20 + $0x124] ss:$16 sps:$4 sm:$0xff]   ;;  %v1018_v43 = vld [vmem:[%s1137_s20 + $0x12c] ss:$16 sps:$4 sm:$0xff]   ;;  %v1020_v44 = vld [vmem:[%s1137_s20 + $0x120] ss:$16 sps:$4 sm:$0xff]  }
  0x1f   : > { %v1021_v45 = vld [vmem:[%s1137_s20 + $0x128] ss:$16 sps:$4 sm:$0xff]   ;;  %v1022_v46 = vld [vmem:[%s1137_s20 + $0x144] ss:$16 sps:$4 sm:$0xff]   ;;  %v1024_v47 = vld [vmem:[%s1137_s20 + $0x14c] ss:$16 sps:$4 sm:$0xff]  }
  0x20   : > { %657 = vmatpush1.bf16.msra.mxu0 %v984_v19  ;;  %v1026_v48 = vld [vmem:[%s1137_s20 + $0x140] ss:$16 sps:$4 sm:$0xff]   ;;  %v1027_v49 = vld [vmem:[%s1137_s20 + $0x148] ss:$16 sps:$4 sm:$0xff]   ;;  %v1028_v50 = vld [vmem:[%s1137_s20 + $0x164] ss:$16 sps:$4 sm:$0xff]  }
  0x21   : > { %698 = vmatpush1.bf16.msra.mxu1 %v985_v20  ;;  %658 = vmatprep.subr.bf16.mxu0 %v986_v21  ;;  %v1030_v51 = vld [vmem:[%s1137_s20 + $0x16c] ss:$16 sps:$4 sm:$0xff]   ;;  %v1032_v52 = vld [vmem:[%s1137_s20 + $0x160] ss:$16 sps:$4 sm:$0xff]   ;;  %v1033_v53 = vld [vmem:[%s1137_s20 + $0x168] ss:$16 sps:$4 sm:$0xff]  }
  0x22   : > { %699 = vmatprep.subr.bf16.mxu1 %v988_v22  ;;  %v1034_v58 = vld [vmem:[%s1137_s20 + $0x184] ss:$16 sps:$4 sm:$0xff]   ;;  %v1036_v59 = vld [vmem:[%s1137_s20 + $0x18c] ss:$16 sps:$4 sm:$0xff]   ;;  %v1038_v60 = vld [vmem:[%s1137_s20 + $0x180] ss:$16 sps:$4 sm:$0xff]  }
  0x23   : > { %v1039_v61 = vld [vmem:[%s1137_s20 + $0x188] ss:$16 sps:$4 sm:$0xff]   ;;  %v1040_v62 = vld [vmem:[%s1137_s20 + $0x1a4] ss:$16 sps:$4 sm:$0xff]   ;;  %v1042_v63 = vld [vmem:[%s1137_s20 + $0x1ac] ss:$16 sps:$4 sm:$0xff]  }
  0x24   : > { %659 = vmatpush1.bf16.msra.mxu0 %v990_v23  ;;  %v1044_v0 = vld [vmem:[%s1137_s20 + $0x1a0] ss:$16 sps:$4 sm:$0xff]   ;;  %v1045_v3 = vld [vmem:[%s1137_s20 + $0x1a8] ss:$16 sps:$4 sm:$0xff]   ;;  %v1046_v4 = vld [vmem:[%s1137_s20 + $0x1c4] ss:$16 sps:$4 sm:$0xff]  }
  0x25   : > { %700 = vmatpush1.bf16.msra.mxu1 %v991_v24  ;;  %660 = vmatprep.subr.bf16.mxu0 %v992_v25  ;;  %v1048_v5 = vld [vmem:[%s1137_s20 + $0x1cc] ss:$16 sps:$4 sm:$0xff]   ;;  %v1050_v6 = vld [vmem:[%s1137_s20 + $0x1c0] ss:$16 sps:$4 sm:$0xff]   ;;  %v1051_v7 = vld [vmem:[%s1137_s20 + $0x1c8] ss:$16 sps:$4 sm:$0xff]  }
  0x26   : > { %701 = vmatprep.subr.bf16.mxu1 %v994_v26  ;;  %v1052_v8 = vld [vmem:[%s1137_s20 + $0x1e4] ss:$16 sps:$4 sm:$0xff]   ;;  %v1054_v9 = vld [vmem:[%s1137_s20 + $0x1ec] ss:$16 sps:$4 sm:$0xff]   ;;  %v1056_v10 = vld [vmem:[%s1137_s20 + $0x1e0] ss:$16 sps:$4 sm:$0xff]  }
  0x27   : > { %v1057_v11 = vld [vmem:[%s1137_s20 + $0x1e8] ss:$16 sps:$4 sm:$0xff]  }
  0x28   : > { %661 = vmatpush1.bf16.msra.mxu0 %v996_v28 }
  0x29   : > { %702 = vmatpush1.bf16.msra.mxu1 %v997_v29  ;;  %662 = vmatprep.subr.bf16.mxu0 %v998_v30 }
  0x2a   : > { %703 = vmatprep.subr.bf16.mxu1 %v1000_v31 }
  0x2c   : > { %663 = vmatpush1.bf16.msra.mxu0 %v1002_v32 }
  0x2d   : > { %704 = vmatpush1.bf16.msra.mxu1 %v1003_v33  ;;  %664 = vmatprep.subr.bf16.mxu0 %v1004_v34 }
  0x2e   : > { %705 = vmatprep.subr.bf16.mxu1 %v1006_v35 }
  0x30   : > { %665 = vmatpush1.bf16.msra.mxu0 %v1008_v36 }
  0x31   : > { %706 = vmatpush1.bf16.msra.mxu1 %v1009_v37  ;;  %666 = vmatprep.subr.bf16.mxu0 %v1010_v38 }
  0x32   : > { %707 = vmatprep.subr.bf16.mxu1 %v1012_v39 }
  0x34   : > { %667 = vmatpush1.bf16.msra.mxu0 %v1014_v40 }
  0x35   : > { %708 = vmatpush1.bf16.msra.mxu1 %v1015_v41  ;;  %668 = vmatprep.subr.bf16.mxu0 %v1016_v42 }
  0x36   : > { %709 = vmatprep.subr.bf16.mxu1 %v1018_v43 }
  0x38   : > { %669 = vmatpush1.bf16.msra.mxu0 %v1020_v44 }
  0x39   : > { %710 = vmatpush1.bf16.msra.mxu1 %v1021_v45  ;;  %670 = vmatprep.subr.bf16.mxu0 %v1022_v46 }
  0x3a   : > { %711 = vmatprep.subr.bf16.mxu1 %v1024_v47 }
  0x3c   : > { %671 = vmatpush1.bf16.msra.mxu0 %v1026_v48 }
  0x3d   : > { %712 = vmatpush1.bf16.msra.mxu1 %v1027_v49  ;;  %672 = vmatprep.subr.bf16.mxu0 %v1028_v50 }
  0x3e   : > { %713 = vmatprep.subr.bf16.mxu1 %v1030_v51 }
  0x40   : > { %673 = vmatpush1.bf16.msra.mxu0 %v1032_v52 }
  0x41   : > { %714 = vmatpush1.bf16.msra.mxu1 %v1033_v53  ;;  %674 = vmatprep.subr.bf16.mxu0 %v1034_v58 }
  0x42   : > { %715 = vmatprep.subr.bf16.mxu1 %v1036_v59 }
  0x44   : > { %675 = vmatpush1.bf16.msra.mxu0 %v1038_v60 }
  0x45   : > { %716 = vmatpush1.bf16.msra.mxu1 %v1039_v61  ;;  %676 = vmatprep.subr.bf16.mxu0 %v1040_v62 }
  0x46   : > { %717 = vmatprep.subr.bf16.mxu1 %v1042_v63 }
  0x48   : > { %677 = vmatpush1.bf16.msra.mxu0 %v1044_v0 }
  0x49   : > { %718 = vmatpush1.bf16.msra.mxu1 %v1045_v3  ;;  %678 = vmatprep.subr.bf16.mxu0 %v1046_v4 }
  0x4a   : > { %719 = vmatprep.subr.bf16.mxu1 %v1048_v5 }
  0x4c   : > { %679 = vmatpush1.bf16.msra.mxu0 %v1050_v6 }
  0x4d   : > { %720 = vmatpush1.bf16.msra.mxu1 %v1051_v7  ;;  %680 = vmatprep.subr.bf16.mxu0 %v1052_v8 }
  0x4e   : > { %721 = vmatprep.subr.bf16.mxu1 %v1054_v9 }
  0x50   : > { %681 = vmatpush1.bf16.msra.mxu0 %v1056_v10 }
  0x51   : > { %722 = vmatpush1.bf16.msra.mxu1 %v1057_v11 }
  0xa1   : > { %v227_v55 = vpop.xlane.xlu0 %226 }
  0xa2   : > { %v228_v56 = vmax.f32 %v224_v54, %v227_v55 }
  0xa4   : > { %v229_v57 = vsub.f32 %v224_v54, %v228_v56  ;;  %740 = vst.msk [vmem:[#allocation2] sm:$0xff] %vm215_vm0, %v228_v56  ;;  %234 = vperm.xlu0 %960, %v228_v56  }
  0xa6   : > { %v230_v22 = vmul.f32 1.442695, %v229_v57 }
 0x123   : > { %v235_v12 = vpop.permute.xlu0 %234 }
 0x124   : > { %v237_v13 = vsub.f32 %v1139_v1, %v235_v12  ;;  %v238_v14 = vsub.f32 %v1141_v2, %v235_v12  ;;  %v243_v1 = vld [vmem:[#allocation3] sm:$0xff] }
 0x126   : > { %v239_v15 = vmul.f32 1.442695, %v237_v13  ;;  %v241_v16 = vmul.f32 1.442695, %v238_v14 }
 0x128   : > { %1058 = vpow2.f32 %v239_v15 }
 0x129   : > { %1060 = vpow2.f32 %v241_v16 }
 0x12a   : > { %1062 = vpow2.f32 %v230_v22 }
 0x132   : > { %v1059_v17 = vpop.eup %1058 }
 0x133   : > { %v1061_v18 = vpop.eup %1060  ;;  %v264_v19 = vpack.c.bf16 %v1059_v17, %v1059_v17 }
 0x134   : > { %v265_v20 = vpack.c.bf16 %v1061_v18, %v1061_v18  ;;  %v245_v21 = vadd.f32 %v1061_v18, %v1059_v17  ;;  %v1063_v23 = vpop.eup %1062 }
 0x135   : > { %v244_v2 = vmul.f32 %v1063_v23, %v243_v1 }
 0x136   : > { %682 = vmatprep.mubr.bf16.mxu0 %v265_v20  ;;  %723 = vmatprep.mubr.bf16.mxu1 %v265_v20 }
 0x137   : > { %246 = vadd.xlane.f32.xlu1 %v245_v21  ;;  %683 = vmatmul.mubr.bf16.vlgmr.msra.gmra.mrb[0].mxu0 %v264_v19 }
 0x138   : > { %724 = vmatmul.mubr.bf16.vlgmr.msra.gmra.mrb[0].mxu1 %v264_v19 }
 0x148   : > { %257 = vperm.xlu1 %961, %v1063_v23  }
 0x1c4   : > { %v247_v24 = vpop.xlane.xlu1 %246 }
 0x1c5   : > { %v248_v25 = vadd.f32 %v247_v24, %v244_v2 }
 0x1c7   : > { %250 = vst.msk [vmem:[#allocation3] sm:$0xff] %vm215_vm0, %v248_v25 }
 0x1c8   : > { %v258_v36 = vpop.permute.xlu1 %257 }
 0x1c9   : > { %v260_v37 = vmul.f32 0.0, %v258_v36 }
 0x1ce   : > { %v748_v26 = vld [vmem:[#allocation3] sm:$0xff] }
 0x1cf   : > { %1064 = vrcp.f32 %v748_v26 }
 0x1d9   : > { %v1065_v27 = vpop.eup %1064 }
 0x1da   : > { %752 = vperm.xlu1 %961, %v1065_v27  }
 0x20a   : > { %v684_v28 = vpop.f32.mrb[0].mxu0 }
 0x20b   : > { %v725_v29 = vpop.f32.mrb[0].mxu1  ;;  %v686_v30 = vpop.f32.mrb[1].mxu0  ;;  %v732_v38 = vadd.f32 %v684_v28, %v260_v37 }
 0x20c   : > { %v727_v31 = vpop.f32.mrb[1].mxu1  ;;  %v688_v32 = vpop.f32.mrb[2].mxu0  ;;  %v734_v39 = vadd.f32 %v725_v29, %v260_v37  ;;  %v733_v40 = vadd.f32 %v686_v30, %v260_v37 }
 0x20d   : > { %v729_v33 = vpop.f32.mrb[2].mxu1  ;;  %v689_v34 = vpop.f32.mrb[3].mxu0  ;;  %v735_v41 = vadd.f32 %v727_v31, %v260_v37 }
 0x20e   : > { %v730_v35 = vpop.f32.mrb[3].mxu1 }
 0x259   : > { %v753_v42 = vpop.permute.xlu1 %752 }
 0x25a   : > { %v755_v43 = vmul.f32 %v753_v42, %v732_v38  ;;  %v756_v44 = vmul.f32 %v753_v42, %v733_v40  ;;  %v757_v45 = vmul.f32 %v753_v42, %v734_v39  ;;  %v758_v46 = vmul.f32 %v753_v42, %v735_v41 }
 0x25c   : > { %759 = vst [vmem:[%s210_s24] sm:$0xff] %v755_v43  ;;  %760 = vst [vmem:[%s210_s24 + $0x8] sm:$0xff] %v756_v44 }
 0x25d   : > { %761 = vst [vmem:[%s210_s24 + $0x10] sm:$0xff] %v757_v45  ;;  %762 = vst [vmem:[%s210_s24 + $0x18] sm:$0xff] %v758_v46 }
 0x25e PF: > { %s12_s11 = sadd.s32 1, %s1088_s11   ;;  %s1230_s9 = smov %s1084_s10 }
 0x25f   : > { %p9_p5 = scmp.ge.s32.totalorder %s12_s11, 4   ;;  %s1231_s10 = smov %s1233_s12 }
 0x261   :  { %11 = sbr.rel (!%p9_p5) target bundleno = 2 (0x2), region = 69 }

// kernel: ocr_forward.6
= control target key start
LH: loop header
LB: loop body
LE: loop exit
PB: predicated region body
PF: predicated region fallthrough
CT: control target
= control target key end

     0   :  { %s12080_s12 = smov 0   ;;  %s14203_s0 = inlined_call_operand.vmem [shape: bf16[2,440,32], index: 0, kind: input, shape index: {}]   ;;  %s14204_s1 = inlined_call_operand.vmem [shape: bf16[288,512], index: 1, kind: input, shape index: {}]   ;;  %s14205_s2 = inlined_call_operand.vmem [shape: f32[1,512], index: 2, kind: input, shape index: {}]   ;;  %s14206_s3 = inlined_call_operand.vmem [shape: bf16[2,360,512], index: 3, kind: output, shape index: {}]  }
   0x1 LB: > { %s9648_s13 = sadd.s32 4294967295, %s12057_s12   ;;  %p9652_p0 = scmp.ge.s32.totalorder %s12057_s12, 1  ;;  %s12057_s12 = sphi %s12080_s12, %s13_s12  }
   0x2   : > { %p137_p1 = scmp.lt.s32.totalorder %s12057_s12, 3 }
   0x4   : > { %p138_p2 = pnand %p9652_p0, %p137_p1 }
   0x5   : > { %v11839_v0 = vld [vmem:[%s14204_s1 + $0x44] ss:$16 sps:$4 sm:$0xff] (!%p138_p2)   ;;  %p161_p3 = scmp.lt.s32.totalorder (!%p138_p2), %s9648_s13, 1  ;;  %v11841_v1 = vld [vmem:[%s14204_s1 + $0x4c] ss:$16 sps:$4 sm:$0xff] (!%p138_p2)   ;;  %v12059_v2 = vmov (!%p138_p2), 0  }
   0x6   : > { %141 = sbr.rel (%p138_p2) target bundleno = 1897 (0x769), region = 32  ;;  %675 = vmatprep.mubr.bf16.mxu0 (!%p138_p2), %v12059_v2  ;;  %936 = vmatprep.mubr.bf16.mxu1 (!%p138_p2), %v12059_v2  ;;  %v11843_v3 = vld [vmem:[%s14204_s1 + $0x40] ss:$16 sps:$4 sm:$0xff] (!%p138_p2)   ;;  %v11844_v4 = vld [vmem:[%s14204_s1 + $0x48] ss:$16 sps:$4 sm:$0xff] (!%p138_p2)   ;;  %vm573_vm1 = vcmask (!%p138_p2), 261120  }
   0x7   : > { %643 = vmatprep.subr.bf16.mxu0 (!%p138_p2), %v11839_v0  ;;  %904 = vmatprep.subr.bf16.mxu1 (!%p138_p2), %v11841_v1  ;;  %v11845_v5 = vld [vmem:[%s14204_s1 + $0x64] ss:$16 sps:$4 sm:$0xff] (!%p138_p2)   ;;  %v11847_v6 = vld [vmem:[%s14204_s1 + $0x6c] ss:$16 sps:$4 sm:$0xff] (!%p138_p2)   ;;  %v11849_v7 = vld [vmem:[%s14204_s1 + $0x60] ss:$16 sps:$4 sm:$0xff] (!%p138_p2)  }
   0x8   : > { %644 = vmatpush1.bf16.msra.mxu0 (!%p138_p2), %v11843_v3  ;;  %905 = vmatpush1.bf16.msra.mxu1 (!%p138_p2), %v11844_v4  ;;  %v11850_v8 = vld [vmem:[%s14204_s1 + $0x68] ss:$16 sps:$4 sm:$0xff] (!%p138_p2)   ;;  %v11853_v9 = vld [vmem:[%s14204_s1 + $0x4] ss:$16 sps:$4 sm:$0xff] (!%p138_p2)   ;;  %v11856_v10 = vld [vmem:[%s14204_s1 + $0xc] ss:$16 sps:$4 sm:$0xff] (!%p138_p2)  }
   0x9   : > { %645 = vmatprep.subr.bf16.mxu0 (!%p138_p2), %v11845_v5  ;;  %906 = vmatprep.subr.bf16.mxu1 (!%p138_p2), %v11847_v6  ;;  %vm349_vm0 = vsmask.f32 (!%p138_p2), 7424  ;;  %v11851_v21 = vld [vmem:[%s14204_s1] ss:$16 sps:$4 sm:$0xff] (!%p138_p2)   ;;  %v11854_v22 = vld [vmem:[%s14204_s1 + $0x8] ss:$16 sps:$4 sm:$0xff] (!%p138_p2)  }
   0xa   : > { %v11870_v34 = vld [vmem:[%s14204_s1 + $0x20] ss:$16 sps:$4 sm:$0xff] (!%p138_p2)   ;;  %v11872_v35 = vld [vmem:[%s14204_s1 + $0x24] ss:$16 sps:$4 sm:$0xff] (!%p138_p2)   ;;  %v11873_v37 = vld [vmem:[%s14204_s1 + $0x28] ss:$16 sps:$4 sm:$0xff] (!%p138_p2)  }
   0xb   : > { %v11875_v39 = vld [vmem:[%s14204_s1 + $0x2c] ss:$16 sps:$4 sm:$0xff] (!%p138_p2)   ;;  %vm1787_vm2 = vcmask (!%p138_p2), 1046528   ;;  %vm2813_vm3 = vcmask (!%p138_p2), 1045504   ;;  %vm3682_vm4 = vsmask.f32 (!%p138_p2), 5376 }
   0xc   : > { %646 = vmatpush1.bf16.msra.mxu0 (!%p138_p2), %v11849_v7  ;;  %907 = vmatpush1.bf16.msra.mxu1 (!%p138_p2), %v11850_v8  ;;  %vm4712_vm5 = vcmask (!%p138_p2), 1044480  }
   0xd   : > { %s14208_s13 = smov (!%p161_p3, %s9648_s13), 1  ;;  %1253 = vmatprep.subr.bf16.mxu0 %v11853_v9  ;;  %1514 = vmatprep.subr.bf16.mxu1 %v11856_v10  ;;  %v11888_v10 = vld [vmem:[%s14204_s1 + $0x84] ss:$16 sps:$4 sm:$0xff]  }
   0xe   : > { %s11828_s28 = smul.u32 220, %s14208_s13 }
   0xf   : > { %s11829_s18 = smul.u32 720, %s14208_s13 }
  0x10   : > { %s12123_s8 = scalar_lea.vmem %s14203_s0, %s11828_s28 }
  0x11   : > { %v172_v11 = vld [vmem:[%s12123_s8] sm:$0xf]  ;;  %v173_v12 = vld [vmem:[%s12123_s8 + $0x4] sm:$0xf]  ;;  %v12133_v14 = vld [vmem:[%s12123_s8 + $0x8] sm:$0xff]   ;;  %s13932_s20 = scalar_lea.vmem %s14206_s3, %s11829_s18 }
  0x12   : > { %v12130_v13 = vcombine.low %v172_v11, %v173_v12  ;;  %v358_v17 = vshll.u32 %v12133_v14, 16  ;;  %v12139_v18 = vld [vmem:[%s12123_s8 + $0x10] sm:$0xff]   ;;  %v362_v24 = vshrl.u32 %v12133_v14, 16  ;;  %v12153_v27 = vld [vmem:[%s12123_s8 + $0x18] sm:$0xff]   ;;  %v12161_v33 = vld [vmem:[%s12123_s8 + $0x20] sm:$0xff]  }
  0x13   : > { %v366_v25 = vshll.u32 %v12139_v18, 16  ;;  %v374_v30 = vshll.u32 %v12153_v27, 16  ;;  %v370_v32 = vshrl.u32 %v12139_v18, 16  ;;  %v378_v41 = vshrl.u32 %v12153_v27, 16  ;;  %v12187_v45 = vld [vmem:[%s12123_s8 + $0x28] sm:$0xff]   ;;  %v12197_v51 = vld [vmem:[%s12123_s8 + $0x30] sm:$0xff]  }
  0x14   : > { %v351_v15 = vshrl.u32 %v12130_v13, 16  ;;  %v353_v16 = vshll.u32 %v12130_v13, 16  ;;  %v360_v20 = vrot.slane %v358_v17, 1  ;;  %v382_v42 = vshll.u32 %v12161_v33, 16  ;;  %v12205_v55 = vld [vmem:[%s12123_s8 + $0x38] sm:$0xff]   ;;  %v12213_v61 = vld [vmem:[%s12123_s8 + $0x40] sm:$0xff]  }
  0x15   : > { %v368_v29 = vrot.slane %v366_v25, 1  ;;  %v376_v36 = vrot.slane %v374_v30, 1  ;;  %v386_v47 = vshrl.u32 %v12161_v33, 16  ;;  %v390_v48 = vshll.u32 %v12187_v45, 16  ;;  %v12218_v62 = vld [vmem:[%s12123_s8 + $0x48] sm:$0xff]   ;;  %v12223_v1 = vld [vmem:[%s12123_s8 + $0x50] sm:$0xff]  }
  0x16   : > { %v355_v19 = vrot.slane %v353_v16, 1  ;;  %v364_v28 = vor.u32 %v362_v24, %v360_v20  ;;  %v384_v44 = vrot.slane %v382_v42, 1  ;;  %v394_v52 = vshrl.u32 %v12187_v45, 16  ;;  %v12243_v17 = vld [vmem:[%s12123_s8 + $0x58] sm:$0xff]   ;;  %v12253_v24 = vld [vmem:[%s12123_s8 + $0x60] sm:$0xff]  }
  0x17   : > { %v372_v38 = vor.u32 %v370_v32, %v368_v29  ;;  %v380_v43 = vor.u32 %v378_v41, %v376_v36  ;;  %v392_v50 = vrot.slane %v390_v48, 1  ;;  %v398_v54 = vshll.u32 %v12197_v51, 16 }
  0x18   : > { %v356_v23 = vor.u32 %v355_v19, %v351_v15  ;;  %v369_v31 = vsel %vm349_vm0, %v364_v28, %v368_v29  ;;  %v388_v49 = vor.u32 %v386_v47, %v384_v44  ;;  %v402_v58 = vshrl.u32 %v12197_v51, 16  ;;  %v11891_v15 = vld [vmem:[%s14204_s1 + $0x8c] ss:$16 sps:$4 sm:$0xff]  }
  0x19   : > { %v377_v40 = vsel %vm349_vm0, %v372_v38, %v376_v36  ;;  %v385_v46 = vsel %vm349_vm0, %v380_v43, %v384_v44  ;;  %v396_v56 = vor.u32 %v394_v52, %v392_v50  ;;  %v400_v57 = vrot.slane %v398_v54, 1  ;;  %v12269_v36 = vld [vmem:[%s12123_s8 + $0x68] sm:$0xff]   ;;  %v12283_v43 = vld [vmem:[%s12123_s8 + $0x70] sm:$0xff]  }
  0x1a   : > { %v361_v26 = vsel %vm349_vm0, %v356_v23, %v360_v20  ;;  %v393_v53 = vsel %vm349_vm0, %v388_v49, %v392_v50  ;;  %v406_v60 = vshll.u32 %v12205_v55, 16  ;;  %v410_v4 = vshrl.u32 %v12205_v55, 16  ;;  %v12293_v50 = vld [vmem:[%s12123_s8 + $0x78] sm:$0xff]  }
  0x1b   : > { %9686 = vmatmul.mubr.msk.bf16.vlgmr.msra.gmra.mrb[0].mxu0 %vm573_vm1, %v361_v26  ;;  %9709 = vmatmul.mubr.msk.bf16.vlgmr.msra.gmra.mrb[0].mxu1 %vm573_vm1, %v361_v26  ;;  %v401_v59 = vsel %vm349_vm0, %v396_v56, %v400_v57  ;;  %v404_v63 = vor.u32 %v402_v58, %v400_v57  ;;  %v414_v5 = vshll.u32 %v12213_v61, 16  ;;  %v422_v6 = vshll.u32 %v12218_v62, 16  ;;  %v12303_v58 = vld [vmem:[%s12123_s8 + $0x80] sm:$0xff]  }
  0x1c   : > { %1254 = vmatpush1.bf16.msra.mxu0 %v11851_v21  ;;  %1515 = vmatpush1.bf16.msra.mxu1 %v11854_v22  ;;  %v408_v0 = vrot.slane %v406_v60, 1  ;;  %v418_v9 = vshrl.u32 %v12213_v61, 16  ;;  %v430_v12 = vshll.u32 %v12223_v1, 16  ;;  %v426_v20 = vshrl.u32 %v12218_v62, 16 }
  0x1d   : > { %685 = vmatprep.mubr.bf16.mxu0 %v12059_v2  ;;  %946 = vmatprep.mubr.bf16.mxu1 %v12059_v2  ;;  %v416_v8 = vrot.slane %v414_v5, 1  ;;  %v424_v11 = vrot.slane %v422_v6, 1  ;;  %v438_v21 = vshll.u32 %v12243_v17, 16  ;;  %v434_v26 = vshrl.u32 %v12223_v1, 16 }
  0x1e   : > { %1255 = vmatprep.subr.bf16.mxu0 %v11872_v35  ;;  %1516 = vmatprep.subr.bf16.mxu1 %v11875_v39  ;;  %v409_v3 = vsel %vm349_vm0, %v404_v63, %v408_v0  ;;  %v412_v7 = vor.u32 %v410_v4, %v408_v0  ;;  %v432_v22 = vrot.slane %v430_v12, 1  ;;  %v446_v29 = vshll.u32 %v12253_v24, 16  ;;  %v12313_v4 = vld [vmem:[%s12123_s8 + $0x88] sm:$0xff]  }
  0x1f   : > { %v420_v19 = vor.u32 %v418_v9, %v416_v8  ;;  %v428_v25 = vor.u32 %v426_v20, %v424_v11  ;;  %v440_v28 = vrot.slane %v438_v21, 1  ;;  %v450_v39 = vshrl.u32 %v12253_v24, 16  ;;  %v12333_v20 = vld [vmem:[%s12123_s8 + $0x98] sm:$0xff]  }
  0x20   : > { %1256 = vmatpush1.bf16.msra.mxu0 %v11870_v34  ;;  %1517 = vmatpush1.bf16.msra.mxu1 %v11873_v37  ;;  %v417_v16 = vsel %vm349_vm0, %v412_v7, %v416_v8  ;;  %v442_v34 = vshrl.u32 %v12243_v17, 16  ;;  %v448_v35 = vrot.slane %v446_v29, 1  ;;  %v462_v47 = vshll.u32 %v12283_v43, 16 }
  0x21   : > { %1942 = vmatprep.subr.bf16.mxu0 %v11888_v10  ;;  %2203 = vmatprep.subr.bf16.mxu1 %v11891_v15  ;;  %v425_v23 = vsel %vm349_vm0, %v420_v19, %v424_v11  ;;  %v433_v30 = vsel %vm349_vm0, %v428_v25, %v432_v22  ;;  %v470_v54 = vshll.u32 %v12293_v50, 16  ;;  %v474_v60 = vshrl.u32 %v12293_v50, 16  ;;  %v12323_v10 = vld [vmem:[%s12123_s8 + $0x90] sm:$0xff]  }
  0x22   : > { %v444_v37 = vor.u32 %v442_v34, %v440_v28  ;;  %v452_v41 = vor.u32 %v450_v39, %v448_v35  ;;  %v464_v49 = vrot.slane %v462_v47, 1  ;;  %v478_v63 = vshll.u32 %v12303_v58, 16 }
  0x23   : > { %9687 = vmatmul.mubr.msk.bf16.gmra.mrb[4].mxu0 %vm573_vm1, %v369_v31  ;;  %9710 = vmatmul.mubr.msk.bf16.gmra.mrb[4].mxu1 %vm573_vm1, %v369_v31  ;;  %v436_v31 = vor.u32 %v434_v26, %v432_v22  ;;  %v472_v57 = vrot.slane %v470_v54, 1  ;;  %v482_v6 = vshrl.u32 %v12303_v58, 16  ;;  %v486_v7 = vshll.u32 %v12313_v4, 16 }
  0x24   : > { %695 = vmatprep.mubr.bf16.mxu0 %v12059_v2  ;;  %956 = vmatprep.mubr.bf16.mxu1 %v12059_v2  ;;  %v449_v38 = vsel %vm349_vm0, %v444_v37, %v448_v35  ;;  %v490_v12 = vshrl.u32 %v12313_v4, 16  ;;  %v494_v15 = vshll.u32 %v12323_v10, 16  ;;  %v498_v22 = vshrl.u32 %v12323_v10, 16  ;;  %v12353_v35 = vld [vmem:[%s12123_s8 + $0xa8] sm:$0xff]  }
  0x25   : > { %v441_v32 = vsel %vm349_vm0, %v436_v31, %v440_v28  ;;  %v476_v0 = vor.u32 %v474_v60, %v472_v57  ;;  %v488_v9 = vrot.slane %v486_v7, 1  ;;  %v12343_v28 = vld [vmem:[%s12123_s8 + $0xa0] sm:$0xff]   ;;  %v518_v39 = vshll.u32 %v12353_v35, 16  ;;  %v11889_v60 = vld [vmem:[%s14204_s1 + $0x88] ss:$16 sps:$4 sm:$0xff]  }
  0x26   : > { %v496_v19 = vrot.slane %v494_v15, 1  ;;  %v510_v31 = vshll.u32 %v12343_v28, 16  ;;  %v11911_v15 = vld [vmem:[%s14204_s1 + $0xec] ss:$16 sps:$4 sm:$0xff]  }
  0x28   : > { %v500_v25 = vor.u32 %v498_v22, %v496_v19  ;;  %v512_v34 = vrot.slane %v510_v31, 1  ;;  %v11909_v22 = vld [vmem:[%s14204_s1 + $0xe8] ss:$16 sps:$4 sm:$0xff]  }
  0x2b   : > { %9688 = vmatmul.mubr.msk.bf16.gmra.mrb[8].mxu0 %vm573_vm1, %v377_v40  ;;  %9711 = vmatmul.mubr.msk.bf16.gmra.mrb[8].mxu1 %vm573_vm1, %v377_v40  ;;  %v454_v40 = vshll.u32 %v12269_v36, 16 }
  0x2c   : > { %705 = vmatprep.mubr.bf16.mxu0 %v12059_v2  ;;  %966 = vmatprep.mubr.bf16.mxu1 %v12059_v2 }
  0x2d   : > { %v456_v42 = vrot.slane %v454_v40, 1  ;;  %v12359_v40 = vld [vmem:[%s12123_s8 + $0xb0] sm:$0xf] }
  0x2f   : > { %v457_v44 = vsel %vm349_vm0, %v452_v41, %v456_v42  ;;  %v225_v41 = vld [vmem:[%s12123_s8 + $0xb4] sm:$0x1] }
  0x33   : > { %9689 = vmatmul.mubr.msk.bf16.gmra.mrb[12].mxu0 %vm573_vm1, %v385_v46  ;;  %9712 = vmatmul.mubr.msk.bf16.gmra.mrb[12].mxu1 %vm573_vm1, %v385_v46  ;;  %v458_v46 = vshrl.u32 %v12269_v36, 16 }
  0x34   : > { %715 = vmatprep.mubr.bf16.mxu0 %v12059_v2  ;;  %976 = vmatprep.mubr.bf16.mxu1 %v12059_v2 }
  0x35   : > { %v460_v48 = vor.u32 %v458_v46, %v456_v42  ;;  %v12367_v46 = vcombine.low %v12359_v40, %v225_v41 }
  0x37   : > { %v465_v52 = vsel %vm349_vm0, %v460_v48, %v464_v49  ;;  %v522_v48 = vshrl.u32 %v12353_v35, 16 }
  0x3b   : > { %9690 = vmatmul.mubr.msk.bf16.gmra.mrb[16].mxu0 %vm573_vm1, %v393_v53  ;;  %9713 = vmatmul.mubr.msk.bf16.gmra.mrb[16].mxu1 %vm573_vm1, %v393_v53  ;;  %v466_v53 = vshrl.u32 %v12283_v43, 16 }
  0x3c   : > { %725 = vmatprep.mubr.bf16.mxu0 %v12059_v2  ;;  %986 = vmatprep.mubr.bf16.mxu1 %v12059_v2 }
  0x3d   : > { %v468_v56 = vor.u32 %v466_v53, %v464_v49  ;;  %v526_v49 = vshll.u32 %v12367_v46, 16 }
  0x3f   : > { %v528_v53 = vrot.slane %v526_v49, 1 }
  0x43   : > { %9691 = vmatmul.mubr.msk.bf16.gmra.mrb[20].mxu0 %vm573_vm1, %v401_v59  ;;  %9714 = vmatmul.mubr.msk.bf16.gmra.mrb[20].mxu1 %vm573_vm1, %v401_v59  ;;  %v473_v59 = vsel %vm349_vm0, %v468_v56, %v472_v57  ;;  %v530_v56 = vshrl.u32 %v12367_v46, 16 }
  0x44   : > { %735 = vmatprep.mubr.bf16.mxu0 %v12059_v2  ;;  %996 = vmatprep.mubr.bf16.mxu1 %v12059_v2 }
  0x45   : > { %v532_v57 = vor.u32 %v530_v56, %v528_v53  ;;  %v1801_v56 = vrot.slane %v12205_v55, 1 }
  0x4b   : > { %9692 = vmatmul.mubr.msk.bf16.gmra.mrb[24].mxu0 %vm573_vm1, %v409_v3  ;;  %9715 = vmatmul.mubr.msk.bf16.gmra.mrb[24].mxu1 %vm573_vm1, %v409_v3  ;;  %v480_v3 = vrot.slane %v478_v63, 1  ;;  %v11894_v63 = vld [vmem:[%s14204_s1 + $0xa4] ss:$16 sps:$4 sm:$0xff]  }
  0x4c   : > { %745 = vmatprep.mubr.bf16.mxu0 %v12059_v2  ;;  %1006 = vmatprep.mubr.bf16.mxu1 %v12059_v2 }
  0x4d   : > { %v481_v5 = vsel %vm349_vm0, %v476_v0, %v480_v3  ;;  %v484_v8 = vor.u32 %v482_v6, %v480_v3  ;;  %v11897_v0 = vld [vmem:[%s14204_s1 + $0xac] ss:$16 sps:$4 sm:$0xff]   ;;  %v11892_v3 = vld [vmem:[%s14204_s1 + $0xa0] ss:$16 sps:$4 sm:$0xff]  }
  0x4e   : > { %v12045_v6 = vld [vmem:[%s12123_s8 + $0x8] sm:$0xff]  }
  0x4f   : > { %v489_v11 = vsel %vm349_vm0, %v484_v8, %v488_v9  ;;  %v1789_v7 = vrot.slane %v12045_v6, 1  ;;  %v11899_v8 = vld [vmem:[%s14204_s1 + $0xc0] ss:$16 sps:$4 sm:$0xff]  }
  0x53   : > { %9693 = vmatmul.mubr.msk.bf16.gmra.mrb[28].mxu0 %vm573_vm1, %v417_v16  ;;  %9716 = vmatmul.mubr.msk.bf16.gmra.mrb[28].mxu1 %vm573_vm1, %v417_v16  ;;  %v492_v16 = vor.u32 %v490_v12, %v488_v9  ;;  %v11902_v9 = vld [vmem:[%s14204_s1 + $0xc8] ss:$16 sps:$4 sm:$0xff]   ;;  %v11908_v12 = vld [vmem:[%s14204_s1 + $0xe4] ss:$16 sps:$4 sm:$0xff]  }
  0x54   : > { %755 = vmatprep.mubr.bf16.mxu0 %v12059_v2  ;;  %1016 = vmatprep.mubr.bf16.mxu1 %v12059_v2 }
  0x55   : > { %v497_v21 = vsel %vm349_vm0, %v492_v16, %v496_v19  ;;  %v12046_v16 = vld [vmem:[%s12123_s8 + $0x10] sm:$0xff]  }
  0x56   : > { %v1791_v19 = vrot.slane %v12046_v16, 1  ;;  %v12722_v16 = vld [vmem:[%s12123_s8 + $0x10] sm:$0xff]  }
  0x5b   : > { %9694 = vmatmul.mubr.msk.bf16.gmra.mrb[32].mxu0 %vm573_vm1, %v425_v23  ;;  %9717 = vmatmul.mubr.msk.bf16.gmra.mrb[32].mxu1 %vm573_vm1, %v425_v23  ;;  %v502_v23 = vshll.u32 %v12333_v20, 16 }
  0x5c   : > { %765 = vmatprep.mubr.bf16.mxu0 %v12059_v2  ;;  %1026 = vmatprep.mubr.bf16.mxu1 %v12059_v2 }
  0x5d   : > { %v504_v26 = vrot.slane %v502_v23, 1  ;;  %v1792_v23 = vsel %vm1787_vm2, %v1789_v7, %v1791_v19 }
  0x5f   : > { %v505_v29 = vsel %vm349_vm0, %v500_v25, %v504_v26  ;;  %v12047_v25 = vld [vmem:[%s12123_s8 + $0x18] sm:$0xff]  }
  0x63   : > { %9695 = vmatmul.mubr.msk.bf16.gmra.mrb[36].mxu0 %vm573_vm1, %v433_v30  ;;  %9718 = vmatmul.mubr.msk.bf16.gmra.mrb[36].mxu1 %vm573_vm1, %v433_v30  ;;  %v506_v30 = vshrl.u32 %v12333_v20, 16 }
  0x64   : > { %775 = vmatprep.mubr.bf16.mxu0 %v12059_v2  ;;  %1036 = vmatprep.mubr.bf16.mxu1 %v12059_v2 }
  0x6b   : > { %9696 = vmatmul.mubr.msk.bf16.gmra.mrb[40].mxu0 %vm573_vm1, %v441_v32  ;;  %9719 = vmatmul.mubr.msk.bf16.gmra.mrb[40].mxu1 %vm573_vm1, %v441_v32  ;;  %v508_v32 = vor.u32 %v506_v30, %v504_v26  ;;  %v1793_v26 = vrot.slane %v12047_v25, 1  ;;  %v12048_v30 = vld [vmem:[%s12123_s8 + $0x20] sm:$0xff]   ;;  %v12738_v25 = vld [vmem:[%s12123_s8 + $0x18] sm:$0xff]  }
  0x6c   : > { %785 = vmatprep.mubr.bf16.mxu0 %v12059_v2  ;;  %1046 = vmatprep.mubr.bf16.mxu1 %v12059_v2  ;;  %v1795_v31 = vrot.slane %v12048_v30, 1  ;;  %v2817_v30 = vrot.slane %v12738_v25, 2 }
  0x6d   : > { %v513_v37 = vsel %vm349_vm0, %v508_v32, %v512_v34 }
  0x6e   : > { %v1796_v41 = vsel %vm1787_vm2, %v1793_v26, %v1795_v31 }
  0x73   : > { %9697 = vmatmul.mubr.msk.bf16.gmra.mrb[44].mxu0 %vm573_vm1, %v449_v38  ;;  %9720 = vmatmul.mubr.msk.bf16.gmra.mrb[44].mxu1 %vm573_vm1, %v449_v38  ;;  %v514_v38 = vshrl.u32 %v12343_v28, 16 }
  0x74   : > { %795 = vmatprep.mubr.bf16.mxu0 %v12059_v2  ;;  %1056 = vmatprep.mubr.bf16.mxu1 %v12059_v2 }
  0x75   : > { %v516_v42 = vor.u32 %v514_v38, %v512_v34 }
  0x7b   : > { %9698 = vmatmul.mubr.msk.bf16.gmra.mrb[48].mxu0 %vm573_vm1, %v457_v44  ;;  %9721 = vmatmul.mubr.msk.bf16.gmra.mrb[48].mxu1 %vm573_vm1, %v457_v44  ;;  %v520_v44 = vrot.slane %v518_v39, 1 }
  0x7c   : > { %805 = vmatprep.mubr.bf16.mxu0 %v12059_v2  ;;  %1066 = vmatprep.mubr.bf16.mxu1 %v12059_v2 }
  0x7d   : > { %v521_v47 = vsel %vm349_vm0, %v516_v42, %v520_v44 }
  0x83   : > { %9699 = vmatmul.mubr.msk.bf16.gmra.mrb[52].mxu0 %vm573_vm1, %v465_v52  ;;  %9722 = vmatmul.mubr.msk.bf16.gmra.mrb[52].mxu1 %vm573_vm1, %v465_v52  ;;  %v524_v52 = vor.u32 %v522_v48, %v520_v44 }
  0x84   : > { %815 = vmatprep.mubr.bf16.mxu0 %v12059_v2  ;;  %1076 = vmatprep.mubr.bf16.mxu1 %v12059_v2 }
  0x85   : > { %v529_v54 = vsel %vm349_vm0, %v524_v52, %v528_v53  ;;  %v12050_v52 = vld [vmem:[%s12123_s8 + $0x30] sm:$0xff]  }
  0x86   : > { %v1799_v53 = vrot.slane %v12050_v52, 1 }
  0x8b   : > { %9700 = vmatmul.mubr.msk.bf16.gmra.mrb[56].mxu0 %vm573_vm1, %v473_v59  ;;  %9723 = vmatmul.mubr.msk.bf16.gmra.mrb[56].mxu1 %vm573_vm1, %v473_v59  ;;  %v11886_v59 = vld [vmem:[%s14204_s1 + $0x80] ss:$16 sps:$4 sm:$0xff]  }
  0x8c   : > { %825 = vmatprep.mubr.bf16.mxu0 %v12059_v2  ;;  %1086 = vmatprep.mubr.bf16.mxu1 %v12059_v2 }
  0x93   : > { %9701 = vmatmul.mubr.msk.bf16.gmra.mrb[60].mxu0 %vm573_vm1, %v481_v5  ;;  %9724 = vmatmul.mubr.msk.bf16.gmra.mrb[60].mxu1 %vm573_vm1, %v481_v5  ;;  %v11895_v5 = vld [vmem:[%s14204_s1 + $0xa8] ss:$16 sps:$4 sm:$0xff]  }
  0x94   : > { %835 = vmatprep.mubr.bf16.mxu0 %v12059_v2  ;;  %1096 = vmatprep.mubr.bf16.mxu1 %v12059_v2 }
  0x9b   : > { %9702 = vmatmul.mubr.msk.bf16.gmra.mrb[64].mxu0 %vm573_vm1, %v489_v11  ;;  %9725 = vmatmul.mubr.msk.bf16.gmra.mrb[64].mxu1 %vm573_vm1, %v489_v11 }
  0x9c   : > { %845 = vmatprep.mubr.bf16.mxu0 %v12059_v2  ;;  %1106 = vmatprep.mubr.bf16.mxu1 %v12059_v2 }
  0xa3   : > { %9703 = vmatmul.mubr.msk.bf16.gmra.mrb[68].mxu0 %vm573_vm1, %v497_v21  ;;  %9726 = vmatmul.mubr.msk.bf16.gmra.mrb[68].mxu1 %vm573_vm1, %v497_v21  ;;  %v11906_v21 = vld [vmem:[%s14204_s1 + $0xe0] ss:$16 sps:$4 sm:$0xff]  }
  0xa4   : > { %855 = vmatprep.mubr.bf16.mxu0 %v12059_v2  ;;  %1116 = vmatprep.mubr.bf16.mxu1 %v12059_v2 }
  0xab   : > { %9704 = vmatmul.mubr.msk.bf16.gmra.mrb[72].mxu0 %vm573_vm1, %v505_v29  ;;  %9727 = vmatmul.mubr.msk.bf16.gmra.mrb[72].mxu1 %vm573_vm1, %v505_v29  ;;  %v1794_v29 = vsel %vm1787_vm2, %v1791_v19, %v1793_v26  ;;  %v2815_v19 = vrot.slane %v12722_v16, 2  ;;  %v11933_v26 = vld [vmem:[%s14204_s1 + $0x124] ss:$16 sps:$4 sm:$0xff]  }
  0xac   : > { %865 = vmatprep.mubr.bf16.mxu0 %v12059_v2  ;;  %1126 = vmatprep.mubr.bf16.mxu1 %v12059_v2 }
  0xb3   : > { %9705 = vmatmul.mubr.msk.bf16.gmra.mrb[76].mxu0 %vm573_vm1, %v513_v37  ;;  %9728 = vmatmul.mubr.msk.bf16.gmra.mrb[76].mxu1 %vm573_vm1, %v513_v37 }
  0xb4   : > { %875 = vmatprep.mubr.bf16.mxu0 %v12059_v2  ;;  %1136 = vmatprep.mubr.bf16.mxu1 %v12059_v2 }
  0xbb   : > { %9706 = vmatmul.mubr.msk.bf16.gmra.mrb[80].mxu0 %vm573_vm1, %v521_v47  ;;  %9729 = vmatmul.mubr.msk.bf16.gmra.mrb[80].mxu1 %vm573_vm1, %v521_v47  ;;  %v12049_v47 = vld [vmem:[%s12123_s8 + $0x28] sm:$0xff]  }
  0xbc   : > { %885 = vmatprep.mubr.bf16.mxu0 %v12059_v2  ;;  %1146 = vmatprep.mubr.bf16.mxu1 %v12059_v2  ;;  %v1797_v48 = vrot.slane %v12049_v47, 1  ;;  %v12768_v47 = vld [vmem:[%s12123_s8 + $0x28] sm:$0xff]  }
  0xbe   : > { %v1798_v49 = vsel %vm1787_vm2, %v1795_v31, %v1797_v48  ;;  %v11931_v31 = vld [vmem:[%s14204_s1 + $0x120] ss:$16 sps:$4 sm:$0xff]  }
  0xc3   : > { %9707 = vmatmul.mubr.msk.bf16.gmra.mrb[84].mxu0 %vm573_vm1, %v529_v54  ;;  %9730 = vmatmul.mubr.msk.bf16.gmra.mrb[84].mxu1 %vm573_vm1, %v529_v54  ;;  %v1800_v54 = vsel %vm1787_vm2, %v1797_v48, %v1799_v53  ;;  %v2821_v48 = vrot.slane %v12768_v47, 2 }
  0xc4   : > { %895 = vmatprep.mubr.bf16.mxu0 %v12059_v2  ;;  %1156 = vmatprep.mubr.bf16.mxu1 %v12059_v2 }
  0xcb   : > { %9708 = vmatmul.mubr.msk.bf16.gmra.mrb[88].mxu0 %vm573_vm1, %v532_v57  ;;  %9731 = vmatmul.mubr.msk.bf16.gmra.mrb[88].mxu1 %vm573_vm1, %v532_v57  ;;  %v1802_v57 = vsel %vm1787_vm2, %v1799_v53, %v1801_v56 }
  0xcc   : > { %1285 = vmatprep.mubr.bf16.mxu0 %v12059_v2  ;;  %1546 = vmatprep.mubr.bf16.mxu1 %v12059_v2 }
  0xd3   : > { %9741 = vmatmul.mubr.msk.bf16.vlgmr.msra.gmra.mrb[0].mxu0 %vm573_vm1, %v12130_v13  ;;  %9764 = vmatmul.mubr.msk.bf16.vlgmr.msra.gmra.mrb[0].mxu1 %vm573_vm1, %v12130_v13  ;;  %v11901_v13 = vld [vmem:[%s14204_s1 + $0xc4] ss:$16 sps:$4 sm:$0xff]  }
  0xd4   : > { %1943 = vmatpush1.bf16.msra.mxu0 %v11886_v59  ;;  %2204 = vmatpush1.bf16.msra.mxu1 %v11889_v60  ;;  %v1803_v59 = vrot.slane %v12213_v61, 1  ;;  %v11914_v60 = vld [vmem:[%s14204_s1 + $0x104] ss:$16 sps:$4 sm:$0xff]  }
  0xd5   : > { %1295 = vmatprep.mubr.bf16.mxu0 %v12059_v2  ;;  %1556 = vmatprep.mubr.bf16.mxu1 %v12059_v2 }
  0xd6   : > { %1944 = vmatprep.subr.bf16.mxu0 %v11894_v63  ;;  %2205 = vmatprep.subr.bf16.mxu1 %v11897_v0  ;;  %v1804_v63 = vsel %vm1787_vm2, %v1801_v56, %v1803_v59 }
  0xd8   : > { %1945 = vmatpush1.bf16.msra.mxu0 %v11892_v3  ;;  %2206 = vmatpush1.bf16.msra.mxu1 %v11895_v5  ;;  %v1807_v3 = vrot.slane %v12223_v1, 1 }
  0xd9   : > { %2968 = vmatprep.subr.bf16.mxu0 %v11901_v13 }
  0xdb   : > { %9742 = vmatmul.mubr.msk.bf16.gmra.mrb[4].mxu0 %vm573_vm1, %v12133_v14  ;;  %9765 = vmatmul.mubr.msk.bf16.gmra.mrb[4].mxu1 %vm573_vm1, %v12133_v14  ;;  %v11904_v14 = vld [vmem:[%s14204_s1 + $0xcc] ss:$16 sps:$4 sm:$0xff]  }
  0xdc   : > { %1305 = vmatprep.mubr.bf16.mxu0 %v12059_v2  ;;  %1566 = vmatprep.mubr.bf16.mxu1 %v12059_v2 }
  0xdd   : > { %3229 = vmatprep.subr.bf16.mxu1 %v11904_v14 }
  0xe3   : > { %9743 = vmatmul.mubr.msk.bf16.gmra.mrb[8].mxu0 %vm573_vm1, %v12139_v18  ;;  %9766 = vmatmul.mubr.msk.bf16.gmra.mrb[8].mxu1 %vm573_vm1, %v12139_v18  ;;  %v1775_v18 = vld [vmem:[%s12123_s8] sm:$0xe] }
  0xe4   : > { %1315 = vmatprep.mubr.bf16.mxu0 %v12059_v2  ;;  %1576 = vmatprep.mubr.bf16.mxu1 %v12059_v2 }
  0xeb   : > { %9744 = vmatmul.mubr.msk.bf16.gmra.mrb[12].mxu0 %vm573_vm1, %v12153_v27  ;;  %9767 = vmatmul.mubr.msk.bf16.gmra.mrb[12].mxu1 %vm573_vm1, %v12153_v27  ;;  %v9732_v27 = vcombine.low %v12359_v40, %v12359_v40 }
  0xec   : > { %1325 = vmatprep.mubr.bf16.mxu0 %v12059_v2  ;;  %1586 = vmatprep.mubr.bf16.mxu1 %v12059_v2 }
  0xf3   : > { %9745 = vmatmul.mubr.msk.bf16.gmra.mrb[16].mxu0 %vm573_vm1, %v12161_v33  ;;  %9768 = vmatmul.mubr.msk.bf16.gmra.mrb[16].mxu1 %vm573_vm1, %v12161_v33  ;;  %v12044_v33 = vld [vmem:[%s12123_s8 + $0x4] sm:$0xf] }
  0xf4   : > { %1335 = vmatprep.mubr.bf16.mxu0 %v12059_v2  ;;  %1596 = vmatprep.mubr.bf16.mxu1 %v12059_v2 }
  0xfb   : > { %9746 = vmatmul.mubr.msk.bf16.gmra.mrb[20].mxu0 %vm573_vm1, %v12187_v45  ;;  %9769 = vmatmul.mubr.msk.bf16.gmra.mrb[20].mxu1 %vm573_vm1, %v12187_v45  ;;  %v9787_v45 = vcombine.low %v1775_v18, %v12044_v33 }
  0xfc   : > { %1345 = vmatprep.mubr.bf16.mxu0 %v12059_v2  ;;  %1606 = vmatprep.mubr.bf16.mxu1 %v12059_v2 }
 0x103   : > { %9747 = vmatmul.mubr.msk.bf16.gmra.mrb[24].mxu0 %vm573_vm1, %v12197_v51  ;;  %9770 = vmatmul.mubr.msk.bf16.gmra.mrb[24].mxu1 %vm573_vm1, %v12197_v51  ;;  %v1788_v51 = vrot.slane %v9787_v45, 1 }
 0x104   : > { %1355 = vmatprep.mubr.bf16.mxu0 %v12059_v2  ;;  %1616 = vmatprep.mubr.bf16.mxu1 %v12059_v2 }
 0x105   : > { %v1790_v11 = vsel %vm1787_vm2, %v1788_v51, %v1789_v7 }
 0x10b   : > { %9748 = vmatmul.mubr.msk.bf16.gmra.mrb[28].mxu0 %vm573_vm1, %v12205_v55  ;;  %9771 = vmatmul.mubr.msk.bf16.gmra.mrb[28].mxu1 %vm573_vm1, %v12205_v55  ;;  %v11917_v55 = vld [vmem:[%s14204_s1 + $0x10c] ss:$16 sps:$4 sm:$0xff]  }
 0x10c   : > { %1365 = vmatprep.mubr.bf16.mxu0 %v12059_v2  ;;  %1626 = vmatprep.mubr.bf16.mxu1 %v12059_v2 }
 0x113   : > { %9749 = vmatmul.mubr.msk.bf16.gmra.mrb[32].mxu0 %vm573_vm1, %v12213_v61  ;;  %9772 = vmatmul.mubr.msk.bf16.gmra.mrb[32].mxu1 %vm573_vm1, %v12213_v61  ;;  %v1805_v61 = vrot.slane %v12218_v62, 1 }
 0x114   : > { %1375 = vmatprep.mubr.bf16.mxu0 %v12059_v2  ;;  %1636 = vmatprep.mubr.bf16.mxu1 %v12059_v2 }
 0x115   : > { %v1806_v0 = vsel %vm1787_vm2, %v1803_v59, %v1805_v61  ;;  %v1808_v5 = vsel %vm1787_vm2, %v1805_v61, %v1807_v3 }
 0x11b   : > { %9750 = vmatmul.mubr.msk.bf16.gmra.mrb[36].mxu0 %vm573_vm1, %v12218_v62  ;;  %9773 = vmatmul.mubr.msk.bf16.gmra.mrb[36].mxu1 %vm573_vm1, %v12218_v62  ;;  %v1809_v62 = vrot.slane %v12243_v17, 1 }
 0x11c   : > { %1385 = vmatprep.mubr.bf16.mxu0 %v12059_v2  ;;  %1646 = vmatprep.mubr.bf16.mxu1 %v12059_v2 }
 0x11d   : > { %v1810_v13 = vsel %vm1787_vm2, %v1807_v3, %v1809_v62 }
 0x123   : > { %9751 = vmatmul.mubr.msk.bf16.gmra.mrb[40].mxu0 %vm573_vm1, %v12223_v1  ;;  %9774 = vmatmul.mubr.msk.bf16.gmra.mrb[40].mxu1 %vm573_vm1, %v12223_v1  ;;  %v1811_v1 = vrot.slane %v12253_v24, 1 }
 0x124   : > { %1395 = vmatprep.mubr.bf16.mxu0 %v12059_v2  ;;  %1656 = vmatprep.mubr.bf16.mxu1 %v12059_v2 }
 0x125   : > { %v1812_v14 = vsel %vm1787_vm2, %v1809_v62, %v1811_v1 }
 0x12b   : > { %9752 = vmatmul.mubr.msk.bf16.gmra.mrb[44].mxu0 %vm573_vm1, %v12243_v17  ;;  %9775 = vmatmul.mubr.msk.bf16.gmra.mrb[44].mxu1 %vm573_vm1, %v12243_v17  ;;  %v1813_v17 = vrot.slane %v12269_v36, 1 }
 0x12c   : > { %1405 = vmatprep.mubr.bf16.mxu0 %v12059_v2  ;;  %1666 = vmatprep.mubr.bf16.mxu1 %v12059_v2 }
 0x12d   : > { %v1814_v18 = vsel %vm1787_vm2, %v1811_v1, %v1813_v17 }
 0x133   : > { %9753 = vmatmul.mubr.msk.bf16.gmra.mrb[48].mxu0 %vm573_vm1, %v12253_v24  ;;  %9776 = vmatmul.mubr.msk.bf16.gmra.mrb[48].mxu1 %vm573_vm1, %v12253_v24  ;;  %v1815_v24 = vrot.slane %v12283_v43, 1 }
 0x134   : > { %1415 = vmatprep.mubr.bf16.mxu0 %v12059_v2  ;;  %1676 = vmatprep.mubr.bf16.mxu1 %v12059_v2 }
 0x13b   : > { %9754 = vmatmul.mubr.msk.bf16.gmra.mrb[52].mxu0 %vm573_vm1, %v12269_v36  ;;  %9777 = vmatmul.mubr.msk.bf16.gmra.mrb[52].mxu1 %vm573_vm1, %v12269_v36  ;;  %v1817_v36 = vrot.slane %v12293_v50, 1 }
 0x13c   : > { %1425 = vmatprep.mubr.bf16.mxu0 %v12059_v2  ;;  %1686 = vmatprep.mubr.bf16.mxu1 %v12059_v2 }
 0x13d   : > { %v1818_v33 = vsel %vm1787_vm2, %v1815_v24, %v1817_v36 }
 0x143   : > { %9755 = vmatmul.mubr.msk.bf16.gmra.mrb[56].mxu0 %vm573_vm1, %v12283_v43  ;;  %9778 = vmatmul.mubr.msk.bf16.gmra.mrb[56].mxu1 %vm573_vm1, %v12283_v43  ;;  %v1819_v43 = vrot.slane %v12303_v58, 1 }
 0x144   : > { %1435 = vmatprep.mubr.bf16.mxu0 %v12059_v2  ;;  %1696 = vmatprep.mubr.bf16.mxu1 %v12059_v2 }
 0x145   : > { %v1820_v45 = vsel %vm1787_vm2, %v1817_v36, %v1819_v43 }
 0x14b   : > { %9756 = vmatmul.mubr.msk.bf16.gmra.mrb[60].mxu0 %vm573_vm1, %v12293_v50  ;;  %9779 = vmatmul.mubr.msk.bf16.gmra.mrb[60].mxu1 %vm573_vm1, %v12293_v50  ;;  %v1821_v50 = vrot.slane %v12313_v4, 1 }
 0x14c   : > { %1445 = vmatprep.mubr.bf16.mxu0 %v12059_v2  ;;  %1706 = vmatprep.mubr.bf16.mxu1 %v12059_v2 }
 0x14d   : > { %v1822_v51 = vsel %vm1787_vm2, %v1819_v43, %v1821_v50 }
 0x153   : > { %9757 = vmatmul.mubr.msk.bf16.gmra.mrb[64].mxu0 %vm573_vm1, %v12303_v58  ;;  %9780 = vmatmul.mubr.msk.bf16.gmra.mrb[64].mxu1 %vm573_vm1, %v12303_v58  ;;  %v1823_v58 = vrot.slane %v12323_v10, 1 }
 0x154   : > { %1455 = vmatprep.mubr.bf16.mxu0 %v12059_v2  ;;  %1716 = vmatprep.mubr.bf16.mxu1 %v12059_v2 }
 0x155   : > { %v1824_v6 = vsel %vm1787_vm2, %v1821_v50, %v1823_v58  ;;  %v12840_v50 = vld [vmem:[%s12123_s8 + $0x58] sm:$0xff]  }
 0x15b   : > { %9758 = vmatmul.mubr.msk.bf16.gmra.mrb[68].mxu0 %vm573_vm1, %v12313_v4  ;;  %9781 = vmatmul.mubr.msk.bf16.gmra.mrb[68].mxu1 %vm573_vm1, %v12313_v4  ;;  %v1825_v4 = vrot.slane %v12333_v20, 1 }
 0x15c   : > { %1465 = vmatprep.mubr.bf16.mxu0 %v12059_v2  ;;  %1726 = vmatprep.mubr.bf16.mxu1 %v12059_v2 }
 0x15d   : > { %v1826_v7 = vsel %vm1787_vm2, %v1823_v58, %v1825_v4 }
 0x163   : > { %9759 = vmatmul.mubr.msk.bf16.gmra.mrb[72].mxu0 %vm573_vm1, %v12323_v10  ;;  %9782 = vmatmul.mubr.msk.bf16.gmra.mrb[72].mxu1 %vm573_vm1, %v12323_v10  ;;  %v1827_v10 = vrot.slane %v12343_v28, 1 }
 0x164   : > { %1475 = vmatprep.mubr.bf16.mxu0 %v12059_v2  ;;  %1736 = vmatprep.mubr.bf16.mxu1 %v12059_v2 }
 0x16b   : > { %9760 = vmatmul.mubr.msk.bf16.gmra.mrb[76].mxu0 %vm573_vm1, %v12333_v20  ;;  %9783 = vmatmul.mubr.msk.bf16.gmra.mrb[76].mxu1 %vm573_vm1, %v12333_v20  ;;  %v1829_v20 = vrot.slane %v12353_v35, 1 }
 0x16c   : > { %1485 = vmatprep.mubr.bf16.mxu0 %v12059_v2  ;;  %1746 = vmatprep.mubr.bf16.mxu1 %v12059_v2 }
 0x173   : > { %9761 = vmatmul.mubr.msk.bf16.gmra.mrb[80].mxu0 %vm573_vm1, %v12343_v28  ;;  %9784 = vmatmul.mubr.msk.bf16.gmra.mrb[80].mxu1 %vm573_vm1, %v12343_v28  ;;  %v1831_v28 = vrot.slane %v12367_v46, 1 }
 0x174   : > { %1495 = vmatprep.mubr.bf16.mxu0 %v12059_v2  ;;  %1756 = vmatprep.mubr.bf16.mxu1 %v12059_v2 }
 0x17b   : > { %9762 = vmatmul.mubr.msk.bf16.gmra.mrb[84].mxu0 %vm573_vm1, %v12353_v35  ;;  %9785 = vmatmul.mubr.msk.bf16.gmra.mrb[84].mxu1 %vm573_vm1, %v12353_v35  ;;  %v2644_v35 = vld [vmem:[%s12123_s8 + $0x8] sm:$0xc] }
 0x17c   : > { %1505 = vmatprep.mubr.bf16.mxu0 %v12059_v2  ;;  %1766 = vmatprep.mubr.bf16.mxu1 %v12059_v2 }
 0x183   : > { %9763 = vmatmul.mubr.msk.bf16.gmra.mrb[92].mxu0 %vm573_vm1, %v9732_v27  ;;  %9786 = vmatmul.mubr.msk.bf16.gmra.mrb[92].mxu1 %vm573_vm1, %v9732_v27  ;;  %v1816_v27 = vsel %vm1787_vm2, %v1813_v17, %v1815_v24  ;;  %v12816_v17 = vld [vmem:[%s12123_s8 + $0x48] sm:$0xff]   ;;  %v11950_v24 = vld [vmem:[%s14204_s1 + $0x144] ss:$16 sps:$4 sm:$0xff]  }
 0x184   : > { %1974 = vmatprep.mubr.bf16.mxu0 %v12059_v2  ;;  %2235 = vmatprep.mubr.bf16.mxu1 %v12059_v2 }
 0x18b   : > { %9796 = vmatmul.mubr.msk.bf16.vlgmr.msra.gmra.mrb[0].mxu0 %vm573_vm1, %v1790_v11  ;;  %9819 = vmatmul.mubr.msk.bf16.vlgmr.msra.gmra.mrb[0].mxu1 %vm573_vm1, %v1790_v11  ;;  %v1832_v11 = vsel %vm1787_vm2, %v1829_v20, %v1831_v28 }
 0x18c   : > { %2969 = vmatpush1.bf16.msra.mxu0 %v11899_v8  ;;  %3230 = vmatpush1.bf16.msra.mxu1 %v11902_v9  ;;  %v1828_v8 = vsel %vm1787_vm2, %v1825_v4, %v1827_v10  ;;  %v1830_v9 = vsel %vm1787_vm2, %v1827_v10, %v1829_v20  ;;  %v12858_v10 = vld [vmem:[%s12123_s8 + $0x68] sm:$0xff]  }
 0x18d   : > { %1984 = vmatprep.mubr.bf16.mxu0 %v12059_v2  ;;  %2245 = vmatprep.mubr.bf16.mxu1 %v12059_v2 }
 0x18e   : > { %2970 = vmatprep.subr.bf16.mxu0 %v11908_v12  ;;  %3231 = vmatprep.subr.bf16.mxu1 %v11911_v15  ;;  %v12716_v12 = vld [vmem:[%s12123_s8 + $0xc] sm:$0xf] }
 0x18f   : > { %v12719_v15 = vcombine.low %v2644_v35, %v12716_v12  ;;  %v12876_v35 = vld [vmem:[%s12123_s8 + $0x78] sm:$0xff]  }
 0x190   : > { %2971 = vmatpush1.bf16.msra.mxu0 %v11906_v21  ;;  %3232 = vmatpush1.bf16.msra.mxu1 %v11909_v22  ;;  %v11912_v21 = vld [vmem:[%s14204_s1 + $0x100] ss:$16 sps:$4 sm:$0xff]   ;;  %v11915_v22 = vld [vmem:[%s14204_s1 + $0x108] ss:$16 sps:$4 sm:$0xff]  }
 0x191   : > { %3998 = vmatprep.subr.bf16.mxu0 %v11914_v60  ;;  %4259 = vmatprep.subr.bf16.mxu1 %v11917_v55  ;;  %v2814_v46 = vrot.slane %v12719_v15, 2 }
 0x193   : > { %9797 = vmatmul.mubr.msk.bf16.gmra.mrb[4].mxu0 %vm573_vm1, %v1792_v23  ;;  %9820 = vmatmul.mubr.msk.bf16.gmra.mrb[4].mxu1 %vm573_vm1, %v1792_v23  ;;  %v2816_v23 = vsel %vm2813_vm3, %v2814_v46, %v2815_v19  ;;  %v2841_v46 = vrot.slane %v12876_v35, 2 }
 0x194   : > { %1994 = vmatprep.mubr.bf16.mxu0 %v12059_v2  ;;  %2255 = vmatprep.mubr.bf16.mxu1 %v12059_v2 }
 0x19b   : > { %9798 = vmatmul.mubr.msk.bf16.gmra.mrb[8].mxu0 %vm573_vm1, %v1794_v29  ;;  %9821 = vmatmul.mubr.msk.bf16.gmra.mrb[8].mxu1 %vm573_vm1, %v1794_v29  ;;  %v11936_v29 = vld [vmem:[%s14204_s1 + $0x12c] ss:$16 sps:$4 sm:$0xff]  }
 0x19c   : > { %2004 = vmatprep.mubr.bf16.mxu0 %v12059_v2  ;;  %2265 = vmatprep.mubr.bf16.mxu1 %v12059_v2 }
 0x19e   : > { %v12587_v32 = vpop.f32.mrb[88].mxu0  ;;  %v12589_v34 = vpop.f32.mrb[88].mxu1 }
 0x19f   : > { %v12591_v37 = vpop.f32.mrb[89].mxu0  ;;  %v12593_v38 = vpop.f32.mrb[89].mxu1 }
 0x1a0   : > { %v901_v39 = vpop.f32.mrb[90].mxu0  ;;  %v1162_v40 = vpop.f32.mrb[90].mxu1 }
 0x1a1   : > { %v902_v42 = vpop.f32.mrb[91].mxu0  ;;  %v1163_v44 = vpop.f32.mrb[91].mxu1  ;;  %v11934_v39 = vld [vmem:[%s14204_s1 + $0x128] ss:$16 sps:$4 sm:$0xff]   ;;  %v2818_v40 = vsel %vm2813_vm3, %v2815_v19, %v2817_v30 }
 0x1a3   : > { %9799 = vmatmul.mubr.msk.bf16.gmra.mrb[12].mxu0 %vm573_vm1, %v1796_v41  ;;  %9822 = vmatmul.mubr.msk.bf16.gmra.mrb[12].mxu1 %vm573_vm1, %v1796_v41  ;;  %v12759_v41 = vld [vmem:[%s12123_s8 + $0x20] sm:$0xff]  }
 0x1a4   : > { %2014 = vmatprep.mubr.bf16.mxu0 %v12059_v2  ;;  %2275 = vmatprep.mubr.bf16.mxu1 %v12059_v2  ;;  %v2819_v42 = vrot.slane %v12759_v41, 2 }
 0x1a6   : > { %v2820_v44 = vsel %vm2813_vm3, %v2817_v30, %v2819_v42  ;;  %v2822_v61 = vsel %vm2813_vm3, %v2819_v42, %v2821_v48  ;;  %v12912_v42 = vld [vmem:[%s12123_s8 + $0x98] sm:$0xff]  }
 0x1ab   : > { %9800 = vmatmul.mubr.msk.bf16.gmra.mrb[16].mxu0 %vm573_vm1, %v1798_v49  ;;  %9823 = vmatmul.mubr.msk.bf16.gmra.mrb[16].mxu1 %vm573_vm1, %v1798_v49 }
 0x1ac   : > { %2024 = vmatprep.mubr.bf16.mxu0 %v12059_v2  ;;  %2285 = vmatprep.mubr.bf16.mxu1 %v12059_v2 }
 0x1b3   : > { %9801 = vmatmul.mubr.msk.bf16.gmra.mrb[20].mxu0 %vm573_vm1, %v1800_v54  ;;  %9824 = vmatmul.mubr.msk.bf16.gmra.mrb[20].mxu1 %vm573_vm1, %v1800_v54 }
 0x1b4   : > { %2034 = vmatprep.mubr.bf16.mxu0 %v12059_v2  ;;  %2295 = vmatprep.mubr.bf16.mxu1 %v12059_v2 }
 0x1bb   : > { %9802 = vmatmul.mubr.msk.bf16.gmra.mrb[24].mxu0 %vm573_vm1, %v1802_v57  ;;  %9825 = vmatmul.mubr.msk.bf16.gmra.mrb[24].mxu1 %vm573_vm1, %v1802_v57 }
 0x1bc   : > { %2044 = vmatprep.mubr.bf16.mxu0 %v12059_v2  ;;  %2305 = vmatprep.mubr.bf16.mxu1 %v12059_v2 }
 0x1c3   : > { %9803 = vmatmul.mubr.msk.bf16.gmra.mrb[28].mxu0 %vm573_vm1, %v1804_v63  ;;  %9826 = vmatmul.mubr.msk.bf16.gmra.mrb[28].mxu1 %vm573_vm1, %v1804_v63 }
 0x1c4   : > { %2054 = vmatprep.mubr.bf16.mxu0 %v12059_v2  ;;  %2315 = vmatprep.mubr.bf16.mxu1 %v12059_v2 }
 0x1cb   : > { %9804 = vmatmul.mubr.msk.bf16.gmra.mrb[32].mxu0 %vm573_vm1, %v1806_v0  ;;  %9827 = vmatmul.mubr.msk.bf16.gmra.mrb[32].mxu1 %vm573_vm1, %v1806_v0  ;;  %v12789_v0 = vld [vmem:[%s12123_s8 + $0x30] sm:$0xff]  }
 0x1cc   : > { %2064 = vmatprep.mubr.bf16.mxu0 %v12059_v2  ;;  %2325 = vmatprep.mubr.bf16.mxu1 %v12059_v2 }
 0x1d3   : > { %9805 = vmatmul.mubr.msk.bf16.gmra.mrb[36].mxu0 %vm573_vm1, %v1808_v5  ;;  %9828 = vmatmul.mubr.msk.bf16.gmra.mrb[36].mxu1 %vm573_vm1, %v1808_v5 }
 0x1d4   : > { %2074 = vmatprep.mubr.bf16.mxu0 %v12059_v2  ;;  %2335 = vmatprep.mubr.bf16.mxu1 %v12059_v2 }
 0x1db   : > { %9806 = vmatmul.mubr.msk.bf16.gmra.mrb[40].mxu0 %vm573_vm1, %v1810_v13  ;;  %9829 = vmatmul.mubr.msk.bf16.gmra.mrb[40].mxu1 %vm573_vm1, %v1810_v13  ;;  %v12807_v13 = vld [vmem:[%s12123_s8 + $0x40] sm:$0xff]  }
 0x1dc   : > { %2084 = vmatprep.mubr.bf16.mxu0 %v12059_v2  ;;  %2345 = vmatprep.mubr.bf16.mxu1 %v12059_v2  ;;  %v2827_v1 = vrot.slane %v12807_v13, 2 }
 0x1e3   : > { %9807 = vmatmul.mubr.msk.bf16.gmra.mrb[44].mxu0 %vm573_vm1, %v1812_v14  ;;  %9830 = vmatmul.mubr.msk.bf16.gmra.mrb[44].mxu1 %vm573_vm1, %v1812_v14 }
 0x1e4   : > { %2094 = vmatprep.mubr.bf16.mxu0 %v12059_v2  ;;  %2355 = vmatprep.mubr.bf16.mxu1 %v12059_v2 }
 0x1eb   : > { %9808 = vmatmul.mubr.msk.bf16.gmra.mrb[48].mxu0 %vm573_vm1, %v1814_v18  ;;  %9831 = vmatmul.mubr.msk.bf16.gmra.mrb[48].mxu1 %vm573_vm1, %v1814_v18  ;;  %v2829_v18 = vrot.slane %v12816_v17, 2 }
 0x1ec   : > { %2104 = vmatprep.mubr.bf16.mxu0 %v12059_v2  ;;  %2365 = vmatprep.mubr.bf16.mxu1 %v12059_v2 }
 0x1ed   : > { %v2830_v36 = vsel %vm2813_vm3, %v2827_v1, %v2829_v18 }
 0x1f3   : > { %9809 = vmatmul.mubr.msk.bf16.gmra.mrb[52].mxu0 %vm573_vm1, %v1816_v27  ;;  %9832 = vmatmul.mubr.msk.bf16.gmra.mrb[52].mxu1 %vm573_vm1, %v1816_v27  ;;  %v11953_v27 = vld [vmem:[%s14204_s1 + $0x14c] ss:$16 sps:$4 sm:$0xff]  }
 0x1f4   : > { %2114 = vmatprep.mubr.bf16.mxu0 %v12059_v2  ;;  %2375 = vmatprep.mubr.bf16.mxu1 %v12059_v2 }
 0x1fb   : > { %9810 = vmatmul.mubr.msk.bf16.gmra.mrb[56].mxu0 %vm573_vm1, %v1818_v33  ;;  %9833 = vmatmul.mubr.msk.bf16.gmra.mrb[56].mxu1 %vm573_vm1, %v1818_v33  ;;  %v12831_v33 = vld [vmem:[%s12123_s8 + $0x50] sm:$0xff]  }
 0x1fc   : > { %2124 = vmatprep.mubr.bf16.mxu0 %v12059_v2  ;;  %2385 = vmatprep.mubr.bf16.mxu1 %v12059_v2  ;;  %v2831_v43 = vrot.slane %v12831_v33, 2 }
 0x203   : > { %9811 = vmatmul.mubr.msk.bf16.gmra.mrb[60].mxu0 %vm573_vm1, %v1820_v45  ;;  %9834 = vmatmul.mubr.msk.bf16.gmra.mrb[60].mxu1 %vm573_vm1, %v1820_v45  ;;  %v2832_v45 = vsel %vm2813_vm3, %v2829_v18, %v2831_v43  ;;  %v3687_v18 = vshll.u32 %v12719_v15, 16 }
 0x204   : > { %2134 = vmatprep.mubr.bf16.mxu0 %v12059_v2  ;;  %2395 = vmatprep.mubr.bf16.mxu1 %v12059_v2 }
 0x20b   : > { %9812 = vmatmul.mubr.msk.bf16.gmra.mrb[64].mxu0 %vm573_vm1, %v1822_v51  ;;  %9835 = vmatmul.mubr.msk.bf16.gmra.mrb[64].mxu1 %vm573_vm1, %v1822_v51  ;;  %v2833_v51 = vrot.slane %v12840_v50, 2 }
 0x20c   : > { %2144 = vmatprep.mubr.bf16.mxu0 %v12059_v2  ;;  %2405 = vmatprep.mubr.bf16.mxu1 %v12059_v2 }
 0x20d   : > { %v2834_v58 = vsel %vm2813_vm3, %v2831_v43, %v2833_v51  ;;  %v3689_v43 = vrot.slane %v3687_v18, 3 }
 0x213   : > { %9813 = vmatmul.mubr.msk.bf16.gmra.mrb[68].mxu0 %vm573_vm1, %v1824_v6  ;;  %9836 = vmatmul.mubr.msk.bf16.gmra.mrb[68].mxu1 %vm573_vm1, %v1824_v6  ;;  %v12849_v6 = vld [vmem:[%s12123_s8 + $0x60] sm:$0xff]  }
 0x214   : > { %2154 = vmatprep.mubr.bf16.mxu0 %v12059_v2  ;;  %2415 = vmatprep.mubr.bf16.mxu1 %v12059_v2  ;;  %v2835_v4 = vrot.slane %v12849_v6, 2 }
 0x21b   : > { %9814 = vmatmul.mubr.msk.bf16.gmra.mrb[72].mxu0 %vm573_vm1, %v1826_v7  ;;  %9837 = vmatmul.mubr.msk.bf16.gmra.mrb[72].mxu1 %vm573_vm1, %v1826_v7  ;;  %v2836_v7 = vsel %vm2813_vm3, %v2833_v51, %v2835_v4 }
 0x21c   : > { %2164 = vmatprep.mubr.bf16.mxu0 %v12059_v2  ;;  %2425 = vmatprep.mubr.bf16.mxu1 %v12059_v2 }
 0x223   : > { %9815 = vmatmul.mubr.msk.bf16.gmra.mrb[76].mxu0 %vm573_vm1, %v1828_v8  ;;  %9838 = vmatmul.mubr.msk.bf16.gmra.mrb[76].mxu1 %vm573_vm1, %v1828_v8  ;;  %v2837_v8 = vrot.slane %v12858_v10, 2 }
 0x224   : > { %2174 = vmatprep.mubr.bf16.mxu0 %v12059_v2  ;;  %2435 = vmatprep.mubr.bf16.mxu1 %v12059_v2 }
 0x225   : > { %v2838_v20 = vsel %vm2813_vm3, %v2835_v4, %v2837_v8 }
 0x22b   : > { %9816 = vmatmul.mubr.msk.bf16.gmra.mrb[80].mxu0 %vm573_vm1, %v1830_v9  ;;  %9839 = vmatmul.mubr.msk.bf16.gmra.mrb[80].mxu1 %vm573_vm1, %v1830_v9  ;;  %v12867_v9 = vld [vmem:[%s12123_s8 + $0x70] sm:$0xff]  }
 0x22c   : > { %2184 = vmatprep.mubr.bf16.mxu0 %v12059_v2  ;;  %2445 = vmatprep.mubr.bf16.mxu1 %v12059_v2 }
 0x233   : > { %9817 = vmatmul.mubr.msk.bf16.gmra.mrb[84].mxu0 %vm573_vm1, %v1832_v11  ;;  %9840 = vmatmul.mubr.msk.bf16.gmra.mrb[84].mxu1 %vm573_vm1, %v1832_v11 }
 0x234   : > { %2194 = vmatprep.mubr.bf16.mxu0 %v12059_v2  ;;  %2455 = vmatprep.mubr.bf16.mxu1 %v12059_v2 }
 0x23b   : > { %9818 = vmatmul.mubr.msk.bf16.gmra.mrb[96].mxu0 %vm573_vm1, %v1831_v28  ;;  %9841 = vmatmul.mubr.msk.bf16.gmra.mrb[96].mxu1 %vm573_vm1, %v1831_v28  ;;  %v2839_v28 = vrot.slane %v12867_v9, 2 }
 0x23c   : > { %3000 = vmatprep.mubr.bf16.mxu0 %v12059_v2  ;;  %3261 = vmatprep.mubr.bf16.mxu1 %v12059_v2 }
 0x23d   : > { %v2840_v11 = vsel %vm2813_vm3, %v2837_v8, %v2839_v28  ;;  %v2842_v19 = vsel %vm2813_vm3, %v2839_v28, %v2841_v46  ;;  %v11948_v8 = vld [vmem:[%s14204_s1 + $0x140] ss:$16 sps:$4 sm:$0xff]  }
 0x243   : > { %9873 = vmatmul.mubr.msk.bf16.vlgmr.msra.gmra.mrb[0].mxu0 %vm573_vm1, %v2816_v23  ;;  %9896 = vmatmul.mubr.msk.bf16.vlgmr.msra.gmra.mrb[0].mxu1 %vm573_vm1, %v2816_v23 }
 0x244   : > { %3999 = vmatpush1.bf16.msra.mxu0 %v11912_v21  ;;  %4260 = vmatpush1.bf16.msra.mxu1 %v11915_v22  ;;  %v12885_v21 = vld [vmem:[%s12123_s8 + $0x80] sm:$0xff]  }
 0x245   : > { %3010 = vmatprep.mubr.bf16.mxu0 %v12059_v2  ;;  %3271 = vmatprep.mubr.bf16.mxu1 %v12059_v2  ;;  %v2843_v22 = vrot.slane %v12885_v21, 2 }
 0x246   : > { %4000 = vmatprep.subr.bf16.mxu0 %v11933_v26  ;;  %4261 = vmatprep.subr.bf16.mxu1 %v11936_v29  ;;  %v12894_v26 = vld [vmem:[%s12123_s8 + $0x88] sm:$0xff]  }
 0x247   : > { %v2844_v23 = vsel %vm2813_vm3, %v2841_v46, %v2843_v22  ;;  %v2845_v29 = vrot.slane %v12894_v26, 2 }
 0x248   : > { %4001 = vmatpush1.bf16.msra.mxu0 %v11931_v31  ;;  %4262 = vmatpush1.bf16.msra.mxu1 %v11934_v39  ;;  %v12903_v31 = vld [vmem:[%s12123_s8 + $0x90] sm:$0xff]  }
 0x249   : > { %4867 = vmatprep.subr.bf16.mxu0 %v11950_v24  ;;  %5128 = vmatprep.subr.bf16.mxu1 %v11953_v27  ;;  %v2846_v30 = vsel %vm2813_vm3, %v2843_v22, %v2845_v29  ;;  %v2847_v39 = vrot.slane %v12903_v31, 2  ;;  %v3692_v24 = vshrl.u32 %v12722_v16, 16  ;;  %v3695_v27 = vshll.u32 %v12722_v16, 16  ;;  %v11959_v22 = vld [vmem:[%s14204_s1 + $0x16c] ss:$16 sps:$4 sm:$0xff]  }
 0x24b   : > { %9874 = vmatmul.mubr.msk.bf16.gmra.mrb[4].mxu0 %vm573_vm1, %v2818_v40  ;;  %9897 = vmatmul.mubr.msk.bf16.gmra.mrb[4].mxu1 %vm573_vm1, %v2818_v40  ;;  %v2848_v40 = vsel %vm2813_vm3, %v2845_v29, %v2847_v39  ;;  %v3697_v51 = vrot.slane %v3695_v27, 3  ;;  %v3710_v29 = vshrl.u32 %v12759_v41, 16 }
 0x24c   : > { %3020 = vmatprep.mubr.bf16.mxu0 %v12059_v2  ;;  %3281 = vmatprep.mubr.bf16.mxu1 %v12059_v2 }
 0x253   : > { %9875 = vmatmul.mubr.msk.bf16.gmra.mrb[8].mxu0 %vm573_vm1, %v2820_v44  ;;  %9898 = vmatmul.mubr.msk.bf16.gmra.mrb[8].mxu1 %vm573_vm1, %v2820_v44  ;;  %v2849_v44 = vrot.slane %v12912_v42, 2 }
 0x254   : > { %3030 = vmatprep.mubr.bf16.mxu0 %v12059_v2  ;;  %3291 = vmatprep.mubr.bf16.mxu1 %v12059_v2 }
 0x256   : > { %v1507_v49 = vpop.f32.mrb[92].mxu0  ;;  %v1768_v52 = vpop.f32.mrb[92].mxu1 }
 0x257   : > { %v12776_v53 = vadd.f32 %v1507_v49, %v12587_v32  ;;  %v12779_v54 = vadd.f32 %v1768_v52, %v12589_v34  ;;  %v1509_v56 = vpop.f32.mrb[93].mxu0  ;;  %v1770_v57 = vpop.f32.mrb[93].mxu1  ;;  %v2823_v34 = vrot.slane %v12789_v0, 2  ;;  %v12921_v49 = vld [vmem:[%s12123_s8 + $0xa0] sm:$0xff]  }
 0x258   : > { %v12782_v59 = vadd.f32 %v1509_v56, %v12591_v37  ;;  %v12785_v60 = vadd.f32 %v1770_v57, %v12593_v38  ;;  %v1511_v55 = vpop.f32.mrb[94].mxu0  ;;  %v1772_v63 = vpop.f32.mrb[94].mxu1  ;;  %v12798_v38 = vld [vmem:[%s12123_s8 + $0x38] sm:$0xff]   ;;  %v2851_v52 = vrot.slane %v12921_v49, 2  ;;  %v12930_v57 = vld [vmem:[%s12123_s8 + $0xa8] sm:$0xff]  }
 0x259   : > { %v1512_v32 = vpop.f32.mrb[95].mxu0  ;;  %v1773_v3 = vpop.f32.mrb[95].mxu1  ;;  %v2824_v37 = vsel %vm2813_vm3, %v2821_v48, %v2823_v34  ;;  %v2825_v5 = vrot.slane %v12798_v38, 2  ;;  %v2850_v48 = vsel %vm2813_vm3, %v2847_v39, %v2849_v44  ;;  %v2853_v55 = vrot.slane %v12930_v57, 2  ;;  %v11954_v39 = vld [vmem:[%s14204_s1 + $0x160] ss:$16 sps:$4 sm:$0xff]  }
 0x25a   : > { %v2852_v56 = vsel %vm2813_vm3, %v2849_v44, %v2851_v52  ;;  %v12947_v3 = vld [vmem:[%s12123_s8 + $0xb8] sm:$0xf] }
 0x25b   : > { %9876 = vmatmul.mubr.msk.bf16.gmra.mrb[12].mxu0 %vm573_vm1, %v2822_v61  ;;  %9899 = vmatmul.mubr.msk.bf16.gmra.mrb[12].mxu1 %vm573_vm1, %v2822_v61  ;;  %v2826_v62 = vsel %vm2813_vm3, %v2823_v34, %v2825_v5  ;;  %v2828_v14 = vsel %vm2813_vm3, %v2825_v5, %v2827_v1  ;;  %v2854_v63 = vsel %vm2813_vm3, %v2851_v52, %v2853_v55  ;;  %v12939_v61 = vld [vmem:[%s12123_s8 + $0xb0] sm:$0xff]   ;;  %v2689_v34 = vld [vmem:[%s12123_s8 + $0xbc] sm:$0x3] }
 0x25c   : > { %3040 = vmatprep.mubr.bf16.mxu0 %v12059_v2  ;;  %3301 = vmatprep.mubr.bf16.mxu1 %v12059_v2  ;;  %v2855_v32 = vrot.slane %v12939_v61, 2  ;;  %v9864_v5 = vcombine.low %v12947_v3, %v2689_v34 }
 0x263   : > { %9877 = vmatmul.mubr.msk.bf16.gmra.mrb[16].mxu0 %vm573_vm1, %v2824_v37  ;;  %9900 = vmatmul.mubr.msk.bf16.gmra.mrb[16].mxu1 %vm573_vm1, %v2824_v37  ;;  %v2856_v37 = vsel %vm2813_vm3, %v2853_v55, %v2855_v32  ;;  %v3722_v55 = vshll.u32 %v12768_v47, 16 }
 0x264   : > { %3050 = vmatprep.mubr.bf16.mxu0 %v12059_v2  ;;  %3311 = vmatprep.mubr.bf16.mxu1 %v12059_v2 }
 0x265   : > { %v3724_v34 = vrot.slane %v3722_v55, 3 }
 0x26b   : > { %9878 = vmatmul.mubr.msk.bf16.gmra.mrb[20].mxu0 %vm573_vm1, %v2826_v62  ;;  %9901 = vmatmul.mubr.msk.bf16.gmra.mrb[20].mxu1 %vm573_vm1, %v2826_v62  ;;  %v2857_v62 = vrot.slane %v9864_v5, 2 }
 0x26c   : > { %3060 = vmatprep.mubr.bf16.mxu0 %v12059_v2  ;;  %3321 = vmatprep.mubr.bf16.mxu1 %v12059_v2 }
 0x26d   : > { %v2858_v1 = vsel %vm2813_vm3, %v2855_v32, %v2857_v62 }
 0x273   : > { %9879 = vmatmul.mubr.msk.bf16.gmra.mrb[24].mxu0 %vm573_vm1, %v2828_v14  ;;  %9902 = vmatmul.mubr.msk.bf16.gmra.mrb[24].mxu1 %vm573_vm1, %v2828_v14  ;;  %v3684_v14 = vshrl.u32 %v12719_v15, 16  ;;  %v3701_v15 = vshrl.u32 %v12738_v25, 16 }
 0x274   : > { %3070 = vmatprep.mubr.bf16.mxu0 %v12059_v2  ;;  %3331 = vmatprep.mubr.bf16.mxu1 %v12059_v2 }
 0x27b   : > { %9880 = vmatmul.mubr.msk.bf16.gmra.mrb[28].mxu0 %vm573_vm1, %v2830_v36  ;;  %9903 = vmatmul.mubr.msk.bf16.gmra.mrb[28].mxu1 %vm573_vm1, %v2830_v36  ;;  %v3686_v36 = vrot.slane %v3684_v14, 2 }
 0x27c   : > { %3080 = vmatprep.mubr.bf16.mxu0 %v12059_v2  ;;  %3341 = vmatprep.mubr.bf16.mxu1 %v12059_v2 }
 0x283   : > { %9881 = vmatmul.mubr.msk.bf16.gmra.mrb[32].mxu0 %vm573_vm1, %v2832_v45  ;;  %9904 = vmatmul.mubr.msk.bf16.gmra.mrb[32].mxu1 %vm573_vm1, %v2832_v45  ;;  %v3694_v45 = vrot.slane %v3692_v24, 2 }
 0x284   : > { %3090 = vmatprep.mubr.bf16.mxu0 %v12059_v2  ;;  %3351 = vmatprep.mubr.bf16.mxu1 %v12059_v2 }
 0x285   : > { %v3698_v4 = vor.u32 %v3697_v51, %v3694_v45 }
 0x28b   : > { %9882 = vmatmul.mubr.msk.bf16.gmra.mrb[36].mxu0 %vm573_vm1, %v2834_v58  ;;  %9905 = vmatmul.mubr.msk.bf16.gmra.mrb[36].mxu1 %vm573_vm1, %v2834_v58  ;;  %v3690_v58 = vor.u32 %v3689_v43, %v3686_v36 }
 0x28c   : > { %3100 = vmatprep.mubr.bf16.mxu0 %v12059_v2  ;;  %3361 = vmatprep.mubr.bf16.mxu1 %v12059_v2 }
 0x28d   : > { %v3699_v28 = vsel %vm3682_vm4, %v3690_v58, %v3698_v4 }
 0x293   : > { %9883 = vmatmul.mubr.msk.bf16.gmra.mrb[40].mxu0 %vm573_vm1, %v2836_v7  ;;  %9906 = vmatmul.mubr.msk.bf16.gmra.mrb[40].mxu1 %vm573_vm1, %v2836_v7  ;;  %v3704_v7 = vshll.u32 %v12738_v25, 16 }
 0x294   : > { %3110 = vmatprep.mubr.bf16.mxu0 %v12059_v2  ;;  %3371 = vmatprep.mubr.bf16.mxu1 %v12059_v2 }
 0x295   : > { %v3706_v46 = vrot.slane %v3704_v7, 3 }
 0x29b   : > { %9884 = vmatmul.mubr.msk.bf16.gmra.mrb[44].mxu0 %vm573_vm1, %v2838_v20  ;;  %9907 = vmatmul.mubr.msk.bf16.gmra.mrb[44].mxu1 %vm573_vm1, %v2838_v20  ;;  %v11951_v20 = vld [vmem:[%s14204_s1 + $0x148] ss:$16 sps:$4 sm:$0xff]  }
 0x29c   : > { %3120 = vmatprep.mubr.bf16.mxu0 %v12059_v2  ;;  %3381 = vmatprep.mubr.bf16.mxu1 %v12059_v2 }
 0x2a3   : > { %9885 = vmatmul.mubr.msk.bf16.gmra.mrb[48].mxu0 %vm573_vm1, %v2840_v11  ;;  %9908 = vmatmul.mubr.msk.bf16.gmra.mrb[48].mxu1 %vm573_vm1, %v2840_v11  ;;  %v3703_v11 = vrot.slane %v3701_v15, 2 }
 0x2a4   : > { %3130 = vmatprep.mubr.bf16.mxu0 %v12059_v2  ;;  %3391 = vmatprep.mubr.bf16.mxu1 %v12059_v2 }
 0x2ab   : > { %9886 = vmatmul.mubr.msk.bf16.gmra.mrb[52].mxu0 %vm573_vm1, %v2842_v19  ;;  %9909 = vmatmul.mubr.msk.bf16.gmra.mrb[52].mxu1 %vm573_vm1, %v2842_v19  ;;  %v11956_v19 = vld [vmem:[%s14204_s1 + $0x164] ss:$16 sps:$4 sm:$0xff]  }
 0x2ac   : > { %3140 = vmatprep.mubr.bf16.mxu0 %v12059_v2  ;;  %3401 = vmatprep.mubr.bf16.mxu1 %v12059_v2 }
 0x2b3   : > { %9887 = vmatmul.mubr.msk.bf16.gmra.mrb[56].mxu0 %vm573_vm1, %v2844_v23  ;;  %9910 = vmatmul.mubr.msk.bf16.gmra.mrb[56].mxu1 %vm573_vm1, %v2844_v23  ;;  %v3707_v23 = vor.u32 %v3706_v46, %v3703_v11 }
 0x2b4   : > { %3150 = vmatprep.mubr.bf16.mxu0 %v12059_v2  ;;  %3411 = vmatprep.mubr.bf16.mxu1 %v12059_v2 }
 0x2b5   : > { %v3708_v44 = vsel %vm3682_vm4, %v3698_v4, %v3707_v23 }
 0x2bb   : > { %9888 = vmatmul.mubr.msk.bf16.gmra.mrb[60].mxu0 %vm573_vm1, %v2846_v30  ;;  %9911 = vmatmul.mubr.msk.bf16.gmra.mrb[60].mxu1 %vm573_vm1, %v2846_v30  ;;  %v3713_v30 = vshll.u32 %v12759_v41, 16 }
 0x2bc   : > { %3160 = vmatprep.mubr.bf16.mxu0 %v12059_v2  ;;  %3421 = vmatprep.mubr.bf16.mxu1 %v12059_v2 }
 0x2bd   : > { %v3715_v52 = vrot.slane %v3713_v30, 3 }
 0x2c3   : > { %9889 = vmatmul.mubr.msk.bf16.gmra.mrb[64].mxu0 %vm573_vm1, %v2848_v40  ;;  %9912 = vmatmul.mubr.msk.bf16.gmra.mrb[64].mxu1 %vm573_vm1, %v2848_v40  ;;  %v11957_v40 = vld [vmem:[%s14204_s1 + $0x168] ss:$16 sps:$4 sm:$0xff]  }
 0x2c4   : > { %3170 = vmatprep.mubr.bf16.mxu0 %v12059_v2  ;;  %3431 = vmatprep.mubr.bf16.mxu1 %v12059_v2 }
 0x2cb   : > { %9890 = vmatmul.mubr.msk.bf16.gmra.mrb[68].mxu0 %vm573_vm1, %v2850_v48  ;;  %9913 = vmatmul.mubr.msk.bf16.gmra.mrb[68].mxu1 %vm573_vm1, %v2850_v48  ;;  %v3712_v48 = vrot.slane %v3710_v29, 2 }
 0x2cc   : > { %3180 = vmatprep.mubr.bf16.mxu0 %v12059_v2  ;;  %3441 = vmatprep.mubr.bf16.mxu1 %v12059_v2 }
 0x2d3   : > { %9891 = vmatmul.mubr.msk.bf16.gmra.mrb[72].mxu0 %vm573_vm1, %v2852_v56  ;;  %9914 = vmatmul.mubr.msk.bf16.gmra.mrb[72].mxu1 %vm573_vm1, %v2852_v56  ;;  %v3719_v56 = vshrl.u32 %v12768_v47, 16 }
 0x2d4   : > { %3190 = vmatprep.mubr.bf16.mxu0 %v12059_v2  ;;  %3451 = vmatprep.mubr.bf16.mxu1 %v12059_v2 }
 0x2d5   : > { %v3721_v32 = vrot.slane %v3719_v56, 2 }
 0x2d7   : > { %v3725_v5 = vor.u32 %v3724_v34, %v3721_v32  ;;  %v3764_v32 = vshrl.u32 %v12831_v33, 16  ;;  %v3767_v34 = vshll.u32 %v12831_v33, 16 }
 0x2db   : > { %9892 = vmatmul.mubr.msk.bf16.gmra.mrb[76].mxu0 %vm573_vm1, %v2854_v63  ;;  %9915 = vmatmul.mubr.msk.bf16.gmra.mrb[76].mxu1 %vm573_vm1, %v2854_v63  ;;  %v3716_v63 = vor.u32 %v3715_v52, %v3712_v48  ;;  %v3758_v48 = vshll.u32 %v12816_v17, 16 }
 0x2dc   : > { %3200 = vmatprep.mubr.bf16.mxu0 %v12059_v2  ;;  %3461 = vmatprep.mubr.bf16.mxu1 %v12059_v2 }
 0x2dd   : > { %v3726_v45 = vsel %vm3682_vm4, %v3716_v63, %v3725_v5  ;;  %v3760_v55 = vrot.slane %v3758_v48, 3 }
 0x2e3   : > { %9893 = vmatmul.mubr.msk.bf16.gmra.mrb[80].mxu0 %vm573_vm1, %v2856_v37  ;;  %9916 = vmatmul.mubr.msk.bf16.gmra.mrb[80].mxu1 %vm573_vm1, %v2856_v37  ;;  %v3717_v37 = vsel %vm3682_vm4, %v3707_v23, %v3716_v63  ;;  %v3749_v23 = vshll.u32 %v12807_v13, 16 }
 0x2e4   : > { %3210 = vmatprep.mubr.bf16.mxu0 %v12059_v2  ;;  %3471 = vmatprep.mubr.bf16.mxu1 %v12059_v2 }
 0x2eb   : > { %9894 = vmatmul.mubr.msk.bf16.gmra.mrb[84].mxu0 %vm573_vm1, %v2858_v1  ;;  %9917 = vmatmul.mubr.msk.bf16.gmra.mrb[84].mxu1 %vm573_vm1, %v2858_v1  ;;  %v3731_v1 = vshll.u32 %v12789_v0, 16 }
 0x2ec   : > { %3220 = vmatprep.mubr.bf16.mxu0 %v12059_v2  ;;  %3481 = vmatprep.mubr.bf16.mxu1 %v12059_v2 }
 0x2f3   : > { %9895 = vmatmul.mubr.msk.bf16.gmra.mrb[100].mxu0 %vm573_vm1, %v2857_v62  ;;  %9918 = vmatmul.mubr.msk.bf16.gmra.mrb[100].mxu1 %vm573_vm1, %v2857_v62  ;;  %v3728_v62 = vshrl.u32 %v12789_v0, 16 }
 0x2f4   : > { %4030 = vmatprep.mubr.bf16.mxu0 %v12059_v2  ;;  %4291 = vmatprep.mubr.bf16.mxu1 %v12059_v2 }
 0x2f5   : > { %v3730_v7 = vrot.slane %v3728_v62, 2 }
 0x2fb   : > { %9928 = vmatmul.mubr.msk.bf16.vlgmr.msra.gmra.mrb[0].mxu0 %vm573_vm1, %v3699_v28  ;;  %9951 = vmatmul.mubr.msk.bf16.vlgmr.msra.gmra.mrb[0].mxu1 %vm573_vm1, %v3699_v28 }
 0x2fc   : > { %4868 = vmatpush1.bf16.msra.mxu0 %v11948_v8  ;;  %5129 = vmatpush1.bf16.msra.mxu1 %v11951_v20  ;;  %v3733_v8 = vrot.slane %v3731_v1, 3  ;;  %v3766_v1 = vrot.slane %v3764_v32, 2 }
 0x2fd   : > { %4040 = vmatprep.mubr.bf16.mxu0 %v12059_v2  ;;  %4301 = vmatprep.mubr.bf16.mxu1 %v12059_v2 }
 0x2fe   : > { %4869 = vmatprep.subr.bf16.mxu0 %v11956_v19  ;;  %5130 = vmatprep.subr.bf16.mxu1 %v11959_v22  ;;  %v3746_v22 = vshrl.u32 %v12807_v13, 16 }
 0x300   : > { %4870 = vmatpush1.bf16.msra.mxu0 %v11954_v39  ;;  %5131 = vmatpush1.bf16.msra.mxu1 %v11957_v40  ;;  %v3748_v30 = vrot.slane %v3746_v22, 2  ;;  %v3751_v39 = vrot.slane %v3749_v23, 3 }
 0x302   : > { %v3752_v40 = vor.u32 %v3751_v39, %v3748_v30  ;;  %v3803_v30 = vshll.u32 %v12867_v9, 16 }
 0x303   : > { %9929 = vmatmul.mubr.msk.bf16.gmra.mrb[4].mxu0 %vm573_vm1, %v3708_v44  ;;  %9952 = vmatmul.mubr.msk.bf16.gmra.mrb[4].mxu1 %vm573_vm1, %v3708_v44  ;;  %v3755_v44 = vshrl.u32 %v12816_v17, 16 }
 0x304   : > { %4050 = vmatprep.mubr.bf16.mxu0 %v12059_v2  ;;  %4311 = vmatprep.mubr.bf16.mxu1 %v12059_v2 }
 0x305   : > { %v3757_v56 = vrot.slane %v3755_v44, 2  ;;  %v3805_v44 = vrot.slane %v3803_v30, 3  ;;  %v3857_v30 = vshll.u32 %v12921_v49, 16 }
 0x307   : > { %v3761_v63 = vor.u32 %v3760_v55, %v3757_v56  ;;  %v3812_v56 = vshll.u32 %v12876_v35, 16 }
 0x309   : > { %v3762_v62 = vsel %vm3682_vm4, %v3752_v40, %v3761_v63  ;;  %v3814_v32 = vrot.slane %v3812_v56, 3  ;;  %v3866_v56 = vshll.u32 %v12930_v57, 16 }
 0x30b   : > { %9930 = vmatmul.mubr.msk.bf16.gmra.mrb[8].mxu0 %vm573_vm1, %v3717_v37  ;;  %9953 = vmatmul.mubr.msk.bf16.gmra.mrb[8].mxu1 %vm573_vm1, %v3717_v37  ;;  %v11962_v37 = vld [vmem:[%s14204_s1 + $0x184] ss:$16 sps:$4 sm:$0xff]  }
 0x30c   : > { %4060 = vmatprep.mubr.bf16.mxu0 %v12059_v2  ;;  %4321 = vmatprep.mubr.bf16.mxu1 %v12059_v2 }
 0x30d   : > { %5844 = vmatprep.subr.bf16.mxu0 %v11962_v37  ;;  %v3818_v37 = vshrl.u32 %v12885_v21, 16 }
 0x30e   : > { %v2196_v14 = vpop.f32.mrb[96].mxu0  ;;  %v2457_v18 = vpop.f32.mrb[96].mxu1 }
 0x30f   : > { %v13011_v24 = vadd.f32 %v2196_v14, %v12776_v53  ;;  %v13014_v27 = vadd.f32 %v2457_v18, %v12779_v54  ;;  %v2198_v36 = vpop.f32.mrb[97].mxu0  ;;  %v2459_v43 = vpop.f32.mrb[97].mxu1  ;;  %v3734_v54 = vor.u32 %v3733_v8, %v3730_v7  ;;  %v3769_v14 = vrot.slane %v3767_v34, 3 }
 0x310   : > { %v13018_v51 = vadd.f32 %v2198_v36, %v12782_v59  ;;  %v13021_v58 = vadd.f32 %v2459_v43, %v12785_v60  ;;  %v2200_v4 = vpop.f32.mrb[98].mxu0  ;;  %v2461_v15 = vpop.f32.mrb[98].mxu1  ;;  %v3737_v59 = vshrl.u32 %v12798_v38, 16  ;;  %v3740_v60 = vshll.u32 %v12798_v38, 16 }
 0x311   : > { %v2201_v20 = vpop.f32.mrb[99].mxu0  ;;  %v2462_v53 = vpop.f32.mrb[99].mxu1  ;;  %v3735_v28 = vsel %vm3682_vm4, %v3725_v5, %v3734_v54  ;;  %v11965_v5 = vld [vmem:[%s14204_s1 + $0x18c] ss:$16 sps:$4 sm:$0xff]   ;;  %v3770_v18 = vor.u32 %v3769_v14, %v3766_v1  ;;  %v3773_v36 = vshrl.u32 %v12840_v50, 16  ;;  %v3776_v43 = vshll.u32 %v12840_v50, 16 }
 0x312   : > { %v3739_v11 = vrot.slane %v3737_v59, 2  ;;  %v3742_v46 = vrot.slane %v3740_v60, 3  ;;  %6105 = vmatprep.subr.bf16.mxu1 %v11965_v5  ;;  %v3782_v8 = vshrl.u32 %v12849_v6, 16  ;;  %v3785_v20 = vshll.u32 %v12849_v6, 16 }
 0x313   : > { %9931 = vmatmul.mubr.msk.bf16.gmra.mrb[12].mxu0 %vm573_vm1, %v3726_v45  ;;  %9954 = vmatmul.mubr.msk.bf16.gmra.mrb[12].mxu1 %vm573_vm1, %v3726_v45  ;;  %v3771_v45 = vsel %vm3682_vm4, %v3761_v63, %v3770_v18  ;;  %v3775_v4 = vrot.slane %v3773_v36, 2  ;;  %v3778_v15 = vrot.slane %v3776_v43, 3  ;;  %v3821_v5 = vshll.u32 %v12885_v21, 16 }
 0x314   : > { %4070 = vmatprep.mubr.bf16.mxu0 %v12059_v2  ;;  %4331 = vmatprep.mubr.bf16.mxu1 %v12059_v2  ;;  %v3743_v19 = vor.u32 %v3742_v46, %v3739_v11  ;;  %v3787_v59 = vrot.slane %v3785_v20, 3  ;;  %v3794_v11 = vshll.u32 %v12858_v10, 16  ;;  %v3820_v1 = vrot.slane %v3818_v37, 2 }
 0x315   : > { %v3779_v7 = vor.u32 %v3778_v15, %v3775_v4  ;;  %v3823_v14 = vrot.slane %v3821_v5, 3  ;;  %v3827_v36 = vshrl.u32 %v12894_v26, 16  ;;  %v3830_v43 = vshll.u32 %v12894_v26, 16 }
 0x316   : > { %v3744_v29 = vsel %vm3682_vm4, %v3734_v54, %v3743_v19  ;;  %v3753_v52 = vsel %vm3682_vm4, %v3743_v19, %v3752_v40  ;;  %v3784_v54 = vrot.slane %v3782_v8, 2  ;;  %v3796_v22 = vrot.slane %v3794_v11, 3 }
 0x317   : > { %v3780_v53 = vsel %vm3682_vm4, %v3770_v18, %v3779_v7  ;;  %v3824_v18 = vor.u32 %v3823_v14, %v3820_v1  ;;  %v3829_v4 = vrot.slane %v3827_v36, 2  ;;  %v3832_v15 = vrot.slane %v3830_v43, 3 }
 0x318   : > { %v3788_v60 = vor.u32 %v3787_v59, %v3784_v54  ;;  %v3836_v8 = vshrl.u32 %v12903_v31, 16  ;;  %v3839_v20 = vshll.u32 %v12903_v31, 16  ;;  %v3848_v11 = vshll.u32 %v12912_v42, 16 }
 0x319   : > { %v3872_v37 = vshrl.u32 %v12939_v61, 16  ;;  %v3875_v5 = vshll.u32 %v12939_v61, 16 }
 0x31a   : > { %v3789_v46 = vsel %vm3682_vm4, %v3779_v7, %v3788_v60  ;;  %v3833_v7 = vor.u32 %v3832_v15, %v3829_v4  ;;  %v3838_v54 = vrot.slane %v3836_v8, 2  ;;  %v3841_v59 = vrot.slane %v3839_v20, 3 }
 0x31b   : > { %9932 = vmatmul.mubr.msk.bf16.gmra.mrb[16].mxu0 %vm573_vm1, %v3735_v28  ;;  %9955 = vmatmul.mubr.msk.bf16.gmra.mrb[16].mxu1 %vm573_vm1, %v3735_v28  ;;  %v3791_v28 = vshrl.u32 %v12858_v10, 16  ;;  %v3877_v36 = vrot.slane %v3875_v5, 3 }
 0x31c   : > { %4080 = vmatprep.mubr.bf16.mxu0 %v12059_v2  ;;  %4341 = vmatprep.mubr.bf16.mxu1 %v12059_v2 }
 0x31d   : > { %v3793_v19 = vrot.slane %v3791_v28, 2  ;;  %v3845_v28 = vshrl.u32 %v12912_v42, 16 }
 0x31f   : > { %v3797_v23 = vor.u32 %v3796_v22, %v3793_v19  ;;  %v3847_v19 = vrot.slane %v3845_v28, 2  ;;  %v3850_v22 = vrot.slane %v3848_v11, 3  ;;  %v11960_v28 = vld [vmem:[%s14204_s1 + $0x180] ss:$16 sps:$4 sm:$0xff]  }
 0x321   : > { %v3798_v39 = vsel %vm3682_vm4, %v3788_v60, %v3797_v23  ;;  %v3842_v60 = vor.u32 %v3841_v59, %v3838_v54 }
 0x323   : > { %9933 = vmatmul.mubr.msk.bf16.gmra.mrb[20].mxu0 %vm573_vm1, %v3744_v29  ;;  %9956 = vmatmul.mubr.msk.bf16.gmra.mrb[20].mxu1 %vm573_vm1, %v3744_v29  ;;  %v3800_v29 = vshrl.u32 %v12867_v9, 16 }
 0x324   : > { %4090 = vmatprep.mubr.bf16.mxu0 %v12059_v2  ;;  %4351 = vmatprep.mubr.bf16.mxu1 %v12059_v2 }
 0x325   : > { %v3802_v40 = vrot.slane %v3800_v29, 2  ;;  %v3854_v29 = vshrl.u32 %v12921_v49, 16 }
 0x327   : > { %v3806_v48 = vor.u32 %v3805_v44, %v3802_v40  ;;  %v3856_v40 = vrot.slane %v3854_v29, 2  ;;  %v3859_v44 = vrot.slane %v3857_v30, 3 }
 0x329   : > { %v3807_v55 = vsel %vm3682_vm4, %v3797_v23, %v3806_v48  ;;  %v3851_v23 = vor.u32 %v3850_v22, %v3847_v19  ;;  %v11972_v19 = vld [vmem:[%s14204_s1 + $0x1ac] ss:$16 sps:$4 sm:$0xff]   ;;  %v11967_v22 = vld [vmem:[%s14204_s1 + $0x1a0] ss:$16 sps:$4 sm:$0xff]  }
 0x32b   : > { %9934 = vmatmul.mubr.msk.bf16.gmra.mrb[24].mxu0 %vm573_vm1, %v3753_v52  ;;  %9957 = vmatmul.mubr.msk.bf16.gmra.mrb[24].mxu1 %vm573_vm1, %v3753_v52  ;;  %v3809_v52 = vshrl.u32 %v12876_v35, 16 }
 0x32c   : > { %4100 = vmatprep.mubr.bf16.mxu0 %v12059_v2  ;;  %4361 = vmatprep.mubr.bf16.mxu1 %v12059_v2 }
 0x32d   : > { %v3811_v63 = vrot.slane %v3809_v52, 2  ;;  %v3863_v52 = vshrl.u32 %v12930_v57, 16 }
 0x32f   : > { %v3815_v34 = vor.u32 %v3814_v32, %v3811_v63  ;;  %v3865_v63 = vrot.slane %v3863_v52, 2  ;;  %v3868_v32 = vrot.slane %v3866_v56, 3 }
 0x333   : > { %9935 = vmatmul.mubr.msk.bf16.gmra.mrb[28].mxu0 %vm573_vm1, %v3762_v62  ;;  %9958 = vmatmul.mubr.msk.bf16.gmra.mrb[28].mxu1 %vm573_vm1, %v3762_v62  ;;  %v3816_v62 = vsel %vm3682_vm4, %v3806_v48, %v3815_v34  ;;  %v3860_v48 = vor.u32 %v3859_v44, %v3856_v40 }
 0x334   : > { %4110 = vmatprep.mubr.bf16.mxu0 %v12059_v2  ;;  %4371 = vmatprep.mubr.bf16.mxu1 %v12059_v2 }
 0x33b   : > { %9936 = vmatmul.mubr.msk.bf16.gmra.mrb[32].mxu0 %vm573_vm1, %v3771_v45  ;;  %9959 = vmatmul.mubr.msk.bf16.gmra.mrb[32].mxu1 %vm573_vm1, %v3771_v45  ;;  %v3825_v45 = vsel %vm3682_vm4, %v3815_v34, %v3824_v18  ;;  %v3869_v34 = vor.u32 %v3868_v32, %v3865_v63 }
 0x33c   : > { %4120 = vmatprep.mubr.bf16.mxu0 %v12059_v2  ;;  %4381 = vmatprep.mubr.bf16.mxu1 %v12059_v2 }
 0x33d   : > { %v3870_v14 = vsel %vm3682_vm4, %v3860_v48, %v3869_v34 }
 0x343   : > { %9937 = vmatmul.mubr.msk.bf16.gmra.mrb[36].mxu0 %vm573_vm1, %v3780_v53  ;;  %9960 = vmatmul.mubr.msk.bf16.gmra.mrb[36].mxu1 %vm573_vm1, %v3780_v53  ;;  %v3834_v53 = vsel %vm3682_vm4, %v3824_v18, %v3833_v7  ;;  %v3874_v18 = vrot.slane %v3872_v37, 2 }
 0x344   : > { %4130 = vmatprep.mubr.bf16.mxu0 %v12059_v2  ;;  %4391 = vmatprep.mubr.bf16.mxu1 %v12059_v2 }
 0x345   : > { %v3878_v43 = vor.u32 %v3877_v36, %v3874_v18 }
 0x34b   : > { %9938 = vmatmul.mubr.msk.bf16.gmra.mrb[40].mxu0 %vm573_vm1, %v3789_v46  ;;  %9961 = vmatmul.mubr.msk.bf16.gmra.mrb[40].mxu1 %vm573_vm1, %v3789_v46  ;;  %v3843_v46 = vsel %vm3682_vm4, %v3833_v7, %v3842_v60 }
 0x34c   : > { %4140 = vmatprep.mubr.bf16.mxu0 %v12059_v2  ;;  %4401 = vmatprep.mubr.bf16.mxu1 %v12059_v2 }
 0x353   : > { %9939 = vmatmul.mubr.msk.bf16.gmra.mrb[44].mxu0 %vm573_vm1, %v3798_v39  ;;  %9962 = vmatmul.mubr.msk.bf16.gmra.mrb[44].mxu1 %vm573_vm1, %v3798_v39  ;;  %v3852_v39 = vsel %vm3682_vm4, %v3842_v60, %v3851_v23  ;;  %v4714_v60 = vrot.slane %v12722_v16, 3  ;;  %v4716_v16 = vrot.slane %v12738_v25, 3  ;;  %v4718_v25 = vrot.slane %v12759_v41, 3 }
 0x354   : > { %4150 = vmatprep.mubr.bf16.mxu0 %v12059_v2  ;;  %4411 = vmatprep.mubr.bf16.mxu1 %v12059_v2 }
 0x355   : > { %v4717_v29 = vsel %vm4712_vm5, %v4714_v60, %v4716_v16  ;;  %v4719_v30 = vsel %vm4712_vm5, %v4716_v16, %v4718_v25  ;;  %v11991_v16 = vld [vmem:[%s14204_s1 + $0x1e0] ss:$16 sps:$4 sm:$0xff]  }
 0x35b   : > { %9940 = vmatmul.mubr.msk.bf16.gmra.mrb[48].mxu0 %vm573_vm1, %v3807_v55  ;;  %9963 = vmatmul.mubr.msk.bf16.gmra.mrb[48].mxu1 %vm573_vm1, %v3807_v55  ;;  %v3861_v55 = vsel %vm3682_vm4, %v3851_v23, %v3860_v48  ;;  %v11970_v23 = vld [vmem:[%s14204_s1 + $0x1a8] ss:$16 sps:$4 sm:$0xff]  }
 0x35c   : > { %4160 = vmatprep.mubr.bf16.mxu0 %v12059_v2  ;;  %4421 = vmatprep.mubr.bf16.mxu1 %v12059_v2 }
 0x363   : > { %9941 = vmatmul.mubr.msk.bf16.gmra.mrb[52].mxu0 %vm573_vm1, %v3816_v62  ;;  %9964 = vmatmul.mubr.msk.bf16.gmra.mrb[52].mxu1 %vm573_vm1, %v3816_v62  ;;  %v3670_v62 = vld [vmem:[%s12123_s8 + $0xbc] sm:$0x7] }
 0x364   : > { %4170 = vmatprep.mubr.bf16.mxu0 %v12059_v2  ;;  %4431 = vmatprep.mubr.bf16.mxu1 %v12059_v2  ;;  %v13142_v1 = vcombine.low %v12947_v3, %v3670_v62  ;;  %v3879_v3 = vsel %vm3682_vm4, %v3869_v34, %v3878_v43 }
 0x366   : > { %v3884_v4 = vshll.u32 %v13142_v1, 16 }
 0x368   : > { %v3886_v7 = vrot.slane %v3884_v4, 3 }
 0x36b   : > { %9942 = vmatmul.mubr.msk.bf16.gmra.mrb[56].mxu0 %vm573_vm1, %v3825_v45  ;;  %9965 = vmatmul.mubr.msk.bf16.gmra.mrb[56].mxu1 %vm573_vm1, %v3825_v45  ;;  %v3881_v45 = vshrl.u32 %v13142_v1, 16 }
 0x36c   : > { %4180 = vmatprep.mubr.bf16.mxu0 %v12059_v2  ;;  %4441 = vmatprep.mubr.bf16.mxu1 %v12059_v2 }
 0x36d   : > { %v3883_v15 = vrot.slane %v3881_v45, 2 }
 0x36f   : > { %v3887_v8 = vor.u32 %v3886_v7, %v3883_v15 }
 0x371   : > { %v3888_v20 = vsel %vm3682_vm4, %v3878_v43, %v3887_v8  ;;  %v4732_v43 = vrot.slane %v12840_v50, 3  ;;  %v4736_v50 = vrot.slane %v12858_v10, 3  ;;  %v4740_v10 = vrot.slane %v12876_v35, 3 }
 0x372   : > { %v4744_v35 = vrot.slane %v12894_v26, 3  ;;  %v4748_v26 = vrot.slane %v12912_v42, 3  ;;  %v4752_v42 = vrot.slane %v12930_v57, 3  ;;  %v4756_v57 = vrot.slane %v13142_v1, 3  ;;  %v11973_v1 = vld [vmem:[%s14204_s1 + $0x1c0] ss:$16 sps:$4 sm:$0xff]  }
 0x373   : > { %9943 = vmatmul.mubr.msk.bf16.gmra.mrb[60].mxu0 %vm573_vm1, %v3834_v53  ;;  %9966 = vmatmul.mubr.msk.bf16.gmra.mrb[60].mxu1 %vm573_vm1, %v3834_v53  ;;  %v4700_v53 = vld [vmem:[%s12123_s8 + $0x8] sm:$0x8] }
 0x374   : > { %4190 = vmatprep.mubr.bf16.mxu0 %v12059_v2  ;;  %4451 = vmatprep.mubr.bf16.mxu1 %v12059_v2  ;;  %v9974_v54 = vcombine.low %v4700_v53, %v12716_v12  ;;  %v11963_v12 = vld [vmem:[%s14204_s1 + $0x188] ss:$16 sps:$4 sm:$0xff]  }
 0x376   : > { %v4713_v59 = vrot.slane %v9974_v54, 3 }
 0x378   : > { %v4715_v11 = vsel %vm4712_vm5, %v4713_v59, %v4714_v60 }
 0x37b   : > { %9944 = vmatmul.mubr.msk.bf16.gmra.mrb[64].mxu0 %vm573_vm1, %v3843_v46  ;;  %9967 = vmatmul.mubr.msk.bf16.gmra.mrb[64].mxu1 %vm573_vm1, %v3843_v46  ;;  %v11969_v46 = vld [vmem:[%s14204_s1 + $0x1a4] ss:$16 sps:$4 sm:$0xff]  }
 0x37c   : > { %4200 = vmatprep.mubr.bf16.mxu0 %v12059_v2  ;;  %4461 = vmatprep.mubr.bf16.mxu1 %v12059_v2 }
 0x383   : > { %9945 = vmatmul.mubr.msk.bf16.gmra.mrb[68].mxu0 %vm573_vm1, %v3852_v39  ;;  %9968 = vmatmul.mubr.msk.bf16.gmra.mrb[68].mxu1 %vm573_vm1, %v3852_v39  ;;  %v4720_v39 = vrot.slane %v12768_v47, 3 }
 0x384   : > { %4210 = vmatprep.mubr.bf16.mxu0 %v12059_v2  ;;  %4471 = vmatprep.mubr.bf16.mxu1 %v12059_v2 }
 0x385   : > { %v4721_v47 = vsel %vm4712_vm5, %v4718_v25, %v4720_v39 }
 0x38b   : > { %9946 = vmatmul.mubr.msk.bf16.gmra.mrb[72].mxu0 %vm573_vm1, %v3861_v55  ;;  %9969 = vmatmul.mubr.msk.bf16.gmra.mrb[72].mxu1 %vm573_vm1, %v3861_v55 }
 0x38c   : > { %4220 = vmatprep.mubr.bf16.mxu0 %v12059_v2  ;;  %4481 = vmatprep.mubr.bf16.mxu1 %v12059_v2 }
 0x393   : > { %9947 = vmatmul.mubr.msk.bf16.gmra.mrb[76].mxu0 %vm573_vm1, %v3870_v14  ;;  %9970 = vmatmul.mubr.msk.bf16.gmra.mrb[76].mxu1 %vm573_vm1, %v3870_v14  ;;  %v11975_v14 = vld [vmem:[%s14204_s1 + $0x1c4] ss:$16 sps:$4 sm:$0xff]  }
 0x394   : > { %4230 = vmatprep.mubr.bf16.mxu0 %v12059_v2  ;;  %4491 = vmatprep.mubr.bf16.mxu1 %v12059_v2 }
 0x39b   : > { %9948 = vmatmul.mubr.msk.bf16.gmra.mrb[80].mxu0 %vm573_vm1, %v3879_v3  ;;  %9971 = vmatmul.mubr.msk.bf16.gmra.mrb[80].mxu1 %vm573_vm1, %v3879_v3 }
 0x39c   : > { %4240 = vmatprep.mubr.bf16.mxu0 %v12059_v2  ;;  %4501 = vmatprep.mubr.bf16.mxu1 %v12059_v2 }
 0x3a3   : > { %9949 = vmatmul.mubr.msk.bf16.gmra.mrb[84].mxu0 %vm573_vm1, %v3888_v20  ;;  %9972 = vmatmul.mubr.msk.bf16.gmra.mrb[84].mxu1 %vm573_vm1, %v3888_v20 }
 0x3a4   : > { %4250 = vmatprep.mubr.bf16.mxu0 %v12059_v2  ;;  %4511 = vmatprep.mubr.bf16.mxu1 %v12059_v2 }
 0x3ab   : > { %9950 = vmatmul.mubr.msk.bf16.gmra.mrb[104].mxu0 %vm573_vm1, %v3887_v8  ;;  %9973 = vmatmul.mubr.msk.bf16.gmra.mrb[104].mxu1 %vm573_vm1, %v3887_v8 }
 0x3ac   : > { %4899 = vmatprep.mubr.bf16.mxu0 %v12059_v2  ;;  %5160 = vmatprep.mubr.bf16.mxu1 %v12059_v2 }
 0x3b3   : > { %9983 = vmatmul.mubr.msk.bf16.vlgmr.msra.gmra.mrb[0].mxu0 %vm573_vm1, %v4715_v11  ;;  %10006 = vmatmul.mubr.msk.bf16.vlgmr.msra.gmra.mrb[0].mxu1 %vm573_vm1, %v4715_v11  ;;  %v11976_v11 = vld [vmem:[%s14204_s1 + $0x1c8] ss:$16 sps:$4 sm:$0xff]  }
 0x3b4   : > { %5845 = vmatpush1.bf16.msra.mxu0 %v11960_v28  ;;  %6106 = vmatpush1.bf16.msra.mxu1 %v11963_v12 }
 0x3b5   : > { %4909 = vmatprep.mubr.bf16.mxu0 %v12059_v2  ;;  %5170 = vmatprep.mubr.bf16.mxu1 %v12059_v2 }
 0x3b6   : > { %5846 = vmatprep.subr.bf16.mxu0 %v11969_v46  ;;  %6107 = vmatprep.subr.bf16.mxu1 %v11972_v19  ;;  %v11993_v46 = vld [vmem:[%s14204_s1 + $0x1e4] ss:$16 sps:$4 sm:$0xff]   ;;  %v11996_v19 = vld [vmem:[%s14204_s1 + $0x1ec] ss:$16 sps:$4 sm:$0xff]  }
 0x3b8   : > { %5847 = vmatpush1.bf16.msra.mxu0 %v11967_v22  ;;  %6108 = vmatpush1.bf16.msra.mxu1 %v11970_v23  ;;  %v11994_v22 = vld [vmem:[%s14204_s1 + $0x1e8] ss:$16 sps:$4 sm:$0xff]   ;;  %v11980_v23 = vld [vmem:[%s12123_s8 + $0x1c] sm:$0xff]  }
 0x3b9   : > { %7007 = vmatprep.subr.bf16.mxu0 %v11975_v14  ;;  %v11997_v14 = vld [vmem:[%s12123_s8 + $0x74] sm:$0xff]  }
 0x3bb   : > { %9984 = vmatmul.mubr.msk.bf16.gmra.mrb[4].mxu0 %vm573_vm1, %v4717_v29  ;;  %10007 = vmatmul.mubr.msk.bf16.gmra.mrb[4].mxu1 %vm573_vm1, %v4717_v29  ;;  %v11981_v29 = vld [vmem:[%s12123_s8 + $0x24] sm:$0xff]  }
 0x3bc   : > { %4919 = vmatprep.mubr.bf16.mxu0 %v12059_v2  ;;  %5180 = vmatprep.mubr.bf16.mxu1 %v12059_v2 }
 0x3c3   : > { %9985 = vmatmul.mubr.msk.bf16.gmra.mrb[8].mxu0 %vm573_vm1, %v4719_v30  ;;  %10008 = vmatmul.mubr.msk.bf16.gmra.mrb[8].mxu1 %vm573_vm1, %v4719_v30 }
 0x3c4   : > { %4929 = vmatprep.mubr.bf16.mxu0 %v12059_v2  ;;  %5190 = vmatprep.mubr.bf16.mxu1 %v12059_v2 }
 0x3c6   : > { %v3222_v40 = vpop.f32.mrb[100].mxu0  ;;  %v3483_v44 = vpop.f32.mrb[100].mxu1 }
 0x3c7   : > { %v13205_v48 = vadd.f32 %v3222_v40, %v13011_v24  ;;  %v13208_v52 = vadd.f32 %v3483_v44, %v13014_v27  ;;  %v3224_v41 = vpop.f32.mrb[101].mxu0  ;;  %v3485_v56 = vpop.f32.mrb[101].mxu1  ;;  %v4722_v24 = vrot.slane %v12789_v0, 3  ;;  %v4726_v0 = vrot.slane %v12807_v13, 3  ;;  %v11978_v13 = vld [vmem:[%s14204_s1 + $0x1cc] ss:$16 sps:$4 sm:$0xff]  }
 0x3c8   : > { %v13211_v55 = vadd.f32 %v3224_v41, %v13018_v51  ;;  %v13214_v63 = vadd.f32 %v3485_v56, %v13021_v58  ;;  %v3226_v32 = vpop.f32.mrb[102].mxu0  ;;  %v3487_v34 = vpop.f32.mrb[102].mxu1  ;;  %v4724_v51 = vrot.slane %v12798_v38, 3  ;;  %v4728_v38 = vrot.slane %v12816_v17, 3  ;;  %7268 = vmatprep.subr.bf16.mxu1 %v11978_v13  ;;  %v11982_v56 = vld [vmem:[%s12123_s8 + $0x2c] sm:$0xff]   ;;  %v11998_v13 = vld [vmem:[%s12123_s8 + $0x7c] sm:$0xff]  }
 0x3c9   : > { %v3227_v37 = vpop.f32.mrb[103].mxu0  ;;  %v3488_v5 = vpop.f32.mrb[103].mxu1  ;;  %v4723_v27 = vsel %vm4712_vm5, %v4720_v39, %v4722_v24  ;;  %v4730_v17 = vrot.slane %v12831_v33, 3  ;;  %v4734_v33 = vrot.slane %v12849_v6, 3  ;;  %v4738_v6 = vrot.slane %v12867_v9, 3 }
 0x3ca   : > { %v4725_v58 = vsel %vm4712_vm5, %v4722_v24, %v4724_v51  ;;  %v4727_v62 = vsel %vm4712_vm5, %v4724_v51, %v4726_v0  ;;  %v4729_v18 = vsel %vm4712_vm5, %v4726_v0, %v4728_v38  ;;  %v4742_v9 = vrot.slane %v12885_v21, 3  ;;  %v11986_v51 = vld [vmem:[%s12123_s8 + $0x4c] sm:$0xff]   ;;  %v11988_v0 = vld [vmem:[%s12123_s8 + $0x5c] sm:$0xff]  }
 0x3cb   : > { %9986 = vmatmul.mubr.msk.bf16.gmra.mrb[12].mxu0 %vm573_vm1, %v4721_v47  ;;  %10009 = vmatmul.mubr.msk.bf16.gmra.mrb[12].mxu1 %vm573_vm1, %v4721_v47  ;;  %v4731_v36 = vsel %vm4712_vm5, %v4728_v38, %v4730_v17  ;;  %v4733_v45 = vsel %vm4712_vm5, %v4730_v17, %v4732_v43  ;;  %v4735_v4 = vsel %vm4712_vm5, %v4732_v43, %v4734_v33  ;;  %v4746_v21 = vrot.slane %v12903_v31, 3  ;;  %v11990_v38 = vld [vmem:[%s12123_s8 + $0x6c] sm:$0xff]   ;;  %v12002_v43 = vld [vmem:[%s12123_s8 + $0x9c] sm:$0xff]  }
 0x3cc   : > { %4939 = vmatprep.mubr.bf16.mxu0 %v12059_v2  ;;  %5200 = vmatprep.mubr.bf16.mxu1 %v12059_v2  ;;  %v4737_v3 = vsel %vm4712_vm5, %v4734_v33, %v4736_v50  ;;  %v4739_v15 = vsel %vm4712_vm5, %v4736_v50, %v4738_v6  ;;  %v4741_v7 = vsel %vm4712_vm5, %v4738_v6, %v4740_v10  ;;  %v4750_v31 = vrot.slane %v12921_v49, 3  ;;  %v12000_v17 = vld [vmem:[%s12123_s8 + $0x8c] sm:$0xff]   ;;  %v6546_v50 = vld [vmem:[%s12123_s8 + $0x14] sm:$0xf]  ;;  %v12006_v6 = vld [vmem:[%s12123_s8 + $0xbc] sm:$0xff]  }
 0x3cd   : > { %v4743_v8 = vsel %vm4712_vm5, %v4740_v10, %v4742_v9  ;;  %v4745_v20 = vsel %vm4712_vm5, %v4742_v9, %v4744_v35  ;;  %v4747_v53 = vsel %vm4712_vm5, %v4744_v35, %v4746_v21  ;;  %v4749_v54 = vsel %vm4712_vm5, %v4746_v21, %v4748_v26  ;;  %v12004_v33 = vld [vmem:[%s12123_s8 + $0xac] sm:$0xff]   ;;  %v13491_v10 = vld [vmem:[%s12123_s8 + $0x1c] sm:$0xff]   ;;  %v12007_v9 = vld [vmem:[%s12123_s8 + $0xc4] ss:$0 sps:$4 sm:$0xff]  }
 0x3ce   : > { %v4751_v59 = vsel %vm4712_vm5, %v4748_v26, %v4750_v31  ;;  %v4753_v60 = vsel %vm4712_vm5, %v4750_v31, %v4752_v42  ;;  %v4754_v49 = vrot.slane %v12939_v61, 3  ;;  %v11979_v61 = vld [vmem:[%s12123_s8 + $0x14] sm:$0xff]   ;;  %v13500_v26 = vld [vmem:[%s12123_s8 + $0x24] sm:$0xff]  }
 0x3cf   : > { %v12011_v31 = vld [vmem:[%s14204_s1 + $0x208] ss:$16 sps:$4 sm:$0xff]  }
 0x3d0   : > { %v4755_v28 = vsel %vm4712_vm5, %v4752_v42, %v4754_v49  ;;  %v4757_v12 = vsel %vm4712_vm5, %v4754_v49, %v4756_v57  ;;  %v6727_v42 = vshrl.u32 %v13491_v10, 16  ;;  %v12029_v49 = vld [vmem:[%s14204_s1 + $0x224] ss:$16 sps:$4 sm:$0xff]  }
 0x3d3   : > { %9987 = vmatmul.mubr.msk.bf16.gmra.mrb[16].mxu0 %vm573_vm1, %v4723_v27  ;;  %10010 = vmatmul.mubr.msk.bf16.gmra.mrb[16].mxu1 %vm573_vm1, %v4723_v27  ;;  %v12013_v27 = vld [vmem:[%s14204_s1 + $0x20c] ss:$16 sps:$4 sm:$0xff]  }
 0x3d4   : > { %4949 = vmatprep.mubr.bf16.mxu0 %v12059_v2  ;;  %5210 = vmatprep.mubr.bf16.mxu1 %v12059_v2 }
 0x3db   : > { %9988 = vmatmul.mubr.msk.bf16.gmra.mrb[20].mxu0 %vm573_vm1, %v4725_v58  ;;  %10011 = vmatmul.mubr.msk.bf16.gmra.mrb[20].mxu1 %vm573_vm1, %v4725_v58  ;;  %v11987_v58 = vld [vmem:[%s12123_s8 + $0x54] sm:$0xff]  }
 0x3dc   : > { %4959 = vmatprep.mubr.bf16.mxu0 %v12059_v2  ;;  %5220 = vmatprep.mubr.bf16.mxu1 %v12059_v2 }
 0x3e3   : > { %9989 = vmatmul.mubr.msk.bf16.gmra.mrb[24].mxu0 %vm573_vm1, %v4727_v62  ;;  %10012 = vmatmul.mubr.msk.bf16.gmra.mrb[24].mxu1 %vm573_vm1, %v4727_v62  ;;  %v11989_v62 = vld [vmem:[%s12123_s8 + $0x64] sm:$0xff]  }
 0x3e4   : > { %4969 = vmatprep.mubr.bf16.mxu0 %v12059_v2  ;;  %5230 = vmatprep.mubr.bf16.mxu1 %v12059_v2 }
 0x3eb   : > { %9990 = vmatmul.mubr.msk.bf16.gmra.mrb[28].mxu0 %vm573_vm1, %v4729_v18  ;;  %10013 = vmatmul.mubr.msk.bf16.gmra.mrb[28].mxu1 %vm573_vm1, %v4729_v18  ;;  %v11999_v18 = vld [vmem:[%s12123_s8 + $0x84] sm:$0xff]  }
 0x3ec   : > { %4979 = vmatprep.mubr.bf16.mxu0 %v12059_v2  ;;  %5240 = vmatprep.mubr.bf16.mxu1 %v12059_v2 }
 0x3f3   : > { %9991 = vmatmul.mubr.msk.bf16.gmra.mrb[32].mxu0 %vm573_vm1, %v4731_v36  ;;  %10014 = vmatmul.mubr.msk.bf16.gmra.mrb[32].mxu1 %vm573_vm1, %v4731_v36  ;;  %v12001_v36 = vld [vmem:[%s12123_s8 + $0x94] sm:$0xff]  }
 0x3f4   : > { %4989 = vmatprep.mubr.bf16.mxu0 %v12059_v2  ;;  %5250 = vmatprep.mubr.bf16.mxu1 %v12059_v2 }
 0x3fb   : > { %9992 = vmatmul.mubr.msk.bf16.gmra.mrb[36].mxu0 %vm573_vm1, %v4733_v45  ;;  %10015 = vmatmul.mubr.msk.bf16.gmra.mrb[36].mxu1 %vm573_vm1, %v4733_v45  ;;  %v12003_v45 = vld [vmem:[%s12123_s8 + $0xa4] sm:$0xff]  }
 0x3fc   : > { %4999 = vmatprep.mubr.bf16.mxu0 %v12059_v2  ;;  %5260 = vmatprep.mubr.bf16.mxu1 %v12059_v2 }
 0x403   : > { %9993 = vmatmul.mubr.msk.bf16.gmra.mrb[40].mxu0 %vm573_vm1, %v4735_v4  ;;  %10016 = vmatmul.mubr.msk.bf16.gmra.mrb[40].mxu1 %vm573_vm1, %v4735_v4  ;;  %v12005_v4 = vld [vmem:[%s12123_s8 + $0xb4] sm:$0xff]  }
 0x404   : > { %5009 = vmatprep.mubr.bf16.mxu0 %v12059_v2  ;;  %5270 = vmatprep.mubr.bf16.mxu1 %v12059_v2 }
 0x40b   : > { %9994 = vmatmul.mubr.msk.bf16.gmra.mrb[44].mxu0 %vm573_vm1, %v4737_v3  ;;  %10017 = vmatmul.mubr.msk.bf16.gmra.mrb[44].mxu1 %vm573_vm1, %v4737_v3  ;;  %v13482_v3 = vld [vmem:[%s12123_s8 + $0x18] sm:$0xf] }
 0x40c   : > { %5019 = vmatprep.mubr.bf16.mxu0 %v12059_v2  ;;  %5280 = vmatprep.mubr.bf16.mxu1 %v12059_v2 }
 0x413   : > { %9995 = vmatmul.mubr.msk.bf16.gmra.mrb[48].mxu0 %vm573_vm1, %v4739_v15  ;;  %10018 = vmatmul.mubr.msk.bf16.gmra.mrb[48].mxu1 %vm573_vm1, %v4739_v15  ;;  %v10106_v15 = vcombine.low %v6546_v50, %v13482_v3 }
 0x414   : > { %5029 = vmatprep.mubr.bf16.mxu0 %v12059_v2  ;;  %5290 = vmatprep.mubr.bf16.mxu1 %v12059_v2 }
 0x41b   : > { %9996 = vmatmul.mubr.msk.bf16.gmra.mrb[52].mxu0 %vm573_vm1, %v4741_v7  ;;  %10019 = vmatmul.mubr.msk.bf16.gmra.mrb[52].mxu1 %vm573_vm1, %v4741_v7  ;;  %v6718_v7 = vshll.u32 %v10106_v15, 16 }
 0x41c   : > { %5039 = vmatprep.mubr.bf16.mxu0 %v12059_v2  ;;  %5300 = vmatprep.mubr.bf16.mxu1 %v12059_v2 }
 0x41d   : > { %v6720_v35 = vrot.slane %v6718_v7, 1  ;;  %v13590_v7 = vld [vmem:[%s12123_s8 + $0x54] sm:$0xff]  }
 0x423   : > { %9997 = vmatmul.mubr.msk.bf16.gmra.mrb[56].mxu0 %vm573_vm1, %v4743_v8  ;;  %10020 = vmatmul.mubr.msk.bf16.gmra.mrb[56].mxu1 %vm573_vm1, %v4743_v8  ;;  %v6716_v8 = vshrl.u32 %v10106_v15, 16 }
 0x424   : > { %5049 = vmatprep.mubr.bf16.mxu0 %v12059_v2  ;;  %5310 = vmatprep.mubr.bf16.mxu1 %v12059_v2 }
 0x425   : > { %v6721_v21 = vor.u32 %v6720_v35, %v6716_v8  ;;  %v6779_v35 = vshll.u32 %v13590_v7, 16 }
 0x42b   : > { %9998 = vmatmul.mubr.msk.bf16.gmra.mrb[60].mxu0 %vm573_vm1, %v4745_v20  ;;  %10021 = vmatmul.mubr.msk.bf16.gmra.mrb[60].mxu1 %vm573_vm1, %v4745_v20  ;;  %v6723_v20 = vshll.u32 %v13491_v10, 16 }
 0x42c   : > { %5059 = vmatprep.mubr.bf16.mxu0 %v12059_v2  ;;  %5320 = vmatprep.mubr.bf16.mxu1 %v12059_v2 }
 0x433   : > { %9999 = vmatmul.mubr.msk.bf16.gmra.mrb[64].mxu0 %vm573_vm1, %v4747_v53  ;;  %10022 = vmatmul.mubr.msk.bf16.gmra.mrb[64].mxu1 %vm573_vm1, %v4747_v53  ;;  %v6725_v53 = vrot.slane %v6723_v20, 1 }
 0x434   : > { %5069 = vmatprep.mubr.bf16.mxu0 %v12059_v2  ;;  %5330 = vmatprep.mubr.bf16.mxu1 %v12059_v2 }
 0x43b   : > { %10000 = vmatmul.mubr.msk.bf16.gmra.mrb[68].mxu0 %vm573_vm1, %v4749_v54  ;;  %10023 = vmatmul.mubr.msk.bf16.gmra.mrb[68].mxu1 %vm573_vm1, %v4749_v54  ;;  %v12008_v54 = vld [vmem:[%s14204_s1 + $0x200] ss:$16 sps:$4 sm:$0xff]  }
 0x43c   : > { %5079 = vmatprep.mubr.bf16.mxu0 %v12059_v2  ;;  %5340 = vmatprep.mubr.bf16.mxu1 %v12059_v2 }
 0x443   : > { %10001 = vmatmul.mubr.msk.bf16.gmra.mrb[72].mxu0 %vm573_vm1, %v4751_v59  ;;  %10024 = vmatmul.mubr.msk.bf16.gmra.mrb[72].mxu1 %vm573_vm1, %v4751_v59  ;;  %v6726_v59 = vsel %vm349_vm0, %v6721_v21, %v6725_v53  ;;  %v6781_v21 = vrot.slane %v6779_v35, 1 }
 0x444   : > { %5089 = vmatprep.mubr.bf16.mxu0 %v12059_v2  ;;  %5350 = vmatprep.mubr.bf16.mxu1 %v12059_v2 }
 0x44b   : > { %10002 = vmatmul.mubr.msk.bf16.gmra.mrb[76].mxu0 %vm573_vm1, %v4753_v60  ;;  %10025 = vmatmul.mubr.msk.bf16.gmra.mrb[76].mxu1 %vm573_vm1, %v4753_v60  ;;  %v6731_v60 = vshll.u32 %v13500_v26, 16 }
 0x44c   : > { %5099 = vmatprep.mubr.bf16.mxu0 %v12059_v2  ;;  %5360 = vmatprep.mubr.bf16.mxu1 %v12059_v2 }
 0x453   : > { %10003 = vmatmul.mubr.msk.bf16.gmra.mrb[80].mxu0 %vm573_vm1, %v4755_v28  ;;  %10026 = vmatmul.mubr.msk.bf16.gmra.mrb[80].mxu1 %vm573_vm1, %v4755_v28  ;;  %v12032_v28 = vld [vmem:[%s14204_s1 + $0x22c] ss:$16 sps:$4 sm:$0xff]  }
 0x454   : > { %5109 = vmatprep.mubr.bf16.mxu0 %v12059_v2  ;;  %5370 = vmatprep.mubr.bf16.mxu1 %v12059_v2 }
 0x45b   : > { %10004 = vmatmul.mubr.msk.bf16.gmra.mrb[84].mxu0 %vm573_vm1, %v4757_v12  ;;  %10027 = vmatmul.mubr.msk.bf16.gmra.mrb[84].mxu1 %vm573_vm1, %v4757_v12  ;;  %v6733_v12 = vrot.slane %v6731_v60, 1 }
 0x45c   : > { %5119 = vmatprep.mubr.bf16.mxu0 %v12059_v2  ;;  %5380 = vmatprep.mubr.bf16.mxu1 %v12059_v2 }
 0x463   : > { %10005 = vmatmul.mubr.msk.bf16.gmra.mrb[108].mxu0 %vm573_vm1, %v4756_v57  ;;  %10028 = vmatmul.mubr.msk.bf16.gmra.mrb[108].mxu1 %vm573_vm1, %v4756_v57  ;;  %v6729_v57 = vor.u32 %v6727_v42, %v6725_v53  ;;  %v13600_v53 = vld [vmem:[%s12123_s8 + $0x5c] sm:$0xff]  }
 0x464   : > { %5876 = vmatprep.mubr.bf16.mxu0 %v12059_v2  ;;  %6137 = vmatprep.mubr.bf16.mxu1 %v12059_v2 }
 0x46b   : > { %10060 = vmatmul.mubr.msk.bf16.vlgmr.msra.gmra.mrb[0].mxu0 %vm573_vm1, %v11979_v61  ;;  %10083 = vmatmul.mubr.msk.bf16.vlgmr.msra.gmra.mrb[0].mxu1 %vm573_vm1, %v11979_v61  ;;  %v13520_v61 = vld [vmem:[%s12123_s8 + $0x2c] sm:$0xff]  }
 0x46c   : > { %7008 = vmatpush1.bf16.msra.mxu0 %v11973_v1  ;;  %7269 = vmatpush1.bf16.msra.mxu1 %v11976_v11  ;;  %v12027_v1 = vld [vmem:[%s14204_s1 + $0x220] ss:$16 sps:$4 sm:$0xff]   ;;  %v12030_v11 = vld [vmem:[%s14204_s1 + $0x228] ss:$16 sps:$4 sm:$0xff]  }
 0x46d   : > { %5886 = vmatprep.mubr.bf16.mxu0 %v12059_v2  ;;  %6147 = vmatprep.mubr.bf16.mxu1 %v12059_v2 }
 0x46e   : > { %7009 = vmatprep.subr.bf16.mxu0 %v11993_v46  ;;  %7270 = vmatprep.subr.bf16.mxu1 %v11996_v19  ;;  %v6734_v46 = vsel %vm349_vm0, %v6729_v57, %v6733_v12  ;;  %v6735_v19 = vshrl.u32 %v13500_v26, 16  ;;  %v6791_v57 = vshrl.u32 %v13600_v53, 16 }
 0x470   : > { %7010 = vmatpush1.bf16.msra.mxu0 %v11991_v16  ;;  %7271 = vmatpush1.bf16.msra.mxu1 %v11994_v22  ;;  %v6739_v16 = vshll.u32 %v13520_v61, 16  ;;  %v13536_v22 = vld [vmem:[%s12123_s8 + $0x34] sm:$0xff]  }
 0x471   : > { %8136 = vmatprep.subr.bf16.mxu1 %v12013_v27 }
 0x473   : > { %10061 = vmatmul.mubr.msk.bf16.gmra.mrb[4].mxu0 %vm573_vm1, %v11980_v23  ;;  %10084 = vmatmul.mubr.msk.bf16.gmra.mrb[4].mxu1 %vm573_vm1, %v11980_v23  ;;  %v6737_v23 = vor.u32 %v6735_v19, %v6733_v12 }
 0x474   : > { %5896 = vmatprep.mubr.bf16.mxu0 %v12059_v2  ;;  %6157 = vmatprep.mubr.bf16.mxu1 %v12059_v2 }
 0x47b   : > { %10062 = vmatmul.mubr.msk.bf16.gmra.mrb[8].mxu0 %vm573_vm1, %v11981_v29  ;;  %10085 = vmatmul.mubr.msk.bf16.gmra.mrb[8].mxu1 %vm573_vm1, %v11981_v29  ;;  %v6741_v29 = vrot.slane %v6739_v16, 1 }
 0x47c   : > { %5906 = vmatprep.mubr.bf16.mxu0 %v12059_v2  ;;  %6167 = vmatprep.mubr.bf16.mxu1 %v12059_v2 }
 0x47e   : > { %v4252_v25 = vpop.f32.mrb[104].mxu0  ;;  %v4513_v30 = vpop.f32.mrb[104].mxu1 }
 0x47f   : > { %v13373_v39 = vadd.f32 %v4252_v25, %v13205_v48  ;;  %v13376_v40 = vadd.f32 %v4513_v30, %v13208_v52  ;;  %v4254_v44 = vpop.f32.mrb[105].mxu0  ;;  %v4515_v41 = vpop.f32.mrb[105].mxu1  ;;  %v11983_v48 = vld [vmem:[%s12123_s8 + $0x34] sm:$0xff]   ;;  %v11984_v52 = vld [vmem:[%s12123_s8 + $0x3c] sm:$0xff]   ;;  %v6743_v25 = vshrl.u32 %v13520_v61, 16  ;;  %v6747_v30 = vshll.u32 %v13536_v22, 16 }
 0x480   : > { %v13380_v32 = vadd.f32 %v4254_v44, %v13211_v55  ;;  %v13383_v34 = vadd.f32 %v4515_v41, %v13214_v63  ;;  %v4256_v47 = vpop.f32.mrb[106].mxu0  ;;  %v4517_v37 = vpop.f32.mrb[106].mxu1  ;;  %v11985_v55 = vld [vmem:[%s12123_s8 + $0x44] sm:$0xff]   ;;  %v6742_v44 = vsel %vm349_vm0, %v6737_v23, %v6741_v29 }
 0x481   : > { %v4257_v5 = vpop.f32.mrb[107].mxu0  ;;  %v4518_v24 = vpop.f32.mrb[107].mxu1  ;;  %v12010_v63 = vld [vmem:[%s14204_s1 + $0x204] ss:$16 sps:$4 sm:$0xff]   ;;  %v6745_v41 = vor.u32 %v6743_v25, %v6741_v29  ;;  %v13548_v47 = vld [vmem:[%s12123_s8 + $0x3c] sm:$0xff]  }
 0x482   : > { %7875 = vmatprep.subr.bf16.mxu0 %v12010_v63 }
 0x483   : > { %10063 = vmatmul.mubr.msk.bf16.gmra.mrb[12].mxu0 %vm573_vm1, %v11982_v56  ;;  %10086 = vmatmul.mubr.msk.bf16.gmra.mrb[12].mxu1 %vm573_vm1, %v11982_v56  ;;  %v6749_v56 = vrot.slane %v6747_v30, 1  ;;  %v13630_v30 = vld [vmem:[%s12123_s8 + $0x74] sm:$0xff]  }
 0x484   : > { %5916 = vmatprep.mubr.bf16.mxu0 %v12059_v2  ;;  %6177 = vmatprep.mubr.bf16.mxu1 %v12059_v2 }
 0x485   : > { %v6750_v63 = vsel %vm349_vm0, %v6745_v41, %v6749_v56 }
 0x48b   : > { %10064 = vmatmul.mubr.msk.bf16.gmra.mrb[16].mxu0 %vm573_vm1, %v11983_v48  ;;  %10087 = vmatmul.mubr.msk.bf16.gmra.mrb[16].mxu1 %vm573_vm1, %v11983_v48 }
 0x48c   : > { %5926 = vmatprep.mubr.bf16.mxu0 %v12059_v2  ;;  %6187 = vmatprep.mubr.bf16.mxu1 %v12059_v2 }
 0x493   : > { %10065 = vmatmul.mubr.msk.bf16.gmra.mrb[20].mxu0 %vm573_vm1, %v11984_v52  ;;  %10088 = vmatmul.mubr.msk.bf16.gmra.mrb[20].mxu1 %vm573_vm1, %v11984_v52 }
 0x494   : > { %5936 = vmatprep.mubr.bf16.mxu0 %v12059_v2  ;;  %6197 = vmatprep.mubr.bf16.mxu1 %v12059_v2 }
 0x49b   : > { %10066 = vmatmul.mubr.msk.bf16.gmra.mrb[24].mxu0 %vm573_vm1, %v11985_v55  ;;  %10089 = vmatmul.mubr.msk.bf16.gmra.mrb[24].mxu1 %vm573_vm1, %v11985_v55 }
 0x49c   : > { %5946 = vmatprep.mubr.bf16.mxu0 %v12059_v2  ;;  %6207 = vmatprep.mubr.bf16.mxu1 %v12059_v2 }
 0x4a3   : > { %10067 = vmatmul.mubr.msk.bf16.gmra.mrb[28].mxu0 %vm573_vm1, %v11986_v51  ;;  %10090 = vmatmul.mubr.msk.bf16.gmra.mrb[28].mxu1 %vm573_vm1, %v11986_v51 }
 0x4a4   : > { %5956 = vmatprep.mubr.bf16.mxu0 %v12059_v2  ;;  %6217 = vmatprep.mubr.bf16.mxu1 %v12059_v2 }
 0x4ab   : > { %10068 = vmatmul.mubr.msk.bf16.gmra.mrb[32].mxu0 %vm573_vm1, %v11987_v58  ;;  %10091 = vmatmul.mubr.msk.bf16.gmra.mrb[32].mxu1 %vm573_vm1, %v11987_v58 }
 0x4ac   : > { %5966 = vmatprep.mubr.bf16.mxu0 %v12059_v2  ;;  %6227 = vmatprep.mubr.bf16.mxu1 %v12059_v2 }
 0x4b3   : > { %10069 = vmatmul.mubr.msk.bf16.gmra.mrb[36].mxu0 %vm573_vm1, %v11988_v0  ;;  %10092 = vmatmul.mubr.msk.bf16.gmra.mrb[36].mxu1 %vm573_vm1, %v11988_v0 }
 0x4b4   : > { %5976 = vmatprep.mubr.bf16.mxu0 %v12059_v2  ;;  %6237 = vmatprep.mubr.bf16.mxu1 %v12059_v2 }
 0x4bb   : > { %10070 = vmatmul.mubr.msk.bf16.gmra.mrb[40].mxu0 %vm573_vm1, %v11989_v62  ;;  %10093 = vmatmul.mubr.msk.bf16.gmra.mrb[40].mxu1 %vm573_vm1, %v11989_v62  ;;  %v6751_v62 = vshrl.u32 %v13536_v22, 16 }
 0x4bc   : > { %5986 = vmatprep.mubr.bf16.mxu0 %v12059_v2  ;;  %6247 = vmatprep.mubr.bf16.mxu1 %v12059_v2 }
 0x4c3   : > { %10071 = vmatmul.mubr.msk.bf16.gmra.mrb[44].mxu0 %vm573_vm1, %v11990_v38  ;;  %10094 = vmatmul.mubr.msk.bf16.gmra.mrb[44].mxu1 %vm573_vm1, %v11990_v38 }
 0x4c4   : > { %5996 = vmatprep.mubr.bf16.mxu0 %v12059_v2  ;;  %6257 = vmatprep.mubr.bf16.mxu1 %v12059_v2 }
 0x4cb   : > { %10072 = vmatmul.mubr.msk.bf16.gmra.mrb[48].mxu0 %vm573_vm1, %v11997_v14  ;;  %10095 = vmatmul.mubr.msk.bf16.gmra.mrb[48].mxu1 %vm573_vm1, %v11997_v14  ;;  %v13570_v14 = vld [vmem:[%s12123_s8 + $0x44] sm:$0xff]  }
 0x4cc   : > { %6006 = vmatprep.mubr.bf16.mxu0 %v12059_v2  ;;  %6267 = vmatprep.mubr.bf16.mxu1 %v12059_v2 }
 0x4d3   : > { %10073 = vmatmul.mubr.msk.bf16.gmra.mrb[52].mxu0 %vm573_vm1, %v11998_v13  ;;  %10096 = vmatmul.mubr.msk.bf16.gmra.mrb[52].mxu1 %vm573_vm1, %v11998_v13 }
 0x4d4   : > { %6016 = vmatprep.mubr.bf16.mxu0 %v12059_v2  ;;  %6277 = vmatprep.mubr.bf16.mxu1 %v12059_v2 }
 0x4db   : > { %10074 = vmatmul.mubr.msk.bf16.gmra.mrb[56].mxu0 %vm573_vm1, %v11999_v18  ;;  %10097 = vmatmul.mubr.msk.bf16.gmra.mrb[56].mxu1 %vm573_vm1, %v11999_v18  ;;  %v6759_v18 = vshrl.u32 %v13548_v47, 16 }
 0x4dc   : > { %6026 = vmatprep.mubr.bf16.mxu0 %v12059_v2  ;;  %6287 = vmatprep.mubr.bf16.mxu1 %v12059_v2 }
 0x4e3   : > { %10075 = vmatmul.mubr.msk.bf16.gmra.mrb[60].mxu0 %vm573_vm1, %v12000_v17  ;;  %10098 = vmatmul.mubr.msk.bf16.gmra.mrb[60].mxu1 %vm573_vm1, %v12000_v17  ;;  %v6763_v17 = vshll.u32 %v13570_v14, 16 }
 0x4e4   : > { %6036 = vmatprep.mubr.bf16.mxu0 %v12059_v2  ;;  %6297 = vmatprep.mubr.bf16.mxu1 %v12059_v2 }
 0x4eb   : > { %10076 = vmatmul.mubr.msk.bf16.gmra.mrb[64].mxu0 %vm573_vm1, %v12001_v36  ;;  %10099 = vmatmul.mubr.msk.bf16.gmra.mrb[64].mxu1 %vm573_vm1, %v12001_v36 }
 0x4ec   : > { %6046 = vmatprep.mubr.bf16.mxu0 %v12059_v2  ;;  %6307 = vmatprep.mubr.bf16.mxu1 %v12059_v2 }
 0x4f3   : > { %10077 = vmatmul.mubr.msk.bf16.gmra.mrb[68].mxu0 %vm573_vm1, %v12002_v43  ;;  %10100 = vmatmul.mubr.msk.bf16.gmra.mrb[68].mxu1 %vm573_vm1, %v12002_v43  ;;  %v6765_v43 = vrot.slane %v6763_v17, 1 }
 0x4f4   : > { %6056 = vmatprep.mubr.bf16.mxu0 %v12059_v2  ;;  %6317 = vmatprep.mubr.bf16.mxu1 %v12059_v2 }
 0x4fb   : > { %10078 = vmatmul.mubr.msk.bf16.gmra.mrb[72].mxu0 %vm573_vm1, %v12003_v45  ;;  %10101 = vmatmul.mubr.msk.bf16.gmra.mrb[72].mxu1 %vm573_vm1, %v12003_v45  ;;  %v13580_v45 = vld [vmem:[%s12123_s8 + $0x4c] sm:$0xff]  }
 0x4fc   : > { %6066 = vmatprep.mubr.bf16.mxu0 %v12059_v2  ;;  %6327 = vmatprep.mubr.bf16.mxu1 %v12059_v2  ;;  %v6771_v50 = vshll.u32 %v13580_v45, 16  ;;  %v6775_v8 = vshrl.u32 %v13580_v45, 16 }
 0x4fe   : > { %v6773_v15 = vrot.slane %v6771_v50, 1  ;;  %v13670_v50 = vld [vmem:[%s12123_s8 + $0x94] sm:$0xff]  }
 0x500   : > { %v6777_v20 = vor.u32 %v6775_v8, %v6773_v15 }
 0x503   : > { %10079 = vmatmul.mubr.msk.bf16.gmra.mrb[76].mxu0 %vm573_vm1, %v12004_v33  ;;  %10102 = vmatmul.mubr.msk.bf16.gmra.mrb[76].mxu1 %vm573_vm1, %v12004_v33 }
 0x504   : > { %6076 = vmatprep.mubr.bf16.mxu0 %v12059_v2  ;;  %6337 = vmatprep.mubr.bf16.mxu1 %v12059_v2 }
 0x50b   : > { %10080 = vmatmul.mubr.msk.bf16.gmra.mrb[80].mxu0 %vm573_vm1, %v12005_v4  ;;  %10103 = vmatmul.mubr.msk.bf16.gmra.mrb[80].mxu1 %vm573_vm1, %v12005_v4  ;;  %v6767_v4 = vshrl.u32 %v13570_v14, 16 }
 0x50c   : > { %6086 = vmatprep.mubr.bf16.mxu0 %v12059_v2  ;;  %6347 = vmatprep.mubr.bf16.mxu1 %v12059_v2 }
 0x513   : > { %10081 = vmatmul.mubr.msk.bf16.gmra.mrb[84].mxu0 %vm573_vm1, %v12006_v6  ;;  %10104 = vmatmul.mubr.msk.bf16.gmra.mrb[84].mxu1 %vm573_vm1, %v12006_v6  ;;  %v6769_v6 = vor.u32 %v6767_v4, %v6765_v43 }
 0x514   : > { %6096 = vmatprep.mubr.bf16.mxu0 %v12059_v2  ;;  %6357 = vmatprep.mubr.bf16.mxu1 %v12059_v2 }
 0x51b   : > { %10082 = vmatmul.mubr.msk.bf16.gmra.mrb[112].mxu0 %vm573_vm1, %v12007_v9  ;;  %10105 = vmatmul.mubr.msk.bf16.gmra.mrb[112].mxu1 %vm573_vm1, %v12007_v9  ;;  %v6774_v9 = vsel %vm349_vm0, %v6769_v6, %v6773_v15 }
 0x51c   : > { %7039 = vmatprep.mubr.bf16.mxu0 %v12059_v2  ;;  %7300 = vmatprep.mubr.bf16.mxu1 %v12059_v2 }
 0x523   : > { %10137 = vmatmul.mubr.msk.bf16.vlgmr.msra.gmra.mrb[0].mxu0 %vm573_vm1, %v6726_v59  ;;  %10160 = vmatmul.mubr.msk.bf16.vlgmr.msra.gmra.mrb[0].mxu1 %vm573_vm1, %v6726_v59  ;;  %v6787_v59 = vshll.u32 %v13600_v53, 16 }
 0x524   : > { %7876 = vmatpush1.bf16.msra.mxu0 %v12008_v54  ;;  %8137 = vmatpush1.bf16.msra.mxu1 %v12011_v31  ;;  %v6782_v54 = vsel %vm349_vm0, %v6777_v20, %v6781_v21  ;;  %v6783_v31 = vshrl.u32 %v13590_v7, 16  ;;  %v13680_v20 = vld [vmem:[%s12123_s8 + $0x9c] sm:$0xff]  }
 0x525   : > { %7049 = vmatprep.mubr.bf16.mxu0 %v12059_v2  ;;  %7310 = vmatprep.mubr.bf16.mxu1 %v12059_v2  ;;  %v6789_v60 = vrot.slane %v6787_v59, 1 }
 0x526   : > { %7877 = vmatprep.subr.bf16.mxu0 %v12029_v49  ;;  %8138 = vmatprep.subr.bf16.mxu1 %v12032_v28  ;;  %v6785_v42 = vor.u32 %v6783_v31, %v6781_v21  ;;  %v13610_v49 = vld [vmem:[%s12123_s8 + $0x64] sm:$0xff]   ;;  %v6851_v31 = vshll.u32 %v13680_v20, 16 }
 0x527   : > { %v6795_v12 = vshll.u32 %v13610_v49, 16  ;;  %v6799_v16 = vshrl.u32 %v13610_v49, 16 }
 0x528   : > { %7878 = vmatpush1.bf16.msra.mxu0 %v12027_v1  ;;  %8139 = vmatpush1.bf16.msra.mxu1 %v12030_v11  ;;  %v6790_v28 = vsel %vm349_vm0, %v6785_v42, %v6789_v60  ;;  %v6793_v1 = vor.u32 %v6791_v57, %v6789_v60  ;;  %v6853_v42 = vrot.slane %v6851_v31, 1  ;;  %v13690_v60 = vld [vmem:[%s12123_s8 + $0xa4] sm:$0xff]   ;;  %v6855_v57 = vshrl.u32 %v13680_v20, 16 }
 0x529   : > { %v6797_v11 = vrot.slane %v6795_v12, 1  ;;  %v6859_v12 = vshll.u32 %v13690_v60, 16 }
 0x52b   : > { %10138 = vmatmul.mubr.msk.bf16.gmra.mrb[4].mxu0 %vm573_vm1, %v6734_v46  ;;  %10161 = vmatmul.mubr.msk.bf16.gmra.mrb[4].mxu1 %vm573_vm1, %v6734_v46  ;;  %v13620_v46 = vld [vmem:[%s12123_s8 + $0x6c] sm:$0xff]   ;;  %v6798_v19 = vsel %vm349_vm0, %v6793_v1, %v6797_v11  ;;  %v6801_v29 = vor.u32 %v6799_v16, %v6797_v11  ;;  %v6857_v1 = vor.u32 %v6855_v57, %v6853_v42  ;;  %v6861_v11 = vrot.slane %v6859_v12, 1 }
 0x52c   : > { %7059 = vmatprep.mubr.bf16.mxu0 %v12059_v2  ;;  %7320 = vmatprep.mubr.bf16.mxu1 %v12059_v2  ;;  %v6803_v23 = vshll.u32 %v13620_v46, 16  ;;  %v6807_v41 = vshrl.u32 %v13620_v46, 16 }
 0x52d   : > { %v6862_v16 = vsel %vm349_vm0, %v6857_v1, %v6861_v11 }
 0x52e   : > { %v6805_v25 = vrot.slane %v6803_v23, 1  ;;  %v6863_v23 = vshrl.u32 %v13690_v60, 16 }
 0x533   : > { %10139 = vmatmul.mubr.msk.bf16.gmra.mrb[8].mxu0 %vm573_vm1, %v6742_v44  ;;  %10162 = vmatmul.mubr.msk.bf16.gmra.mrb[8].mxu1 %vm573_vm1, %v6742_v44  ;;  %v6806_v44 = vsel %vm349_vm0, %v6801_v29, %v6805_v25 }
 0x534   : > { %7069 = vmatprep.mubr.bf16.mxu0 %v12059_v2  ;;  %7330 = vmatprep.mubr.bf16.mxu1 %v12059_v2 }
 0x536   : > { %v5121_v37 = vpop.f32.mrb[108].mxu0  ;;  %v5382_v5 = vpop.f32.mrb[108].mxu1 }
 0x537   : > { %v13551_v24 = vadd.f32 %v5121_v37, %v13373_v39  ;;  %v13554_v48 = vadd.f32 %v5382_v5, %v13376_v40  ;;  %v5123_v52 = vpop.f32.mrb[109].mxu0  ;;  %v5384_v55 = vpop.f32.mrb[109].mxu1  ;;  %v6755_v39 = vshll.u32 %v13548_v47, 16  ;;  %v6809_v37 = vor.u32 %v6807_v41, %v6805_v25  ;;  %v13710_v41 = vld [vmem:[%s12123_s8 + $0xb4] sm:$0xff]  }
 0x538   : > { %v13558_v27 = vadd.f32 %v5123_v52, %v13380_v32  ;;  %v13561_v51 = vadd.f32 %v5384_v55, %v13383_v34  ;;  %v5125_v58 = vpop.f32.mrb[110].mxu0  ;;  %v5386_v0 = vpop.f32.mrb[110].mxu1  ;;  %v6753_v32 = vor.u32 %v6751_v62, %v6749_v56  ;;  %v6811_v56 = vshll.u32 %v13630_v30, 16  ;;  %v13640_v52 = vld [vmem:[%s12123_s8 + $0x7c] sm:$0xff]  }
 0x539   : > { %v5126_v38 = vpop.f32.mrb[111].mxu0  ;;  %v5387_v40 = vpop.f32.mrb[111].mxu1  ;;  %v6757_v34 = vrot.slane %v6755_v39, 1  ;;  %v6819_v58 = vshll.u32 %v13640_v52, 16  ;;  %v13650_v39 = vld [vmem:[%s12123_s8 + $0x84] sm:$0xff]   ;;  %v6865_v25 = vor.u32 %v6863_v23, %v6861_v11 }
 0x53a   : > { %v6813_v5 = vrot.slane %v6811_v56, 1  ;;  %v6823_v40 = vshrl.u32 %v13640_v52, 16 }
 0x53b   : > { %10140 = vmatmul.mubr.msk.bf16.gmra.mrb[12].mxu0 %vm573_vm1, %v6750_v63  ;;  %10163 = vmatmul.mubr.msk.bf16.gmra.mrb[12].mxu1 %vm573_vm1, %v6750_v63  ;;  %v6758_v13 = vsel %vm349_vm0, %v6753_v32, %v6757_v34  ;;  %v6761_v36 = vor.u32 %v6759_v18, %v6757_v34  ;;  %v6815_v63 = vshrl.u32 %v13630_v30, 16  ;;  %v6821_v62 = vrot.slane %v6819_v58, 1  ;;  %v13660_v18 = vld [vmem:[%s12123_s8 + $0x8c] sm:$0xff]   ;;  %v13720_v58 = vld [vmem:[%s12123_s8 + $0xbc] sm:$0xff]  }
 0x53c   : > { %7079 = vmatprep.mubr.bf16.mxu0 %v12059_v2  ;;  %7340 = vmatprep.mubr.bf16.mxu1 %v12059_v2  ;;  %v6814_v55 = vsel %vm349_vm0, %v6809_v37, %v6813_v5  ;;  %v6827_v32 = vshll.u32 %v13650_v39, 16  ;;  %v6839_v15 = vshrl.u32 %v13660_v18, 16 }
 0x53d   : > { %v6766_v33 = vsel %vm349_vm0, %v6761_v36, %v6765_v43  ;;  %v6817_v0 = vor.u32 %v6815_v63, %v6813_v5  ;;  %v6825_v34 = vor.u32 %v6823_v40, %v6821_v62  ;;  %v6831_v36 = vshrl.u32 %v13650_v39, 16 }
 0x53e   : > { %v6835_v43 = vshll.u32 %v13660_v18, 16  ;;  %v6875_v5 = vshll.u32 %v13710_v41, 16 }
 0x53f   : > { %v6822_v38 = vsel %vm349_vm0, %v6817_v0, %v6821_v62  ;;  %v6879_v62 = vshrl.u32 %v13710_v41, 16 }
 0x540   : > { %v6837_v4 = vrot.slane %v6835_v43, 1  ;;  %v6877_v63 = vrot.slane %v6875_v5, 1 }
 0x542   : > { %v6841_v8 = vor.u32 %v6839_v15, %v6837_v4  ;;  %v6881_v40 = vor.u32 %v6879_v62, %v6877_v63  ;;  %v7709_v15 = vld [vmem:[%s12123_s8 + $0x14] sm:$0xe] }
 0x543   : > { %10141 = vmatmul.mubr.msk.bf16.gmra.mrb[16].mxu0 %vm573_vm1, %v6758_v13  ;;  %10164 = vmatmul.mubr.msk.bf16.gmra.mrb[16].mxu1 %vm573_vm1, %v6758_v13  ;;  %v6829_v13 = vrot.slane %v6827_v32, 1 }
 0x544   : > { %7089 = vmatprep.mubr.bf16.mxu0 %v12059_v2  ;;  %7350 = vmatprep.mubr.bf16.mxu1 %v12059_v2 }
 0x545   : > { %v6830_v17 = vsel %vm349_vm0, %v6825_v34, %v6829_v13  ;;  %v13730_v34 = vld [vmem:[%s12123_s8 + $0xc4] sm:$0x1f]  }
 0x54b   : > { %10142 = vmatmul.mubr.msk.bf16.gmra.mrb[20].mxu0 %vm573_vm1, %v6766_v33  ;;  %10165 = vmatmul.mubr.msk.bf16.gmra.mrb[20].mxu1 %vm573_vm1, %v6766_v33  ;;  %v6833_v33 = vor.u32 %v6831_v36, %v6829_v13  ;;  %v6891_v36 = vshll.u32 %v13730_v34, 16 }
 0x54c   : > { %7099 = vmatprep.mubr.bf16.mxu0 %v12059_v2  ;;  %7360 = vmatprep.mubr.bf16.mxu1 %v12059_v2 }
 0x54d   : > { %v6838_v6 = vsel %vm349_vm0, %v6833_v33, %v6837_v4  ;;  %v6893_v33 = vrot.slane %v6891_v36, 1 }
 0x553   : > { %10143 = vmatmul.mubr.msk.bf16.gmra.mrb[24].mxu0 %vm573_vm1, %v6774_v9  ;;  %10166 = vmatmul.mubr.msk.bf16.gmra.mrb[24].mxu1 %vm573_vm1, %v6774_v9  ;;  %v6843_v9 = vshll.u32 %v13670_v50, 16 }
 0x554   : > { %7109 = vmatprep.mubr.bf16.mxu0 %v12059_v2  ;;  %7370 = vmatprep.mubr.bf16.mxu1 %v12059_v2 }
 0x555   : > { %v6845_v35 = vrot.slane %v6843_v9, 1 }
 0x557   : > { %v6846_v21 = vsel %vm349_vm0, %v6841_v8, %v6845_v35  ;;  %v10183_v8 = vcombine.low %v7709_v15, %v13482_v3  ;;  %v7724_v3 = vrot.slane %v13500_v26, 1  ;;  %v7728_v26 = vrot.slane %v13536_v22, 1 }
 0x55b   : > { %10144 = vmatmul.mubr.msk.bf16.gmra.mrb[28].mxu0 %vm573_vm1, %v6782_v54  ;;  %10167 = vmatmul.mubr.msk.bf16.gmra.mrb[28].mxu1 %vm573_vm1, %v6782_v54  ;;  %v6847_v54 = vshrl.u32 %v13670_v50, 16 }
 0x55c   : > { %7119 = vmatprep.mubr.bf16.mxu0 %v12059_v2  ;;  %7380 = vmatprep.mubr.bf16.mxu1 %v12059_v2 }
 0x55d   : > { %v6849_v59 = vor.u32 %v6847_v54, %v6845_v35  ;;  %v7721_v35 = vrot.slane %v10183_v8, 1 }
 0x563   : > { %10145 = vmatmul.mubr.msk.bf16.gmra.mrb[32].mxu0 %vm573_vm1, %v6790_v28  ;;  %10168 = vmatmul.mubr.msk.bf16.gmra.mrb[32].mxu1 %vm573_vm1, %v6790_v28  ;;  %v6854_v28 = vsel %vm349_vm0, %v6849_v59, %v6853_v42 }
 0x564   : > { %7129 = vmatprep.mubr.bf16.mxu0 %v12059_v2  ;;  %7390 = vmatprep.mubr.bf16.mxu1 %v12059_v2 }
 0x56b   : > { %10146 = vmatmul.mubr.msk.bf16.gmra.mrb[36].mxu0 %vm573_vm1, %v6798_v19  ;;  %10169 = vmatmul.mubr.msk.bf16.gmra.mrb[36].mxu1 %vm573_vm1, %v6798_v19  ;;  %v13700_v19 = vld [vmem:[%s12123_s8 + $0xac] sm:$0xff]  }
 0x56c   : > { %7139 = vmatprep.mubr.bf16.mxu0 %v12059_v2  ;;  %7400 = vmatprep.mubr.bf16.mxu1 %v12059_v2  ;;  %v6867_v29 = vshll.u32 %v13700_v19, 16  ;;  %v6871_v37 = vshrl.u32 %v13700_v19, 16 }
 0x573   : > { %10147 = vmatmul.mubr.msk.bf16.gmra.mrb[40].mxu0 %vm573_vm1, %v6806_v44  ;;  %10170 = vmatmul.mubr.msk.bf16.gmra.mrb[40].mxu1 %vm573_vm1, %v6806_v44  ;;  %v6869_v44 = vrot.slane %v6867_v29, 1 }
 0x574   : > { %7149 = vmatprep.mubr.bf16.mxu0 %v12059_v2  ;;  %7410 = vmatprep.mubr.bf16.mxu1 %v12059_v2 }
 0x575   : > { %v6870_v56 = vsel %vm349_vm0, %v6865_v25, %v6869_v44 }
 0x57b   : > { %10148 = vmatmul.mubr.msk.bf16.gmra.mrb[44].mxu0 %vm573_vm1, %v6814_v55  ;;  %10171 = vmatmul.mubr.msk.bf16.gmra.mrb[44].mxu1 %vm573_vm1, %v6814_v55  ;;  %v6873_v55 = vor.u32 %v6871_v37, %v6869_v44 }
 0x57c   : > { %7159 = vmatprep.mubr.bf16.mxu0 %v12059_v2  ;;  %7420 = vmatprep.mubr.bf16.mxu1 %v12059_v2 }
 0x57d   : > { %v6878_v0 = vsel %vm349_vm0, %v6873_v55, %v6877_v63 }
 0x583   : > { %10149 = vmatmul.mubr.msk.bf16.gmra.mrb[48].mxu0 %vm573_vm1, %v6822_v38  ;;  %10172 = vmatmul.mubr.msk.bf16.gmra.mrb[48].mxu1 %vm573_vm1, %v6822_v38  ;;  %v6883_v38 = vshll.u32 %v13720_v58, 16 }
 0x584   : > { %7169 = vmatprep.mubr.bf16.mxu0 %v12059_v2  ;;  %7430 = vmatprep.mubr.bf16.mxu1 %v12059_v2 }
 0x585   : > { %v6885_v32 = vrot.slane %v6883_v38, 1 }
 0x587   : > { %v6886_v13 = vsel %vm349_vm0, %v6881_v40, %v6885_v32 }
 0x58b   : > { %10150 = vmatmul.mubr.msk.bf16.gmra.mrb[52].mxu0 %vm573_vm1, %v6830_v17  ;;  %10173 = vmatmul.mubr.msk.bf16.gmra.mrb[52].mxu1 %vm573_vm1, %v6830_v17  ;;  %v6887_v17 = vshrl.u32 %v13720_v58, 16 }
 0x58c   : > { %7179 = vmatprep.mubr.bf16.mxu0 %v12059_v2  ;;  %7440 = vmatprep.mubr.bf16.mxu1 %v12059_v2 }
 0x58d   : > { %v6889_v43 = vor.u32 %v6887_v17, %v6885_v32 }
 0x58f   : > { %v6894_v4 = vsel %vm349_vm0, %v6889_v43, %v6893_v33 }
 0x593   : > { %10151 = vmatmul.mubr.msk.bf16.gmra.mrb[56].mxu0 %vm573_vm1, %v6838_v6  ;;  %10174 = vmatmul.mubr.msk.bf16.gmra.mrb[56].mxu1 %vm573_vm1, %v6838_v6  ;;  %v6895_v6 = vshrl.u32 %v13730_v34, 16 }
 0x594   : > { %7189 = vmatprep.mubr.bf16.mxu0 %v12059_v2  ;;  %7450 = vmatprep.mubr.bf16.mxu1 %v12059_v2 }
 0x595   : > { %v6897_v9 = vor.u32 %v6895_v6, %v6893_v33 }
 0x59b   : > { %10152 = vmatmul.mubr.msk.bf16.gmra.mrb[60].mxu0 %vm573_vm1, %v6846_v21  ;;  %10175 = vmatmul.mubr.msk.bf16.gmra.mrb[60].mxu1 %vm573_vm1, %v6846_v21  ;;  %v7722_v21 = vrot.slane %v13491_v10, 1  ;;  %v7726_v10 = vrot.slane %v13520_v61, 1 }
 0x59c   : > { %7199 = vmatprep.mubr.bf16.mxu0 %v12059_v2  ;;  %7460 = vmatprep.mubr.bf16.mxu1 %v12059_v2 }
 0x59d   : > { %v7723_v54 = vsel %vm1787_vm2, %v7721_v35, %v7722_v21  ;;  %v7725_v31 = vsel %vm1787_vm2, %v7722_v21, %v7724_v3  ;;  %v7727_v59 = vsel %vm1787_vm2, %v7724_v3, %v7726_v10  ;;  %v7729_v22 = vsel %vm1787_vm2, %v7726_v10, %v7728_v26 }
 0x5a3   : > { %10153 = vmatmul.mubr.msk.bf16.gmra.mrb[64].mxu0 %vm573_vm1, %v6854_v28  ;;  %10176 = vmatmul.mubr.msk.bf16.gmra.mrb[64].mxu1 %vm573_vm1, %v6854_v28 }
 0x5a4   : > { %7209 = vmatprep.mubr.bf16.mxu0 %v12059_v2  ;;  %7470 = vmatprep.mubr.bf16.mxu1 %v12059_v2 }
 0x5ab   : > { %10154 = vmatmul.mubr.msk.bf16.gmra.mrb[68].mxu0 %vm573_vm1, %v6862_v16  ;;  %10177 = vmatmul.mubr.msk.bf16.gmra.mrb[68].mxu1 %vm573_vm1, %v6862_v16 }
 0x5ac   : > { %7219 = vmatprep.mubr.bf16.mxu0 %v12059_v2  ;;  %7480 = vmatprep.mubr.bf16.mxu1 %v12059_v2 }
 0x5b3   : > { %10155 = vmatmul.mubr.msk.bf16.gmra.mrb[72].mxu0 %vm573_vm1, %v6870_v56  ;;  %10178 = vmatmul.mubr.msk.bf16.gmra.mrb[72].mxu1 %vm573_vm1, %v6870_v56 }
 0x5b4   : > { %7229 = vmatprep.mubr.bf16.mxu0 %v12059_v2  ;;  %7490 = vmatprep.mubr.bf16.mxu1 %v12059_v2 }
 0x5bb   : > { %10156 = vmatmul.mubr.msk.bf16.gmra.mrb[76].mxu0 %vm573_vm1, %v6878_v0  ;;  %10179 = vmatmul.mubr.msk.bf16.gmra.mrb[76].mxu1 %vm573_vm1, %v6878_v0 }
 0x5bc   : > { %7239 = vmatprep.mubr.bf16.mxu0 %v12059_v2  ;;  %7500 = vmatprep.mubr.bf16.mxu1 %v12059_v2 }
 0x5c3   : > { %10157 = vmatmul.mubr.msk.bf16.gmra.mrb[80].mxu0 %vm573_vm1, %v6886_v13  ;;  %10180 = vmatmul.mubr.msk.bf16.gmra.mrb[80].mxu1 %vm573_vm1, %v6886_v13 }
 0x5c4   : > { %7249 = vmatprep.mubr.bf16.mxu0 %v12059_v2  ;;  %7510 = vmatprep.mubr.bf16.mxu1 %v12059_v2 }
 0x5cb   : > { %10158 = vmatmul.mubr.msk.bf16.gmra.mrb[84].mxu0 %vm573_vm1, %v6894_v4  ;;  %10181 = vmatmul.mubr.msk.bf16.gmra.mrb[84].mxu1 %vm573_vm1, %v6894_v4 }
 0x5cc   : > { %7259 = vmatprep.mubr.bf16.mxu0 %v12059_v2  ;;  %7520 = vmatprep.mubr.bf16.mxu1 %v12059_v2 }
 0x5d3   : > { %10159 = vmatmul.mubr.msk.bf16.gmra.mrb[116].mxu0 %vm573_vm1, %v6897_v9  ;;  %10182 = vmatmul.mubr.msk.bf16.gmra.mrb[116].mxu1 %vm573_vm1, %v6897_v9 }
 0x5d4   : > { %7907 = vmatprep.mubr.bf16.mxu0 %v12059_v2  ;;  %8168 = vmatprep.mubr.bf16.mxu1 %v12059_v2 }
 0x5db   : > { %10192 = vmatmul.mubr.msk.bf16.vlgmr.msra.gmra.mrb[0].mxu0 %vm573_vm1, %v7723_v54  ;;  %10215 = vmatmul.mubr.msk.bf16.vlgmr.msra.gmra.mrb[0].mxu1 %vm573_vm1, %v7723_v54 }
 0x5dc   : > { %7917 = vmatprep.mubr.bf16.mxu0 %v12059_v2  ;;  %8178 = vmatprep.mubr.bf16.mxu1 %v12059_v2 }
 0x5e3   : > { %10193 = vmatmul.mubr.msk.bf16.gmra.mrb[4].mxu0 %vm573_vm1, %v7725_v31  ;;  %10216 = vmatmul.mubr.msk.bf16.gmra.mrb[4].mxu1 %vm573_vm1, %v7725_v31 }
 0x5e4   : > { %7927 = vmatprep.mubr.bf16.mxu0 %v12059_v2  ;;  %8188 = vmatprep.mubr.bf16.mxu1 %v12059_v2 }
 0x5eb   : > { %10194 = vmatmul.mubr.msk.bf16.gmra.mrb[8].mxu0 %vm573_vm1, %v7727_v59  ;;  %10217 = vmatmul.mubr.msk.bf16.gmra.mrb[8].mxu1 %vm573_vm1, %v7727_v59 }
 0x5ec   : > { %7937 = vmatprep.mubr.bf16.mxu0 %v12059_v2  ;;  %8198 = vmatprep.mubr.bf16.mxu1 %v12059_v2 }
 0x5ee   : > { %v6098_v42 = vpop.f32.mrb[112].mxu0  ;;  %v6359_v28 = vpop.f32.mrb[112].mxu1 }
 0x5ef   : > { %v13771_v57 = vadd.f32 %v6098_v42, %v13551_v24  ;;  %v13774_v12 = vadd.f32 %v6359_v28, %v13554_v48  ;;  %v6100_v61 = vpop.f32.mrb[113].mxu0  ;;  %v6361_v1 = vpop.f32.mrb[113].mxu1  ;;  %v7730_v24 = vrot.slane %v13548_v47, 1  ;;  %v7734_v47 = vrot.slane %v13580_v45, 1 }
 0x5f0   : > { %v13777_v11 = vadd.f32 %v6100_v61, %v13558_v27  ;;  %v13780_v16 = vadd.f32 %v6361_v1, %v13561_v51  ;;  %v6102_v23 = vpop.f32.mrb[114].mxu0  ;;  %v6363_v29 = vpop.f32.mrb[114].mxu1  ;;  %v7732_v27 = vrot.slane %v13570_v14, 1  ;;  %v7736_v14 = vrot.slane %v13590_v7, 1 }
 0x5f1   : > { %v6103_v25 = vpop.f32.mrb[115].mxu0  ;;  %v6364_v44 = vpop.f32.mrb[115].mxu1  ;;  %v7731_v48 = vsel %vm1787_vm2, %v7728_v26, %v7730_v24  ;;  %v7738_v45 = vrot.slane %v13600_v53, 1  ;;  %v7740_v7 = vrot.slane %v13610_v49, 1  ;;  %v7742_v53 = vrot.slane %v13620_v46, 1 }
 0x5f2   : > { %v7733_v51 = vsel %vm1787_vm2, %v7730_v24, %v7732_v27  ;;  %v7735_v56 = vsel %vm1787_vm2, %v7732_v27, %v7734_v47  ;;  %v7737_v37 = vsel %vm1787_vm2, %v7734_v47, %v7736_v14  ;;  %v7744_v49 = vrot.slane %v13630_v30, 1  ;;  %v8577_v26 = vld [vmem:[%s14205_s2] sm:$0xf] }
 0x5f3   : > { %10195 = vmatmul.mubr.msk.bf16.gmra.mrb[12].mxu0 %vm573_vm1, %v7729_v22  ;;  %10218 = vmatmul.mubr.msk.bf16.gmra.mrb[12].mxu1 %vm573_vm1, %v7729_v22  ;;  %v7739_v5 = vsel %vm1787_vm2, %v7736_v14, %v7738_v45  ;;  %v7741_v55 = vsel %vm1787_vm2, %v7738_v45, %v7740_v7  ;;  %v7743_v63 = vsel %vm1787_vm2, %v7740_v7, %v7742_v53  ;;  %v7746_v46 = vrot.slane %v13640_v52, 1 }
 0x5f4   : > { %7947 = vmatprep.mubr.bf16.mxu0 %v12059_v2  ;;  %8208 = vmatprep.mubr.bf16.mxu1 %v12059_v2  ;;  %v7745_v0 = vsel %vm1787_vm2, %v7742_v53, %v7744_v49  ;;  %v7748_v30 = vrot.slane %v13650_v39, 1  ;;  %v7750_v52 = vrot.slane %v13660_v18, 1  ;;  %v7752_v39 = vrot.slane %v13670_v50, 1 }
 0x5f5   : > { %v7747_v62 = vsel %vm1787_vm2, %v7744_v49, %v7746_v46  ;;  %v7754_v18 = vrot.slane %v13680_v20, 1  ;;  %v7756_v50 = vrot.slane %v13690_v60, 1  ;;  %v7758_v20 = vrot.slane %v13700_v19, 1 }
 0x5f6   : > { %v7749_v38 = vsel %vm1787_vm2, %v7746_v46, %v7748_v30  ;;  %v7751_v40 = vsel %vm1787_vm2, %v7748_v30, %v7750_v52  ;;  %v7753_v32 = vsel %vm1787_vm2, %v7750_v52, %v7752_v39  ;;  %v7760_v60 = vrot.slane %v13710_v41, 1 }
 0x5f7   : > { %v7755_v13 = vsel %vm1787_vm2, %v7752_v39, %v7754_v18  ;;  %v7757_v17 = vsel %vm1787_vm2, %v7754_v18, %v7756_v50  ;;  %v7759_v36 = vsel %vm1787_vm2, %v7756_v50, %v7758_v20  ;;  %v7762_v19 = vrot.slane %v13720_v58, 1 }
 0x5f8   : > { %v7761_v43 = vsel %vm1787_vm2, %v7758_v20, %v7760_v60  ;;  %v7764_v41 = vrot.slane %v13730_v34, 1  ;;  %v8579_v58 = vlaneseq }
 0x5f9   : > { %v7763_v33 = vsel %vm1787_vm2, %v7760_v60, %v7762_v19 }
 0x5fa   : > { %v7765_v4 = vsel %vm1787_vm2, %v7762_v19, %v7764_v41  ;;  %v8580_v6 = vshrl.u32 %v8579_v58, 7 }
 0x5fb   : > { %10196 = vmatmul.mubr.msk.bf16.gmra.mrb[16].mxu0 %vm573_vm1, %v7731_v48  ;;  %10219 = vmatmul.mubr.msk.bf16.gmra.mrb[16].mxu1 %vm573_vm1, %v7731_v48 }
 0x5fc   : > { %7957 = vmatprep.mubr.bf16.mxu0 %v12059_v2  ;;  %8218 = vmatprep.mubr.bf16.mxu1 %v12059_v2  ;;  %v8581_v54 = vsub.s32 0, %v8580_v6  ;;  %v8589_v3 = vsub.s32 2, %v8580_v6  ;;  %v8585_v42 = vsub.s32 1, %v8580_v6  ;;  %v8593_v28 = vsub.s32 3, %v8580_v6 }
 0x5fe   : > { %v13912_v61 = vrot.slane %v8577_v26, %v8581_v54  ;;  %v13914_v1 = vrot.slane %v8577_v26, %v8589_v3  ;;  %v13918_v23 = vrot.slane %v8577_v26, %v8593_v28 }
 0x603   : > { %10197 = vmatmul.mubr.msk.bf16.gmra.mrb[20].mxu0 %vm573_vm1, %v7733_v51  ;;  %10220 = vmatmul.mubr.msk.bf16.gmra.mrb[20].mxu1 %vm573_vm1, %v7733_v51 }
 0x604   : > { %7967 = vmatprep.mubr.bf16.mxu0 %v12059_v2  ;;  %8228 = vmatprep.mubr.bf16.mxu1 %v12059_v2 }
 0x60b   : > { %10198 = vmatmul.mubr.msk.bf16.gmra.mrb[24].mxu0 %vm573_vm1, %v7735_v56  ;;  %10221 = vmatmul.mubr.msk.bf16.gmra.mrb[24].mxu1 %vm573_vm1, %v7735_v56 }
 0x60c   : > { %7977 = vmatprep.mubr.bf16.mxu0 %v12059_v2  ;;  %8238 = vmatprep.mubr.bf16.mxu1 %v12059_v2 }
 0x613   : > { %10199 = vmatmul.mubr.msk.bf16.gmra.mrb[28].mxu0 %vm573_vm1, %v7737_v37  ;;  %10222 = vmatmul.mubr.msk.bf16.gmra.mrb[28].mxu1 %vm573_vm1, %v7737_v37 }
 0x614   : > { %7987 = vmatprep.mubr.bf16.mxu0 %v12059_v2  ;;  %8248 = vmatprep.mubr.bf16.mxu1 %v12059_v2 }
 0x61b   : > { %10200 = vmatmul.mubr.msk.bf16.gmra.mrb[32].mxu0 %vm573_vm1, %v7739_v5  ;;  %10223 = vmatmul.mubr.msk.bf16.gmra.mrb[32].mxu1 %vm573_vm1, %v7739_v5 }
 0x61c   : > { %7997 = vmatprep.mubr.bf16.mxu0 %v12059_v2  ;;  %8258 = vmatprep.mubr.bf16.mxu1 %v12059_v2 }
 0x623   : > { %10201 = vmatmul.mubr.msk.bf16.gmra.mrb[36].mxu0 %vm573_vm1, %v7741_v55  ;;  %10224 = vmatmul.mubr.msk.bf16.gmra.mrb[36].mxu1 %vm573_vm1, %v7741_v55 }
 0x624   : > { %8007 = vmatprep.mubr.bf16.mxu0 %v12059_v2  ;;  %8268 = vmatprep.mubr.bf16.mxu1 %v12059_v2 }
 0x62b   : > { %10202 = vmatmul.mubr.msk.bf16.gmra.mrb[40].mxu0 %vm573_vm1, %v7743_v63  ;;  %10225 = vmatmul.mubr.msk.bf16.gmra.mrb[40].mxu1 %vm573_vm1, %v7743_v63 }
 0x62c   : > { %8017 = vmatprep.mubr.bf16.mxu0 %v12059_v2  ;;  %8278 = vmatprep.mubr.bf16.mxu1 %v12059_v2 }
 0x633   : > { %10203 = vmatmul.mubr.msk.bf16.gmra.mrb[44].mxu0 %vm573_vm1, %v7745_v0  ;;  %10226 = vmatmul.mubr.msk.bf16.gmra.mrb[44].mxu1 %vm573_vm1, %v7745_v0 }
 0x634   : > { %8027 = vmatprep.mubr.bf16.mxu0 %v12059_v2  ;;  %8288 = vmatprep.mubr.bf16.mxu1 %v12059_v2 }
 0x63b   : > { %10204 = vmatmul.mubr.msk.bf16.gmra.mrb[48].mxu0 %vm573_vm1, %v7747_v62  ;;  %10227 = vmatmul.mubr.msk.bf16.gmra.mrb[48].mxu1 %vm573_vm1, %v7747_v62 }
 0x63c   : > { %8037 = vmatprep.mubr.bf16.mxu0 %v12059_v2  ;;  %8298 = vmatprep.mubr.bf16.mxu1 %v12059_v2 }
 0x643   : > { %10205 = vmatmul.mubr.msk.bf16.gmra.mrb[52].mxu0 %vm573_vm1, %v7749_v38  ;;  %10228 = vmatmul.mubr.msk.bf16.gmra.mrb[52].mxu1 %vm573_vm1, %v7749_v38 }
 0x644   : > { %8047 = vmatprep.mubr.bf16.mxu0 %v12059_v2  ;;  %8308 = vmatprep.mubr.bf16.mxu1 %v12059_v2 }
 0x64b   : > { %10206 = vmatmul.mubr.msk.bf16.gmra.mrb[56].mxu0 %vm573_vm1, %v7751_v40  ;;  %10229 = vmatmul.mubr.msk.bf16.gmra.mrb[56].mxu1 %vm573_vm1, %v7751_v40 }
 0x64c   : > { %8057 = vmatprep.mubr.bf16.mxu0 %v12059_v2  ;;  %8318 = vmatprep.mubr.bf16.mxu1 %v12059_v2 }
 0x653   : > { %10207 = vmatmul.mubr.msk.bf16.gmra.mrb[60].mxu0 %vm573_vm1, %v7753_v32  ;;  %10230 = vmatmul.mubr.msk.bf16.gmra.mrb[60].mxu1 %vm573_vm1, %v7753_v32 }
 0x654   : > { %8067 = vmatprep.mubr.bf16.mxu0 %v12059_v2  ;;  %8328 = vmatprep.mubr.bf16.mxu1 %v12059_v2 }
 0x65b   : > { %10208 = vmatmul.mubr.msk.bf16.gmra.mrb[64].mxu0 %vm573_vm1, %v7755_v13  ;;  %10231 = vmatmul.mubr.msk.bf16.gmra.mrb[64].mxu1 %vm573_vm1, %v7755_v13 }
 0x65c   : > { %8077 = vmatprep.mubr.bf16.mxu0 %v12059_v2  ;;  %8338 = vmatprep.mubr.bf16.mxu1 %v12059_v2 }
 0x663   : > { %10209 = vmatmul.mubr.msk.bf16.gmra.mrb[68].mxu0 %vm573_vm1, %v7757_v17  ;;  %10232 = vmatmul.mubr.msk.bf16.gmra.mrb[68].mxu1 %vm573_vm1, %v7757_v17 }
 0x664   : > { %8087 = vmatprep.mubr.bf16.mxu0 %v12059_v2  ;;  %8348 = vmatprep.mubr.bf16.mxu1 %v12059_v2 }
 0x66b   : > { %10210 = vmatmul.mubr.msk.bf16.gmra.mrb[72].mxu0 %vm573_vm1, %v7759_v36  ;;  %10233 = vmatmul.mubr.msk.bf16.gmra.mrb[72].mxu1 %vm573_vm1, %v7759_v36 }
 0x66c   : > { %8097 = vmatprep.mubr.bf16.mxu0 %v12059_v2  ;;  %8358 = vmatprep.mubr.bf16.mxu1 %v12059_v2 }
 0x673   : > { %10211 = vmatmul.mubr.msk.bf16.gmra.mrb[76].mxu0 %vm573_vm1, %v7761_v43  ;;  %10234 = vmatmul.mubr.msk.bf16.gmra.mrb[76].mxu1 %vm573_vm1, %v7761_v43 }
 0x674   : > { %8107 = vmatprep.mubr.bf16.mxu0 %v12059_v2  ;;  %8368 = vmatprep.mubr.bf16.mxu1 %v12059_v2 }
 0x67b   : > { %10212 = vmatmul.mubr.msk.bf16.gmra.mrb[80].mxu0 %vm573_vm1, %v7763_v33  ;;  %10235 = vmatmul.mubr.msk.bf16.gmra.mrb[80].mxu1 %vm573_vm1, %v7763_v33 }
 0x67c   : > { %8117 = vmatprep.mubr.bf16.mxu0 %v12059_v2  ;;  %8378 = vmatprep.mubr.bf16.mxu1 %v12059_v2 }
 0x683   : > { %10213 = vmatmul.mubr.msk.bf16.gmra.mrb[84].mxu0 %vm573_vm1, %v7765_v4  ;;  %10236 = vmatmul.mubr.msk.bf16.gmra.mrb[84].mxu1 %vm573_vm1, %v7765_v4 }
 0x684   : > { %8127 = vmatprep.mubr.bf16.mxu0 %v12059_v2  ;;  %8388 = vmatprep.mubr.bf16.mxu1 %v12059_v2 }
 0x68b   : > { %10214 = vmatmul.mubr.msk.bf16.gmra.mrb[120].mxu0 %vm573_vm1, %v7764_v41  ;;  %10237 = vmatmul.mubr.msk.bf16.gmra.mrb[120].mxu1 %vm573_vm1, %v7764_v41 }
 0x6a6   : > { %v7261_v15 = vpop.f32.mrb[116].mxu0  ;;  %v7522_v9 = vpop.f32.mrb[116].mxu1 }
 0x6a7   : > { %v13898_v34 = vadd.f32 %v7261_v15, %v13771_v57  ;;  %v13901_v8 = vadd.f32 %v7522_v9, %v13774_v12  ;;  %v7263_v35 = vpop.f32.mrb[117].mxu0  ;;  %v7524_v21 = vpop.f32.mrb[117].mxu1 }
 0x6a8   : > { %v13904_v2 = vadd.f32 %v7263_v35, %v13777_v11  ;;  %v13907_v31 = vadd.f32 %v7524_v21, %v13780_v16  ;;  %v7265_v10 = vpop.f32.mrb[118].mxu0  ;;  %v7526_v59 = vpop.f32.mrb[118].mxu1  ;;  %v13916_v11 = vrot.slane %v8577_v26, %v8585_v42 }
 0x6a9   : > { %v7266_v57 = vpop.f32.mrb[119].mxu0  ;;  %v7527_v12 = vpop.f32.mrb[119].mxu1 }
 0x6ae   : > { %v7909_v16 = vpop.f32.mrb[0].mxu0  ;;  %v8170_v29 = vpop.f32.mrb[0].mxu1 }
 0x6af   : > { %v8599_v22 = vadd.f32 %v13912_v61, %v7909_v16  ;;  %v8601_v25 = vadd.f32 %v13914_v1, %v8170_v29  ;;  %v7911_v44 = vpop.f32.mrb[1].mxu0  ;;  %v8172_v24 = vpop.f32.mrb[1].mxu1 }
 0x6b0   : > { %v8600_v48 = vadd.f32 %v13916_v11, %v7911_v44  ;;  %v8602_v27 = vadd.f32 %v13918_v23, %v8172_v24  ;;  %v7913_v51 = vpop.f32.mrb[2].mxu0  ;;  %v8174_v47 = vpop.f32.mrb[2].mxu1 }
 0x6b1   : > { %v8779_v56 = vmax.f32 %v8599_v22, 0.0  ;;  %v8781_v14 = vmax.f32 %v8601_v25, 0.0  ;;  %v8603_v37 = vadd.f32 %v13912_v61, %v7913_v51  ;;  %v8605_v45 = vadd.f32 %v13914_v1, %v8174_v47  ;;  %v7915_v5 = vpop.f32.mrb[3].mxu0  ;;  %v8176_v7 = vpop.f32.mrb[3].mxu1 }
 0x6b2   : > { %v8780_v55 = vmax.f32 %v8600_v48, 0.0  ;;  %v8782_v53 = vmax.f32 %v8602_v27, 0.0  ;;  %v8604_v63 = vadd.f32 %v13916_v11, %v7915_v5  ;;  %v8606_v49 = vadd.f32 %v13918_v23, %v8176_v7 }
 0x6b3   : > { %v8783_v0 = vmax.f32 %v8603_v37, 0.0  ;;  %v8785_v46 = vmax.f32 %v8605_v45, 0.0 }
 0x6b4   : > { %v10330_v62 = vpack.c.bf16 %v8780_v55, %v8779_v56  ;;  %v10331_v30 = vpack.c.bf16 %v8782_v53, %v8781_v14  ;;  %v8784_v38 = vmax.f32 %v8604_v63, 0.0  ;;  %v8786_v52 = vmax.f32 %v8606_v49, 0.0 }
 0x6b6   : > { %9503 = vst [vmem:[%s13932_s20] sm:$0xff] %v10330_v62  ;;  %9504 = vst [vmem:[%s13932_s20 + $0x8] sm:$0xff] %v10331_v30  ;;  %v10332_v40 = vpack.c.bf16 %v8784_v38, %v8783_v0  ;;  %v10333_v39 = vpack.c.bf16 %v8786_v52, %v8785_v46  ;;  %v7919_v32 = vpop.f32.mrb[4].mxu0  ;;  %v8180_v18 = vpop.f32.mrb[4].mxu1 }
 0x6b7   : > { %v8607_v13 = vadd.f32 %v13912_v61, %v7919_v32  ;;  %v8609_v50 = vadd.f32 %v13914_v1, %v8180_v18  ;;  %v7921_v17 = vpop.f32.mrb[5].mxu0  ;;  %v8182_v20 = vpop.f32.mrb[5].mxu1 }
 0x6b8   : > { %9505 = vst [vmem:[%s13932_s20 + $0x10] sm:$0xff] %v10332_v40  ;;  %9506 = vst [vmem:[%s13932_s20 + $0x18] sm:$0xff] %v10333_v39  ;;  %v8608_v36 = vadd.f32 %v13916_v11, %v7921_v17  ;;  %v8610_v60 = vadd.f32 %v13918_v23, %v8182_v20  ;;  %v7923_v43 = vpop.f32.mrb[6].mxu0  ;;  %v8184_v19 = vpop.f32.mrb[6].mxu1 }
 0x6b9   : > { %v8787_v33 = vmax.f32 %v8607_v13, 0.0  ;;  %v8789_v41 = vmax.f32 %v8609_v50, 0.0  ;;  %v8611_v4 = vadd.f32 %v13912_v61, %v7923_v43  ;;  %v8613_v58 = vadd.f32 %v13914_v1, %v8184_v19  ;;  %v7925_v6 = vpop.f32.mrb[7].mxu0  ;;  %v8186_v15 = vpop.f32.mrb[7].mxu1 }
 0x6ba   : > { %v8788_v9 = vmax.f32 %v8608_v36, 0.0  ;;  %v8790_v35 = vmax.f32 %v8610_v60, 0.0  ;;  %v8612_v21 = vadd.f32 %v13916_v11, %v7925_v6  ;;  %v8614_v54 = vadd.f32 %v13918_v23, %v8186_v15 }
 0x6bb   : > { %v8791_v3 = vmax.f32 %v8611_v4, 0.0  ;;  %v8793_v10 = vmax.f32 %v8613_v58, 0.0 }
 0x6bc   : > { %v10334_v59 = vpack.c.bf16 %v8788_v9, %v8787_v33  ;;  %v10335_v26 = vpack.c.bf16 %v8790_v35, %v8789_v41  ;;  %v8792_v42 = vmax.f32 %v8612_v21, 0.0  ;;  %v8794_v28 = vmax.f32 %v8614_v54, 0.0 }
 0x6be   : > { %9507 = vst [vmem:[%s13932_s20 + $0x20] sm:$0xff] %v10334_v59  ;;  %9508 = vst [vmem:[%s13932_s20 + $0x28] sm:$0xff] %v10335_v26  ;;  %v10336_v57 = vpack.c.bf16 %v8792_v42, %v8791_v3  ;;  %v10337_v12 = vpack.c.bf16 %v8794_v28, %v8793_v10  ;;  %v7929_v16 = vpop.f32.mrb[8].mxu0  ;;  %v8190_v29 = vpop.f32.mrb[8].mxu1 }
 0x6bf   : > { %v8615_v22 = vadd.f32 %v13912_v61, %v7929_v16  ;;  %v8617_v25 = vadd.f32 %v13914_v1, %v8190_v29  ;;  %v7931_v44 = vpop.f32.mrb[9].mxu0  ;;  %v8192_v24 = vpop.f32.mrb[9].mxu1 }
 0x6c0   : > { %9509 = vst [vmem:[%s13932_s20 + $0x30] sm:$0xff] %v10336_v57  ;;  %9510 = vst [vmem:[%s13932_s20 + $0x38] sm:$0xff] %v10337_v12  ;;  %v8616_v48 = vadd.f32 %v13916_v11, %v7931_v44  ;;  %v8618_v27 = vadd.f32 %v13918_v23, %v8192_v24  ;;  %v7933_v51 = vpop.f32.mrb[10].mxu0  ;;  %v8194_v47 = vpop.f32.mrb[10].mxu1 }
 0x6c1   : > { %v8795_v56 = vmax.f32 %v8615_v22, 0.0  ;;  %v8797_v14 = vmax.f32 %v8617_v25, 0.0  ;;  %v8619_v37 = vadd.f32 %v13912_v61, %v7933_v51  ;;  %v8621_v45 = vadd.f32 %v13914_v1, %v8194_v47  ;;  %v7935_v5 = vpop.f32.mrb[11].mxu0  ;;  %v8196_v7 = vpop.f32.mrb[11].mxu1 }
 0x6c2   : > { %v8796_v55 = vmax.f32 %v8616_v48, 0.0  ;;  %v8798_v53 = vmax.f32 %v8618_v27, 0.0  ;;  %v8620_v63 = vadd.f32 %v13916_v11, %v7935_v5  ;;  %v8622_v49 = vadd.f32 %v13918_v23, %v8196_v7 }
 0x6c3   : > { %v8799_v0 = vmax.f32 %v8619_v37, 0.0  ;;  %v8801_v46 = vmax.f32 %v8621_v45, 0.0 }
 0x6c4   : > { %v10338_v62 = vpack.c.bf16 %v8796_v55, %v8795_v56  ;;  %v10339_v30 = vpack.c.bf16 %v8798_v53, %v8797_v14  ;;  %v8800_v38 = vmax.f32 %v8620_v63, 0.0  ;;  %v8802_v52 = vmax.f32 %v8622_v49, 0.0 }
 0x6c6   : > { %9511 = vst [vmem:[%s13932_s20 + $0x40] sm:$0xff] %v10338_v62  ;;  %9512 = vst [vmem:[%s13932_s20 + $0x48] sm:$0xff] %v10339_v30  ;;  %v10340_v40 = vpack.c.bf16 %v8800_v38, %v8799_v0  ;;  %v10341_v39 = vpack.c.bf16 %v8802_v52, %v8801_v46  ;;  %v7939_v32 = vpop.f32.mrb[12].mxu0  ;;  %v8200_v18 = vpop.f32.mrb[12].mxu1 }
 0x6c7   : > { %v8623_v13 = vadd.f32 %v13912_v61, %v7939_v32  ;;  %v8625_v50 = vadd.f32 %v13914_v1, %v8200_v18  ;;  %v7941_v17 = vpop.f32.mrb[13].mxu0  ;;  %v8202_v20 = vpop.f32.mrb[13].mxu1 }
 0x6c8   : > { %9513 = vst [vmem:[%s13932_s20 + $0x50] sm:$0xff] %v10340_v40  ;;  %9514 = vst [vmem:[%s13932_s20 + $0x58] sm:$0xff] %v10341_v39  ;;  %v8624_v36 = vadd.f32 %v13916_v11, %v7941_v17  ;;  %v8626_v60 = vadd.f32 %v13918_v23, %v8202_v20  ;;  %v7943_v43 = vpop.f32.mrb[14].mxu0  ;;  %v8204_v19 = vpop.f32.mrb[14].mxu1 }
 0x6c9   : > { %v8803_v33 = vmax.f32 %v8623_v13, 0.0  ;;  %v8805_v41 = vmax.f32 %v8625_v50, 0.0  ;;  %v8627_v4 = vadd.f32 %v13912_v61, %v7943_v43  ;;  %v8629_v58 = vadd.f32 %v13914_v1, %v8204_v19  ;;  %v7945_v6 = vpop.f32.mrb[15].mxu0  ;;  %v8206_v15 = vpop.f32.mrb[15].mxu1 }
 0x6ca   : > { %v8804_v9 = vmax.f32 %v8624_v36, 0.0  ;;  %v8806_v35 = vmax.f32 %v8626_v60, 0.0  ;;  %v8628_v21 = vadd.f32 %v13916_v11, %v7945_v6  ;;  %v8630_v54 = vadd.f32 %v13918_v23, %v8206_v15 }
 0x6cb   : > { %v8807_v3 = vmax.f32 %v8627_v4, 0.0  ;;  %v8809_v10 = vmax.f32 %v8629_v58, 0.0 }
 0x6cc   : > { %v10342_v59 = vpack.c.bf16 %v8804_v9, %v8803_v33  ;;  %v10343_v26 = vpack.c.bf16 %v8806_v35, %v8805_v41  ;;  %v8808_v42 = vmax.f32 %v8628_v21, 0.0  ;;  %v8810_v28 = vmax.f32 %v8630_v54, 0.0 }
 0x6ce   : > { %9515 = vst [vmem:[%s13932_s20 + $0x60] sm:$0xff] %v10342_v59  ;;  %9516 = vst [vmem:[%s13932_s20 + $0x68] sm:$0xff] %v10343_v26  ;;  %v10344_v57 = vpack.c.bf16 %v8808_v42, %v8807_v3  ;;  %v10345_v12 = vpack.c.bf16 %v8810_v28, %v8809_v10  ;;  %v7949_v16 = vpop.f32.mrb[16].mxu0  ;;  %v8210_v29 = vpop.f32.mrb[16].mxu1 }
 0x6cf   : > { %v8631_v22 = vadd.f32 %v13912_v61, %v7949_v16  ;;  %v8633_v25 = vadd.f32 %v13914_v1, %v8210_v29  ;;  %v7951_v44 = vpop.f32.mrb[17].mxu0  ;;  %v8212_v24 = vpop.f32.mrb[17].mxu1 }
 0x6d0   : > { %9517 = vst [vmem:[%s13932_s20 + $0x70] sm:$0xff] %v10344_v57  ;;  %9518 = vst [vmem:[%s13932_s20 + $0x78] sm:$0xff] %v10345_v12  ;;  %v8632_v48 = vadd.f32 %v13916_v11, %v7951_v44  ;;  %v8634_v27 = vadd.f32 %v13918_v23, %v8212_v24  ;;  %v7953_v51 = vpop.f32.mrb[18].mxu0  ;;  %v8214_v47 = vpop.f32.mrb[18].mxu1 }
 0x6d1   : > { %v8811_v56 = vmax.f32 %v8631_v22, 0.0  ;;  %v8813_v14 = vmax.f32 %v8633_v25, 0.0  ;;  %v8635_v37 = vadd.f32 %v13912_v61, %v7953_v51  ;;  %v8637_v45 = vadd.f32 %v13914_v1, %v8214_v47  ;;  %v7955_v5 = vpop.f32.mrb[19].mxu0  ;;  %v8216_v7 = vpop.f32.mrb[19].mxu1 }
 0x6d2   : > { %v8812_v55 = vmax.f32 %v8632_v48, 0.0  ;;  %v8814_v53 = vmax.f32 %v8634_v27, 0.0  ;;  %v8636_v63 = vadd.f32 %v13916_v11, %v7955_v5  ;;  %v8638_v49 = vadd.f32 %v13918_v23, %v8216_v7 }
 0x6d3   : > { %v8815_v0 = vmax.f32 %v8635_v37, 0.0  ;;  %v8817_v46 = vmax.f32 %v8637_v45, 0.0 }
 0x6d4   : > { %v10346_v62 = vpack.c.bf16 %v8812_v55, %v8811_v56  ;;  %v10347_v30 = vpack.c.bf16 %v8814_v53, %v8813_v14  ;;  %v8816_v38 = vmax.f32 %v8636_v63, 0.0  ;;  %v8818_v52 = vmax.f32 %v8638_v49, 0.0 }
 0x6d6   : > { %9519 = vst [vmem:[%s13932_s20 + $0x80] sm:$0xff] %v10346_v62  ;;  %9520 = vst [vmem:[%s13932_s20 + $0x88] sm:$0xff] %v10347_v30  ;;  %v10348_v40 = vpack.c.bf16 %v8816_v38, %v8815_v0  ;;  %v10349_v39 = vpack.c.bf16 %v8818_v52, %v8817_v46  ;;  %v7959_v32 = vpop.f32.mrb[20].mxu0  ;;  %v8220_v18 = vpop.f32.mrb[20].mxu1 }
 0x6d7   : > { %v8639_v13 = vadd.f32 %v13912_v61, %v7959_v32  ;;  %v8641_v50 = vadd.f32 %v13914_v1, %v8220_v18  ;;  %v7961_v17 = vpop.f32.mrb[21].mxu0  ;;  %v8222_v20 = vpop.f32.mrb[21].mxu1 }
 0x6d8   : > { %9521 = vst [vmem:[%s13932_s20 + $0x90] sm:$0xff] %v10348_v40  ;;  %9522 = vst [vmem:[%s13932_s20 + $0x98] sm:$0xff] %v10349_v39  ;;  %v8640_v36 = vadd.f32 %v13916_v11, %v7961_v17  ;;  %v8642_v60 = vadd.f32 %v13918_v23, %v8222_v20  ;;  %v7963_v43 = vpop.f32.mrb[22].mxu0  ;;  %v8224_v19 = vpop.f32.mrb[22].mxu1 }
 0x6d9   : > { %v8819_v33 = vmax.f32 %v8639_v13, 0.0  ;;  %v8821_v41 = vmax.f32 %v8641_v50, 0.0  ;;  %v8643_v4 = vadd.f32 %v13912_v61, %v7963_v43  ;;  %v8645_v58 = vadd.f32 %v13914_v1, %v8224_v19  ;;  %v7965_v6 = vpop.f32.mrb[23].mxu0  ;;  %v8226_v15 = vpop.f32.mrb[23].mxu1 }
 0x6da   : > { %v8820_v9 = vmax.f32 %v8640_v36, 0.0  ;;  %v8822_v35 = vmax.f32 %v8642_v60, 0.0  ;;  %v8644_v21 = vadd.f32 %v13916_v11, %v7965_v6  ;;  %v8646_v54 = vadd.f32 %v13918_v23, %v8226_v15 }
 0x6db   : > { %v8823_v3 = vmax.f32 %v8643_v4, 0.0  ;;  %v8825_v10 = vmax.f32 %v8645_v58, 0.0 }
 0x6dc   : > { %v10350_v59 = vpack.c.bf16 %v8820_v9, %v8819_v33  ;;  %v10351_v26 = vpack.c.bf16 %v8822_v35, %v8821_v41  ;;  %v8824_v42 = vmax.f32 %v8644_v21, 0.0  ;;  %v8826_v28 = vmax.f32 %v8646_v54, 0.0 }
 0x6de   : > { %9523 = vst [vmem:[%s13932_s20 + $0xa0] sm:$0xff] %v10350_v59  ;;  %9524 = vst [vmem:[%s13932_s20 + $0xa8] sm:$0xff] %v10351_v26  ;;  %v10352_v57 = vpack.c.bf16 %v8824_v42, %v8823_v3  ;;  %v10353_v12 = vpack.c.bf16 %v8826_v28, %v8825_v10  ;;  %v7969_v16 = vpop.f32.mrb[24].mxu0  ;;  %v8230_v29 = vpop.f32.mrb[24].mxu1 }
 0x6df   : > { %v8647_v22 = vadd.f32 %v13912_v61, %v7969_v16  ;;  %v8649_v25 = vadd.f32 %v13914_v1, %v8230_v29  ;;  %v7971_v44 = vpop.f32.mrb[25].mxu0  ;;  %v8232_v24 = vpop.f32.mrb[25].mxu1 }
 0x6e0   : > { %9525 = vst [vmem:[%s13932_s20 + $0xb0] sm:$0xff] %v10352_v57  ;;  %9526 = vst [vmem:[%s13932_s20 + $0xb8] sm:$0xff] %v10353_v12  ;;  %v8648_v48 = vadd.f32 %v13916_v11, %v7971_v44  ;;  %v8650_v27 = vadd.f32 %v13918_v23, %v8232_v24  ;;  %v7973_v51 = vpop.f32.mrb[26].mxu0  ;;  %v8234_v47 = vpop.f32.mrb[26].mxu1 }
 0x6e1   : > { %v8827_v56 = vmax.f32 %v8647_v22, 0.0  ;;  %v8829_v14 = vmax.f32 %v8649_v25, 0.0  ;;  %v8651_v37 = vadd.f32 %v13912_v61, %v7973_v51  ;;  %v8653_v45 = vadd.f32 %v13914_v1, %v8234_v47  ;;  %v7975_v5 = vpop.f32.mrb[27].mxu0  ;;  %v8236_v7 = vpop.f32.mrb[27].mxu1 }
 0x6e2   : > { %v8828_v55 = vmax.f32 %v8648_v48, 0.0  ;;  %v8830_v53 = vmax.f32 %v8650_v27, 0.0  ;;  %v8652_v63 = vadd.f32 %v13916_v11, %v7975_v5  ;;  %v8654_v49 = vadd.f32 %v13918_v23, %v8236_v7 }
 0x6e3   : > { %v8831_v0 = vmax.f32 %v8651_v37, 0.0  ;;  %v8833_v46 = vmax.f32 %v8653_v45, 0.0 }
 0x6e4   : > { %v10354_v62 = vpack.c.bf16 %v8828_v55, %v8827_v56  ;;  %v10355_v30 = vpack.c.bf16 %v8830_v53, %v8829_v14  ;;  %v8832_v38 = vmax.f32 %v8652_v63, 0.0  ;;  %v8834_v52 = vmax.f32 %v8654_v49, 0.0 }
 0x6e6   : > { %9527 = vst [vmem:[%s13932_s20 + $0xc0] sm:$0xff] %v10354_v62  ;;  %9528 = vst [vmem:[%s13932_s20 + $0xc8] sm:$0xff] %v10355_v30  ;;  %v10356_v40 = vpack.c.bf16 %v8832_v38, %v8831_v0  ;;  %v10357_v39 = vpack.c.bf16 %v8834_v52, %v8833_v46  ;;  %v7979_v32 = vpop.f32.mrb[28].mxu0  ;;  %v8240_v18 = vpop.f32.mrb[28].mxu1 }
 0x6e7   : > { %v8655_v13 = vadd.f32 %v13912_v61, %v7979_v32  ;;  %v8657_v50 = vadd.f32 %v13914_v1, %v8240_v18  ;;  %v7981_v17 = vpop.f32.mrb[29].mxu0  ;;  %v8242_v20 = vpop.f32.mrb[29].mxu1 }
 0x6e8   : > { %9529 = vst [vmem:[%s13932_s20 + $0xd0] sm:$0xff] %v10356_v40  ;;  %9530 = vst [vmem:[%s13932_s20 + $0xd8] sm:$0xff] %v10357_v39  ;;  %v8656_v36 = vadd.f32 %v13916_v11, %v7981_v17  ;;  %v8658_v60 = vadd.f32 %v13918_v23, %v8242_v20  ;;  %v7983_v43 = vpop.f32.mrb[30].mxu0  ;;  %v8244_v19 = vpop.f32.mrb[30].mxu1 }
 0x6e9   : > { %v8835_v33 = vmax.f32 %v8655_v13, 0.0  ;;  %v8837_v41 = vmax.f32 %v8657_v50, 0.0  ;;  %v8659_v4 = vadd.f32 %v13912_v61, %v7983_v43  ;;  %v8661_v58 = vadd.f32 %v13914_v1, %v8244_v19  ;;  %v7985_v6 = vpop.f32.mrb[31].mxu0  ;;  %v8246_v15 = vpop.f32.mrb[31].mxu1 }
 0x6ea   : > { %v8836_v9 = vmax.f32 %v8656_v36, 0.0  ;;  %v8838_v35 = vmax.f32 %v8658_v60, 0.0  ;;  %v8660_v21 = vadd.f32 %v13916_v11, %v7985_v6  ;;  %v8662_v54 = vadd.f32 %v13918_v23, %v8246_v15 }
 0x6eb   : > { %v8839_v3 = vmax.f32 %v8659_v4, 0.0  ;;  %v8841_v10 = vmax.f32 %v8661_v58, 0.0 }
 0x6ec   : > { %v10358_v59 = vpack.c.bf16 %v8836_v9, %v8835_v33  ;;  %v10359_v26 = vpack.c.bf16 %v8838_v35, %v8837_v41  ;;  %v8840_v42 = vmax.f32 %v8660_v21, 0.0  ;;  %v8842_v28 = vmax.f32 %v8662_v54, 0.0 }
 0x6ee   : > { %9531 = vst [vmem:[%s13932_s20 + $0xe0] sm:$0xff] %v10358_v59  ;;  %9532 = vst [vmem:[%s13932_s20 + $0xe8] sm:$0xff] %v10359_v26  ;;  %v10360_v57 = vpack.c.bf16 %v8840_v42, %v8839_v3  ;;  %v10361_v12 = vpack.c.bf16 %v8842_v28, %v8841_v10  ;;  %v7989_v16 = vpop.f32.mrb[32].mxu0  ;;  %v8250_v29 = vpop.f32.mrb[32].mxu1 }
 0x6ef   : > { %v8663_v22 = vadd.f32 %v13912_v61, %v7989_v16  ;;  %v8665_v25 = vadd.f32 %v13914_v1, %v8250_v29  ;;  %v7991_v44 = vpop.f32.mrb[33].mxu0  ;;  %v8252_v24 = vpop.f32.mrb[33].mxu1 }
 0x6f0   : > { %9533 = vst [vmem:[%s13932_s20 + $0xf0] sm:$0xff] %v10360_v57  ;;  %9534 = vst [vmem:[%s13932_s20 + $0xf8] sm:$0xff] %v10361_v12  ;;  %v8664_v48 = vadd.f32 %v13916_v11, %v7991_v44  ;;  %v8666_v27 = vadd.f32 %v13918_v23, %v8252_v24  ;;  %v7993_v51 = vpop.f32.mrb[34].mxu0  ;;  %v8254_v47 = vpop.f32.mrb[34].mxu1 }
 0x6f1   : > { %v8843_v56 = vmax.f32 %v8663_v22, 0.0  ;;  %v8845_v14 = vmax.f32 %v8665_v25, 0.0  ;;  %v8667_v37 = vadd.f32 %v13912_v61, %v7993_v51  ;;  %v8669_v45 = vadd.f32 %v13914_v1, %v8254_v47  ;;  %v7995_v5 = vpop.f32.mrb[35].mxu0  ;;  %v8256_v7 = vpop.f32.mrb[35].mxu1 }
 0x6f2   : > { %v8844_v55 = vmax.f32 %v8664_v48, 0.0  ;;  %v8846_v53 = vmax.f32 %v8666_v27, 0.0  ;;  %v8668_v63 = vadd.f32 %v13916_v11, %v7995_v5  ;;  %v8670_v49 = vadd.f32 %v13918_v23, %v8256_v7 }
 0x6f3   : > { %v8847_v0 = vmax.f32 %v8667_v37, 0.0  ;;  %v8849_v46 = vmax.f32 %v8669_v45, 0.0 }
 0x6f4   : > { %v10362_v62 = vpack.c.bf16 %v8844_v55, %v8843_v56  ;;  %v10363_v30 = vpack.c.bf16 %v8846_v53, %v8845_v14  ;;  %v8848_v38 = vmax.f32 %v8668_v63, 0.0  ;;  %v8850_v52 = vmax.f32 %v8670_v49, 0.0 }
 0x6f6   : > { %9535 = vst [vmem:[%s13932_s20 + $0x100] sm:$0xff] %v10362_v62  ;;  %9536 = vst [vmem:[%s13932_s20 + $0x108] sm:$0xff] %v10363_v30  ;;  %v10364_v40 = vpack.c.bf16 %v8848_v38, %v8847_v0  ;;  %v10365_v39 = vpack.c.bf16 %v8850_v52, %v8849_v46  ;;  %v7999_v32 = vpop.f32.mrb[36].mxu0  ;;  %v8260_v18 = vpop.f32.mrb[36].mxu1 }
 0x6f7   : > { %v8671_v13 = vadd.f32 %v13912_v61, %v7999_v32  ;;  %v8673_v50 = vadd.f32 %v13914_v1, %v8260_v18  ;;  %v8001_v17 = vpop.f32.mrb[37].mxu0  ;;  %v8262_v20 = vpop.f32.mrb[37].mxu1 }
 0x6f8   : > { %9537 = vst [vmem:[%s13932_s20 + $0x110] sm:$0xff] %v10364_v40  ;;  %9538 = vst [vmem:[%s13932_s20 + $0x118] sm:$0xff] %v10365_v39  ;;  %v8672_v36 = vadd.f32 %v13916_v11, %v8001_v17  ;;  %v8674_v60 = vadd.f32 %v13918_v23, %v8262_v20  ;;  %v8003_v43 = vpop.f32.mrb[38].mxu0  ;;  %v8264_v19 = vpop.f32.mrb[38].mxu1 }
 0x6f9   : > { %v8851_v33 = vmax.f32 %v8671_v13, 0.0  ;;  %v8853_v41 = vmax.f32 %v8673_v50, 0.0  ;;  %v8675_v4 = vadd.f32 %v13912_v61, %v8003_v43  ;;  %v8677_v58 = vadd.f32 %v13914_v1, %v8264_v19  ;;  %v8005_v6 = vpop.f32.mrb[39].mxu0  ;;  %v8266_v15 = vpop.f32.mrb[39].mxu1 }
 0x6fa   : > { %v8852_v9 = vmax.f32 %v8672_v36, 0.0  ;;  %v8854_v35 = vmax.f32 %v8674_v60, 0.0  ;;  %v8676_v21 = vadd.f32 %v13916_v11, %v8005_v6  ;;  %v8678_v54 = vadd.f32 %v13918_v23, %v8266_v15 }
 0x6fb   : > { %v8855_v3 = vmax.f32 %v8675_v4, 0.0  ;;  %v8857_v10 = vmax.f32 %v8677_v58, 0.0 }
 0x6fc   : > { %v10366_v59 = vpack.c.bf16 %v8852_v9, %v8851_v33  ;;  %v10367_v26 = vpack.c.bf16 %v8854_v35, %v8853_v41  ;;  %v8856_v42 = vmax.f32 %v8676_v21, 0.0  ;;  %v8858_v28 = vmax.f32 %v8678_v54, 0.0 }
 0x6fe   : > { %9539 = vst [vmem:[%s13932_s20 + $0x120] sm:$0xff] %v10366_v59  ;;  %9540 = vst [vmem:[%s13932_s20 + $0x128] sm:$0xff] %v10367_v26  ;;  %v10368_v57 = vpack.c.bf16 %v8856_v42, %v8855_v3  ;;  %v10369_v12 = vpack.c.bf16 %v8858_v28, %v8857_v10  ;;  %v8009_v16 = vpop.f32.mrb[40].mxu0  ;;  %v8270_v29 = vpop.f32.mrb[40].mxu1 }
 0x6ff   : > { %v8679_v22 = vadd.f32 %v13912_v61, %v8009_v16  ;;  %v8681_v25 = vadd.f32 %v13914_v1, %v8270_v29  ;;  %v8011_v44 = vpop.f32.mrb[41].mxu0  ;;  %v8272_v24 = vpop.f32.mrb[41].mxu1 }
 0x700   : > { %9541 = vst [vmem:[%s13932_s20 + $0x130] sm:$0xff] %v10368_v57  ;;  %9542 = vst [vmem:[%s13932_s20 + $0x138] sm:$0xff] %v10369_v12  ;;  %v8680_v48 = vadd.f32 %v13916_v11, %v8011_v44  ;;  %v8682_v27 = vadd.f32 %v13918_v23, %v8272_v24  ;;  %v8013_v51 = vpop.f32.mrb[42].mxu0  ;;  %v8274_v47 = vpop.f32.mrb[42].mxu1 }
 0x701   : > { %v8859_v56 = vmax.f32 %v8679_v22, 0.0  ;;  %v8861_v14 = vmax.f32 %v8681_v25, 0.0  ;;  %v8683_v37 = vadd.f32 %v13912_v61, %v8013_v51  ;;  %v8685_v45 = vadd.f32 %v13914_v1, %v8274_v47  ;;  %v8015_v5 = vpop.f32.mrb[43].mxu0  ;;  %v8276_v7 = vpop.f32.mrb[43].mxu1 }
 0x702   : > { %v8860_v55 = vmax.f32 %v8680_v48, 0.0  ;;  %v8862_v53 = vmax.f32 %v8682_v27, 0.0  ;;  %v8684_v63 = vadd.f32 %v13916_v11, %v8015_v5  ;;  %v8686_v49 = vadd.f32 %v13918_v23, %v8276_v7 }
 0x703   : > { %v8863_v0 = vmax.f32 %v8683_v37, 0.0  ;;  %v8865_v46 = vmax.f32 %v8685_v45, 0.0 }
 0x704   : > { %v10370_v62 = vpack.c.bf16 %v8860_v55, %v8859_v56  ;;  %v10371_v30 = vpack.c.bf16 %v8862_v53, %v8861_v14  ;;  %v8864_v38 = vmax.f32 %v8684_v63, 0.0  ;;  %v8866_v52 = vmax.f32 %v8686_v49, 0.0 }
 0x706   : > { %9543 = vst [vmem:[%s13932_s20 + $0x140] sm:$0xff] %v10370_v62  ;;  %9544 = vst [vmem:[%s13932_s20 + $0x148] sm:$0xff] %v10371_v30  ;;  %v10372_v40 = vpack.c.bf16 %v8864_v38, %v8863_v0  ;;  %v10373_v39 = vpack.c.bf16 %v8866_v52, %v8865_v46  ;;  %v8019_v32 = vpop.f32.mrb[44].mxu0  ;;  %v8280_v18 = vpop.f32.mrb[44].mxu1 }
 0x707   : > { %v8687_v13 = vadd.f32 %v13912_v61, %v8019_v32  ;;  %v8689_v50 = vadd.f32 %v13914_v1, %v8280_v18  ;;  %v8021_v17 = vpop.f32.mrb[45].mxu0  ;;  %v8282_v20 = vpop.f32.mrb[45].mxu1 }
 0x708   : > { %9545 = vst [vmem:[%s13932_s20 + $0x150] sm:$0xff] %v10372_v40  ;;  %9546 = vst [vmem:[%s13932_s20 + $0x158] sm:$0xff] %v10373_v39  ;;  %v8688_v36 = vadd.f32 %v13916_v11, %v8021_v17  ;;  %v8690_v60 = vadd.f32 %v13918_v23, %v8282_v20  ;;  %v8023_v43 = vpop.f32.mrb[46].mxu0  ;;  %v8284_v19 = vpop.f32.mrb[46].mxu1 }
 0x709   : > { %v8867_v33 = vmax.f32 %v8687_v13, 0.0  ;;  %v8869_v41 = vmax.f32 %v8689_v50, 0.0  ;;  %v8691_v4 = vadd.f32 %v13912_v61, %v8023_v43  ;;  %v8693_v58 = vadd.f32 %v13914_v1, %v8284_v19  ;;  %v8025_v6 = vpop.f32.mrb[47].mxu0  ;;  %v8286_v15 = vpop.f32.mrb[47].mxu1 }
 0x70a   : > { %v8868_v9 = vmax.f32 %v8688_v36, 0.0  ;;  %v8870_v35 = vmax.f32 %v8690_v60, 0.0  ;;  %v8692_v21 = vadd.f32 %v13916_v11, %v8025_v6  ;;  %v8694_v54 = vadd.f32 %v13918_v23, %v8286_v15 }
 0x70b   : > { %v8871_v3 = vmax.f32 %v8691_v4, 0.0  ;;  %v8873_v10 = vmax.f32 %v8693_v58, 0.0 }
 0x70c   : > { %v10374_v59 = vpack.c.bf16 %v8868_v9, %v8867_v33  ;;  %v10375_v26 = vpack.c.bf16 %v8870_v35, %v8869_v41  ;;  %v8872_v42 = vmax.f32 %v8692_v21, 0.0  ;;  %v8874_v28 = vmax.f32 %v8694_v54, 0.0 }
 0x70e   : > { %9547 = vst [vmem:[%s13932_s20 + $0x160] sm:$0xff] %v10374_v59  ;;  %9548 = vst [vmem:[%s13932_s20 + $0x168] sm:$0xff] %v10375_v26  ;;  %v10376_v57 = vpack.c.bf16 %v8872_v42, %v8871_v3  ;;  %v10377_v12 = vpack.c.bf16 %v8874_v28, %v8873_v10  ;;  %v8029_v16 = vpop.f32.mrb[48].mxu0  ;;  %v8290_v29 = vpop.f32.mrb[48].mxu1 }
 0x70f   : > { %v8695_v22 = vadd.f32 %v13912_v61, %v8029_v16  ;;  %v8697_v25 = vadd.f32 %v13914_v1, %v8290_v29  ;;  %v8031_v44 = vpop.f32.mrb[49].mxu0  ;;  %v8292_v24 = vpop.f32.mrb[49].mxu1 }
 0x710   : > { %9549 = vst [vmem:[%s13932_s20 + $0x170] sm:$0xff] %v10376_v57  ;;  %9550 = vst [vmem:[%s13932_s20 + $0x178] sm:$0xff] %v10377_v12  ;;  %v8696_v48 = vadd.f32 %v13916_v11, %v8031_v44  ;;  %v8698_v27 = vadd.f32 %v13918_v23, %v8292_v24  ;;  %v8033_v51 = vpop.f32.mrb[50].mxu0  ;;  %v8294_v47 = vpop.f32.mrb[50].mxu1 }
 0x711   : > { %v8875_v56 = vmax.f32 %v8695_v22, 0.0  ;;  %v8877_v14 = vmax.f32 %v8697_v25, 0.0  ;;  %v8699_v37 = vadd.f32 %v13912_v61, %v8033_v51  ;;  %v8701_v45 = vadd.f32 %v13914_v1, %v8294_v47  ;;  %v8035_v5 = vpop.f32.mrb[51].mxu0  ;;  %v8296_v7 = vpop.f32.mrb[51].mxu1 }
 0x712   : > { %v8876_v55 = vmax.f32 %v8696_v48, 0.0  ;;  %v8878_v53 = vmax.f32 %v8698_v27, 0.0  ;;  %v8700_v63 = vadd.f32 %v13916_v11, %v8035_v5  ;;  %v8702_v49 = vadd.f32 %v13918_v23, %v8296_v7 }
 0x713   : > { %v8879_v0 = vmax.f32 %v8699_v37, 0.0  ;;  %v8881_v46 = vmax.f32 %v8701_v45, 0.0 }
 0x714   : > { %v10378_v62 = vpack.c.bf16 %v8876_v55, %v8875_v56  ;;  %v10379_v30 = vpack.c.bf16 %v8878_v53, %v8877_v14  ;;  %v8880_v38 = vmax.f32 %v8700_v63, 0.0  ;;  %v8882_v52 = vmax.f32 %v8702_v49, 0.0 }
 0x716   : > { %9551 = vst [vmem:[%s13932_s20 + $0x180] sm:$0xff] %v10378_v62  ;;  %9552 = vst [vmem:[%s13932_s20 + $0x188] sm:$0xff] %v10379_v30  ;;  %v10380_v40 = vpack.c.bf16 %v8880_v38, %v8879_v0  ;;  %v10381_v39 = vpack.c.bf16 %v8882_v52, %v8881_v46  ;;  %v8039_v32 = vpop.f32.mrb[52].mxu0  ;;  %v8300_v18 = vpop.f32.mrb[52].mxu1 }
 0x717   : > { %v8703_v13 = vadd.f32 %v13912_v61, %v8039_v32  ;;  %v8705_v50 = vadd.f32 %v13914_v1, %v8300_v18  ;;  %v8041_v17 = vpop.f32.mrb[53].mxu0  ;;  %v8302_v20 = vpop.f32.mrb[53].mxu1 }
 0x718   : > { %9553 = vst [vmem:[%s13932_s20 + $0x190] sm:$0xff] %v10380_v40  ;;  %9554 = vst [vmem:[%s13932_s20 + $0x198] sm:$0xff] %v10381_v39  ;;  %v8704_v36 = vadd.f32 %v13916_v11, %v8041_v17  ;;  %v8706_v60 = vadd.f32 %v13918_v23, %v8302_v20  ;;  %v8043_v43 = vpop.f32.mrb[54].mxu0  ;;  %v8304_v19 = vpop.f32.mrb[54].mxu1 }
 0x719   : > { %v8883_v33 = vmax.f32 %v8703_v13, 0.0  ;;  %v8885_v41 = vmax.f32 %v8705_v50, 0.0  ;;  %v8707_v4 = vadd.f32 %v13912_v61, %v8043_v43  ;;  %v8709_v58 = vadd.f32 %v13914_v1, %v8304_v19  ;;  %v8045_v6 = vpop.f32.mrb[55].mxu0  ;;  %v8306_v15 = vpop.f32.mrb[55].mxu1 }
 0x71a   : > { %v8884_v9 = vmax.f32 %v8704_v36, 0.0  ;;  %v8886_v35 = vmax.f32 %v8706_v60, 0.0  ;;  %v8708_v21 = vadd.f32 %v13916_v11, %v8045_v6  ;;  %v8710_v54 = vadd.f32 %v13918_v23, %v8306_v15 }
 0x71b   : > { %v8887_v3 = vmax.f32 %v8707_v4, 0.0  ;;  %v8889_v10 = vmax.f32 %v8709_v58, 0.0 }
 0x71c   : > { %v10382_v59 = vpack.c.bf16 %v8884_v9, %v8883_v33  ;;  %v10383_v26 = vpack.c.bf16 %v8886_v35, %v8885_v41  ;;  %v8888_v42 = vmax.f32 %v8708_v21, 0.0  ;;  %v8890_v28 = vmax.f32 %v8710_v54, 0.0 }
 0x71e   : > { %9555 = vst [vmem:[%s13932_s20 + $0x1a0] sm:$0xff] %v10382_v59  ;;  %9556 = vst [vmem:[%s13932_s20 + $0x1a8] sm:$0xff] %v10383_v26  ;;  %v10384_v57 = vpack.c.bf16 %v8888_v42, %v8887_v3  ;;  %v10385_v12 = vpack.c.bf16 %v8890_v28, %v8889_v10  ;;  %v8049_v16 = vpop.f32.mrb[56].mxu0  ;;  %v8310_v29 = vpop.f32.mrb[56].mxu1 }
 0x71f   : > { %v8711_v22 = vadd.f32 %v13912_v61, %v8049_v16  ;;  %v8713_v25 = vadd.f32 %v13914_v1, %v8310_v29  ;;  %v8051_v44 = vpop.f32.mrb[57].mxu0  ;;  %v8312_v24 = vpop.f32.mrb[57].mxu1 }
 0x720   : > { %9557 = vst [vmem:[%s13932_s20 + $0x1b0] sm:$0xff] %v10384_v57  ;;  %9558 = vst [vmem:[%s13932_s20 + $0x1b8] sm:$0xff] %v10385_v12  ;;  %v8712_v48 = vadd.f32 %v13916_v11, %v8051_v44  ;;  %v8714_v27 = vadd.f32 %v13918_v23, %v8312_v24  ;;  %v8053_v51 = vpop.f32.mrb[58].mxu0  ;;  %v8314_v47 = vpop.f32.mrb[58].mxu1 }
 0x721   : > { %v8891_v56 = vmax.f32 %v8711_v22, 0.0  ;;  %v8893_v14 = vmax.f32 %v8713_v25, 0.0  ;;  %v8715_v37 = vadd.f32 %v13912_v61, %v8053_v51  ;;  %v8717_v45 = vadd.f32 %v13914_v1, %v8314_v47  ;;  %v8055_v5 = vpop.f32.mrb[59].mxu0  ;;  %v8316_v7 = vpop.f32.mrb[59].mxu1 }
 0x722   : > { %v8892_v55 = vmax.f32 %v8712_v48, 0.0  ;;  %v8894_v53 = vmax.f32 %v8714_v27, 0.0  ;;  %v8716_v63 = vadd.f32 %v13916_v11, %v8055_v5  ;;  %v8718_v49 = vadd.f32 %v13918_v23, %v8316_v7 }
 0x723   : > { %v8895_v0 = vmax.f32 %v8715_v37, 0.0  ;;  %v8897_v46 = vmax.f32 %v8717_v45, 0.0 }
 0x724   : > { %v10386_v62 = vpack.c.bf16 %v8892_v55, %v8891_v56  ;;  %v10387_v30 = vpack.c.bf16 %v8894_v53, %v8893_v14  ;;  %v8896_v38 = vmax.f32 %v8716_v63, 0.0  ;;  %v8898_v52 = vmax.f32 %v8718_v49, 0.0 }
 0x726   : > { %9559 = vst [vmem:[%s13932_s20 + $0x1c0] sm:$0xff] %v10386_v62  ;;  %9560 = vst [vmem:[%s13932_s20 + $0x1c8] sm:$0xff] %v10387_v30  ;;  %v10388_v40 = vpack.c.bf16 %v8896_v38, %v8895_v0  ;;  %v10389_v39 = vpack.c.bf16 %v8898_v52, %v8897_v46  ;;  %v8059_v32 = vpop.f32.mrb[60].mxu0  ;;  %v8320_v18 = vpop.f32.mrb[60].mxu1 }
 0x727   : > { %v8719_v13 = vadd.f32 %v13912_v61, %v8059_v32  ;;  %v8721_v50 = vadd.f32 %v13914_v1, %v8320_v18  ;;  %v8061_v17 = vpop.f32.mrb[61].mxu0  ;;  %v8322_v20 = vpop.f32.mrb[61].mxu1 }
 0x728   : > { %9561 = vst [vmem:[%s13932_s20 + $0x1d0] sm:$0xff] %v10388_v40  ;;  %9562 = vst [vmem:[%s13932_s20 + $0x1d8] sm:$0xff] %v10389_v39  ;;  %v8720_v36 = vadd.f32 %v13916_v11, %v8061_v17  ;;  %v8722_v60 = vadd.f32 %v13918_v23, %v8322_v20  ;;  %v8063_v43 = vpop.f32.mrb[62].mxu0  ;;  %v8324_v19 = vpop.f32.mrb[62].mxu1 }
 0x729   : > { %v8899_v33 = vmax.f32 %v8719_v13, 0.0  ;;  %v8901_v41 = vmax.f32 %v8721_v50, 0.0  ;;  %v8723_v4 = vadd.f32 %v13912_v61, %v8063_v43  ;;  %v8725_v58 = vadd.f32 %v13914_v1, %v8324_v19  ;;  %v8065_v6 = vpop.f32.mrb[63].mxu0  ;;  %v8326_v15 = vpop.f32.mrb[63].mxu1 }
 0x72a   : > { %v8900_v9 = vmax.f32 %v8720_v36, 0.0  ;;  %v8902_v35 = vmax.f32 %v8722_v60, 0.0  ;;  %v8724_v21 = vadd.f32 %v13916_v11, %v8065_v6  ;;  %v8726_v54 = vadd.f32 %v13918_v23, %v8326_v15 }
 0x72b   : > { %v8903_v3 = vmax.f32 %v8723_v4, 0.0  ;;  %v8905_v10 = vmax.f32 %v8725_v58, 0.0 }
 0x72c   : > { %v10390_v59 = vpack.c.bf16 %v8900_v9, %v8899_v33  ;;  %v10391_v26 = vpack.c.bf16 %v8902_v35, %v8901_v41  ;;  %v8904_v42 = vmax.f32 %v8724_v21, 0.0  ;;  %v8906_v28 = vmax.f32 %v8726_v54, 0.0 }
 0x72e   : > { %9563 = vst [vmem:[%s13932_s20 + $0x1e0] sm:$0xff] %v10390_v59  ;;  %9564 = vst [vmem:[%s13932_s20 + $0x1e8] sm:$0xff] %v10391_v26  ;;  %v10392_v57 = vpack.c.bf16 %v8904_v42, %v8903_v3  ;;  %v10393_v12 = vpack.c.bf16 %v8906_v28, %v8905_v10  ;;  %v8069_v16 = vpop.f32.mrb[64].mxu0  ;;  %v8330_v29 = vpop.f32.mrb[64].mxu1 }
 0x72f   : > { %v8727_v22 = vadd.f32 %v13912_v61, %v8069_v16  ;;  %v8729_v25 = vadd.f32 %v13914_v1, %v8330_v29  ;;  %v8071_v44 = vpop.f32.mrb[65].mxu0  ;;  %v8332_v24 = vpop.f32.mrb[65].mxu1 }
 0x730   : > { %9565 = vst [vmem:[%s13932_s20 + $0x1f0] sm:$0xff] %v10392_v57  ;;  %9566 = vst [vmem:[%s13932_s20 + $0x1f8] sm:$0xff] %v10393_v12  ;;  %v8728_v48 = vadd.f32 %v13916_v11, %v8071_v44  ;;  %v8730_v27 = vadd.f32 %v13918_v23, %v8332_v24  ;;  %v8073_v51 = vpop.f32.mrb[66].mxu0  ;;  %v8334_v47 = vpop.f32.mrb[66].mxu1 }
 0x731   : > { %v8907_v56 = vmax.f32 %v8727_v22, 0.0  ;;  %v8909_v14 = vmax.f32 %v8729_v25, 0.0  ;;  %v8731_v37 = vadd.f32 %v13912_v61, %v8073_v51  ;;  %v8733_v45 = vadd.f32 %v13914_v1, %v8334_v47  ;;  %v8075_v5 = vpop.f32.mrb[67].mxu0  ;;  %v8336_v7 = vpop.f32.mrb[67].mxu1 }
 0x732   : > { %v8908_v55 = vmax.f32 %v8728_v48, 0.0  ;;  %v8910_v53 = vmax.f32 %v8730_v27, 0.0  ;;  %v8732_v63 = vadd.f32 %v13916_v11, %v8075_v5  ;;  %v8734_v49 = vadd.f32 %v13918_v23, %v8336_v7 }
 0x733   : > { %v8911_v0 = vmax.f32 %v8731_v37, 0.0  ;;  %v8913_v46 = vmax.f32 %v8733_v45, 0.0 }
 0x734   : > { %v10394_v62 = vpack.c.bf16 %v8908_v55, %v8907_v56  ;;  %v10395_v30 = vpack.c.bf16 %v8910_v53, %v8909_v14  ;;  %v8912_v38 = vmax.f32 %v8732_v63, 0.0  ;;  %v8914_v52 = vmax.f32 %v8734_v49, 0.0 }
 0x736   : > { %9567 = vst [vmem:[%s13932_s20 + $0x200] sm:$0xff] %v10394_v62  ;;  %9568 = vst [vmem:[%s13932_s20 + $0x208] sm:$0xff] %v10395_v30  ;;  %v10396_v40 = vpack.c.bf16 %v8912_v38, %v8911_v0  ;;  %v10397_v39 = vpack.c.bf16 %v8914_v52, %v8913_v46  ;;  %v8079_v32 = vpop.f32.mrb[68].mxu0  ;;  %v8340_v18 = vpop.f32.mrb[68].mxu1 }
 0x737   : > { %v8735_v13 = vadd.f32 %v13912_v61, %v8079_v32  ;;  %v8737_v50 = vadd.f32 %v13914_v1, %v8340_v18  ;;  %v8081_v17 = vpop.f32.mrb[69].mxu0  ;;  %v8342_v20 = vpop.f32.mrb[69].mxu1 }
 0x738   : > { %9569 = vst [vmem:[%s13932_s20 + $0x210] sm:$0xff] %v10396_v40  ;;  %9570 = vst [vmem:[%s13932_s20 + $0x218] sm:$0xff] %v10397_v39  ;;  %v8736_v36 = vadd.f32 %v13916_v11, %v8081_v17  ;;  %v8738_v60 = vadd.f32 %v13918_v23, %v8342_v20  ;;  %v8083_v43 = vpop.f32.mrb[70].mxu0  ;;  %v8344_v19 = vpop.f32.mrb[70].mxu1 }
 0x739   : > { %v8915_v33 = vmax.f32 %v8735_v13, 0.0  ;;  %v8917_v41 = vmax.f32 %v8737_v50, 0.0  ;;  %v8739_v4 = vadd.f32 %v13912_v61, %v8083_v43  ;;  %v8741_v58 = vadd.f32 %v13914_v1, %v8344_v19  ;;  %v8085_v6 = vpop.f32.mrb[71].mxu0  ;;  %v8346_v15 = vpop.f32.mrb[71].mxu1 }
 0x73a   : > { %v8916_v9 = vmax.f32 %v8736_v36, 0.0  ;;  %v8918_v35 = vmax.f32 %v8738_v60, 0.0  ;;  %v8740_v21 = vadd.f32 %v13916_v11, %v8085_v6  ;;  %v8742_v54 = vadd.f32 %v13918_v23, %v8346_v15 }
 0x73b   : > { %v8919_v3 = vmax.f32 %v8739_v4, 0.0  ;;  %v8921_v10 = vmax.f32 %v8741_v58, 0.0 }
 0x73c   : > { %v10398_v59 = vpack.c.bf16 %v8916_v9, %v8915_v33  ;;  %v10399_v26 = vpack.c.bf16 %v8918_v35, %v8917_v41  ;;  %v8920_v42 = vmax.f32 %v8740_v21, 0.0  ;;  %v8922_v28 = vmax.f32 %v8742_v54, 0.0 }
 0x73e   : > { %9571 = vst [vmem:[%s13932_s20 + $0x220] sm:$0xff] %v10398_v59  ;;  %9572 = vst [vmem:[%s13932_s20 + $0x228] sm:$0xff] %v10399_v26  ;;  %v10400_v57 = vpack.c.bf16 %v8920_v42, %v8919_v3  ;;  %v10401_v12 = vpack.c.bf16 %v8922_v28, %v8921_v10  ;;  %v8089_v16 = vpop.f32.mrb[72].mxu0  ;;  %v8350_v29 = vpop.f32.mrb[72].mxu1 }
 0x73f   : > { %v8743_v22 = vadd.f32 %v13912_v61, %v8089_v16  ;;  %v8745_v25 = vadd.f32 %v13914_v1, %v8350_v29  ;;  %v8091_v44 = vpop.f32.mrb[73].mxu0  ;;  %v8352_v24 = vpop.f32.mrb[73].mxu1 }
 0x740   : > { %9573 = vst [vmem:[%s13932_s20 + $0x230] sm:$0xff] %v10400_v57  ;;  %9574 = vst [vmem:[%s13932_s20 + $0x238] sm:$0xff] %v10401_v12  ;;  %v8744_v48 = vadd.f32 %v13916_v11, %v8091_v44  ;;  %v8746_v27 = vadd.f32 %v13918_v23, %v8352_v24  ;;  %v8093_v51 = vpop.f32.mrb[74].mxu0  ;;  %v8354_v47 = vpop.f32.mrb[74].mxu1 }
 0x741   : > { %v8923_v56 = vmax.f32 %v8743_v22, 0.0  ;;  %v8925_v14 = vmax.f32 %v8745_v25, 0.0  ;;  %v8747_v37 = vadd.f32 %v13912_v61, %v8093_v51  ;;  %v8749_v45 = vadd.f32 %v13914_v1, %v8354_v47  ;;  %v8095_v5 = vpop.f32.mrb[75].mxu0  ;;  %v8356_v7 = vpop.f32.mrb[75].mxu1 }
 0x742   : > { %v8924_v55 = vmax.f32 %v8744_v48, 0.0  ;;  %v8926_v53 = vmax.f32 %v8746_v27, 0.0  ;;  %v8748_v63 = vadd.f32 %v13916_v11, %v8095_v5  ;;  %v8750_v49 = vadd.f32 %v13918_v23, %v8356_v7 }
 0x743   : > { %v8927_v0 = vmax.f32 %v8747_v37, 0.0  ;;  %v8929_v46 = vmax.f32 %v8749_v45, 0.0 }
 0x744   : > { %v10402_v62 = vpack.c.bf16 %v8924_v55, %v8923_v56  ;;  %v10403_v30 = vpack.c.bf16 %v8926_v53, %v8925_v14  ;;  %v8928_v38 = vmax.f32 %v8748_v63, 0.0  ;;  %v8930_v52 = vmax.f32 %v8750_v49, 0.0 }
 0x746   : > { %9575 = vst [vmem:[%s13932_s20 + $0x240] sm:$0xff] %v10402_v62  ;;  %9576 = vst [vmem:[%s13932_s20 + $0x248] sm:$0xff] %v10403_v30  ;;  %v10404_v40 = vpack.c.bf16 %v8928_v38, %v8927_v0  ;;  %v10405_v39 = vpack.c.bf16 %v8930_v52, %v8929_v46  ;;  %v8099_v32 = vpop.f32.mrb[76].mxu0  ;;  %v8360_v18 = vpop.f32.mrb[76].mxu1 }
 0x747   : > { %v8751_v13 = vadd.f32 %v13912_v61, %v8099_v32  ;;  %v8753_v50 = vadd.f32 %v13914_v1, %v8360_v18  ;;  %v8101_v17 = vpop.f32.mrb[77].mxu0  ;;  %v8362_v20 = vpop.f32.mrb[77].mxu1 }
 0x748   : > { %9577 = vst [vmem:[%s13932_s20 + $0x250] sm:$0xff] %v10404_v40  ;;  %9578 = vst [vmem:[%s13932_s20 + $0x258] sm:$0xff] %v10405_v39  ;;  %v8752_v36 = vadd.f32 %v13916_v11, %v8101_v17  ;;  %v8754_v60 = vadd.f32 %v13918_v23, %v8362_v20  ;;  %v8103_v43 = vpop.f32.mrb[78].mxu0  ;;  %v8364_v19 = vpop.f32.mrb[78].mxu1 }
 0x749   : > { %v8931_v33 = vmax.f32 %v8751_v13, 0.0  ;;  %v8933_v41 = vmax.f32 %v8753_v50, 0.0  ;;  %v8755_v4 = vadd.f32 %v13912_v61, %v8103_v43  ;;  %v8757_v58 = vadd.f32 %v13914_v1, %v8364_v19  ;;  %v8105_v6 = vpop.f32.mrb[79].mxu0  ;;  %v8366_v15 = vpop.f32.mrb[79].mxu1 }
 0x74a   : > { %v8932_v9 = vmax.f32 %v8752_v36, 0.0  ;;  %v8934_v35 = vmax.f32 %v8754_v60, 0.0  ;;  %v8756_v21 = vadd.f32 %v13916_v11, %v8105_v6  ;;  %v8758_v54 = vadd.f32 %v13918_v23, %v8366_v15 }
 0x74b   : > { %v8935_v3 = vmax.f32 %v8755_v4, 0.0  ;;  %v8937_v10 = vmax.f32 %v8757_v58, 0.0 }
 0x74c   : > { %v10406_v59 = vpack.c.bf16 %v8932_v9, %v8931_v33  ;;  %v10407_v26 = vpack.c.bf16 %v8934_v35, %v8933_v41  ;;  %v8936_v42 = vmax.f32 %v8756_v21, 0.0  ;;  %v8938_v28 = vmax.f32 %v8758_v54, 0.0 }
 0x74e   : > { %9579 = vst [vmem:[%s13932_s20 + $0x260] sm:$0xff] %v10406_v59  ;;  %9580 = vst [vmem:[%s13932_s20 + $0x268] sm:$0xff] %v10407_v26  ;;  %v10408_v57 = vpack.c.bf16 %v8936_v42, %v8935_v3  ;;  %v10409_v12 = vpack.c.bf16 %v8938_v28, %v8937_v10  ;;  %v8109_v16 = vpop.f32.mrb[80].mxu0  ;;  %v8370_v29 = vpop.f32.mrb[80].mxu1 }
 0x74f   : > { %v8759_v22 = vadd.f32 %v13912_v61, %v8109_v16  ;;  %v8761_v25 = vadd.f32 %v13914_v1, %v8370_v29  ;;  %v8111_v44 = vpop.f32.mrb[81].mxu0  ;;  %v8372_v24 = vpop.f32.mrb[81].mxu1 }
 0x750   : > { %9581 = vst [vmem:[%s13932_s20 + $0x270] sm:$0xff] %v10408_v57  ;;  %9582 = vst [vmem:[%s13932_s20 + $0x278] sm:$0xff] %v10409_v12  ;;  %v8760_v48 = vadd.f32 %v13916_v11, %v8111_v44  ;;  %v8762_v27 = vadd.f32 %v13918_v23, %v8372_v24  ;;  %v8113_v51 = vpop.f32.mrb[82].mxu0  ;;  %v8374_v47 = vpop.f32.mrb[82].mxu1 }
 0x751   : > { %v8939_v56 = vmax.f32 %v8759_v22, 0.0  ;;  %v8941_v14 = vmax.f32 %v8761_v25, 0.0  ;;  %v8763_v37 = vadd.f32 %v13912_v61, %v8113_v51  ;;  %v8765_v45 = vadd.f32 %v13914_v1, %v8374_v47  ;;  %v8115_v5 = vpop.f32.mrb[83].mxu0  ;;  %v8376_v7 = vpop.f32.mrb[83].mxu1 }
 0x752   : > { %v8940_v55 = vmax.f32 %v8760_v48, 0.0  ;;  %v8942_v53 = vmax.f32 %v8762_v27, 0.0  ;;  %v8764_v63 = vadd.f32 %v13916_v11, %v8115_v5  ;;  %v8766_v49 = vadd.f32 %v13918_v23, %v8376_v7 }
 0x753   : > { %v8943_v0 = vmax.f32 %v8763_v37, 0.0  ;;  %v8945_v46 = vmax.f32 %v8765_v45, 0.0 }
 0x754   : > { %v10410_v62 = vpack.c.bf16 %v8940_v55, %v8939_v56  ;;  %v10411_v30 = vpack.c.bf16 %v8942_v53, %v8941_v14  ;;  %v8944_v38 = vmax.f32 %v8764_v63, 0.0  ;;  %v8946_v52 = vmax.f32 %v8766_v49, 0.0 }
 0x756   : > { %9583 = vst [vmem:[%s13932_s20 + $0x280] sm:$0xff] %v10410_v62  ;;  %9584 = vst [vmem:[%s13932_s20 + $0x288] sm:$0xff] %v10411_v30  ;;  %v10412_v40 = vpack.c.bf16 %v8944_v38, %v8943_v0  ;;  %v10413_v39 = vpack.c.bf16 %v8946_v52, %v8945_v46  ;;  %v8119_v32 = vpop.f32.mrb[84].mxu0  ;;  %v8380_v18 = vpop.f32.mrb[84].mxu1 }
 0x757   : > { %v8767_v13 = vadd.f32 %v13912_v61, %v8119_v32  ;;  %v8769_v50 = vadd.f32 %v13914_v1, %v8380_v18  ;;  %v8121_v17 = vpop.f32.mrb[85].mxu0  ;;  %v8382_v20 = vpop.f32.mrb[85].mxu1 }
 0x758   : > { %9585 = vst [vmem:[%s13932_s20 + $0x290] sm:$0xff] %v10412_v40  ;;  %9586 = vst [vmem:[%s13932_s20 + $0x298] sm:$0xff] %v10413_v39  ;;  %v8768_v36 = vadd.f32 %v13916_v11, %v8121_v17  ;;  %v8770_v60 = vadd.f32 %v13918_v23, %v8382_v20  ;;  %v8123_v43 = vpop.f32.mrb[86].mxu0  ;;  %v8384_v19 = vpop.f32.mrb[86].mxu1 }
 0x759   : > { %v8947_v33 = vmax.f32 %v8767_v13, 0.0  ;;  %v8949_v41 = vmax.f32 %v8769_v50, 0.0  ;;  %v8771_v4 = vadd.f32 %v13912_v61, %v8123_v43  ;;  %v8773_v58 = vadd.f32 %v13914_v1, %v8384_v19  ;;  %v8125_v6 = vpop.f32.mrb[87].mxu0  ;;  %v8386_v15 = vpop.f32.mrb[87].mxu1 }
 0x75a   : > { %v8948_v9 = vmax.f32 %v8768_v36, 0.0  ;;  %v8950_v35 = vmax.f32 %v8770_v60, 0.0  ;;  %v8772_v21 = vadd.f32 %v13916_v11, %v8125_v6  ;;  %v8774_v54 = vadd.f32 %v13918_v23, %v8386_v15 }
 0x75b   : > { %v8951_v3 = vmax.f32 %v8771_v4, 0.0  ;;  %v8953_v10 = vmax.f32 %v8773_v58, 0.0 }
 0x75c   : > { %v10414_v59 = vpack.c.bf16 %v8948_v9, %v8947_v33  ;;  %v10415_v26 = vpack.c.bf16 %v8950_v35, %v8949_v41  ;;  %v8952_v42 = vmax.f32 %v8772_v21, 0.0  ;;  %v8954_v28 = vmax.f32 %v8774_v54, 0.0 }
 0x75e   : > { %9587 = vst [vmem:[%s13932_s20 + $0x2a0] sm:$0xff] %v10414_v59  ;;  %9588 = vst [vmem:[%s13932_s20 + $0x2a8] sm:$0xff] %v10415_v26  ;;  %v10416_v57 = vpack.c.bf16 %v8952_v42, %v8951_v3  ;;  %v10417_v12 = vpack.c.bf16 %v8954_v28, %v8953_v10  ;;  %v8129_v16 = vpop.f32.mrb[120].mxu0  ;;  %v8390_v29 = vpop.f32.mrb[120].mxu1 }
 0x75f   : > { %v8573_v22 = vadd.f32 %v8129_v16, %v13898_v34  ;;  %v8575_v25 = vadd.f32 %v8390_v29, %v13901_v8  ;;  %v8131_v44 = vpop.f32.mrb[121].mxu0  ;;  %v8392_v24 = vpop.f32.mrb[121].mxu1 }
 0x760   : > { %9589 = vst [vmem:[%s13932_s20 + $0x2b0] sm:$0xff] %v10416_v57  ;;  %9590 = vst [vmem:[%s13932_s20 + $0x2b8] sm:$0xff] %v10417_v12  ;;  %v8574_v48 = vadd.f32 %v8131_v44, %v13904_v2  ;;  %v8576_v27 = vadd.f32 %v8392_v24, %v13907_v31  ;;  %v8133_v51 = vpop.f32.mrb[122].mxu0  ;;  %v8394_v47 = vpop.f32.mrb[122].mxu1 }
 0x761   : > { %v8775_v56 = vadd.f32 %v13912_v61, %v8573_v22  ;;  %v8777_v14 = vadd.f32 %v13914_v1, %v8575_v25  ;;  %v8134_v37 = vpop.f32.mrb[123].mxu0  ;;  %v8395_v34 = vpop.f32.mrb[123].mxu1 }
 0x762   : > { %v8776_v8 = vadd.f32 %v13916_v11, %v8574_v48  ;;  %v8778_v45 = vadd.f32 %v13918_v23, %v8576_v27 }
 0x763   : > { %v8955_v5 = vmax.f32 %v8775_v56, 0.0  ;;  %v8957_v7 = vmax.f32 %v8777_v14, 0.0 }
 0x764   : > { %v8956_v55 = vmax.f32 %v8776_v8, 0.0  ;;  %v8958_v2 = vmax.f32 %v8778_v45, 0.0 }
 0x766   : > { %v10418_v53 = vpack.c.bf16 %v8956_v55, %v8955_v5  ;;  %v10419_v63 = vpack.c.bf16 %v8958_v2, %v8957_v7 }
 0x768   : > { %9591 = vst [vmem:[%s13932_s20 + $0x2c0] sm:$0xff] %v10418_v53  ;;  %9592 = vst [vmem:[%s13932_s20 + $0x2c8] sm:$0xff] %v10419_v63 }
 0x769 PF: > { %s13_s12 = sadd.s32 1, %s12057_s12  }
 0x76a   : > { %p10_p4 = scmp.ge.s32.totalorder %s13_s12, 4  }
 0x76c   :  { %12 = sbr.rel (!%p10_p4) target bundleno = 1 (0x1), region = 62 }

// kernel: ocr_forward.8
= control target key start
LH: loop header
LB: loop body
LE: loop exit
PB: predicated region body
PF: predicated region fallthrough
CT: control target
= control target key end

     0   :  { %s3121_s27 = smov 0   ;;  %s4162_s0 = inlined_call_operand.vmem [shape: f32[256,512], index: 0, kind: input, shape index: {}]   ;;  %s4163_s1 = inlined_call_operand.vmem [shape: bf16[512,256], index: 1, kind: input, shape index: {}]   ;;  %s4164_s2 = inlined_call_operand.vmem [shape: f32[1,256], index: 2, kind: input, shape index: {}]   ;;  %s4165_s3 = inlined_call_operand.vmem [shape: bf16[256,256], index: 3, kind: input, shape index: {}]   ;;  %s4166_s4 = inlined_call_operand.vmem [shape: f32[1,256], index: 4, kind: input, shape index: {}]   ;;  %s4167_s5 = inlined_call_operand.vmem [shape: bf16[512,256], index: 5, kind: input, shape index: {}]   ;;  %s4168_s6 = inlined_call_operand.vmem [shape: f32[1,256], index: 6, kind: input, shape index: {}]   ;;  %s4169_s7 = inlined_call_operand.vmem [shape: bf16[256,256], index: 7, kind: output, shape index: {0}]   ;;  %s4170_s8 = inlined_call_operand.vmem [shape: bf16[256,256], index: 8, kind: output, shape index: {1}]  }
   0x1 LB: > { %s2417_s28 = sadd.s32 4294967295, %s3074_s27   ;;  %p2421_p0 = scmp.ge.s32.totalorder %s3074_s27, 1  ;;  %s3074_s27 = sphi %s3121_s27, %s19_s27  }
   0x2   : > { %p267_p1 = scmp.lt.s32.totalorder %s3074_s27, 3 }
   0x4   : > { %p268_p2 = pnand %p2421_p0, %p267_p1 }
   0x6   : > { %271 = sbr.rel (%p268_p2) target bundleno = 738 (0x2e2), region = 48 }
   0xd   : > { %v2828_v0 = vld [vmem:[%s4163_s1 + $0x4] ss:$8 sps:$4 sm:$0xff]   ;;  %v2830_v1 = vld [vmem:[%s4163_s1] ss:$8 sps:$4 sm:$0xff]   ;;  %v2831_v2 = vld [vmem:[%s4163_s1 + $0x14] ss:$8 sps:$4 sm:$0xff]  }
   0xe   : > { %822 = vmatprep.subr.bf16.mxu0 %v2828_v0  ;;  %v2833_v3 = vld [vmem:[%s4163_s1 + $0x10] ss:$8 sps:$4 sm:$0xff]   ;;  %v2834_v4 = vld [vmem:[%s4163_s1 + $0x24] ss:$8 sps:$4 sm:$0xff]   ;;  %s2422_s17 = sshll.u32 %s2417_s28, 4 }
   0xf   : > { %823 = vmatpush1.bf16.msra.mxu0 %v2830_v1  ;;  %v2836_v5 = vld [vmem:[%s4163_s1 + $0x20] ss:$8 sps:$4 sm:$0xff]   ;;  %p310_p3 = scmp.lt.s32.totalorder %s2422_s17, 31  ;;  %v2837_v6 = vld [vmem:[%s4163_s1 + $0x34] ss:$8 sps:$4 sm:$0xff]  }
  0x10   : > { %824 = vmatprep.subr.bf16.mxu0 %v2831_v2  ;;  %v2839_v7 = vld [vmem:[%s4163_s1 + $0x30] ss:$8 sps:$4 sm:$0xff]   ;;  %v2840_v8 = vld [vmem:[%s4163_s1 + $0x44] ss:$8 sps:$4 sm:$0xff]   ;;  %v2842_v9 = vld [vmem:[%s4163_s1 + $0x40] ss:$8 sps:$4 sm:$0xff]  }
  0x11   : > { %s4213_s17 = smov (!%p310_p3, %s2422_s17), 31  ;;  %v2843_v10 = vld [vmem:[%s4163_s1 + $0x54] ss:$8 sps:$4 sm:$0xff]   ;;  %v2845_v11 = vld [vmem:[%s4163_s1 + $0x50] ss:$8 sps:$4 sm:$0xff]  }
  0x12   : > { %s2625_s29 = sshll.u32 %s4213_s17, 5  ;;  %v2846_v12 = vld [vmem:[%s4163_s1 + $0x64] ss:$8 sps:$4 sm:$0xff]   ;;  %v2848_v16 = vld [vmem:[%s4163_s1 + $0x60] ss:$8 sps:$4 sm:$0xff]   ;;  %s2626_s24 = sshll.u32 %s4213_s17, 3 }
  0x13   : > { %825 = vmatpush1.bf16.msra.mxu0 %v2833_v3  ;;  %s3168_s12 = scalar_lea.vmem %s4162_s0, %s2625_s29  ;;  %v2849_v17 = vld [vmem:[%s4163_s1 + $0x74] ss:$8 sps:$4 sm:$0xff]   ;;  %v2851_v18 = vld [vmem:[%s4163_s1 + $0x70] ss:$8 sps:$4 sm:$0xff]   ;;  %v2852_v19 = vld [vmem:[%s4163_s1 + $0x84] ss:$8 sps:$4 sm:$0xff]   ;;  %s4033_s28 = scalar_lea.vmem %s4169_s7, %s2626_s24 }
  0x14   : > { %826 = vmatprep.subr.bf16.mxu0 %v2834_v4  ;;  %v331_v13 = vld [vmem:[%s3168_s12 + $0x8] sm:$0xff]  ;;  %v2855_v21 = vld [vmem:[%s4163_s1 + $0x94] ss:$8 sps:$4 sm:$0xff]   ;;  %v2857_v22 = vld [vmem:[%s4163_s1 + $0x90] ss:$8 sps:$4 sm:$0xff]   ;;  %s4101_s10 = scalar_lea.vmem %s4170_s8, %s2626_s24 }
  0x15   : > { %v335_v14 = vld [vmem:[%s3168_s12 + $0x28] sm:$0xff]  ;;  %v2861_v25 = vld [vmem:[%s4163_s1 + $0xb4] ss:$8 sps:$4 sm:$0xff]   ;;  %v2863_v26 = vld [vmem:[%s4163_s1 + $0xb0] ss:$8 sps:$4 sm:$0xff]  }
  0x16   : > { %v3178_v15 = vpack.c.bf16 %v335_v14, %v331_v13  ;;  %v2854_v20 = vld [vmem:[%s4163_s1 + $0x80] ss:$8 sps:$4 sm:$0xff]   ;;  %v2858_v23 = vld [vmem:[%s4163_s1 + $0xa4] ss:$8 sps:$4 sm:$0xff]   ;;  %v2867_v29 = vld [vmem:[%s4163_s1 + $0xd4] ss:$8 sps:$4 sm:$0xff]  }
  0x17   : > { %827 = vmatpush1.bf16.msra.mxu0 %v2836_v5  ;;  %v2860_v24 = vld [vmem:[%s4163_s1 + $0xa0] ss:$8 sps:$4 sm:$0xff]   ;;  %v2864_v27 = vld [vmem:[%s4163_s1 + $0xc4] ss:$8 sps:$4 sm:$0xff]   ;;  %v2869_v30 = vld [vmem:[%s4163_s1 + $0xd0] ss:$8 sps:$4 sm:$0xff]  }
  0x18   : > { %828 = vmatprep.subr.bf16.mxu0 %v2837_v6  ;;  %854 = vmatprep.mubr.bf16.mxu0 %v3178_v15  ;;  %v2866_v28 = vld [vmem:[%s4163_s1 + $0xc0] ss:$8 sps:$4 sm:$0xff]   ;;  %v2870_v31 = vld [vmem:[%s4163_s1 + $0xe4] ss:$8 sps:$4 sm:$0xff]   ;;  %v2873_v33 = vld [vmem:[%s4163_s1 + $0xf4] ss:$8 sps:$4 sm:$0xff]  }
  0x19   : > { %v2872_v32 = vld [vmem:[%s4163_s1 + $0xe0] ss:$8 sps:$4 sm:$0xff]   ;;  %v2875_v34 = vld [vmem:[%s4163_s1 + $0xf0] ss:$8 sps:$4 sm:$0xff]   ;;  %v2878_v37 = vld [vmem:[%s4163_s1 + $0x104] ss:$8 sps:$4 sm:$0xff]  }
  0x1a   : > { %v330_v35 = vld [vmem:[%s3168_s12] sm:$0xff]  ;;  %v339_v38 = vld [vmem:[%s3168_s12 + $0x48] sm:$0xff]  ;;  %v2881_v42 = vld [vmem:[%s4163_s1 + $0x114] ss:$8 sps:$4 sm:$0xff]  }
  0x1b   : > { %829 = vmatpush1.bf16.msra.mxu0 %v2839_v7  ;;  %v334_v36 = vld [vmem:[%s3168_s12 + $0x20] sm:$0xff]  ;;  %v343_v39 = vld [vmem:[%s3168_s12 + $0x68] sm:$0xff]  ;;  %v2879_v45 = vld [vmem:[%s4163_s1 + $0x110] ss:$8 sps:$4 sm:$0xff]  }
  0x1c   : > { %830 = vmatprep.subr.bf16.mxu0 %v2840_v8  ;;  %v3245_v40 = vpack.c.bf16 %v334_v36, %v330_v35  ;;  %v2876_v41 = vld [vmem:[%s4163_s1 + $0x100] ss:$8 sps:$4 sm:$0xff]   ;;  %v3253_v43 = vpack.c.bf16 %v343_v39, %v339_v38  ;;  %v2924_v44 = vld [vmem:[%s4165_s3 + $0x4] ss:$8 sps:$4 sm:$0xff]   ;;  %v2927_v50 = vld [vmem:[%s4165_s3 + $0x14] ss:$8 sps:$4 sm:$0xff]  }
  0x1d   : > { %v338_v46 = vld [vmem:[%s3168_s12 + $0x40] sm:$0xff]  ;;  %1300 = vmatprep.subr.bf16.mxu1 %v2924_v44  ;;  %v347_v51 = vld [vmem:[%s3168_s12 + $0x88] sm:$0xff]  ;;  %v2929_v53 = vld [vmem:[%s4165_s3 + $0x10] ss:$8 sps:$4 sm:$0xff]  }
  0x1e   : > { %v342_v47 = vld [vmem:[%s3168_s12 + $0x60] sm:$0xff]  ;;  %v351_v52 = vld [vmem:[%s3168_s12 + $0xa8] sm:$0xff]  ;;  %v2887_v57 = vld [vmem:[%s4163_s1 + $0x134] ss:$8 sps:$4 sm:$0xff]  }
  0x1f   : > { %831 = vmatpush1.bf16.msra.mxu0 %v2842_v9  ;;  %v2926_v48 = vld [vmem:[%s4165_s3] ss:$8 sps:$4 sm:$0xff]   ;;  %v2884_v49 = vld [vmem:[%s4163_s1 + $0x124] ss:$8 sps:$4 sm:$0xff]   ;;  %v3282_v55 = vpack.c.bf16 %v342_v47, %v338_v46  ;;  %v3290_v58 = vpack.c.bf16 %v351_v52, %v347_v51  ;;  %v2885_v60 = vld [vmem:[%s4163_s1 + $0x130] ss:$8 sps:$4 sm:$0xff]  }
  0x20   : > { %832 = vmatprep.subr.bf16.mxu0 %v2843_v10  ;;  %1301 = vmatpush1.bf16.msra.mxu1 %v2926_v48  ;;  %v2930_v54 = vld [vmem:[%s4165_s3 + $0x24] ss:$8 sps:$4 sm:$0xff]   ;;  %v2882_v56 = vld [vmem:[%s4163_s1 + $0x120] ss:$8 sps:$4 sm:$0xff]   ;;  %v2933_v62 = vld [vmem:[%s4165_s3 + $0x34] ss:$8 sps:$4 sm:$0xff]  }
  0x21   : > { %1302 = vmatprep.subr.bf16.mxu1 %v2927_v50  ;;  %v2932_v59 = vld [vmem:[%s4165_s3 + $0x20] ss:$8 sps:$4 sm:$0xff]   ;;  %v2890_v0 = vld [vmem:[%s4163_s1 + $0x144] ss:$8 sps:$4 sm:$0xff]   ;;  %v2935_v3 = vld [vmem:[%s4165_s3 + $0x30] ss:$8 sps:$4 sm:$0xff]  }
  0x22   : > { %v346_v61 = vld [vmem:[%s3168_s12 + $0x80] sm:$0xff]  ;;  %v355_v1 = vld [vmem:[%s3168_s12 + $0xc8] sm:$0xff]  ;;  %v2893_v7 = vld [vmem:[%s4163_s1 + $0x154] ss:$8 sps:$4 sm:$0xff]  }
  0x23   : > { %833 = vmatpush1.bf16.msra.mxu0 %v2845_v11  ;;  %v350_v63 = vld [vmem:[%s3168_s12 + $0xa0] sm:$0xff]  ;;  %v359_v2 = vld [vmem:[%s3168_s12 + $0xe8] sm:$0xff]  ;;  %v2891_v10 = vld [vmem:[%s4163_s1 + $0x150] ss:$8 sps:$4 sm:$0xff]  }
  0x24   : > { %834 = vmatprep.subr.bf16.mxu0 %v2846_v12  ;;  %1303 = vmatpush1.bf16.msra.mxu1 %v2929_v53  ;;  %v2936_v4 = vld [vmem:[%s4165_s3 + $0x44] ss:$8 sps:$4 sm:$0xff]   ;;  %v3316_v5 = vpack.c.bf16 %v350_v63, %v346_v61  ;;  %v2888_v6 = vld [vmem:[%s4163_s1 + $0x140] ss:$8 sps:$4 sm:$0xff]   ;;  %v3324_v8 = vpack.c.bf16 %v359_v2, %v355_v1  ;;  %v2939_v13 = vld [vmem:[%s4165_s3 + $0x54] ss:$8 sps:$4 sm:$0xff]  }
  0x25   : > { %1304 = vmatprep.subr.bf16.mxu1 %v2930_v54  ;;  %v2938_v9 = vld [vmem:[%s4165_s3 + $0x40] ss:$8 sps:$4 sm:$0xff]   ;;  %v2896_v14 = vld [vmem:[%s4163_s1 + $0x164] ss:$8 sps:$4 sm:$0xff]   ;;  %v2905_v36 = vld [vmem:[%s4163_s1 + $0x194] ss:$8 sps:$4 sm:$0xff]  }
  0x26   : > { %v354_v11 = vld [vmem:[%s3168_s12 + $0xc0] sm:$0xff]  ;;  %v2951_v39 = vld [vmem:[%s4165_s3 + $0x94] ss:$8 sps:$4 sm:$0xff]   ;;  %v379_v46 = vld [vmem:[%s3168_s12 + $0x188] sm:$0xff] }
  0x27   : > { %835 = vmatpush1.bf16.msra.mxu0 %v2848_v16  ;;  %v358_v12 = vld [vmem:[%s3168_s12 + $0xe0] sm:$0xff]  ;;  %v363_v16 = vld [vmem:[%s3168_s12 + $0x108] sm:$0xff]  ;;  %v2953_v48 = vld [vmem:[%s4165_s3 + $0x90] ss:$8 sps:$4 sm:$0xff]  }
  0x28   : > { %836 = vmatprep.subr.bf16.mxu0 %v2849_v17  ;;  %1305 = vmatpush1.bf16.msra.mxu1 %v2932_v59  ;;  %v367_v17 = vld [vmem:[%s3168_s12 + $0x128] sm:$0xff]  ;;  %v374_v44 = vld [vmem:[%s3168_s12 + $0x160] sm:$0xff]  ;;  %v2911_v52 = vld [vmem:[%s4163_s1 + $0x1b4] ss:$8 sps:$4 sm:$0xff]  }
  0x29   : > { %1306 = vmatprep.subr.bf16.mxu1 %v2933_v62  ;;  %v383_v47 = vld [vmem:[%s3168_s12 + $0x1a8] sm:$0xff]  ;;  %v378_v59 = vld [vmem:[%s3168_s12 + $0x180] sm:$0xff] }
  0x2a   : > { %v2906_v50 = vld [vmem:[%s4163_s1 + $0x1a0] ss:$8 sps:$4 sm:$0xff]   ;;  %v3429_v54 = vpack.c.bf16 %v383_v47, %v379_v46  ;;  %v2914_v61 = vld [vmem:[%s4163_s1 + $0x1c4] ss:$8 sps:$4 sm:$0xff]   ;;  %v356_v46 = vld [vmem:[%s3168_s12 + $0xd0] sm:$0xff] }
  0x2b   : > { %837 = vmatpush1.bf16.msra.mxu0 %v2851_v18  ;;  %v2941_v18 = vld [vmem:[%s4165_s3 + $0x50] ss:$8 sps:$4 sm:$0xff]   ;;  %v2956_v53 = vld [vmem:[%s4165_s3 + $0xa0] ss:$8 sps:$4 sm:$0xff]   ;;  %v2960_v1 = vld [vmem:[%s4165_s3 + $0xc4] ss:$8 sps:$4 sm:$0xff]  }
  0x2c   : > { %838 = vmatprep.subr.bf16.mxu0 %v2852_v19  ;;  %1307 = vmatpush1.bf16.msra.mxu1 %v2935_v3  ;;  %v2942_v19 = vld [vmem:[%s4165_s3 + $0x64] ss:$8 sps:$4 sm:$0xff]   ;;  %v2912_v3 = vld [vmem:[%s4163_s1 + $0x1c0] ss:$8 sps:$4 sm:$0xff]   ;;  %v360_v47 = vld [vmem:[%s3168_s12 + $0xf0] sm:$0xff] }
  0x2d   : > { %1308 = vmatprep.subr.bf16.mxu1 %v2936_v4  ;;  %v387_v62 = vld [vmem:[%s3168_s12 + $0x1c8] sm:$0xff] }
  0x2e   : > { %v391_v63 = vld [vmem:[%s3168_s12 + $0x1e8] sm:$0xff] }
  0x2f   : > { %839 = vmatpush1.bf16.msra.mxu0 %v2854_v20  ;;  %v2894_v20 = vld [vmem:[%s4163_s1 + $0x160] ss:$8 sps:$4 sm:$0xff]   ;;  %v3457_v4 = vpack.c.bf16 %v391_v63, %v387_v62  ;;  %v372_v62 = vld [vmem:[%s3168_s12 + $0x150] sm:$0xff] }
  0x30   : > { %840 = vmatprep.subr.bf16.mxu0 %v2855_v21  ;;  %1309 = vmatpush1.bf16.msra.mxu1 %v2938_v9  ;;  %v3353_v21 = vpack.c.bf16 %v358_v12, %v354_v11  ;;  %v2963_v9 = vld [vmem:[%s4165_s3 + $0xd4] ss:$8 sps:$4 sm:$0xff]   ;;  %v386_v11 = vld [vmem:[%s3168_s12 + $0x1c0] sm:$0xff] }
  0x31   : > { %1310 = vmatprep.subr.bf16.mxu1 %v2939_v13  ;;  %v390_v12 = vld [vmem:[%s3168_s12 + $0x1e0] sm:$0xff]  ;;  %v376_v63 = vld [vmem:[%s3168_s12 + $0x170] sm:$0xff] }
  0x32   : > { %v2920_v13 = vld [vmem:[%s4163_s1 + $0x1e4] ss:$8 sps:$4 sm:$0xff]  }
  0x33   : > { %841 = vmatpush1.bf16.msra.mxu0 %v2857_v22  ;;  %v2899_v22 = vld [vmem:[%s4163_s1 + $0x174] ss:$8 sps:$4 sm:$0xff]  }
  0x34   : > { %842 = vmatprep.subr.bf16.mxu0 %v2858_v23  ;;  %v2944_v23 = vld [vmem:[%s4165_s3 + $0x60] ss:$8 sps:$4 sm:$0xff]   ;;  %1311 = vmatpush1.bf16.msra.mxu1 %v2941_v18 }
  0x35   : > { %1312 = vmatprep.subr.bf16.mxu1 %v2942_v19  ;;  %v2918_v18 = vld [vmem:[%s4163_s1 + $0x1e0] ss:$8 sps:$4 sm:$0xff]  }
  0x37   : > { %843 = vmatpush1.bf16.msra.mxu0 %v2860_v24  ;;  %v3361_v24 = vpack.c.bf16 %v367_v17, %v363_v16  ;;  %v337_v16 = vld [vmem:[%s3168_s12 + $0x38] sm:$0xff]  ;;  %v3480_v17 = vpack.c.bf16 %v390_v12, %v386_v11 }
  0x38   : > { %844 = vmatprep.subr.bf16.mxu0 %v2861_v25  ;;  %v2945_v25 = vld [vmem:[%s4165_s3 + $0x74] ss:$8 sps:$4 sm:$0xff]   ;;  %1313 = vmatpush1.bf16.msra.mxu1 %v2944_v23 }
  0x39   : > { %1314 = vmatprep.subr.bf16.mxu1 %v2945_v25  ;;  %v332_v23 = vld [vmem:[%s3168_s12 + $0x10] sm:$0xff]  ;;  %v393_v11 = vld [vmem:[%s3168_s12 + $0x1f8] sm:$0xff] }
  0x3a   : > { %v336_v25 = vld [vmem:[%s3168_s12 + $0x30] sm:$0xff] }
  0x3b   : > { %845 = vmatpush1.bf16.msra.mxu0 %v2863_v26  ;;  %v2897_v26 = vld [vmem:[%s4163_s1 + $0x170] ss:$8 sps:$4 sm:$0xff]  }
  0x3c   : > { %846 = vmatprep.subr.bf16.mxu0 %v2864_v27  ;;  %v362_v27 = vld [vmem:[%s3168_s12 + $0x100] sm:$0xff] }
  0x3f   : > { %847 = vmatpush1.bf16.msra.mxu0 %v2866_v28  ;;  %v366_v28 = vld [vmem:[%s3168_s12 + $0x120] sm:$0xff] }
  0x40   : > { %848 = vmatprep.subr.bf16.mxu0 %v2867_v29  ;;  %v2902_v29 = vld [vmem:[%s4163_s1 + $0x184] ss:$8 sps:$4 sm:$0xff]   ;;  %v3387_v35 = vpack.c.bf16 %v366_v28, %v362_v27  ;;  %v345_v27 = vld [vmem:[%s3168_s12 + $0x78] sm:$0xff]  ;;  %v3499_v28 = vpack.c.bf16 %v336_v25, %v332_v23  ;;  %v2968_v23 = vld [vmem:[%s4165_s3 + $0xe0] ss:$8 sps:$4 sm:$0xff]  }
  0x41   : > { %v2969_v25 = vld [vmem:[%s4165_s3 + $0xf4] ss:$8 sps:$4 sm:$0xff]  }
  0x43   : > { %849 = vmatpush1.bf16.msra.mxu0 %v2869_v30  ;;  %v371_v30 = vld [vmem:[%s3168_s12 + $0x148] sm:$0xff] }
  0x44   : > { %850 = vmatprep.subr.bf16.mxu0 %v2870_v31  ;;  %v375_v31 = vld [vmem:[%s3168_s12 + $0x168] sm:$0xff] }
  0x45   : > { %v3395_v38 = vpack.c.bf16 %v375_v31, %v371_v30  ;;  %v340_v30 = vld [vmem:[%s3168_s12 + $0x50] sm:$0xff] }
  0x46   : > { %v344_v31 = vld [vmem:[%s3168_s12 + $0x70] sm:$0xff] }
  0x47   : > { %851 = vmatpush1.bf16.msra.mxu0 %v2872_v32  ;;  %v2947_v32 = vld [vmem:[%s4165_s3 + $0x70] ss:$8 sps:$4 sm:$0xff]  }
  0x48   : > { %852 = vmatprep.subr.bf16.mxu0 %v2873_v33  ;;  %v2948_v33 = vld [vmem:[%s4165_s3 + $0x84] ss:$8 sps:$4 sm:$0xff]   ;;  %1315 = vmatpush1.bf16.msra.mxu1 %v2947_v32  ;;  %v349_v32 = vld [vmem:[%s3168_s12 + $0x98] sm:$0xff] }
  0x49   : > { %1316 = vmatprep.subr.bf16.mxu1 %v2948_v33  ;;  %v353_v33 = vld [vmem:[%s3168_s12 + $0xb8] sm:$0xff] }
  0x4b   : > { %853 = vmatpush1.bf16.msra.mxu0 %v2875_v34  ;;  %v2900_v34 = vld [vmem:[%s4163_s1 + $0x180] ss:$8 sps:$4 sm:$0xff]  }
  0x4c   : > { %935 = vmatprep.subr.bf16.mxu0 %v2878_v37  ;;  %v2950_v37 = vld [vmem:[%s4165_s3 + $0x80] ss:$8 sps:$4 sm:$0xff]  }
  0x4d   : > { %1317 = vmatpush1.bf16.msra.mxu1 %v2950_v37  ;;  %v348_v37 = vld [vmem:[%s3168_s12 + $0x90] sm:$0xff] }
  0x4e   : > { %855 = vmatmul.mubr.bf16.vlgmr.msra.gmra.mrb[0].mxu0 %v3245_v40  ;;  %1318 = vmatprep.subr.bf16.mxu1 %v2951_v39  ;;  %v352_v39 = vld [vmem:[%s3168_s12 + $0xb0] sm:$0xff] }
  0x4f   : > { %936 = vmatpush1.bf16.msra.mxu0 %v2876_v41  ;;  %864 = vmatprep.mubr.bf16.mxu0 %v3253_v43  ;;  %v2903_v41 = vld [vmem:[%s4163_s1 + $0x190] ss:$8 sps:$4 sm:$0xff]  }
  0x50   : > { %937 = vmatprep.subr.bf16.mxu0 %v2881_v42  ;;  %v370_v42 = vld [vmem:[%s3168_s12 + $0x140] sm:$0xff] }
  0x51   : > { %v3421_v51 = vpack.c.bf16 %v374_v44, %v370_v42  ;;  %1319 = vmatpush1.bf16.msra.mxu1 %v2953_v48  ;;  %v361_v42 = vld [vmem:[%s3168_s12 + $0xf8] sm:$0xff]  ;;  %v3519_v44 = vpack.c.bf16 %v352_v39, %v348_v37  ;;  %v3621_v37 = vld [vmem:[%s4167_s5 + $0x120] ss:$8 sps:$4 sm:$0xff]  }
  0x52   : > { %v365_v48 = vld [vmem:[%s3168_s12 + $0x118] sm:$0xff] }
  0x53   : > { %938 = vmatpush1.bf16.msra.mxu0 %v2879_v45  ;;  %v2908_v45 = vld [vmem:[%s4163_s1 + $0x1a4] ss:$8 sps:$4 sm:$0xff]   ;;  %v3628_v39 = vld [vmem:[%s4167_s5 + $0x134] ss:$8 sps:$4 sm:$0xff]  }
  0x54   : > { %939 = vmatprep.subr.bf16.mxu0 %v2884_v49  ;;  %v2954_v49 = vld [vmem:[%s4165_s3 + $0xa4] ss:$8 sps:$4 sm:$0xff]  }
  0x55   : > { %1320 = vmatprep.subr.bf16.mxu1 %v2954_v49  ;;  %v369_v49 = vld [vmem:[%s3168_s12 + $0x138] sm:$0xff] }
  0x56   : > { %865 = vmatmul.mubr.bf16.gmra.mrb[4].mxu0 %v3282_v55  ;;  %1321 = vmatpush1.bf16.msra.mxu1 %v2956_v53  ;;  %v364_v53 = vld [vmem:[%s3168_s12 + $0x110] sm:$0xff] }
  0x57   : > { %940 = vmatpush1.bf16.msra.mxu0 %v2882_v56  ;;  %874 = vmatprep.mubr.bf16.mxu0 %v3290_v58  ;;  %v2957_v56 = vld [vmem:[%s4165_s3 + $0xb4] ss:$8 sps:$4 sm:$0xff]  }
  0x58   : > { %941 = vmatprep.subr.bf16.mxu0 %v2887_v57  ;;  %v2909_v57 = vld [vmem:[%s4163_s1 + $0x1b0] ss:$8 sps:$4 sm:$0xff]   ;;  %1322 = vmatprep.subr.bf16.mxu1 %v2957_v56 }
  0x59   : > { %v368_v56 = vld [vmem:[%s3168_s12 + $0x130] sm:$0xff] }
  0x5b   : > { %942 = vmatpush1.bf16.msra.mxu0 %v2885_v60  ;;  %v382_v60 = vld [vmem:[%s3168_s12 + $0x1a0] sm:$0xff] }
  0x5c   : > { %943 = vmatprep.subr.bf16.mxu0 %v2890_v0  ;;  %v2959_v0 = vld [vmem:[%s4165_s3 + $0xb0] ss:$8 sps:$4 sm:$0xff]   ;;  %v3452_v2 = vpack.c.bf16 %v382_v60, %v378_v59  ;;  %v3539_v60 = vpack.c.bf16 %v368_v56, %v364_v53  ;;  %v3669_v53 = vld [vmem:[%s4167_s5 + $0x160] ss:$8 sps:$4 sm:$0xff]   ;;  %v3676_v56 = vld [vmem:[%s4167_s5 + $0x174] ss:$8 sps:$4 sm:$0xff]  }
  0x5d   : > { %1323 = vmatpush1.bf16.msra.mxu1 %v2959_v0  ;;  %v377_v59 = vld [vmem:[%s3168_s12 + $0x178] sm:$0xff] }
  0x5e   : > { %875 = vmatmul.mubr.bf16.gmra.mrb[8].mxu0 %v3316_v5  ;;  %1324 = vmatprep.subr.bf16.mxu1 %v2960_v1  ;;  %4187 = vst [vmem:[#allocation3_spill] sm:$0xff] %v3539_v60  ;;  %v381_v0 = vld [vmem:[%s3168_s12 + $0x198] sm:$0xff] }
  0x5f   : > { %944 = vmatpush1.bf16.msra.mxu0 %v2888_v6  ;;  %884 = vmatprep.mubr.bf16.mxu0 %v3324_v8  ;;  %v2917_v6 = vld [vmem:[%s4163_s1 + $0x1d4] ss:$8 sps:$4 sm:$0xff]  }
  0x60   : > { %945 = vmatprep.subr.bf16.mxu0 %v2893_v7  ;;  %v2962_v7 = vld [vmem:[%s4165_s3 + $0xc0] ss:$8 sps:$4 sm:$0xff]   ;;  %v385_v1 = vld [vmem:[%s3168_s12 + $0x1b8] sm:$0xff] }
  0x61   : > { %1325 = vmatpush1.bf16.msra.mxu1 %v2962_v7  ;;  %v380_v7 = vld [vmem:[%s3168_s12 + $0x190] sm:$0xff] }
  0x62   : > { %1326 = vmatprep.subr.bf16.mxu1 %v2963_v9  ;;  %v384_v9 = vld [vmem:[%s3168_s12 + $0x1b0] sm:$0xff] }
  0x63   : > { %946 = vmatpush1.bf16.msra.mxu0 %v2891_v10  ;;  %v2915_v10 = vld [vmem:[%s4163_s1 + $0x1d0] ss:$8 sps:$4 sm:$0xff]   ;;  %v3559_v12 = vpack.c.bf16 %v384_v9, %v380_v7  ;;  %v3717_v7 = vld [vmem:[%s4167_s5 + $0x1a0] ss:$8 sps:$4 sm:$0xff]   ;;  %v3724_v9 = vld [vmem:[%s4167_s5 + $0x1b4] ss:$8 sps:$4 sm:$0xff]  }
  0x64   : > { %947 = vmatprep.subr.bf16.mxu0 %v2896_v14  ;;  %v333_v14 = vld [vmem:[%s3168_s12 + $0x18] sm:$0xff] }
  0x65   : > { %v3485_v19 = vpack.c.bf16 %v337_v16, %v333_v14  ;;  %4191 = vst [vmem:[#allocation7_spill] sm:$0xff] %v3559_v12  ;;  %v388_v14 = vld [vmem:[%s3168_s12 + $0x1d0] sm:$0xff] }
  0x66   : > { %885 = vmatmul.mubr.bf16.gmra.mrb[12].mxu0 %v3353_v21  ;;  %v392_v16 = vld [vmem:[%s3168_s12 + $0x1f0] sm:$0xff] }
  0x67   : > { %948 = vmatpush1.bf16.msra.mxu0 %v2894_v20  ;;  %894 = vmatprep.mubr.bf16.mxu0 %v3361_v24  ;;  %v2923_v20 = vld [vmem:[%s4163_s1 + $0x1f4] ss:$8 sps:$4 sm:$0xff]  }
  0x68   : > { %949 = vmatprep.subr.bf16.mxu0 %v2899_v22  ;;  %v2921_v22 = vld [vmem:[%s4163_s1 + $0x1f0] ss:$8 sps:$4 sm:$0xff]  }
  0x6b   : > { %950 = vmatpush1.bf16.msra.mxu0 %v2897_v26  ;;  %v341_v26 = vld [vmem:[%s3168_s12 + $0x58] sm:$0xff] }
  0x6c   : > { %951 = vmatprep.subr.bf16.mxu0 %v2902_v29  ;;  %v3501_v29 = vpack.c.bf16 %v345_v27, %v341_v26  ;;  %v2974_v26 = vld [vmem:[%s4167_s5 + $0x4] ss:$8 sps:$4 sm:$0xff]  }
  0x6d   : > { %v3592_v27 = vld [vmem:[%s4167_s5 + $0x104] ss:$8 sps:$4 sm:$0xff]  }
  0x6e   : > { %895 = vmatmul.mubr.bf16.gmra.mrb[16].mxu0 %v3387_v35 }
  0x6f   : > { %952 = vmatpush1.bf16.msra.mxu0 %v2900_v34  ;;  %904 = vmatprep.mubr.bf16.mxu0 %v3395_v38  ;;  %v3509_v34 = vpack.c.bf16 %v344_v31, %v340_v30  ;;  %v3597_v30 = vld [vmem:[%s4167_s5 + $0x100] ss:$8 sps:$4 sm:$0xff]   ;;  %v3604_v31 = vld [vmem:[%s4167_s5 + $0x114] ss:$8 sps:$4 sm:$0xff]  }
  0x70   : > { %953 = vmatprep.subr.bf16.mxu0 %v2905_v36  ;;  %v3511_v36 = vpack.c.bf16 %v353_v33, %v349_v32  ;;  %v3609_v32 = vld [vmem:[%s4167_s5 + $0x110] ss:$8 sps:$4 sm:$0xff]   ;;  %v3616_v33 = vld [vmem:[%s4167_s5 + $0x124] ss:$8 sps:$4 sm:$0xff]  }
  0x73   : > { %954 = vmatpush1.bf16.msra.mxu0 %v2903_v41  ;;  %v357_v41 = vld [vmem:[%s3168_s12 + $0xd8] sm:$0xff] }
  0x74   : > { %955 = vmatprep.subr.bf16.mxu0 %v2908_v45  ;;  %v3521_v45 = vpack.c.bf16 %v361_v42, %v357_v41  ;;  %v3633_v41 = vld [vmem:[%s4167_s5 + $0x130] ss:$8 sps:$4 sm:$0xff]   ;;  %v3640_v42 = vld [vmem:[%s4167_s5 + $0x144] ss:$8 sps:$4 sm:$0xff]  }
  0x76   : > { %905 = vmatmul.mubr.bf16.gmra.mrb[20].mxu0 %v3421_v51 }
  0x77   : > { %956 = vmatpush1.bf16.msra.mxu0 %v2906_v50  ;;  %914 = vmatprep.mubr.bf16.mxu0 %v3429_v54  ;;  %v3529_v50 = vpack.c.bf16 %v360_v47, %v356_v46  ;;  %v3645_v46 = vld [vmem:[%s4167_s5 + $0x140] ss:$8 sps:$4 sm:$0xff]   ;;  %v3652_v47 = vld [vmem:[%s4167_s5 + $0x154] ss:$8 sps:$4 sm:$0xff]  }
  0x78   : > { %957 = vmatprep.subr.bf16.mxu0 %v2911_v52  ;;  %v3531_v52 = vpack.c.bf16 %v369_v49, %v365_v48  ;;  %v3657_v48 = vld [vmem:[%s4167_s5 + $0x150] ss:$8 sps:$4 sm:$0xff]   ;;  %v3664_v49 = vld [vmem:[%s4167_s5 + $0x164] ss:$8 sps:$4 sm:$0xff]  }
  0x7a   : > { %4186 = vst [vmem:[#allocation2_spill] sm:$0xff] %v3531_v52 }
  0x7b   : > { %958 = vmatpush1.bf16.msra.mxu0 %v2909_v57  ;;  %v373_v57 = vld [vmem:[%s3168_s12 + $0x158] sm:$0xff] }
  0x7c   : > { %959 = vmatprep.subr.bf16.mxu0 %v2914_v61  ;;  %v3541_v61 = vpack.c.bf16 %v377_v59, %v373_v57  ;;  %v3681_v57 = vld [vmem:[%s4167_s5 + $0x170] ss:$8 sps:$4 sm:$0xff]   ;;  %v3688_v59 = vld [vmem:[%s4167_s5 + $0x184] ss:$8 sps:$4 sm:$0xff]  }
  0x7e   : > { %915 = vmatmul.mubr.bf16.gmra.mrb[24].mxu0 %v3452_v2  ;;  %4188 = vst [vmem:[#allocation4_spill] sm:$0xff] %v3541_v61 }
  0x7f   : > { %960 = vmatpush1.bf16.msra.mxu0 %v2912_v3  ;;  %924 = vmatprep.mubr.bf16.mxu0 %v3457_v4  ;;  %v3549_v3 = vpack.c.bf16 %v376_v63, %v372_v62  ;;  %v3693_v62 = vld [vmem:[%s4167_s5 + $0x180] ss:$8 sps:$4 sm:$0xff]   ;;  %v3700_v63 = vld [vmem:[%s4167_s5 + $0x194] ss:$8 sps:$4 sm:$0xff]  }
  0x80   : > { %961 = vmatprep.subr.bf16.mxu0 %v2917_v6  ;;  %v3551_v6 = vpack.c.bf16 %v385_v1, %v381_v0  ;;  %v3705_v0 = vld [vmem:[%s4167_s5 + $0x190] ss:$8 sps:$4 sm:$0xff]   ;;  %v3712_v1 = vld [vmem:[%s4167_s5 + $0x1a4] ss:$8 sps:$4 sm:$0xff]  }
  0x81   : > { %4189 = vst [vmem:[#allocation5_spill] sm:$0xff] %v3549_v3 }
  0x82   : > { %4190 = vst [vmem:[#allocation6_spill] sm:$0xff] %v3551_v6 }
  0x83   : > { %962 = vmatpush1.bf16.msra.mxu0 %v2915_v10  ;;  %v389_v10 = vld [vmem:[%s3168_s12 + $0x1d8] sm:$0xff] }
  0x84   : > { %963 = vmatprep.subr.bf16.mxu0 %v2920_v13  ;;  %v3561_v13 = vpack.c.bf16 %v393_v11, %v389_v10  ;;  %v3729_v10 = vld [vmem:[%s4167_s5 + $0x1b0] ss:$8 sps:$4 sm:$0xff]   ;;  %v3736_v11 = vld [vmem:[%s4167_s5 + $0x1c4] ss:$8 sps:$4 sm:$0xff]  }
  0x86   : > { %925 = vmatmul.mubr.bf16.gmra.mrb[28].mxu0 %v3480_v17  ;;  %4192 = vst [vmem:[#allocation8_spill] sm:$0xff] %v3561_v13 }
  0x87   : > { %964 = vmatpush1.bf16.msra.mxu0 %v2918_v18  ;;  %967 = vmatprep.mubr.bf16.mxu0 %v3485_v19  ;;  %v3567_v18 = vpack.c.bf16 %v392_v16, %v388_v14  ;;  %v3741_v14 = vld [vmem:[%s4167_s5 + $0x1c0] ss:$8 sps:$4 sm:$0xff]   ;;  %v3748_v16 = vld [vmem:[%s4167_s5 + $0x1d4] ss:$8 sps:$4 sm:$0xff]  }
  0x88   : > { %965 = vmatprep.subr.bf16.mxu0 %v2923_v20  ;;  %v2965_v20 = vld [vmem:[%s4165_s3 + $0xd0] ss:$8 sps:$4 sm:$0xff]  }
  0x89   : > { %4193 = vst [vmem:[#allocation9_spill] sm:$0xff] %v3567_v18  ;;  %1327 = vmatpush1.bf16.msra.mxu1 %v2965_v20  ;;  %v3753_v20 = vld [vmem:[%s4167_s5 + $0x1d0] ss:$8 sps:$4 sm:$0xff]  }
  0x8b   : > { %966 = vmatpush1.bf16.msra.mxu0 %v2921_v22  ;;  %v2966_v22 = vld [vmem:[%s4165_s3 + $0xe4] ss:$8 sps:$4 sm:$0xff]  }
  0x8c   : > { %1328 = vmatprep.subr.bf16.mxu1 %v2966_v22  ;;  %1954 = vmatprep.subr.bf16.mxu0 %v3592_v27  ;;  %v3760_v22 = vld [vmem:[%s4167_s5 + $0x1e4] ss:$8 sps:$4 sm:$0xff]  }
  0x8d   : > { %1329 = vmatpush1.bf16.msra.mxu1 %v2968_v23  ;;  %v3765_v23 = vld [vmem:[%s4167_s5 + $0x1e0] ss:$8 sps:$4 sm:$0xff]  }
  0x8e   : > { %968 = vmatmul.mubr.bf16.vlgmr.msra.gmra.mrb[0].mxu0 %v3499_v28  ;;  %1330 = vmatprep.subr.bf16.mxu1 %v2969_v25  ;;  %4194 = vst [vmem:[#allocation10_spill] sm:$0xff] %v3765_v23  ;;  %v3772_v25 = vld [vmem:[%s4167_s5 + $0x1f4] ss:$8 sps:$4 sm:$0xff]  }
  0x8f   : > { %977 = vmatprep.mubr.bf16.mxu0 %v3501_v29  ;;  %1955 = vmatpush1.bf16.msra.mxu0 %v3597_v30  ;;  %4195 = vst [vmem:[#allocation11_spill] sm:$0xff] %v3772_v25 }
  0x90   : > { %1956 = vmatprep.subr.bf16.mxu0 %v3604_v31 }
  0x93   : > { %1957 = vmatpush1.bf16.msra.mxu0 %v3609_v32 }
  0x94   : > { %1958 = vmatprep.subr.bf16.mxu0 %v3616_v33 }
  0x96   : > { %978 = vmatmul.mubr.bf16.gmra.mrb[4].mxu0 %v3509_v34 }
  0x97   : > { %987 = vmatprep.mubr.bf16.mxu0 %v3511_v36  ;;  %1959 = vmatpush1.bf16.msra.mxu0 %v3621_v37 }
  0x98   : > { %1960 = vmatprep.subr.bf16.mxu0 %v3628_v39 }
  0x9b   : > { %1961 = vmatpush1.bf16.msra.mxu0 %v3633_v41 }
  0x9c   : > { %1962 = vmatprep.subr.bf16.mxu0 %v3640_v42 }
  0x9e   : > { %988 = vmatmul.mubr.bf16.gmra.mrb[8].mxu0 %v3519_v44 }
  0x9f   : > { %997 = vmatprep.mubr.bf16.mxu0 %v3521_v45  ;;  %1963 = vmatpush1.bf16.msra.mxu0 %v3645_v46 }
  0xa0   : > { %1964 = vmatprep.subr.bf16.mxu0 %v3652_v47 }
  0xa3   : > { %1965 = vmatpush1.bf16.msra.mxu0 %v3657_v48 }
  0xa4   : > { %1966 = vmatprep.subr.bf16.mxu0 %v3664_v49 }
  0xa6   : > { %998 = vmatmul.mubr.bf16.gmra.mrb[12].mxu0 %v3529_v50 }
  0xa7   : > { %1007 = vmatprep.mubr.bf16.mxu0 %v3531_v52  ;;  %1967 = vmatpush1.bf16.msra.mxu0 %v3669_v53 }
  0xa8   : > { %1968 = vmatprep.subr.bf16.mxu0 %v3676_v56 }
  0xab   : > { %1969 = vmatpush1.bf16.msra.mxu0 %v3681_v57 }
  0xac   : > { %1970 = vmatprep.subr.bf16.mxu0 %v3688_v59 }
  0xae   : > { %1008 = vmatmul.mubr.bf16.gmra.mrb[16].mxu0 %v3539_v60 }
  0xaf   : > { %1017 = vmatprep.mubr.bf16.mxu0 %v3541_v61  ;;  %1971 = vmatpush1.bf16.msra.mxu0 %v3693_v62 }
  0xb0   : > { %1972 = vmatprep.subr.bf16.mxu0 %v3700_v63 }
  0xb3   : > { %1973 = vmatpush1.bf16.msra.mxu0 %v3705_v0 }
  0xb4   : > { %1974 = vmatprep.subr.bf16.mxu0 %v3712_v1 }
  0xb6   : > { %1018 = vmatmul.mubr.bf16.gmra.mrb[20].mxu0 %v3549_v3 }
  0xb7   : > { %1027 = vmatprep.mubr.bf16.mxu0 %v3551_v6  ;;  %1975 = vmatpush1.bf16.msra.mxu0 %v3717_v7 }
  0xb8   : > { %1976 = vmatprep.subr.bf16.mxu0 %v3724_v9 }
  0xbb   : > { %1977 = vmatpush1.bf16.msra.mxu0 %v3729_v10 }
  0xbc   : > { %1978 = vmatprep.subr.bf16.mxu0 %v3736_v11 }
  0xbe   : > { %1028 = vmatmul.mubr.bf16.gmra.mrb[24].mxu0 %v3559_v12 }
  0xbf   : > { %1037 = vmatprep.mubr.bf16.mxu0 %v3561_v13  ;;  %1979 = vmatpush1.bf16.msra.mxu0 %v3741_v14 }
  0xc0   : > { %1980 = vmatprep.subr.bf16.mxu0 %v3748_v16 }
  0xc3   : > { %1981 = vmatpush1.bf16.msra.mxu0 %v3753_v20 }
  0xc4   : > { %1982 = vmatprep.subr.bf16.mxu0 %v3760_v22 }
  0xc6   : > { %1038 = vmatmul.mubr.bf16.gmra.mrb[28].mxu0 %v3567_v18 }
  0xc7   : > { %1986 = vmatprep.mubr.bf16.mxu0 %v3485_v19  ;;  %v2971_v19 = vld [vmem:[%s4165_s3 + $0xf0] ss:$8 sps:$4 sm:$0xff]   ;;  %1983 = vmatpush1.bf16.msra.mxu0 %v3765_v23 }
  0xc8   : > { %1331 = vmatpush1.bf16.msra.mxu1 %v2971_v19  ;;  %v3777_v19 = vld [vmem:[%s4167_s5 + $0x1f0] ss:$8 sps:$4 sm:$0xff]   ;;  %1984 = vmatprep.subr.bf16.mxu0 %v3772_v25 }
  0xc9   : > { %1841 = vmatprep.subr.bf16.mxu1 %v2974_v26  ;;  %4196 = vst [vmem:[#allocation12_spill] sm:$0xff] %v3777_v19  ;;  %v492_v26 = vlaneseq }
  0xcb   : > { %1985 = vmatpush1.bf16.msra.mxu0 %v3777_v19  ;;  %v493_v18 = vshrl.u32 %v492_v26, 7 }
  0xcd   : > { %v3788_v13 = vsub.s32 0, %v493_v18  ;;  %v3793_v12 = vsub.s32 1, %v493_v18 }
  0xce   : > { %1987 = vmatmul.mubr.bf16.vlgmr.msra.gmra.mrb[32].mxu0 %v3499_v28  ;;  %v490_v28 = vld [vmem:[%s4164_s2] sm:$0x3] }
  0xcf   : > { %1996 = vmatprep.mubr.bf16.mxu0 %v3501_v29  ;;  %4197 = vst [vmem:[#allocation13_spill] sm:$0xff] %v3788_v13  ;;  %4198 = vst [vmem:[#allocation14_spill] sm:$0xff] %v3793_v12  ;;  %v3796_v29 = vrot.slane %v490_v28, %v3788_v13 }
  0xd6   : > { %1997 = vmatmul.mubr.bf16.gmra.mrb[36].mxu0 %v3509_v34  ;;  %v3799_v34 = vrot.slane %v490_v28, %v3793_v12 }
  0xd7   : > { %2006 = vmatprep.mubr.bf16.mxu0 %v3511_v36 }
  0xde   : > { %2007 = vmatmul.mubr.bf16.gmra.mrb[40].mxu0 %v3519_v44 }
  0xdf   : > { %2016 = vmatprep.mubr.bf16.mxu0 %v3521_v45 }
  0xe6   : > { %2017 = vmatmul.mubr.bf16.gmra.mrb[44].mxu0 %v3529_v50 }
 0x161   : > { %v969_v36 = vpop.f32.mrb[0].mxu0 }
 0x162   : > { %v2692_v44 = vadd.f32 %v969_v36, %v3796_v29  ;;  %v971_v45 = vpop.f32.mrb[1].mxu0  ;;  %v2972_v36 = vld [vmem:[%s4167_s5] ss:$8 sps:$4 sm:$0xff]  }
 0x163   : > { %v2693_v50 = vadd.f32 %v971_v45, %v3799_v34  ;;  %v973_v26 = vpop.f32.mrb[2].mxu0 }
 0x164   : > { %v2694_v6 = vadd.f32 %v973_v26, %v3796_v29  ;;  %v975_v3 = vpop.f32.mrb[3].mxu0  ;;  %v1048_v18 = vmax.f32 %v2692_v44, 0.0  ;;  %v2980_v26 = vld [vmem:[%s4167_s5 + $0x14] ss:$8 sps:$4 sm:$0xff]  }
 0x165   : > { %v2695_v61 = vadd.f32 %v975_v3, %v3799_v34  ;;  %v1049_v19 = vmax.f32 %v2693_v50, 0.0  ;;  %v2986_v50 = vld [vmem:[%s4167_s5 + $0x24] ss:$8 sps:$4 sm:$0xff]  }
 0x166   : > { %v1050_v60 = vmax.f32 %v2694_v6, 0.0 }
 0x167   : > { %v1051_v13 = vmax.f32 %v2695_v61, 0.0 }
 0x168   : > { %v1080_v25 = vpack.c.bf16 %v1050_v60, %v1048_v18 }
 0x169   : > { %v979_v52 = vpop.f32.mrb[4].mxu0  ;;  %v1081_v28 = vpack.c.bf16 %v1051_v13, %v1049_v19 }
 0x16a   : > { %v2696_v12 = vadd.f32 %v979_v52, %v3796_v29  ;;  %v981_v45 = vpop.f32.mrb[5].mxu0  ;;  %v2978_v52 = vld [vmem:[%s4167_s5 + $0x10] ss:$8 sps:$4 sm:$0xff]  }
 0x16b   : > { %v2697_v3 = vadd.f32 %v981_v45, %v3799_v34  ;;  %v983_v44 = vpop.f32.mrb[6].mxu0  ;;  %1332 = vmatprep.mubr.bf16.mxu1 %v1081_v28 }
 0x16c   : > { %v2698_v61 = vadd.f32 %v983_v44, %v3796_v29  ;;  %v985_v60 = vpop.f32.mrb[7].mxu0  ;;  %1333 = vmatmul.mubr.bf16.vlgmr.msra.gmra.mrb[0].mxu1 %v1080_v25  ;;  %v1052_v13 = vmax.f32 %v2696_v12, 0.0  ;;  %v2984_v25 = vld [vmem:[%s4167_s5 + $0x20] ss:$8 sps:$4 sm:$0xff]   ;;  %v2992_v12 = vld [vmem:[%s4167_s5 + $0x34] ss:$8 sps:$4 sm:$0xff]  }
 0x16d   : > { %v2699_v6 = vadd.f32 %v985_v60, %v3799_v34  ;;  %1842 = vmatpush1.bf16.msra.mxu1 %v2972_v36  ;;  %v1053_v18 = vmax.f32 %v2697_v3, 0.0 }
 0x16e   : > { %v1054_v19 = vmax.f32 %v2698_v61, 0.0  ;;  %1843 = vmatprep.subr.bf16.mxu1 %v2980_v26 }
 0x16f   : > { %v1055_v28 = vmax.f32 %v2699_v6, 0.0 }
 0x170   : > { %v1082_v45 = vpack.c.bf16 %v1054_v19, %v1052_v13 }
 0x171   : > { %v1083_v44 = vpack.c.bf16 %v1055_v28, %v1053_v18  ;;  %v989_v23 = vpop.f32.mrb[8].mxu0  ;;  %1844 = vmatpush1.bf16.msra.mxu1 %v2978_v52 }
 0x172   : > { %v2700_v36 = vadd.f32 %v989_v23, %v3796_v29  ;;  %v991_v60 = vpop.f32.mrb[9].mxu0  ;;  %1845 = vmatprep.subr.bf16.mxu1 %v2986_v50  ;;  %v2990_v23 = vld [vmem:[%s4167_s5 + $0x30] ss:$8 sps:$4 sm:$0xff]   ;;  %v2998_v50 = vld [vmem:[%s4167_s5 + $0x44] ss:$8 sps:$4 sm:$0xff]  }
 0x173   : > { %v2701_v26 = vadd.f32 %v991_v60, %v3799_v34  ;;  %v993_v3 = vpop.f32.mrb[10].mxu0  ;;  %1342 = vmatprep.mubr.bf16.mxu1 %v1083_v44 }
 0x174   : > { %v2702_v61 = vadd.f32 %v993_v3, %v3796_v29  ;;  %v995_v6 = vpop.f32.mrb[11].mxu0  ;;  %1343 = vmatmul.mubr.bf16.gmra.mrb[4].mxu1 %v1082_v45  ;;  %v1056_v13 = vmax.f32 %v2700_v36, 0.0  ;;  %v2996_v45 = vld [vmem:[%s4167_s5 + $0x40] ss:$8 sps:$4 sm:$0xff]   ;;  %v3004_v36 = vld [vmem:[%s4167_s5 + $0x54] ss:$8 sps:$4 sm:$0xff]  }
 0x175   : > { %v2703_v52 = vadd.f32 %v995_v6, %v3799_v34  ;;  %1846 = vmatpush1.bf16.msra.mxu1 %v2984_v25  ;;  %v1057_v18 = vmax.f32 %v2701_v26, 0.0 }
 0x176   : > { %v1058_v19 = vmax.f32 %v2702_v61, 0.0  ;;  %1847 = vmatprep.subr.bf16.mxu1 %v2992_v12 }
 0x177   : > { %v1059_v28 = vmax.f32 %v2703_v52, 0.0 }
 0x178   : > { %v1084_v44 = vpack.c.bf16 %v1058_v19, %v1056_v13  ;;  %v3002_v13 = vld [vmem:[%s4167_s5 + $0x50] ss:$8 sps:$4 sm:$0xff]  }
 0x179   : > { %v1085_v60 = vpack.c.bf16 %v1059_v28, %v1057_v18  ;;  %v999_v3 = vpop.f32.mrb[12].mxu0  ;;  %1848 = vmatpush1.bf16.msra.mxu1 %v2990_v23  ;;  %v3010_v18 = vld [vmem:[%s4167_s5 + $0x64] ss:$8 sps:$4 sm:$0xff]  }
 0x17a   : > { %v2704_v25 = vadd.f32 %v999_v3, %v3796_v29  ;;  %v1001_v6 = vpop.f32.mrb[13].mxu0  ;;  %1849 = vmatprep.subr.bf16.mxu1 %v2998_v50 }
 0x17b   : > { %v2705_v12 = vadd.f32 %v1001_v6, %v3799_v34  ;;  %v1003_v26 = vpop.f32.mrb[14].mxu0  ;;  %1352 = vmatprep.mubr.bf16.mxu1 %v1085_v60 }
 0x17c   : > { %v2706_v61 = vadd.f32 %v1003_v26, %v3796_v29  ;;  %v1005_v52 = vpop.f32.mrb[15].mxu0  ;;  %1353 = vmatmul.mubr.bf16.gmra.mrb[8].mxu1 %v1084_v44  ;;  %v1060_v19 = vmax.f32 %v2704_v25, 0.0  ;;  %v3008_v44 = vld [vmem:[%s4167_s5 + $0x60] ss:$8 sps:$4 sm:$0xff]   ;;  %v3016_v25 = vld [vmem:[%s4167_s5 + $0x74] ss:$8 sps:$4 sm:$0xff]  }
 0x17d   : > { %v2707_v23 = vadd.f32 %v1005_v52, %v3799_v34  ;;  %1850 = vmatpush1.bf16.msra.mxu1 %v2996_v45  ;;  %v1061_v28 = vmax.f32 %v2705_v12, 0.0 }
 0x17e   : > { %v1062_v50 = vmax.f32 %v2706_v61, 0.0  ;;  %1851 = vmatprep.subr.bf16.mxu1 %v3004_v36 }
 0x17f   : > { %v1063_v60 = vmax.f32 %v2707_v23, 0.0 }
 0x180   : > { %v1086_v3 = vpack.c.bf16 %v1062_v50, %v1060_v19  ;;  %v3014_v19 = vld [vmem:[%s4167_s5 + $0x70] ss:$8 sps:$4 sm:$0xff]  }
 0x181   : > { %v1087_v6 = vpack.c.bf16 %v1063_v60, %v1061_v28  ;;  %v1009_v26 = vpop.f32.mrb[16].mxu0  ;;  %1852 = vmatpush1.bf16.msra.mxu1 %v3002_v13  ;;  %v3022_v28 = vld [vmem:[%s4167_s5 + $0x84] ss:$8 sps:$4 sm:$0xff]  }
 0x182   : > { %v2708_v45 = vadd.f32 %v1009_v26, %v3796_v29  ;;  %v1011_v52 = vpop.f32.mrb[17].mxu0  ;;  %1853 = vmatprep.subr.bf16.mxu1 %v3010_v18 }
 0x183   : > { %v2709_v36 = vadd.f32 %v1011_v52, %v3799_v34  ;;  %v1013_v12 = vpop.f32.mrb[18].mxu0  ;;  %1362 = vmatprep.mubr.bf16.mxu1 %v1087_v6 }
 0x184   : > { %v2710_v61 = vadd.f32 %v1013_v12, %v3796_v29  ;;  %v1015_v23 = vpop.f32.mrb[19].mxu0  ;;  %1363 = vmatmul.mubr.bf16.gmra.mrb[12].mxu1 %v1086_v3  ;;  %v1064_v50 = vmax.f32 %v2708_v45, 0.0  ;;  %v3020_v3 = vld [vmem:[%s4167_s5 + $0x80] ss:$8 sps:$4 sm:$0xff]   ;;  %v3028_v45 = vld [vmem:[%s4167_s5 + $0x94] ss:$8 sps:$4 sm:$0xff]  }
 0x185   : > { %v2711_v13 = vadd.f32 %v1015_v23, %v3799_v34  ;;  %1854 = vmatpush1.bf16.msra.mxu1 %v3008_v44  ;;  %v1065_v60 = vmax.f32 %v2709_v36, 0.0 }
 0x186   : > { %v1066_v18 = vmax.f32 %v2710_v61, 0.0  ;;  %1855 = vmatprep.subr.bf16.mxu1 %v3016_v25 }
 0x187   : > { %v1067_v6 = vmax.f32 %v2711_v13, 0.0 }
 0x188   : > { %v1088_v26 = vpack.c.bf16 %v1066_v18, %v1064_v50  ;;  %v3026_v50 = vld [vmem:[%s4167_s5 + $0x90] ss:$8 sps:$4 sm:$0xff]  }
 0x189   : > { %v1089_v52 = vpack.c.bf16 %v1067_v6, %v1065_v60  ;;  %v1019_v12 = vpop.f32.mrb[20].mxu0  ;;  %1856 = vmatpush1.bf16.msra.mxu1 %v3014_v19  ;;  %v3034_v60 = vld [vmem:[%s4167_s5 + $0xa4] ss:$8 sps:$4 sm:$0xff]  }
 0x18a   : > { %v2712_v44 = vadd.f32 %v1019_v12, %v3796_v29  ;;  %v1021_v23 = vpop.f32.mrb[21].mxu0  ;;  %1857 = vmatprep.subr.bf16.mxu1 %v3022_v28 }
 0x18b   : > { %v2713_v25 = vadd.f32 %v1021_v23, %v3799_v34  ;;  %v1023_v36 = vpop.f32.mrb[22].mxu0  ;;  %1372 = vmatprep.mubr.bf16.mxu1 %v1089_v52 }
 0x18c   : > { %v2714_v61 = vadd.f32 %v1023_v36, %v3796_v29  ;;  %v1025_v13 = vpop.f32.mrb[23].mxu0  ;;  %1373 = vmatmul.mubr.bf16.gmra.mrb[16].mxu1 %v1088_v26  ;;  %v1068_v18 = vmax.f32 %v2712_v44, 0.0  ;;  %v3032_v26 = vld [vmem:[%s4167_s5 + $0xa0] ss:$8 sps:$4 sm:$0xff]   ;;  %v3040_v44 = vld [vmem:[%s4167_s5 + $0xb4] ss:$8 sps:$4 sm:$0xff]  }
 0x18d   : > { %v2715_v19 = vadd.f32 %v1025_v13, %v3799_v34  ;;  %1858 = vmatpush1.bf16.msra.mxu1 %v3020_v3  ;;  %v1069_v6 = vmax.f32 %v2713_v25, 0.0 }
 0x18e   : > { %v1070_v28 = vmax.f32 %v2714_v61, 0.0  ;;  %1859 = vmatprep.subr.bf16.mxu1 %v3028_v45 }
 0x18f   : > { %v1071_v52 = vmax.f32 %v2715_v19, 0.0 }
 0x190   : > { %v1090_v12 = vpack.c.bf16 %v1070_v28, %v1068_v18  ;;  %v3038_v18 = vld [vmem:[%s4167_s5 + $0xb0] ss:$8 sps:$4 sm:$0xff]  }
 0x191   : > { %v1091_v23 = vpack.c.bf16 %v1071_v52, %v1069_v6  ;;  %v1029_v36 = vpop.f32.mrb[24].mxu0  ;;  %1860 = vmatpush1.bf16.msra.mxu1 %v3026_v50  ;;  %v3046_v6 = vld [vmem:[%s4167_s5 + $0xc4] ss:$8 sps:$4 sm:$0xff]  }
 0x192   : > { %v2716_v3 = vadd.f32 %v1029_v36, %v3796_v29  ;;  %v1031_v13 = vpop.f32.mrb[25].mxu0  ;;  %1861 = vmatprep.subr.bf16.mxu1 %v3034_v60 }
 0x193   : > { %v2717_v45 = vadd.f32 %v1031_v13, %v3799_v34  ;;  %v1033_v25 = vpop.f32.mrb[26].mxu0  ;;  %1382 = vmatprep.mubr.bf16.mxu1 %v1091_v23 }
 0x194   : > { %v2718_v61 = vadd.f32 %v1033_v25, %v3796_v29  ;;  %v1035_v19 = vpop.f32.mrb[27].mxu0  ;;  %1383 = vmatmul.mubr.bf16.gmra.mrb[20].mxu1 %v1090_v12  ;;  %v1072_v28 = vmax.f32 %v2716_v3, 0.0  ;;  %v3044_v12 = vld [vmem:[%s4167_s5 + $0xc0] ss:$8 sps:$4 sm:$0xff]   ;;  %v3052_v3 = vld [vmem:[%s4167_s5 + $0xd4] ss:$8 sps:$4 sm:$0xff]  }
 0x195   : > { %v2719_v50 = vadd.f32 %v1035_v19, %v3799_v34  ;;  %1862 = vmatpush1.bf16.msra.mxu1 %v3032_v26  ;;  %v1073_v52 = vmax.f32 %v2717_v45, 0.0 }
 0x196   : > { %v1074_v60 = vmax.f32 %v2718_v61, 0.0  ;;  %1863 = vmatprep.subr.bf16.mxu1 %v3040_v44 }
 0x197   : > { %v1075_v23 = vmax.f32 %v2719_v50, 0.0 }
 0x198   : > { %v1092_v36 = vpack.c.bf16 %v1074_v60, %v1072_v28  ;;  %v3050_v28 = vld [vmem:[%s4167_s5 + $0xd0] ss:$8 sps:$4 sm:$0xff]  }
 0x199   : > { %v1093_v13 = vpack.c.bf16 %v1075_v23, %v1073_v52  ;;  %v1039_v25 = vpop.f32.mrb[28].mxu0  ;;  %1864 = vmatpush1.bf16.msra.mxu1 %v3038_v18  ;;  %v3058_v52 = vld [vmem:[%s4167_s5 + $0xe4] ss:$8 sps:$4 sm:$0xff]  }
 0x19a   : > { %v2720_v26 = vadd.f32 %v1039_v25, %v3796_v29  ;;  %v1041_v19 = vpop.f32.mrb[29].mxu0  ;;  %1865 = vmatprep.subr.bf16.mxu1 %v3046_v6 }
 0x19b   : > { %v2721_v44 = vadd.f32 %v1041_v19, %v3799_v34  ;;  %v1043_v45 = vpop.f32.mrb[30].mxu0  ;;  %1392 = vmatprep.mubr.bf16.mxu1 %v1093_v13 }
 0x19c   : > { %v2722_v61 = vadd.f32 %v1043_v45, %v3796_v29  ;;  %v1045_v50 = vpop.f32.mrb[31].mxu0  ;;  %1393 = vmatmul.mubr.bf16.gmra.mrb[24].mxu1 %v1092_v36  ;;  %v1076_v60 = vmax.f32 %v2720_v26, 0.0  ;;  %v3064_v36 = vld [vmem:[%s4167_s5 + $0xf4] ss:$8 sps:$4 sm:$0xff]  }
 0x19d   : > { %v2723_v18 = vadd.f32 %v1045_v50, %v3799_v34  ;;  %1866 = vmatpush1.bf16.msra.mxu1 %v3044_v12  ;;  %v1077_v23 = vmax.f32 %v2721_v44, 0.0  ;;  %v3056_v34 = vld [vmem:[%s4167_s5 + $0xe0] ss:$8 sps:$4 sm:$0xff]   ;;  %v3062_v12 = vld [vmem:[%s4167_s5 + $0xf0] ss:$8 sps:$4 sm:$0xff]  }
 0x19e   : > { %v1078_v6 = vmax.f32 %v2722_v61, 0.0  ;;  %1867 = vmatprep.subr.bf16.mxu1 %v3052_v3 }
 0x19f   : > { %v1079_v13 = vmax.f32 %v2723_v18, 0.0 }
 0x1a0   : > { %v1094_v25 = vpack.c.bf16 %v1078_v6, %v1076_v60 }
 0x1a1   : > { %v1095_v29 = vpack.c.bf16 %v1079_v13, %v1077_v23  ;;  %1868 = vmatpush1.bf16.msra.mxu1 %v3050_v28 }
 0x1a2   : > { %1869 = vmatprep.subr.bf16.mxu1 %v3058_v52 }
 0x1a3   : > { %1402 = vmatprep.mubr.bf16.mxu1 %v1095_v29 }
 0x1a4   : > { %1403 = vmatmul.mubr.bf16.gmra.mrb[28].mxu1 %v1094_v25 }
 0x1a5   : > { %1870 = vmatpush1.bf16.msra.mxu1 %v3056_v34  ;;  %1873 = vmatprep.mubr.bf16.mxu1 %v3178_v15  ;;  %v4199_v15 = vld [vmem:[#allocation10_spill] sm:$0xff] }
 0x1a6   : > { %1871 = vmatprep.subr.bf16.mxu1 %v3064_v36 }
 0x1a9   : > { %1872 = vmatpush1.bf16.msra.mxu1 %v3062_v12 }
 0x1aa   : > { %2660 = vmatprep.subr.bf16.mxu1 %v3592_v27 }
 0x1ac   : > { %1874 = vmatmul.mubr.bf16.vlgmr.msra.gmra.mrb[32].mxu1 %v3245_v40  ;;  %v4200_v40 = vld [vmem:[#allocation2_spill] sm:$0xff] }
 0x1ad   : > { %2676 = vmatpush1.bf16.msra.mxu1 %v3597_v30  ;;  %1883 = vmatprep.mubr.bf16.mxu1 %v3253_v43  ;;  %v4201_v43 = vld [vmem:[#allocation11_spill] sm:$0xff] }
 0x1ae   : > { %2661 = vmatprep.subr.bf16.mxu1 %v3604_v31 }
 0x1b1   : > { %2677 = vmatpush1.bf16.msra.mxu1 %v3609_v32 }
 0x1b2   : > { %2662 = vmatprep.subr.bf16.mxu1 %v3616_v33 }
 0x1b4   : > { %1884 = vmatmul.mubr.bf16.gmra.mrb[36].mxu1 %v3282_v55  ;;  %v4202_v55 = vld [vmem:[#allocation12_spill] sm:$0xff] }
 0x1b5   : > { %2678 = vmatpush1.bf16.msra.mxu1 %v3621_v37  ;;  %1893 = vmatprep.mubr.bf16.mxu1 %v3290_v58  ;;  %v4203_v58 = vld [vmem:[#allocation3_spill] sm:$0xff] }
 0x1b6   : > { %2663 = vmatprep.subr.bf16.mxu1 %v3628_v39 }
 0x1b9   : > { %2679 = vmatpush1.bf16.msra.mxu1 %v3633_v41 }
 0x1ba   : > { %2664 = vmatprep.subr.bf16.mxu1 %v3640_v42 }
 0x1bc   : > { %1894 = vmatmul.mubr.bf16.gmra.mrb[40].mxu1 %v3316_v5  ;;  %v4204_v5 = vld [vmem:[#allocation4_spill] sm:$0xff] }
 0x1bd   : > { %2680 = vmatpush1.bf16.msra.mxu1 %v3645_v46  ;;  %1903 = vmatprep.mubr.bf16.mxu1 %v3324_v8  ;;  %v4205_v8 = vld [vmem:[#allocation5_spill] sm:$0xff] }
 0x1be   : > { %2665 = vmatprep.subr.bf16.mxu1 %v3652_v47 }
 0x1c1   : > { %2681 = vmatpush1.bf16.msra.mxu1 %v3657_v48  ;;  %v1128_v48 = vld [vmem:[%s4166_s4] sm:$0x3] }
 0x1c2   : > { %2666 = vmatprep.subr.bf16.mxu1 %v3664_v49  ;;  %v4210_v49 = vld [vmem:[#allocation13_spill] sm:$0xff] }
 0x1c4   : > { %1904 = vmatmul.mubr.bf16.gmra.mrb[44].mxu1 %v3353_v21  ;;  %v4206_v21 = vld [vmem:[#allocation6_spill] sm:$0xff] }
 0x1c5   : > { %2682 = vmatpush1.bf16.msra.mxu1 %v3669_v53  ;;  %1913 = vmatprep.mubr.bf16.mxu1 %v3361_v24  ;;  %v4207_v24 = vld [vmem:[#allocation7_spill] sm:$0xff]  ;;  %v4018_v53 = vrot.slane %v1128_v48, %v4210_v49 }
 0x1c6   : > { %2667 = vmatprep.subr.bf16.mxu1 %v3676_v56  ;;  %v4211_v56 = vld [vmem:[#allocation14_spill] sm:$0xff] }
 0x1c9   : > { %2683 = vmatpush1.bf16.msra.mxu1 %v3681_v57  ;;  %v4021_v57 = vrot.slane %v1128_v48, %v4211_v56 }
 0x1ca   : > { %2668 = vmatprep.subr.bf16.mxu1 %v3688_v59 }
 0x1cc   : > { %1914 = vmatmul.mubr.bf16.gmra.mrb[48].mxu1 %v3387_v35  ;;  %v4208_v35 = vld [vmem:[#allocation8_spill] sm:$0xff] }
 0x1cd   : > { %2684 = vmatpush1.bf16.msra.mxu1 %v3693_v62  ;;  %1923 = vmatprep.mubr.bf16.mxu1 %v3395_v38  ;;  %v3981_v38 = vpop.f32.mrb[32].mxu0 }
 0x1ce   : > { %2669 = vmatprep.subr.bf16.mxu1 %v3700_v63 }
 0x1d1   : > { %2685 = vmatpush1.bf16.msra.mxu1 %v3705_v0 }
 0x1d2   : > { %2670 = vmatprep.subr.bf16.mxu1 %v3712_v1 }
 0x1d4   : > { %1924 = vmatmul.mubr.bf16.gmra.mrb[52].mxu1 %v3421_v51  ;;  %v3983_v51 = vpop.f32.mrb[33].mxu0 }
 0x1d5   : > { %2686 = vmatpush1.bf16.msra.mxu1 %v3717_v7  ;;  %1933 = vmatprep.mubr.bf16.mxu1 %v3429_v54  ;;  %v3985_v54 = vpop.f32.mrb[34].mxu0 }
 0x1d6   : > { %2671 = vmatprep.subr.bf16.mxu1 %v3724_v9 }
 0x1d9   : > { %2687 = vmatpush1.bf16.msra.mxu1 %v3729_v10 }
 0x1da   : > { %2672 = vmatprep.subr.bf16.mxu1 %v3736_v11 }
 0x1dc   : > { %1934 = vmatmul.mubr.bf16.gmra.mrb[56].mxu1 %v3452_v2  ;;  %v4209_v2 = vld [vmem:[#allocation9_spill] sm:$0xff] }
 0x1dd   : > { %2688 = vmatpush1.bf16.msra.mxu1 %v3741_v14  ;;  %1943 = vmatprep.mubr.bf16.mxu1 %v3457_v4  ;;  %v3988_v4 = vpop.f32.mrb[35].mxu0 }
 0x1de   : > { %2673 = vmatprep.subr.bf16.mxu1 %v3748_v16 }
 0x1e1   : > { %2689 = vmatpush1.bf16.msra.mxu1 %v3753_v20 }
 0x1e2   : > { %2674 = vmatprep.subr.bf16.mxu1 %v3760_v22 }
 0x1e4   : > { %1944 = vmatmul.mubr.bf16.gmra.mrb[60].mxu1 %v3480_v17  ;;  %v3990_v17 = vpop.f32.mrb[36].mxu0 }
 0x1e5   : > { %2690 = vmatpush1.bf16.msra.mxu1 %v4199_v15  ;;  %2026 = vmatprep.mubr.bf16.mxu1 %v4200_v40  ;;  %v3992_v27 = vpop.f32.mrb[37].mxu0 }
 0x1e6   : > { %2675 = vmatprep.subr.bf16.mxu1 %v4201_v43  ;;  %v3994_v30 = vpop.f32.mrb[38].mxu0 }
 0x1e7   : > { %v3996_v31 = vpop.f32.mrb[39].mxu0 }
 0x1e8   : > { %v3998_v32 = vpop.f32.mrb[40].mxu0 }
 0x1e9   : > { %2691 = vmatpush1.bf16.msra.mxu1 %v4202_v55  ;;  %v4000_v33 = vpop.f32.mrb[41].mxu0 }
 0x1ea   : > { %v4002_v37 = vpop.f32.mrb[42].mxu0 }
 0x1eb   : > { %v4004_v39 = vpop.f32.mrb[43].mxu0 }
 0x1ec   : > { %2027 = vmatmul.mubr.bf16.vlgmr.msra.gmra.mrb[48].mxu1 %v4203_v58  ;;  %v4006_v41 = vpop.f32.mrb[44].mxu0 }
 0x1ed   : > { %2036 = vmatprep.mubr.bf16.mxu1 %v4204_v5  ;;  %v4008_v42 = vpop.f32.mrb[45].mxu0 }
 0x1ee   : > { %v4010_v46 = vpop.f32.mrb[46].mxu0 }
 0x1ef   : > { %v4012_v47 = vpop.f32.mrb[47].mxu0 }
 0x1f4   : > { %2037 = vmatmul.mubr.bf16.gmra.mrb[52].mxu1 %v4205_v8 }
 0x1f5   : > { %2046 = vmatprep.mubr.bf16.mxu1 %v4206_v21 }
 0x1fc   : > { %2047 = vmatmul.mubr.bf16.gmra.mrb[56].mxu1 %v4207_v24 }
 0x1fd   : > { %2056 = vmatprep.mubr.bf16.mxu1 %v4208_v35 }
 0x204   : > { %2057 = vmatmul.mubr.bf16.gmra.mrb[60].mxu1 %v4209_v2 }
 0x23f   : > { %v1334_v59 = vpop.f32.mrb[0].mxu1 }
 0x240   : > { %v1335_v62 = vadd.f32 %v1334_v59, %v4018_v53  ;;  %v1336_v63 = vpop.f32.mrb[1].mxu1 }
 0x241   : > { %v1337_v0 = vadd.f32 %v1336_v63, %v4021_v57  ;;  %v1338_v1 = vpop.f32.mrb[2].mxu1 }
 0x242   : > { %v1413_v7 = vmax.f32 %v1335_v62, 0.0  ;;  %v1339_v9 = vadd.f32 %v1338_v1, %v4018_v53  ;;  %v1340_v10 = vpop.f32.mrb[3].mxu1 }
 0x243   : > { %v1414_v11 = vmax.f32 %v1337_v0, 0.0  ;;  %v1341_v14 = vadd.f32 %v1340_v10, %v4021_v57 }
 0x244   : > { %v1415_v16 = vmax.f32 %v1339_v9, 0.0 }
 0x245   : > { %v2628_v20 = vpack.c.bf16 %v1414_v11, %v1413_v7  ;;  %v1416_v22 = vmax.f32 %v1341_v14, 0.0 }
 0x247   : > { %2195 = vst [vmem:[%s4033_s28] sm:$0xff] %v2628_v20  ;;  %v2629_v26 = vpack.c.bf16 %v1416_v22, %v1415_v16  ;;  %v1344_v19 = vpop.f32.mrb[4].mxu1 }
 0x248   : > { %v1345_v3 = vadd.f32 %v1344_v19, %v4018_v53  ;;  %v1346_v44 = vpop.f32.mrb[5].mxu1 }
 0x249   : > { %2196 = vst [vmem:[%s4033_s28 + $0x8] sm:$0xff] %v2629_v26  ;;  %v1347_v45 = vadd.f32 %v1346_v44, %v4021_v57  ;;  %v1348_v61 = vpop.f32.mrb[6].mxu1 }
 0x24a   : > { %v1417_v50 = vmax.f32 %v1345_v3, 0.0  ;;  %v1349_v18 = vadd.f32 %v1348_v61, %v4018_v53  ;;  %v1350_v28 = vpop.f32.mrb[7].mxu1 }
 0x24b   : > { %v1418_v60 = vmax.f32 %v1347_v45, 0.0  ;;  %v1351_v6 = vadd.f32 %v1350_v28, %v4021_v57 }
 0x24c   : > { %v1419_v52 = vmax.f32 %v1349_v18, 0.0 }
 0x24d   : > { %v2630_v23 = vpack.c.bf16 %v1418_v60, %v1417_v50  ;;  %v1420_v13 = vmax.f32 %v1351_v6, 0.0 }
 0x24f   : > { %2197 = vst [vmem:[%s4033_s28 + $0x10] sm:$0xff] %v2630_v23  ;;  %v2631_v25 = vpack.c.bf16 %v1420_v13, %v1419_v52  ;;  %v1354_v29 = vpop.f32.mrb[8].mxu1 }
 0x250   : > { %v1355_v34 = vadd.f32 %v1354_v29, %v4018_v53  ;;  %v1356_v36 = vpop.f32.mrb[9].mxu1 }
 0x251   : > { %2198 = vst [vmem:[%s4033_s28 + $0x18] sm:$0xff] %v2631_v25  ;;  %v1357_v12 = vadd.f32 %v1356_v36, %v4021_v57  ;;  %v1358_v15 = vpop.f32.mrb[10].mxu1 }
 0x252   : > { %v1421_v40 = vmax.f32 %v1355_v34, 0.0  ;;  %v1359_v43 = vadd.f32 %v1358_v15, %v4018_v53  ;;  %v1360_v55 = vpop.f32.mrb[11].mxu1 }
 0x253   : > { %v1422_v58 = vmax.f32 %v1357_v12, 0.0  ;;  %v1361_v5 = vadd.f32 %v1360_v55, %v4021_v57 }
 0x254   : > { %v1423_v8 = vmax.f32 %v1359_v43, 0.0 }
 0x255   : > { %v2632_v21 = vpack.c.bf16 %v1422_v58, %v1421_v40  ;;  %v1424_v24 = vmax.f32 %v1361_v5, 0.0 }
 0x257   : > { %2199 = vst [vmem:[%s4033_s28 + $0x20] sm:$0xff] %v2632_v21  ;;  %v2633_v35 = vpack.c.bf16 %v1424_v24, %v1423_v8  ;;  %v1364_v2 = vpop.f32.mrb[12].mxu1 }
 0x258   : > { %v1365_v48 = vadd.f32 %v1364_v2, %v4018_v53  ;;  %v1366_v59 = vpop.f32.mrb[13].mxu1 }
 0x259   : > { %2200 = vst [vmem:[%s4033_s28 + $0x28] sm:$0xff] %v2633_v35  ;;  %v1367_v62 = vadd.f32 %v1366_v59, %v4021_v57  ;;  %v1368_v63 = vpop.f32.mrb[14].mxu1 }
 0x25a   : > { %v1425_v0 = vmax.f32 %v1365_v48, 0.0  ;;  %v1369_v1 = vadd.f32 %v1368_v63, %v4018_v53  ;;  %v1370_v7 = vpop.f32.mrb[15].mxu1 }
 0x25b   : > { %v1426_v9 = vmax.f32 %v1367_v62, 0.0  ;;  %v1371_v10 = vadd.f32 %v1370_v7, %v4021_v57 }
 0x25c   : > { %v1427_v11 = vmax.f32 %v1369_v1, 0.0 }
 0x25d   : > { %v2634_v14 = vpack.c.bf16 %v1426_v9, %v1425_v0  ;;  %v1428_v16 = vmax.f32 %v1371_v10, 0.0 }
 0x25f   : > { %2201 = vst [vmem:[%s4033_s28 + $0x30] sm:$0xff] %v2634_v14  ;;  %v2635_v20 = vpack.c.bf16 %v1428_v16, %v1427_v11  ;;  %v1374_v22 = vpop.f32.mrb[16].mxu1 }
 0x260   : > { %v1375_v26 = vadd.f32 %v1374_v22, %v4018_v53  ;;  %v1376_v19 = vpop.f32.mrb[17].mxu1 }
 0x261   : > { %2202 = vst [vmem:[%s4033_s28 + $0x38] sm:$0xff] %v2635_v20  ;;  %v1377_v3 = vadd.f32 %v1376_v19, %v4021_v57  ;;  %v1378_v44 = vpop.f32.mrb[18].mxu1 }
 0x262   : > { %v1429_v45 = vmax.f32 %v1375_v26, 0.0  ;;  %v1379_v61 = vadd.f32 %v1378_v44, %v4018_v53  ;;  %v1380_v50 = vpop.f32.mrb[19].mxu1 }
 0x263   : > { %v1430_v18 = vmax.f32 %v1377_v3, 0.0  ;;  %v1381_v28 = vadd.f32 %v1380_v50, %v4021_v57  ;;  %v1509_v3 = vld [vmem:[%s4168_s6] sm:$0x3] }
 0x264   : > { %v1431_v60 = vmax.f32 %v1379_v61, 0.0 }
 0x265   : > { %v2636_v6 = vpack.c.bf16 %v1430_v18, %v1429_v45  ;;  %v1432_v52 = vmax.f32 %v1381_v28, 0.0 }
 0x267   : > { %2203 = vst [vmem:[%s4033_s28 + $0x40] sm:$0xff] %v2636_v6  ;;  %v2637_v23 = vpack.c.bf16 %v1432_v52, %v1431_v60  ;;  %v1384_v13 = vpop.f32.mrb[20].mxu1  ;;  %v4081_v60 = vrot.slane %v1509_v3, %v4210_v49 }
 0x268   : > { %v1385_v25 = vadd.f32 %v1384_v13, %v4018_v53  ;;  %v1386_v29 = vpop.f32.mrb[21].mxu1 }
 0x269   : > { %2204 = vst [vmem:[%s4033_s28 + $0x48] sm:$0xff] %v2637_v23  ;;  %v1387_v34 = vadd.f32 %v1386_v29, %v4021_v57  ;;  %v1388_v36 = vpop.f32.mrb[22].mxu1  ;;  %v4084_v23 = vrot.slane %v1509_v3, %v4211_v56 }
 0x26a   : > { %v1433_v12 = vmax.f32 %v1385_v25, 0.0  ;;  %v1389_v15 = vadd.f32 %v1388_v36, %v4018_v53  ;;  %v1390_v40 = vpop.f32.mrb[23].mxu1 }
 0x26b   : > { %v1434_v43 = vmax.f32 %v1387_v34, 0.0  ;;  %v1391_v55 = vadd.f32 %v1390_v40, %v4021_v57 }
 0x26c   : > { %v1435_v58 = vmax.f32 %v1389_v15, 0.0 }
 0x26d   : > { %v2638_v5 = vpack.c.bf16 %v1434_v43, %v1433_v12  ;;  %v1436_v8 = vmax.f32 %v1391_v55, 0.0 }
 0x26f   : > { %2205 = vst [vmem:[%s4033_s28 + $0x50] sm:$0xff] %v2638_v5  ;;  %v2639_v21 = vpack.c.bf16 %v1436_v8, %v1435_v58  ;;  %v1394_v24 = vpop.f32.mrb[24].mxu1 }
 0x270   : > { %v1395_v35 = vadd.f32 %v1394_v24, %v4018_v53  ;;  %v1396_v2 = vpop.f32.mrb[25].mxu1 }
 0x271   : > { %2206 = vst [vmem:[%s4033_s28 + $0x58] sm:$0xff] %v2639_v21  ;;  %v1397_v48 = vadd.f32 %v1396_v2, %v4021_v57  ;;  %v1398_v59 = vpop.f32.mrb[26].mxu1 }
 0x272   : > { %v1437_v62 = vmax.f32 %v1395_v35, 0.0  ;;  %v1399_v63 = vadd.f32 %v1398_v59, %v4018_v53  ;;  %v1400_v0 = vpop.f32.mrb[27].mxu1 }
 0x273   : > { %v1438_v1 = vmax.f32 %v1397_v48, 0.0  ;;  %v1401_v7 = vadd.f32 %v1400_v0, %v4021_v57 }
 0x274   : > { %v1439_v9 = vmax.f32 %v1399_v63, 0.0 }
 0x275   : > { %v2640_v10 = vpack.c.bf16 %v1438_v1, %v1437_v62  ;;  %v1440_v11 = vmax.f32 %v1401_v7, 0.0 }
 0x277   : > { %2207 = vst [vmem:[%s4033_s28 + $0x60] sm:$0xff] %v2640_v10  ;;  %v2641_v14 = vpack.c.bf16 %v1440_v11, %v1439_v9  ;;  %v1404_v16 = vpop.f32.mrb[28].mxu1 }
 0x278   : > { %v1405_v20 = vadd.f32 %v1404_v16, %v4018_v53  ;;  %v1406_v22 = vpop.f32.mrb[29].mxu1 }
 0x279   : > { %2208 = vst [vmem:[%s4033_s28 + $0x68] sm:$0xff] %v2641_v14  ;;  %v1407_v26 = vadd.f32 %v1406_v22, %v4021_v57  ;;  %v1408_v19 = vpop.f32.mrb[30].mxu1 }
 0x27a   : > { %v1441_v44 = vmax.f32 %v1405_v20, 0.0  ;;  %v1409_v45 = vadd.f32 %v1408_v19, %v4018_v53  ;;  %v1410_v61 = vpop.f32.mrb[31].mxu1 }
 0x27b   : > { %v1442_v50 = vmax.f32 %v1407_v26, 0.0  ;;  %v1411_v18 = vadd.f32 %v1410_v61, %v4021_v57 }
 0x27c   : > { %v1443_v28 = vmax.f32 %v1409_v45, 0.0 }
 0x27d   : > { %v2642_v6 = vpack.c.bf16 %v1442_v50, %v1441_v44  ;;  %v1444_v52 = vmax.f32 %v1411_v18, 0.0 }
 0x27f   : > { %2209 = vst [vmem:[%s4033_s28 + $0x70] sm:$0xff] %v2642_v6  ;;  %v2643_v13 = vpack.c.bf16 %v1444_v52, %v1443_v28  ;;  %v1875_v25 = vpop.f32.mrb[32].mxu1 }
 0x280   : > { %v1876_v29 = vadd.f32 %v1875_v25, %v4081_v60  ;;  %v1877_v53 = vpop.f32.mrb[33].mxu1 }
 0x281   : > { %2210 = vst [vmem:[%s4033_s28 + $0x78] sm:$0xff] %v2643_v13  ;;  %v1878_v34 = vadd.f32 %v1877_v53, %v4084_v23  ;;  %v1879_v57 = vpop.f32.mrb[34].mxu1 }
 0x282   : > { %v1880_v36 = vadd.f32 %v1879_v57, %v4081_v60  ;;  %v1989_v49 = vadd.f32 %v3981_v38, %v1876_v29  ;;  %v1881_v12 = vpop.f32.mrb[35].mxu1 }
 0x283   : > { %v1882_v15 = vadd.f32 %v1881_v12, %v4084_v23  ;;  %v1991_v56 = vadd.f32 %v3983_v51, %v1878_v34 }
 0x284   : > { %v2067_v40 = vmax.f32 %v1989_v49, 0.0  ;;  %v1993_v43 = vadd.f32 %v3985_v54, %v1880_v36 }
 0x285   : > { %v2068_v55 = vmax.f32 %v1991_v56, 0.0  ;;  %v1995_v58 = vadd.f32 %v3988_v4, %v1882_v15 }
 0x286   : > { %v2069_v38 = vmax.f32 %v1993_v43, 0.0 }
 0x287   : > { %v2644_v5 = vpack.c.bf16 %v2068_v55, %v2067_v40  ;;  %v2070_v8 = vmax.f32 %v1995_v58, 0.0  ;;  %v1885_v21 = vpop.f32.mrb[36].mxu1 }
 0x288   : > { %v1886_v51 = vadd.f32 %v1885_v21, %v4081_v60  ;;  %v1887_v24 = vpop.f32.mrb[37].mxu1 }
 0x289   : > { %2307 = vst [vmem:[%s4101_s10] sm:$0xff] %v2644_v5  ;;  %v2645_v54 = vpack.c.bf16 %v2070_v8, %v2069_v38  ;;  %v1888_v35 = vadd.f32 %v1887_v24, %v4084_v23  ;;  %v1889_v4 = vpop.f32.mrb[38].mxu1 }
 0x28a   : > { %v1890_v2 = vadd.f32 %v1889_v4, %v4081_v60  ;;  %v1999_v48 = vadd.f32 %v3990_v17, %v1886_v51  ;;  %v1891_v59 = vpop.f32.mrb[39].mxu1 }
 0x28b   : > { %2308 = vst [vmem:[%s4101_s10 + $0x8] sm:$0xff] %v2645_v54  ;;  %v1892_v62 = vadd.f32 %v1891_v59, %v4084_v23  ;;  %v2001_v63 = vadd.f32 %v3992_v27, %v1888_v35 }
 0x28c   : > { %v2071_v0 = vmax.f32 %v1999_v48, 0.0  ;;  %v2003_v1 = vadd.f32 %v3994_v30, %v1890_v2 }
 0x28d   : > { %v2072_v7 = vmax.f32 %v2001_v63, 0.0  ;;  %v2005_v9 = vadd.f32 %v3996_v31, %v1892_v62 }
 0x28e   : > { %v2073_v10 = vmax.f32 %v2003_v1, 0.0 }
 0x28f   : > { %v2646_v11 = vpack.c.bf16 %v2072_v7, %v2071_v0  ;;  %v2074_v14 = vmax.f32 %v2005_v9, 0.0  ;;  %v1895_v16 = vpop.f32.mrb[40].mxu1 }
 0x290   : > { %v1896_v20 = vadd.f32 %v1895_v16, %v4081_v60  ;;  %v1897_v17 = vpop.f32.mrb[41].mxu1 }
 0x291   : > { %2309 = vst [vmem:[%s4101_s10 + $0x10] sm:$0xff] %v2646_v11  ;;  %v2647_v22 = vpack.c.bf16 %v2074_v14, %v2073_v10  ;;  %v1898_v26 = vadd.f32 %v1897_v17, %v4084_v23  ;;  %v1899_v19 = vpop.f32.mrb[42].mxu1 }
 0x292   : > { %v1900_v27 = vadd.f32 %v1899_v19, %v4081_v60  ;;  %v2009_v30 = vadd.f32 %v3998_v32, %v1896_v20  ;;  %v1901_v3 = vpop.f32.mrb[43].mxu1 }
 0x293   : > { %2310 = vst [vmem:[%s4101_s10 + $0x18] sm:$0xff] %v2647_v22  ;;  %v1902_v31 = vadd.f32 %v1901_v3, %v4084_v23  ;;  %v2011_v44 = vadd.f32 %v4000_v33, %v1898_v26 }
 0x294   : > { %v2075_v45 = vmax.f32 %v2009_v30, 0.0  ;;  %v2013_v61 = vadd.f32 %v4002_v37, %v1900_v27 }
 0x295   : > { %v2076_v50 = vmax.f32 %v2011_v44, 0.0  ;;  %v2015_v18 = vadd.f32 %v4004_v39, %v1902_v31 }
 0x296   : > { %v2077_v28 = vmax.f32 %v2013_v61, 0.0 }
 0x297   : > { %v2648_v6 = vpack.c.bf16 %v2076_v50, %v2075_v45  ;;  %v2078_v52 = vmax.f32 %v2015_v18, 0.0  ;;  %v1905_v13 = vpop.f32.mrb[44].mxu1 }
 0x298   : > { %v1906_v25 = vadd.f32 %v1905_v13, %v4081_v60  ;;  %v1907_v32 = vpop.f32.mrb[45].mxu1 }
 0x299   : > { %2311 = vst [vmem:[%s4101_s10 + $0x20] sm:$0xff] %v2648_v6  ;;  %v2649_v29 = vpack.c.bf16 %v2078_v52, %v2077_v28  ;;  %v1908_v53 = vadd.f32 %v1907_v32, %v4084_v23  ;;  %v1909_v33 = vpop.f32.mrb[46].mxu1 }
 0x29a   : > { %v1910_v37 = vadd.f32 %v1909_v33, %v4081_v60  ;;  %v2019_v34 = vadd.f32 %v4006_v41, %v1906_v25  ;;  %v1911_v57 = vpop.f32.mrb[47].mxu1 }
 0x29b   : > { %2312 = vst [vmem:[%s4101_s10 + $0x28] sm:$0xff] %v2649_v29  ;;  %v1912_v39 = vadd.f32 %v1911_v57, %v4084_v23  ;;  %v2021_v36 = vadd.f32 %v4008_v42, %v1908_v53 }
 0x29c   : > { %v2079_v49 = vmax.f32 %v2019_v34, 0.0  ;;  %v2023_v12 = vadd.f32 %v4010_v46, %v1910_v37 }
 0x29d   : > { %v2080_v15 = vmax.f32 %v2021_v36, 0.0  ;;  %v2025_v56 = vadd.f32 %v4012_v47, %v1912_v39 }
 0x29e   : > { %v2081_v40 = vmax.f32 %v2023_v12, 0.0 }
 0x29f   : > { %v2650_v43 = vpack.c.bf16 %v2080_v15, %v2079_v49  ;;  %v2082_v55 = vmax.f32 %v2025_v56, 0.0 }
 0x2a1   : > { %2313 = vst [vmem:[%s4101_s10 + $0x30] sm:$0xff] %v2650_v43  ;;  %v2651_v58 = vpack.c.bf16 %v2082_v55, %v2081_v40 }
 0x2a3   : > { %2314 = vst [vmem:[%s4101_s10 + $0x38] sm:$0xff] %v2651_v58 }
 0x2bf   : > { %v2028_v41 = vpop.f32.mrb[48].mxu1 }
 0x2c0   : > { %v2756_v38 = vadd.f32 %v2028_v41, %v4081_v60  ;;  %v2030_v5 = vpop.f32.mrb[49].mxu1 }
 0x2c1   : > { %v2757_v42 = vadd.f32 %v2030_v5, %v4084_v23  ;;  %v2032_v8 = vpop.f32.mrb[50].mxu1 }
 0x2c2   : > { %v2083_v21 = vmax.f32 %v2756_v38, 0.0  ;;  %v2758_v46 = vadd.f32 %v2032_v8, %v4081_v60  ;;  %v2034_v51 = vpop.f32.mrb[51].mxu1 }
 0x2c3   : > { %v2084_v47 = vmax.f32 %v2757_v42, 0.0  ;;  %v2759_v24 = vadd.f32 %v2034_v51, %v4084_v23 }
 0x2c4   : > { %v2085_v54 = vmax.f32 %v2758_v46, 0.0 }
 0x2c5   : > { %v2652_v35 = vpack.c.bf16 %v2084_v47, %v2083_v21  ;;  %v2086_v4 = vmax.f32 %v2759_v24, 0.0 }
 0x2c7   : > { %2315 = vst [vmem:[%s4101_s10 + $0x40] sm:$0xff] %v2652_v35  ;;  %v2653_v2 = vpack.c.bf16 %v2086_v4, %v2085_v54  ;;  %v2038_v48 = vpop.f32.mrb[52].mxu1 }
 0x2c8   : > { %v2760_v59 = vadd.f32 %v2038_v48, %v4081_v60  ;;  %v2040_v62 = vpop.f32.mrb[53].mxu1 }
 0x2c9   : > { %2316 = vst [vmem:[%s4101_s10 + $0x48] sm:$0xff] %v2653_v2  ;;  %v2761_v63 = vadd.f32 %v2040_v62, %v4084_v23  ;;  %v2042_v0 = vpop.f32.mrb[54].mxu1 }
 0x2ca   : > { %v2087_v1 = vmax.f32 %v2760_v59, 0.0  ;;  %v2762_v7 = vadd.f32 %v2042_v0, %v4081_v60  ;;  %v2044_v9 = vpop.f32.mrb[55].mxu1 }
 0x2cb   : > { %v2088_v10 = vmax.f32 %v2761_v63, 0.0  ;;  %v2763_v11 = vadd.f32 %v2044_v9, %v4084_v23 }
 0x2cc   : > { %v2089_v14 = vmax.f32 %v2762_v7, 0.0 }
 0x2cd   : > { %v2654_v16 = vpack.c.bf16 %v2088_v10, %v2087_v1  ;;  %v2090_v20 = vmax.f32 %v2763_v11, 0.0 }
 0x2cf   : > { %2317 = vst [vmem:[%s4101_s10 + $0x50] sm:$0xff] %v2654_v16  ;;  %v2655_v17 = vpack.c.bf16 %v2090_v20, %v2089_v14  ;;  %v2048_v22 = vpop.f32.mrb[56].mxu1 }
 0x2d0   : > { %v2764_v26 = vadd.f32 %v2048_v22, %v4081_v60  ;;  %v2050_v19 = vpop.f32.mrb[57].mxu1 }
 0x2d1   : > { %2318 = vst [vmem:[%s4101_s10 + $0x58] sm:$0xff] %v2655_v17  ;;  %v2765_v27 = vadd.f32 %v2050_v19, %v4084_v23  ;;  %v2052_v30 = vpop.f32.mrb[58].mxu1 }
 0x2d2   : > { %v2091_v3 = vmax.f32 %v2764_v26, 0.0  ;;  %v2766_v31 = vadd.f32 %v2052_v30, %v4081_v60  ;;  %v2054_v44 = vpop.f32.mrb[59].mxu1 }
 0x2d3   : > { %v2092_v45 = vmax.f32 %v2765_v27, 0.0  ;;  %v2767_v61 = vadd.f32 %v2054_v44, %v4084_v23 }
 0x2d4   : > { %v2093_v50 = vmax.f32 %v2766_v31, 0.0 }
 0x2d5   : > { %v2656_v18 = vpack.c.bf16 %v2092_v45, %v2091_v3  ;;  %v2094_v28 = vmax.f32 %v2767_v61, 0.0 }
 0x2d7   : > { %2319 = vst [vmem:[%s4101_s10 + $0x60] sm:$0xff] %v2656_v18  ;;  %v2657_v6 = vpack.c.bf16 %v2094_v28, %v2093_v50  ;;  %v2058_v52 = vpop.f32.mrb[60].mxu1 }
 0x2d8   : > { %v2768_v13 = vadd.f32 %v2058_v52, %v4081_v60  ;;  %v2060_v25 = vpop.f32.mrb[61].mxu1 }
 0x2d9   : > { %2320 = vst [vmem:[%s4101_s10 + $0x68] sm:$0xff] %v2657_v6  ;;  %v2769_v32 = vadd.f32 %v2060_v25, %v4084_v23  ;;  %v2062_v29 = vpop.f32.mrb[62].mxu1 }
 0x2da   : > { %v2095_v53 = vmax.f32 %v2768_v13, 0.0  ;;  %v2770_v33 = vadd.f32 %v2062_v29, %v4081_v60  ;;  %v2064_v37 = vpop.f32.mrb[63].mxu1 }
 0x2db   : > { %v2096_v34 = vmax.f32 %v2769_v32, 0.0  ;;  %v2771_v57 = vadd.f32 %v2064_v37, %v4084_v23 }
 0x2dc   : > { %v2097_v39 = vmax.f32 %v2770_v33, 0.0 }
 0x2dd   : > { %v2658_v36 = vpack.c.bf16 %v2096_v34, %v2095_v53  ;;  %v2098_v49 = vmax.f32 %v2771_v57, 0.0 }
 0x2df   : > { %2321 = vst [vmem:[%s4101_s10 + $0x70] sm:$0xff] %v2658_v36  ;;  %v2659_v12 = vpack.c.bf16 %v2098_v49, %v2097_v39 }
 0x2e1   : > { %2322 = vst [vmem:[%s4101_s10 + $0x78] sm:$0xff] %v2659_v12 }
 0x2e2 PF: > { %s19_s27 = sadd.s32 1, %s3074_s27  }
 0x2e3   : > { %p16_p4 = scmp.ge.s32.totalorder %s19_s27, 4  }
 0x2e5   :  { %18 = sbr.rel (!%p16_p4) target bundleno = 1 (0x1), region = 90 }

// kernel: ocr_forward.9
= control target key start
LH: loop header
LB: loop body
LE: loop exit
PB: predicated region body
PF: predicated region fallthrough
CT: control target
= control target key end

     0   :  { %s8365_s29 = smov 0   ;;  %s8367_s30 = smov 0   ;;  %s10583_s0 = inlined_call_operand.vmem [shape: bf16[2,256,512], index: 0, kind: input, shape index: {}]   ;;  %s10584_s1 = inlined_call_operand.vmem [shape: bf16[2,256,128], index: 1, kind: input, shape index: {}]   ;;  %s10585_s2 = inlined_call_operand.vmem [shape: bf16[2,128,256], index: 2, kind: input, shape index: {}]   ;;  %s10586_s3 = inlined_call_operand.vmem [shape: bf16[512,256], index: 3, kind: input, shape index: {}]   ;;  %s10587_s4 = inlined_call_operand.vmem [shape: f32[1,256], index: 4, kind: input, shape index: {}]   ;;  %s10588_s5 = inlined_call_operand.vmem [shape: bf16[256,256], index: 5, kind: input, shape index: {}]   ;;  %s10589_s6 = inlined_call_operand.vmem [shape: f32[1,256], index: 6, kind: input, shape index: {}]   ;;  %s10590_s7 = inlined_call_operand.vmem [shape: bf16[256,512], index: 7, kind: input, shape index: {}]   ;;  %s10591_s8 = inlined_call_operand.vmem [shape: f32[1,512], index: 8, kind: input, shape index: {}]   ;;  %s10592_s9 = inlined_call_operand.vmem [shape: bf16[512,512], index: 9, kind: input, shape index: {}]   ;;  %s10593_s10 = inlined_call_operand.vmem [shape: bf16[512,512], index: 10, kind: input, shape index: {}]   ;;  %s10594_s11 = inlined_call_operand.vmem [shape: f32[1,512], index: 11, kind: input, shape index: {}]   ;;  %s10595_s12 = inlined_call_operand.vmem [shape: bf16[512,128], index: 12, kind: input, shape index: {}]   ;;  %s10596_s13 = inlined_call_operand.vmem [shape: f32[1,128], index: 13, kind: input, shape index: {}]   ;;  %s10597_s14 = inlined_call_operand.vmem [shape: f32[2,256,128], index: 14, kind: output, shape index: {}]  }
   0x1   :  { %s8369_s15 = smov 0   ;;  %s8371_s16 = smov 0  }
   0x2   :  { %s8373_s17 = smov 0  }
   0x3 LB: > { %10607 = sst [smem:[#allocation2_spill]] %s8279_s15  ;;  %s33_s18 = sadd.s32 1, %s8279_s15  ;;  %s8287_s17 = sphi %s8373_s17, %s24_s17   ;;  %s8283_s16 = sphi %s8371_s16, %s10624_s16   ;;  %s8279_s15 = sphi %s8369_s15, %s10623_s15   ;;  %s8275_s30 = sphi %s8367_s30, %s10622_s30   ;;  %s8271_s29 = sphi %s8365_s29, %s10621_s29  }
   0x4   : > { %10608 = sst [smem:[#allocation3_spill]] %s8283_s16  ;;  %s36_s19 = sadd.s32 1, %s8283_s16 }
   0x5   : > { %p34_p0 = scmp.ge.s32.totalorder %s33_s18, 2  ;;  %p6359_p1 = scmp.ge.s32.totalorder %s8287_s17, 1 }
   0x6   : > { %p454_p2 = scmp.lt.s32.totalorder %s8287_s17, 5 }
   0x7   : > { %s10626_s18 = smov (%p34_p0, %s33_s18), 0  ;;  %s10628_s19 = smov (!%p34_p0, %s36_s19), %s8283_s16 }
   0x8   : > { %10609 = sst [smem:[#allocation4_spill]] %s10626_s18  ;;  %p455_p3 = pnand %p6359_p1, %p454_p2 }
   0x9   : > { %p38_p4 = scmp.ge.s32.totalorder %s10628_s19, 2 }
   0xa   : > { %458 = sbr.rel (%p455_p3) target bundleno = 2163 (0x873), region = 76 }
   0xb   : > { %s10630_s19 = smov (%p38_p4, %s10628_s19), 0 }
   0xc   : > { %10610 = sst [smem:[#allocation5_spill]] %s10630_s19 }
  0x11   : > { %v7409_v0 = vld [vmem:[%s10586_s3 + $0x4] ss:$8 sps:$4 sm:$0xff]   ;;  %s6360_s22 = sshll.u32 %s8271_s29, 4  ;;  %v7411_v1 = vld [vmem:[%s10586_s3] ss:$8 sps:$4 sm:$0xff]   ;;  %p520_p5 = scmp.lt.s32.totalorder %s8275_s30, 1 }
  0x12   : > { %1139 = vmatprep.subr.bf16.mxu0 %v7409_v0  ;;  %v7412_v2 = vld [vmem:[%s10586_s3 + $0x14] ss:$8 sps:$4 sm:$0xff]   ;;  %p522_p6 = scmp.lt.s32.totalorder %s6360_s22, 31  ;;  %v7414_v3 = vld [vmem:[%s10586_s3 + $0x10] ss:$8 sps:$4 sm:$0xff]  }
  0x13   : > { %1140 = vmatpush1.bf16.msra.mxu0 %v7411_v1  ;;  %v7415_v4 = vld [vmem:[%s10586_s3 + $0x24] ss:$8 sps:$4 sm:$0xff]   ;;  %s10632_s30 = smov (!%p520_p5, %s8275_s30), 1  ;;  %v7417_v5 = vld [vmem:[%s10586_s3 + $0x20] ss:$8 sps:$4 sm:$0xff]  }
  0x14   : > { %1141 = vmatprep.subr.bf16.mxu0 %v7412_v2  ;;  %s10634_s22 = smov (!%p522_p6, %s6360_s22), 31  ;;  %v7418_v6 = vld [vmem:[%s10586_s3 + $0x34] ss:$8 sps:$4 sm:$0xff]   ;;  %s8422_s27 = sshll.u32 %s10632_s30, 7  ;;  %v7420_v7 = vld [vmem:[%s10586_s3 + $0x30] ss:$8 sps:$4 sm:$0xff]  }
  0x15   : > { %s6361_s26 = sshll.u32 %s10634_s22, 2  ;;  %v7421_v8 = vld [vmem:[%s10586_s3 + $0x44] ss:$8 sps:$4 sm:$0xff]   ;;  %v7423_v9 = vld [vmem:[%s10586_s3 + $0x40] ss:$8 sps:$4 sm:$0xff]   ;;  %s8733_s25 = scalar_lea.vmem %s10584_s1, %s8422_s27 }
  0x16   : > { %s526_s29 = sadd.s32 %s8422_s27, %s6361_s26  ;;  %v7424_v10 = vld [vmem:[%s10586_s3 + $0x54] ss:$8 sps:$4 sm:$0xff]   ;;  %v7426_v11 = vld [vmem:[%s10586_s3 + $0x50] ss:$8 sps:$4 sm:$0xff]   ;;  %v7427_v12 = vld [vmem:[%s10586_s3 + $0x64] ss:$8 sps:$4 sm:$0xff]   ;;  %s8930_s21 = scalar_lea.vmem %s10585_s2, %s8422_s27 }
  0x17   : > { %1142 = vmatpush1.bf16.msra.mxu0 %v7414_v3  ;;  %s6363_s16 = sshll.u32 %s526_s29, 2  ;;  %v7429_v14 = vld [vmem:[%s10586_s3 + $0x60] ss:$8 sps:$4 sm:$0xff]   ;;  %v7430_v15 = vld [vmem:[%s10586_s3 + $0x74] ss:$8 sps:$4 sm:$0xff]   ;;  %s6369_s19 = sshll.u32 %s10632_s30, 5 }
  0x18   : > { %1143 = vmatprep.subr.bf16.mxu0 %v7415_v4  ;;  %s8443_s26 = scalar_lea.vmem %s10583_s0, %s6363_s16  ;;  %v7432_v16 = vld [vmem:[%s10586_s3 + $0x70] ss:$8 sps:$4 sm:$0xff]   ;;  %v7433_v17 = vld [vmem:[%s10586_s3 + $0x84] ss:$8 sps:$4 sm:$0xff]   ;;  %v7435_v18 = vld [vmem:[%s10586_s3 + $0x80] ss:$8 sps:$4 sm:$0xff]   ;;  %s546_s18 = sadd.s32 %s6369_s19, %s10634_s22 }
  0x19   : > { %v7457_v13 = vld [vmem:[%s8443_s26 + $0x4] ss:$16 sps:$4 sm:$0xff]   ;;  %v7438_v20 = vld [vmem:[%s10586_s3 + $0x90] ss:$8 sps:$4 sm:$0xff]   ;;  %v7441_v22 = vld [vmem:[%s10586_s3 + $0xa0] ss:$8 sps:$4 sm:$0xff]  }
  0x1a   : > { %1171 = vmatprep.mubr.bf16.mxu0 %v7457_v13  ;;  %v7436_v19 = vld [vmem:[%s10586_s3 + $0x94] ss:$8 sps:$4 sm:$0xff]   ;;  %v7439_v21 = vld [vmem:[%s10586_s3 + $0xa4] ss:$8 sps:$4 sm:$0xff]   ;;  %v7444_v24 = vld [vmem:[%s10586_s3 + $0xb0] ss:$8 sps:$4 sm:$0xff]  }
  0x1b   : > { %1144 = vmatpush1.bf16.msra.mxu0 %v7417_v5  ;;  %v7442_v23 = vld [vmem:[%s10586_s3 + $0xb4] ss:$8 sps:$4 sm:$0xff]   ;;  %v7445_v25 = vld [vmem:[%s10586_s3 + $0xc4] ss:$8 sps:$4 sm:$0xff]   ;;  %v7447_v26 = vld [vmem:[%s10586_s3 + $0xc0] ss:$8 sps:$4 sm:$0xff]  }
  0x1c   : > { %1145 = vmatprep.subr.bf16.mxu0 %v7418_v6  ;;  %v7448_v27 = vld [vmem:[%s10586_s3 + $0xd4] ss:$8 sps:$4 sm:$0xff]   ;;  %v7450_v28 = vld [vmem:[%s10586_s3 + $0xd0] ss:$8 sps:$4 sm:$0xff]   ;;  %v7451_v29 = vld [vmem:[%s10586_s3 + $0xe4] ss:$8 sps:$4 sm:$0xff]  }
  0x1d   : > { %v7453_v30 = vld [vmem:[%s10586_s3 + $0xe0] ss:$8 sps:$4 sm:$0xff]   ;;  %v7454_v31 = vld [vmem:[%s10586_s3 + $0xf4] ss:$8 sps:$4 sm:$0xff]   ;;  %v7456_v32 = vld [vmem:[%s10586_s3 + $0xf0] ss:$8 sps:$4 sm:$0xff]  }
  0x1e   : > { %v7462_v33 = vld [vmem:[%s10586_s3 + $0x104] ss:$8 sps:$4 sm:$0xff]   ;;  %v7459_v34 = vld [vmem:[%s8443_s26] ss:$16 sps:$4 sm:$0xff]   ;;  %v7465_v36 = vld [vmem:[%s10586_s3 + $0x114] ss:$8 sps:$4 sm:$0xff]  }
  0x1f   : > { %1146 = vmatpush1.bf16.msra.mxu0 %v7420_v7  ;;  %v7460_v35 = vld [vmem:[%s10586_s3 + $0x100] ss:$8 sps:$4 sm:$0xff]   ;;  %v7466_v37 = vld [vmem:[%s8443_s26 + $0x24] ss:$16 sps:$4 sm:$0xff]   ;;  %v7463_v41 = vld [vmem:[%s10586_s3 + $0x110] ss:$8 sps:$4 sm:$0xff]  }
  0x20   : > { %1147 = vmatprep.subr.bf16.mxu0 %v7421_v8  ;;  %v7553_v38 = vld [vmem:[%s10588_s5 + $0x4] ss:$8 sps:$4 sm:$0xff]   ;;  %v7555_v39 = vld [vmem:[%s10588_s5] ss:$8 sps:$4 sm:$0xff]   ;;  %v7556_v40 = vld [vmem:[%s10588_s5 + $0x14] ss:$8 sps:$4 sm:$0xff]  }
  0x21   : > { %1617 = vmatprep.subr.bf16.mxu1 %v7553_v38  ;;  %v7471_v42 = vld [vmem:[%s10586_s3 + $0x124] ss:$8 sps:$4 sm:$0xff]   ;;  %v7558_v43 = vld [vmem:[%s10588_s5 + $0x10] ss:$8 sps:$4 sm:$0xff]   ;;  %v7469_v46 = vld [vmem:[%s10586_s3 + $0x120] ss:$8 sps:$4 sm:$0xff]  }
  0x22   : > { %1618 = vmatpush1.bf16.msra.mxu1 %v7555_v39  ;;  %v7559_v44 = vld [vmem:[%s10588_s5 + $0x24] ss:$8 sps:$4 sm:$0xff]   ;;  %v7468_v45 = vld [vmem:[%s8443_s26 + $0x20] ss:$16 sps:$4 sm:$0xff]   ;;  %v7474_v47 = vld [vmem:[%s10586_s3 + $0x134] ss:$8 sps:$4 sm:$0xff]  }
  0x23   : > { %1148 = vmatpush1.bf16.msra.mxu0 %v7423_v9  ;;  %1619 = vmatprep.subr.bf16.mxu1 %v7556_v40  ;;  %v7475_v48 = vld [vmem:[%s8443_s26 + $0x44] ss:$16 sps:$4 sm:$0xff]   ;;  %v7561_v49 = vld [vmem:[%s10588_s5 + $0x20] ss:$8 sps:$4 sm:$0xff]   ;;  %v7472_v51 = vld [vmem:[%s10586_s3 + $0x130] ss:$8 sps:$4 sm:$0xff]  }
  0x24   : > { %1149 = vmatprep.subr.bf16.mxu0 %v7424_v10  ;;  %v7562_v50 = vld [vmem:[%s10588_s5 + $0x34] ss:$8 sps:$4 sm:$0xff]   ;;  %v7480_v52 = vld [vmem:[%s10586_s3 + $0x144] ss:$8 sps:$4 sm:$0xff]   ;;  %v7564_v53 = vld [vmem:[%s10588_s5 + $0x30] ss:$8 sps:$4 sm:$0xff]  }
  0x25   : > { %v7565_v54 = vld [vmem:[%s10588_s5 + $0x44] ss:$8 sps:$4 sm:$0xff]   ;;  %v7477_v55 = vld [vmem:[%s8443_s26 + $0x40] ss:$16 sps:$4 sm:$0xff]   ;;  %v7483_v57 = vld [vmem:[%s10586_s3 + $0x154] ss:$8 sps:$4 sm:$0xff]  }
  0x26   : > { %1620 = vmatpush1.bf16.msra.mxu1 %v7558_v43  ;;  %v7478_v56 = vld [vmem:[%s10586_s3 + $0x140] ss:$8 sps:$4 sm:$0xff]   ;;  %v7484_v58 = vld [vmem:[%s8443_s26 + $0x64] ss:$16 sps:$4 sm:$0xff]   ;;  %v7481_v60 = vld [vmem:[%s10586_s3 + $0x150] ss:$8 sps:$4 sm:$0xff]  }
  0x27   : > { %1150 = vmatpush1.bf16.msra.mxu0 %v7426_v11  ;;  %1621 = vmatprep.subr.bf16.mxu1 %v7559_v44  ;;  %v7567_v59 = vld [vmem:[%s10588_s5 + $0x40] ss:$8 sps:$4 sm:$0xff]   ;;  %v7568_v61 = vld [vmem:[%s10588_s5 + $0x54] ss:$8 sps:$4 sm:$0xff]   ;;  %v7489_v62 = vld [vmem:[%s10586_s3 + $0x164] ss:$8 sps:$4 sm:$0xff]  }
  0x28   : > { %1151 = vmatprep.subr.bf16.mxu0 %v7427_v12  ;;  %v7570_v63 = vld [vmem:[%s10588_s5 + $0x50] ss:$8 sps:$4 sm:$0xff]   ;;  %v7571_v0 = vld [vmem:[%s10588_s5 + $0x64] ss:$8 sps:$4 sm:$0xff]   ;;  %v7487_v2 = vld [vmem:[%s10586_s3 + $0x160] ss:$8 sps:$4 sm:$0xff]  }
  0x29   : > { %v7486_v1 = vld [vmem:[%s8443_s26 + $0x60] ss:$16 sps:$4 sm:$0xff]   ;;  %v7493_v3 = vld [vmem:[%s8443_s26 + $0x84] ss:$16 sps:$4 sm:$0xff]   ;;  %v7529_v44 = vld [vmem:[%s8443_s26 + $0x8] ss:$16 sps:$4 sm:$0xff]  }
  0x2a   : > { %1622 = vmatpush1.bf16.msra.mxu1 %v7561_v49  ;;  %v7492_v4 = vld [vmem:[%s10586_s3 + $0x174] ss:$8 sps:$4 sm:$0xff]   ;;  %v7573_v5 = vld [vmem:[%s10588_s5 + $0x60] ss:$8 sps:$4 sm:$0xff]   ;;  %v7490_v7 = vld [vmem:[%s10586_s3 + $0x170] ss:$8 sps:$4 sm:$0xff]  }
  0x2b   : > { %1152 = vmatpush1.bf16.msra.mxu0 %v7429_v14  ;;  %1623 = vmatprep.subr.bf16.mxu1 %v7562_v50  ;;  %v7574_v6 = vld [vmem:[%s10588_s5 + $0x74] ss:$8 sps:$4 sm:$0xff]   ;;  %v7498_v8 = vld [vmem:[%s10586_s3 + $0x184] ss:$8 sps:$4 sm:$0xff]   ;;  %v7576_v9 = vld [vmem:[%s10588_s5 + $0x70] ss:$8 sps:$4 sm:$0xff]  }
  0x2c   : > { %1153 = vmatprep.subr.bf16.mxu0 %v7430_v15  ;;  %v7577_v10 = vld [vmem:[%s10588_s5 + $0x84] ss:$8 sps:$4 sm:$0xff]   ;;  %v7495_v11 = vld [vmem:[%s8443_s26 + $0x80] ss:$16 sps:$4 sm:$0xff]   ;;  %v7501_v14 = vld [vmem:[%s10586_s3 + $0x194] ss:$8 sps:$4 sm:$0xff]  }
  0x2d   : > { %v7496_v12 = vld [vmem:[%s10586_s3 + $0x180] ss:$8 sps:$4 sm:$0xff]   ;;  %v7502_v13 = vld [vmem:[%s8443_s26 + $0xa4] ss:$16 sps:$4 sm:$0xff]   ;;  %v7526_v43 = vld [vmem:[%s10586_s3 + $0x1f0] ss:$8 sps:$4 sm:$0xff]  }
  0x2e   : > { %1624 = vmatpush1.bf16.msra.mxu1 %v7564_v53  ;;  %v7579_v15 = vld [vmem:[%s10588_s5 + $0x80] ss:$8 sps:$4 sm:$0xff]   ;;  %v7525_v38 = vld [vmem:[%s10586_s3 + $0x1e4] ss:$8 sps:$4 sm:$0xff]   ;;  %s6370_s27 = sshll.u32 %s546_s18, 3 }
  0x2f   : > { %1154 = vmatpush1.bf16.msra.mxu0 %v7432_v16  ;;  %1625 = vmatprep.subr.bf16.mxu1 %v7565_v54  ;;  %v7580_v16 = vld [vmem:[%s10588_s5 + $0x94] ss:$8 sps:$4 sm:$0xff]   ;;  %v7522_v39 = vld [vmem:[%s8443_s26 + $0xe0] ss:$16 sps:$4 sm:$0xff]   ;;  %v7540_v50 = vld [vmem:[%s8443_s26 + $0x68] ss:$16 sps:$4 sm:$0xff]   ;;  %s10535_s23 = scalar_lea.vmem %s10597_s14, %s6370_s27 }
  0x30   : > { %1155 = vmatprep.subr.bf16.mxu0 %v7433_v17  ;;  %v7499_v17 = vld [vmem:[%s10586_s3 + $0x190] ss:$8 sps:$4 sm:$0xff]   ;;  %v7523_v40 = vld [vmem:[%s10586_s3 + $0x1e0] ss:$8 sps:$4 sm:$0xff]   ;;  %v7538_v49 = vld [vmem:[%s8443_s26 + $0x6c] ss:$16 sps:$4 sm:$0xff]  }
  0x31   : > { %v7544_v53 = vld [vmem:[%s8443_s26 + $0xac] ss:$16 sps:$4 sm:$0xff]   ;;  %v7546_v54 = vld [vmem:[%s8443_s26 + $0xa8] ss:$16 sps:$4 sm:$0xff]  }
  0x32   : > { %1626 = vmatpush1.bf16.msra.mxu1 %v7567_v59  ;;  %v7594_v59 = vld [vmem:[%s10588_s5 + $0xd0] ss:$8 sps:$4 sm:$0xff]  }
  0x33   : > { %1156 = vmatpush1.bf16.msra.mxu0 %v7435_v18  ;;  %1627 = vmatprep.subr.bf16.mxu1 %v7568_v61  ;;  %v7507_v18 = vld [vmem:[%s10586_s3 + $0x1a4] ss:$8 sps:$4 sm:$0xff]   ;;  %v7597_v61 = vld [vmem:[%s10588_s5 + $0xe0] ss:$8 sps:$4 sm:$0xff]  }
  0x34   : > { %1157 = vmatprep.subr.bf16.mxu0 %v7436_v19  ;;  %v7582_v19 = vld [vmem:[%s10588_s5 + $0x90] ss:$8 sps:$4 sm:$0xff]  }
  0x36   : > { %1628 = vmatpush1.bf16.msra.mxu1 %v7570_v63  ;;  %v7600_v63 = vld [vmem:[%s10588_s5 + $0xf0] ss:$8 sps:$4 sm:$0xff]  }
  0x37   : > { %1158 = vmatpush1.bf16.msra.mxu0 %v7438_v20  ;;  %1629 = vmatprep.subr.bf16.mxu1 %v7571_v0  ;;  %v7583_v20 = vld [vmem:[%s10588_s5 + $0xa4] ss:$8 sps:$4 sm:$0xff]  }
  0x38   : > { %1159 = vmatprep.subr.bf16.mxu0 %v7439_v21  ;;  %v7504_v21 = vld [vmem:[%s8443_s26 + $0xa0] ss:$16 sps:$4 sm:$0xff]  }
  0x39   : > { %v7601_v0 = vld [vmem:[%s8733_s25 + $0x40] sm:$0xff]  }
  0x3a   : > { %1630 = vmatpush1.bf16.msra.mxu1 %v7573_v5 }
  0x3b   : > { %1160 = vmatpush1.bf16.msra.mxu0 %v7441_v22  ;;  %1631 = vmatprep.subr.bf16.mxu1 %v7574_v6  ;;  %v7505_v22 = vld [vmem:[%s10586_s3 + $0x1a0] ss:$8 sps:$4 sm:$0xff]  }
  0x3c   : > { %1161 = vmatprep.subr.bf16.mxu0 %v7442_v23  ;;  %v7511_v23 = vld [vmem:[%s8443_s26 + $0xc4] ss:$16 sps:$4 sm:$0xff]  }
  0x3e   : > { %1632 = vmatpush1.bf16.msra.mxu1 %v7576_v9 }
  0x3f   : > { %1162 = vmatpush1.bf16.msra.mxu0 %v7444_v24  ;;  %1633 = vmatprep.subr.bf16.mxu1 %v7577_v10  ;;  %v7510_v24 = vld [vmem:[%s10586_s3 + $0x1b4] ss:$8 sps:$4 sm:$0xff]  }
  0x40   : > { %1163 = vmatprep.subr.bf16.mxu0 %v7445_v25  ;;  %v7585_v25 = vld [vmem:[%s10588_s5 + $0xa0] ss:$8 sps:$4 sm:$0xff]  }
  0x42   : > { %1634 = vmatpush1.bf16.msra.mxu1 %v7579_v15 }
  0x43   : > { %1164 = vmatpush1.bf16.msra.mxu0 %v7447_v26  ;;  %1635 = vmatprep.subr.bf16.mxu1 %v7580_v16  ;;  %v7586_v26 = vld [vmem:[%s10588_s5 + $0xb4] ss:$8 sps:$4 sm:$0xff]  }
  0x44   : > { %1165 = vmatprep.subr.bf16.mxu0 %v7448_v27  ;;  %v7508_v27 = vld [vmem:[%s10586_s3 + $0x1b0] ss:$8 sps:$4 sm:$0xff]  }
  0x46   : > { %1636 = vmatpush1.bf16.msra.mxu1 %v7582_v19 }
  0x47   : > { %1166 = vmatpush1.bf16.msra.mxu0 %v7450_v28  ;;  %1637 = vmatprep.subr.bf16.mxu1 %v7583_v20  ;;  %v7516_v28 = vld [vmem:[%s10586_s3 + $0x1c4] ss:$8 sps:$4 sm:$0xff]  }
  0x48   : > { %1167 = vmatprep.subr.bf16.mxu0 %v7451_v29  ;;  %v7588_v29 = vld [vmem:[%s10588_s5 + $0xb0] ss:$8 sps:$4 sm:$0xff]  }
  0x4a   : > { %1638 = vmatpush1.bf16.msra.mxu1 %v7585_v25 }
  0x4b   : > { %1168 = vmatpush1.bf16.msra.mxu0 %v7453_v30  ;;  %v7589_v30 = vld [vmem:[%s10588_s5 + $0xc4] ss:$8 sps:$4 sm:$0xff]   ;;  %1639 = vmatprep.subr.bf16.mxu1 %v7586_v26 }
  0x4c   : > { %1169 = vmatprep.subr.bf16.mxu0 %v7454_v31  ;;  %v7513_v31 = vld [vmem:[%s8443_s26 + $0xc0] ss:$16 sps:$4 sm:$0xff]   ;;  %v7603_v26 = vld [vmem:[%s8733_s25 + $0x48] sm:$0xff]  }
  0x4e   : > { %1640 = vmatpush1.bf16.msra.mxu1 %v7588_v29 }
  0x4f   : > { %1170 = vmatpush1.bf16.msra.mxu0 %v7456_v32  ;;  %v7514_v32 = vld [vmem:[%s10586_s3 + $0x1c0] ss:$8 sps:$4 sm:$0xff]   ;;  %1641 = vmatprep.subr.bf16.mxu1 %v7589_v30 }
  0x50   : > { %1252 = vmatprep.subr.bf16.mxu0 %v7462_v33  ;;  %v7520_v33 = vld [vmem:[%s8443_s26 + $0xe4] ss:$16 sps:$4 sm:$0xff]  }
  0x52   : > { %1172 = vmatmul.mubr.bf16.vlgmr.msra.gmra.mrb[0].mxu0 %v7459_v34  ;;  %v7519_v34 = vld [vmem:[%s10586_s3 + $0x1d4] ss:$8 sps:$4 sm:$0xff]  }
  0x53   : > { %1253 = vmatpush1.bf16.msra.mxu0 %v7460_v35  ;;  %1181 = vmatprep.mubr.bf16.mxu0 %v7466_v37  ;;  %v7591_v35 = vld [vmem:[%s10588_s5 + $0xc0] ss:$8 sps:$4 sm:$0xff]   ;;  %v7517_v37 = vld [vmem:[%s10586_s3 + $0x1d0] ss:$8 sps:$4 sm:$0xff]  }
  0x54   : > { %1254 = vmatprep.subr.bf16.mxu0 %v7465_v36  ;;  %v7592_v36 = vld [vmem:[%s10588_s5 + $0xd4] ss:$8 sps:$4 sm:$0xff]   ;;  %1642 = vmatpush1.bf16.msra.mxu1 %v7591_v35 }
  0x55   : > { %1643 = vmatprep.subr.bf16.mxu1 %v7592_v36  ;;  %v7605_v35 = vld [vmem:[%s8733_s25 + $0x50] sm:$0xff]  }
  0x57   : > { %1255 = vmatpush1.bf16.msra.mxu0 %v7463_v41  ;;  %v7531_v41 = vld [vmem:[%s8443_s26 + $0xc] ss:$16 sps:$4 sm:$0xff]  }
  0x58   : > { %1256 = vmatprep.subr.bf16.mxu0 %v7471_v42  ;;  %v7528_v42 = vld [vmem:[%s10586_s3 + $0x1f4] ss:$8 sps:$4 sm:$0xff]   ;;  %1644 = vmatpush1.bf16.msra.mxu1 %v7594_v59  ;;  %v7610_v59 = vld [vmem:[%s8733_s25 + $0x20] sm:$0xff]  }
  0x5a   : > { %1182 = vmatmul.mubr.bf16.gmra.mrb[4].mxu0 %v7468_v45  ;;  %v7532_v45 = vld [vmem:[%s8443_s26 + $0x2c] ss:$16 sps:$4 sm:$0xff]  }
  0x5b   : > { %1257 = vmatpush1.bf16.msra.mxu0 %v7469_v46  ;;  %1191 = vmatprep.mubr.bf16.mxu0 %v7475_v48  ;;  %v7534_v46 = vld [vmem:[%s8443_s26 + $0x28] ss:$16 sps:$4 sm:$0xff]  }
  0x5c   : > { %1258 = vmatprep.subr.bf16.mxu0 %v7474_v47  ;;  %v7535_v47 = vld [vmem:[%s8443_s26 + $0x4c] ss:$16 sps:$4 sm:$0xff]   ;;  %v7537_v48 = vld [vmem:[%s8443_s26 + $0x48] ss:$16 sps:$4 sm:$0xff]  }
  0x5f   : > { %1259 = vmatpush1.bf16.msra.mxu0 %v7472_v51  ;;  %v7541_v51 = vld [vmem:[%s8443_s26 + $0x8c] ss:$16 sps:$4 sm:$0xff]  }
  0x60   : > { %1260 = vmatprep.subr.bf16.mxu0 %v7480_v52  ;;  %v7543_v52 = vld [vmem:[%s8443_s26 + $0x88] ss:$16 sps:$4 sm:$0xff]  }
  0x62   : > { %1192 = vmatmul.mubr.bf16.gmra.mrb[8].mxu0 %v7477_v55  ;;  %v7547_v55 = vld [vmem:[%s8443_s26 + $0xcc] ss:$16 sps:$4 sm:$0xff]  }
  0x63   : > { %1261 = vmatpush1.bf16.msra.mxu0 %v7478_v56  ;;  %1201 = vmatprep.mubr.bf16.mxu0 %v7484_v58  ;;  %v7549_v56 = vld [vmem:[%s8443_s26 + $0xc8] ss:$16 sps:$4 sm:$0xff]  }
  0x64   : > { %1262 = vmatprep.subr.bf16.mxu0 %v7483_v57  ;;  %v7550_v57 = vld [vmem:[%s8443_s26 + $0xec] ss:$16 sps:$4 sm:$0xff]   ;;  %v7552_v58 = vld [vmem:[%s8443_s26 + $0xe8] ss:$16 sps:$4 sm:$0xff]  }
  0x67   : > { %1263 = vmatpush1.bf16.msra.mxu0 %v7481_v60  ;;  %v7595_v60 = vld [vmem:[%s10588_s5 + $0xe4] ss:$8 sps:$4 sm:$0xff]  }
  0x68   : > { %1264 = vmatprep.subr.bf16.mxu0 %v7489_v62  ;;  %1645 = vmatprep.subr.bf16.mxu1 %v7595_v60  ;;  %v7598_v62 = vld [vmem:[%s10588_s5 + $0xf4] ss:$8 sps:$4 sm:$0xff]  }
  0x69   : > { %1646 = vmatpush1.bf16.msra.mxu1 %v7597_v61 }
  0x6a   : > { %1202 = vmatmul.mubr.bf16.gmra.mrb[12].mxu0 %v7486_v1  ;;  %1647 = vmatprep.subr.bf16.mxu1 %v7598_v62  ;;  %v649_v1 = vlaneseq  ;;  %v7611_v62 = vld [vmem:[%s8733_s25 + $0x68] sm:$0xff]  }
  0x6b   : > { %1265 = vmatpush1.bf16.msra.mxu0 %v7487_v2  ;;  %1211 = vmatprep.mubr.bf16.mxu0 %v7493_v3 }
  0x6c   : > { %1266 = vmatprep.subr.bf16.mxu0 %v7492_v4  ;;  %v8737_v2 = vshrl.u32 %v649_v1, 7  ;;  %v647_v4 = vld [vmem:[%s10587_s4] sm:$0x3] }
  0x6d   : > { %1648 = vmatpush1.bf16.msra.mxu1 %v7600_v63 }
  0x6e   : > { %6888 = vmatprep.subr.bf16.mxu1 %v7601_v0  ;;  %10611 = vst [vmem:[#allocation6_spill] sm:$0xff] %v8737_v2  ;;  %v8740_v3 = vsub.s32 0, %v8737_v2  ;;  %v8746_v5 = vsub.s32 1, %v8737_v2 }
  0x6f   : > { %1267 = vmatpush1.bf16.msra.mxu0 %v7490_v7 }
  0x70   : > { %1268 = vmatprep.subr.bf16.mxu0 %v7498_v8  ;;  %10612 = vst [vmem:[#allocation7_spill] sm:$0xff] %v8740_v3  ;;  %10613 = vst [vmem:[#allocation8_spill] sm:$0xff] %v8746_v5  ;;  %v8749_v6 = vrot.slane %v647_v4, %v8740_v3  ;;  %v8752_v7 = vrot.slane %v647_v4, %v8746_v5 }
  0x72   : > { %1212 = vmatmul.mubr.bf16.gmra.mrb[16].mxu0 %v7495_v11 }
  0x73   : > { %1269 = vmatpush1.bf16.msra.mxu0 %v7496_v12  ;;  %1221 = vmatprep.mubr.bf16.mxu0 %v7502_v13 }
  0x74   : > { %1270 = vmatprep.subr.bf16.mxu0 %v7501_v14 }
  0x77   : > { %1271 = vmatpush1.bf16.msra.mxu0 %v7499_v17 }
  0x78   : > { %1272 = vmatprep.subr.bf16.mxu0 %v7507_v18 }
  0x7a   : > { %1222 = vmatmul.mubr.bf16.gmra.mrb[20].mxu0 %v7504_v21 }
  0x7b   : > { %1273 = vmatpush1.bf16.msra.mxu0 %v7505_v22  ;;  %1231 = vmatprep.mubr.bf16.mxu0 %v7511_v23  ;;  %v7602_v23 = vld [vmem:[%s8733_s25] sm:$0xff]  }
  0x7c   : > { %1274 = vmatprep.subr.bf16.mxu0 %v7510_v24 }
  0x7f   : > { %1275 = vmatpush1.bf16.msra.mxu0 %v7508_v27 }
  0x80   : > { %1276 = vmatprep.subr.bf16.mxu0 %v7516_v28 }
  0x82   : > { %1232 = vmatmul.mubr.bf16.gmra.mrb[24].mxu0 %v7513_v31 }
  0x83   : > { %1277 = vmatpush1.bf16.msra.mxu0 %v7514_v32  ;;  %1241 = vmatprep.mubr.bf16.mxu0 %v7520_v33  ;;  %v7604_v32 = vld [vmem:[%s8733_s25 + $0x8] sm:$0xff]  }
  0x84   : > { %1278 = vmatprep.subr.bf16.mxu0 %v7519_v34 }
  0x87   : > { %1279 = vmatpush1.bf16.msra.mxu0 %v7517_v37 }
  0x88   : > { %1280 = vmatprep.subr.bf16.mxu0 %v7525_v38 }
  0x8a   : > { %1242 = vmatmul.mubr.bf16.gmra.mrb[28].mxu0 %v7522_v39 }
  0x8b   : > { %1281 = vmatpush1.bf16.msra.mxu0 %v7523_v40  ;;  %1284 = vmatprep.mubr.bf16.mxu0 %v7531_v41  ;;  %v7606_v41 = vld [vmem:[%s8733_s25 + $0x10] sm:$0xff]  }
  0x8c   : > { %1282 = vmatprep.subr.bf16.mxu0 %v7528_v42 }
  0x8f   : > { %1283 = vmatpush1.bf16.msra.mxu0 %v7526_v43 }
  0x92   : > { %1285 = vmatmul.mubr.bf16.vlgmr.msra.gmra.mrb[0].mxu0 %v7529_v44  ;;  %v7607_v44 = vld [vmem:[%s8733_s25 + $0x58] sm:$0xff]  }
  0x93   : > { %1294 = vmatprep.mubr.bf16.mxu0 %v7532_v45 }
  0x9a   : > { %1295 = vmatmul.mubr.bf16.gmra.mrb[4].mxu0 %v7534_v46 }
  0x9b   : > { %1304 = vmatprep.mubr.bf16.mxu0 %v7535_v47 }
  0xa2   : > { %1305 = vmatmul.mubr.bf16.gmra.mrb[8].mxu0 %v7537_v48 }
  0xa3   : > { %1314 = vmatprep.mubr.bf16.mxu0 %v7538_v49 }
  0xaa   : > { %1315 = vmatmul.mubr.bf16.gmra.mrb[12].mxu0 %v7540_v50  ;;  %v7608_v50 = vld [vmem:[%s8733_s25 + $0x18] sm:$0xff]  }
  0xab   : > { %1324 = vmatprep.mubr.bf16.mxu0 %v7541_v51 }
  0xb2   : > { %1325 = vmatmul.mubr.bf16.gmra.mrb[16].mxu0 %v7543_v52 }
  0xb3   : > { %1334 = vmatprep.mubr.bf16.mxu0 %v7544_v53  ;;  %v7609_v53 = vld [vmem:[%s8733_s25 + $0x60] sm:$0xff]  }
  0xba   : > { %1335 = vmatmul.mubr.bf16.gmra.mrb[20].mxu0 %v7546_v54 }
  0xbb   : > { %1344 = vmatprep.mubr.bf16.mxu0 %v7547_v55 }
  0xc2   : > { %1345 = vmatmul.mubr.bf16.gmra.mrb[24].mxu0 %v7549_v56 }
  0xc3   : > { %1354 = vmatprep.mubr.bf16.mxu0 %v7550_v57 }
  0xca   : > { %1355 = vmatmul.mubr.bf16.gmra.mrb[28].mxu0 %v7552_v58 }
 0x165   : > { %v1286_v8 = vpop.f32.mrb[0].mxu0 }
 0x166   : > { %v7112_v9 = vadd.f32 %v1286_v8, %v8749_v6  ;;  %v1288_v10 = vpop.f32.mrb[1].mxu0 }
 0x167   : > { %v7113_v11 = vadd.f32 %v1288_v10, %v8752_v7  ;;  %v1290_v12 = vpop.f32.mrb[2].mxu0  ;;  %v7612_v10 = vld [vmem:[%s8733_s25 + $0x28] sm:$0xff]  }
 0x168   : > { %v7114_v13 = vadd.f32 %v1290_v12, %v8749_v6  ;;  %v1292_v14 = vpop.f32.mrb[3].mxu0  ;;  %v1365_v16 = vmax.f32 %v7112_v9, 0.0 }
 0x169   : > { %v7115_v15 = vadd.f32 %v1292_v14, %v8752_v7  ;;  %v1366_v18 = vmax.f32 %v7113_v11, 0.0 }
 0x16a   : > { %v1367_v17 = vmax.f32 %v7114_v13, 0.0  ;;  %v7613_v13 = vld [vmem:[%s8733_s25 + $0x70] sm:$0xff]  }
 0x16b   : > { %v1368_v19 = vmax.f32 %v7115_v15, 0.0 }
 0x16c   : > { %v1397_v20 = vpack.c.bf16 %v1367_v17, %v1365_v16 }
 0x16d   : > { %v1296_v21 = vpop.f32.mrb[4].mxu0  ;;  %v1398_v22 = vpack.c.bf16 %v1368_v19, %v1366_v18  ;;  %v7614_v19 = vld [vmem:[%s8733_s25 + $0x30] sm:$0xff]  }
 0x16e   : > { %v7116_v24 = vadd.f32 %v1296_v21, %v8749_v6  ;;  %v1298_v25 = vpop.f32.mrb[5].mxu0 }
 0x16f   : > { %v7117_v27 = vadd.f32 %v1298_v25, %v8752_v7  ;;  %v1300_v28 = vpop.f32.mrb[6].mxu0  ;;  %1649 = vmatprep.mubr.bf16.mxu1 %v1398_v22 }
 0x170   : > { %v7118_v29 = vadd.f32 %v1300_v28, %v8749_v6  ;;  %v1302_v30 = vpop.f32.mrb[7].mxu0  ;;  %1650 = vmatmul.mubr.bf16.vlgmr.msra.gmra.mrb[0].mxu1 %v1397_v20  ;;  %v1369_v33 = vmax.f32 %v7116_v24, 0.0 }
 0x171   : > { %v7119_v31 = vadd.f32 %v1302_v30, %v8752_v7  ;;  %6889 = vmatpush3.bf16.msra.mxu1 %v7602_v23  ;;  %v1370_v36 = vmax.f32 %v7117_v27, 0.0 }
 0x172   : > { %v1371_v34 = vmax.f32 %v7118_v29, 0.0  ;;  %6890 = vmatprep.subr.bf16.mxu1 %v7603_v26 }
 0x173   : > { %v1372_v37 = vmax.f32 %v7119_v31, 0.0 }
 0x174   : > { %v1399_v38 = vpack.c.bf16 %v1371_v34, %v1369_v33 }
 0x175   : > { %v1400_v39 = vpack.c.bf16 %v1372_v37, %v1370_v36  ;;  %v1306_v40 = vpop.f32.mrb[8].mxu0  ;;  %6891 = vmatpush3.bf16.msra.mxu1 %v7604_v32 }
 0x176   : > { %v7120_v42 = vadd.f32 %v1306_v40, %v8749_v6  ;;  %v1308_v43 = vpop.f32.mrb[9].mxu0  ;;  %6892 = vmatprep.subr.bf16.mxu1 %v7605_v35 }
 0x177   : > { %v7121_v45 = vadd.f32 %v1308_v43, %v8752_v7  ;;  %v1310_v46 = vpop.f32.mrb[10].mxu0  ;;  %1659 = vmatprep.mubr.bf16.mxu1 %v1400_v39 }
 0x178   : > { %v7122_v47 = vadd.f32 %v1310_v46, %v8749_v6  ;;  %v1312_v48 = vpop.f32.mrb[11].mxu0  ;;  %1660 = vmatmul.mubr.bf16.gmra.mrb[4].mxu1 %v1399_v38  ;;  %v1373_v51 = vmax.f32 %v7120_v42, 0.0 }
 0x179   : > { %v7123_v49 = vadd.f32 %v1312_v48, %v8752_v7  ;;  %6893 = vmatpush3.bf16.msra.mxu1 %v7606_v41  ;;  %v1374_v54 = vmax.f32 %v7121_v45, 0.0 }
 0x17a   : > { %v1375_v52 = vmax.f32 %v7122_v47, 0.0  ;;  %6894 = vmatprep.subr.bf16.mxu1 %v7607_v44 }
 0x17b   : > { %v1376_v55 = vmax.f32 %v7123_v49, 0.0 }
 0x17c   : > { %v1401_v56 = vpack.c.bf16 %v1375_v52, %v1373_v51 }
 0x17d   : > { %v1402_v57 = vpack.c.bf16 %v1376_v55, %v1374_v54  ;;  %v1316_v58 = vpop.f32.mrb[12].mxu0  ;;  %6895 = vmatpush3.bf16.msra.mxu1 %v7608_v50 }
 0x17e   : > { %v7124_v60 = vadd.f32 %v1316_v58, %v8749_v6  ;;  %v1318_v61 = vpop.f32.mrb[13].mxu0  ;;  %6896 = vmatprep.subr.bf16.mxu1 %v7609_v53 }
 0x17f   : > { %v7125_v63 = vadd.f32 %v1318_v61, %v8752_v7  ;;  %v1320_v0 = vpop.f32.mrb[14].mxu0  ;;  %1669 = vmatprep.mubr.bf16.mxu1 %v1402_v57 }
 0x180   : > { %v7126_v4 = vadd.f32 %v1320_v0, %v8749_v6  ;;  %v1322_v8 = vpop.f32.mrb[15].mxu0  ;;  %1670 = vmatmul.mubr.bf16.gmra.mrb[8].mxu1 %v1401_v56  ;;  %v1377_v11 = vmax.f32 %v7124_v60, 0.0 }
 0x181   : > { %v7127_v9 = vadd.f32 %v1322_v8, %v8752_v7  ;;  %6897 = vmatpush3.bf16.msra.mxu1 %v7610_v59  ;;  %v1378_v14 = vmax.f32 %v7125_v63, 0.0 }
 0x182   : > { %v1379_v12 = vmax.f32 %v7126_v4, 0.0  ;;  %6898 = vmatprep.subr.bf16.mxu1 %v7611_v62 }
 0x183   : > { %v1380_v15 = vmax.f32 %v7127_v9, 0.0 }
 0x184   : > { %v1403_v16 = vpack.c.bf16 %v1379_v12, %v1377_v11 }
 0x185   : > { %v1404_v17 = vpack.c.bf16 %v1380_v15, %v1378_v14  ;;  %v1326_v18 = vpop.f32.mrb[16].mxu0  ;;  %6899 = vmatpush3.bf16.msra.mxu1 %v7612_v10 }
 0x186   : > { %v7128_v20 = vadd.f32 %v1326_v18, %v8749_v6  ;;  %v1328_v21 = vpop.f32.mrb[17].mxu0  ;;  %6900 = vmatprep.subr.bf16.mxu1 %v7613_v13  ;;  %v7616_v18 = vld [vmem:[%s8733_s25 + $0x38] sm:$0xff]  }
 0x187   : > { %v7129_v22 = vadd.f32 %v1328_v21, %v8752_v7  ;;  %v1330_v23 = vpop.f32.mrb[18].mxu0  ;;  %1679 = vmatprep.mubr.bf16.mxu1 %v1404_v17  ;;  %v7615_v17 = vld [vmem:[%s8733_s25 + $0x78] sm:$0xff]  }
 0x188   : > { %v7130_v24 = vadd.f32 %v1330_v23, %v8749_v6  ;;  %v1332_v25 = vpop.f32.mrb[19].mxu0  ;;  %1680 = vmatmul.mubr.bf16.gmra.mrb[12].mxu1 %v1403_v16  ;;  %v1381_v27 = vmax.f32 %v7128_v20, 0.0 }
 0x189   : > { %v7131_v26 = vadd.f32 %v1332_v25, %v8752_v7  ;;  %6901 = vmatpush3.bf16.msra.mxu1 %v7614_v19  ;;  %v1382_v29 = vmax.f32 %v7129_v22, 0.0 }
 0x18a   : > { %v1383_v28 = vmax.f32 %v7130_v24, 0.0  ;;  %6902 = vmatprep.subr.bf16.mxu1 %v7615_v17 }
 0x18b   : > { %v1384_v30 = vmax.f32 %v7131_v26, 0.0 }
 0x18c   : > { %v1405_v31 = vpack.c.bf16 %v1383_v28, %v1381_v27 }
 0x18d   : > { %v1406_v32 = vpack.c.bf16 %v1384_v30, %v1382_v29  ;;  %v1336_v33 = vpop.f32.mrb[20].mxu0  ;;  %6903 = vmatpush3.bf16.msra.mxu1 %v7616_v18 }
 0x18e   : > { %v7132_v34 = vadd.f32 %v1336_v33, %v8749_v6  ;;  %v1338_v35 = vpop.f32.mrb[21].mxu0 }
 0x18f   : > { %v7133_v36 = vadd.f32 %v1338_v35, %v8752_v7  ;;  %v1340_v37 = vpop.f32.mrb[22].mxu0  ;;  %1689 = vmatprep.mubr.bf16.mxu1 %v1406_v32 }
 0x190   : > { %v7134_v38 = vadd.f32 %v1340_v37, %v8749_v6  ;;  %v1342_v39 = vpop.f32.mrb[23].mxu0  ;;  %1690 = vmatmul.mubr.bf16.gmra.mrb[16].mxu1 %v1405_v31  ;;  %v1385_v41 = vmax.f32 %v7132_v34, 0.0 }
 0x191   : > { %v7135_v40 = vadd.f32 %v1342_v39, %v8752_v7  ;;  %v1386_v43 = vmax.f32 %v7133_v36, 0.0 }
 0x192   : > { %v1387_v42 = vmax.f32 %v7134_v38, 0.0 }
 0x193   : > { %v1388_v44 = vmax.f32 %v7135_v40, 0.0 }
 0x194   : > { %v1407_v45 = vpack.c.bf16 %v1387_v42, %v1385_v41 }
 0x195   : > { %v1408_v46 = vpack.c.bf16 %v1388_v44, %v1386_v43  ;;  %v1346_v47 = vpop.f32.mrb[24].mxu0 }
 0x196   : > { %v7136_v48 = vadd.f32 %v1346_v47, %v8749_v6  ;;  %v1348_v49 = vpop.f32.mrb[25].mxu0 }
 0x197   : > { %v7137_v50 = vadd.f32 %v1348_v49, %v8752_v7  ;;  %v1350_v51 = vpop.f32.mrb[26].mxu0  ;;  %1699 = vmatprep.mubr.bf16.mxu1 %v1408_v46 }
 0x198   : > { %v7138_v52 = vadd.f32 %v1350_v51, %v8749_v6  ;;  %v1352_v53 = vpop.f32.mrb[27].mxu0  ;;  %1700 = vmatmul.mubr.bf16.gmra.mrb[20].mxu1 %v1407_v45  ;;  %v1389_v55 = vmax.f32 %v7136_v48, 0.0 }
 0x199   : > { %v7139_v54 = vadd.f32 %v1352_v53, %v8752_v7  ;;  %v1390_v57 = vmax.f32 %v7137_v50, 0.0 }
 0x19a   : > { %v1391_v56 = vmax.f32 %v7138_v52, 0.0 }
 0x19b   : > { %v1392_v58 = vmax.f32 %v7139_v54, 0.0 }
 0x19c   : > { %v1409_v59 = vpack.c.bf16 %v1391_v56, %v1389_v55 }
 0x19d   : > { %v1410_v60 = vpack.c.bf16 %v1392_v58, %v1390_v57  ;;  %v1356_v61 = vpop.f32.mrb[28].mxu0 }
 0x19e   : > { %v7140_v62 = vadd.f32 %v1356_v61, %v8749_v6  ;;  %v1358_v63 = vpop.f32.mrb[29].mxu0 }
 0x19f   : > { %v7141_v0 = vadd.f32 %v1358_v63, %v8752_v7  ;;  %v1360_v4 = vpop.f32.mrb[30].mxu0  ;;  %1709 = vmatprep.mubr.bf16.mxu1 %v1410_v60 }
 0x1a0   : > { %v7142_v8 = vadd.f32 %v1360_v4, %v8749_v6  ;;  %v1362_v9 = vpop.f32.mrb[31].mxu0  ;;  %1710 = vmatmul.mubr.bf16.gmra.mrb[24].mxu1 %v1409_v59  ;;  %v1393_v11 = vmax.f32 %v7140_v62, 0.0  ;;  %v1445_v6 = vld [vmem:[%s10589_s6] sm:$0x3] }
 0x1a1   : > { %v7143_v10 = vadd.f32 %v1362_v9, %v8752_v7  ;;  %v1394_v13 = vmax.f32 %v7141_v0, 0.0  ;;  %v8805_v19 = vrot.slane %v1445_v6, %v8740_v3  ;;  %v8808_v7 = vrot.slane %v1445_v6, %v8746_v5 }
 0x1a2   : > { %v1395_v12 = vmax.f32 %v7142_v8, 0.0 }
 0x1a3   : > { %v1396_v14 = vmax.f32 %v7143_v10, 0.0 }
 0x1a4   : > { %v1411_v15 = vpack.c.bf16 %v1395_v12, %v1393_v11 }
 0x1a5   : > { %v1412_v16 = vpack.c.bf16 %v1396_v14, %v1394_v13 }
 0x1a7   : > { %1719 = vmatprep.mubr.bf16.mxu1 %v1412_v16 }
 0x1a8   : > { %1720 = vmatmul.mubr.bf16.gmra.mrb[28].mxu1 %v1411_v15 }
 0x243   : > { %v1651_v20 = vpop.f32.mrb[0].mxu1 }
 0x244   : > { %v1652_v21 = vadd.f32 %v1651_v20, %v8805_v19  ;;  %v1653_v22 = vpop.f32.mrb[1].mxu1 }
 0x245   : > { %v1654_v23 = vadd.f32 %v1653_v22, %v8808_v7  ;;  %v1655_v24 = vpop.f32.mrb[2].mxu1 }
 0x246   : > { %v1656_v25 = vadd.f32 %v1655_v24, %v8805_v19  ;;  %v1657_v26 = vpop.f32.mrb[3].mxu1  ;;  %v1730_v28 = vmax.f32 %v1652_v21, 0.0 }
 0x247   : > { %v1658_v27 = vadd.f32 %v1657_v26, %v8808_v7  ;;  %v1731_v30 = vmax.f32 %v1654_v23, 0.0 }
 0x248   : > { %v1732_v29 = vmax.f32 %v1656_v25, 0.0 }
 0x249   : > { %v1733_v31 = vmax.f32 %v1658_v27, 0.0 }
 0x24a   : > { %v1762_v32 = vpack.c.bf16 %v1732_v29, %v1730_v28 }
 0x24b   : > { %v1763_v33 = vpack.c.bf16 %v1733_v31, %v1731_v30  ;;  %v1661_v34 = vpop.f32.mrb[4].mxu1 }
 0x24c   : > { %v1662_v35 = vadd.f32 %v1661_v34, %v8805_v19  ;;  %v1663_v36 = vpop.f32.mrb[5].mxu1 }
 0x24d   : > { %v1664_v37 = vadd.f32 %v1663_v36, %v8808_v7  ;;  %v1665_v38 = vpop.f32.mrb[6].mxu1  ;;  %1938 = vmatprep.mubr.bf16.mxu1 %v1763_v33 }
 0x24e   : > { %v1666_v39 = vadd.f32 %v1665_v38, %v8805_v19  ;;  %v1667_v40 = vpop.f32.mrb[7].mxu1  ;;  %1939 = vmatmul.mubr.bf16.vlgmr.msra.gmra.mrb[32].mxu1 %v1762_v32  ;;  %v1734_v42 = vmax.f32 %v1662_v35, 0.0 }
 0x24f   : > { %v1668_v41 = vadd.f32 %v1667_v40, %v8808_v7  ;;  %v1735_v44 = vmax.f32 %v1664_v37, 0.0 }
 0x250   : > { %v1736_v43 = vmax.f32 %v1666_v39, 0.0 }
 0x251   : > { %v1737_v45 = vmax.f32 %v1668_v41, 0.0 }
 0x252   : > { %v1764_v46 = vpack.c.bf16 %v1736_v43, %v1734_v42 }
 0x253   : > { %v1765_v47 = vpack.c.bf16 %v1737_v45, %v1735_v44  ;;  %v1671_v48 = vpop.f32.mrb[8].mxu1 }
 0x254   : > { %v1672_v49 = vadd.f32 %v1671_v48, %v8805_v19  ;;  %v1673_v50 = vpop.f32.mrb[9].mxu1 }
 0x255   : > { %v1674_v51 = vadd.f32 %v1673_v50, %v8808_v7  ;;  %v1675_v52 = vpop.f32.mrb[10].mxu1  ;;  %1946 = vmatprep.mubr.bf16.mxu1 %v1765_v47 }
 0x256   : > { %v1676_v53 = vadd.f32 %v1675_v52, %v8805_v19  ;;  %v1677_v54 = vpop.f32.mrb[11].mxu1  ;;  %1947 = vmatmul.mubr.bf16.gmra.mrb[36].mxu1 %v1764_v46  ;;  %v1738_v56 = vmax.f32 %v1672_v49, 0.0 }
 0x257   : > { %v1678_v55 = vadd.f32 %v1677_v54, %v8808_v7  ;;  %v1739_v58 = vmax.f32 %v1674_v51, 0.0 }
 0x258   : > { %v1740_v57 = vmax.f32 %v1676_v53, 0.0 }
 0x259   : > { %v1741_v59 = vmax.f32 %v1678_v55, 0.0 }
 0x25a   : > { %v1766_v60 = vpack.c.bf16 %v1740_v57, %v1738_v56 }
 0x25b   : > { %v1767_v61 = vpack.c.bf16 %v1741_v59, %v1739_v58  ;;  %v1681_v62 = vpop.f32.mrb[12].mxu1 }
 0x25c   : > { %v1682_v63 = vadd.f32 %v1681_v62, %v8805_v19  ;;  %v1683_v0 = vpop.f32.mrb[13].mxu1 }
 0x25d   : > { %v1684_v4 = vadd.f32 %v1683_v0, %v8808_v7  ;;  %v1685_v8 = vpop.f32.mrb[14].mxu1  ;;  %1954 = vmatprep.mubr.bf16.mxu1 %v1767_v61 }
 0x25e   : > { %v1686_v9 = vadd.f32 %v1685_v8, %v8805_v19  ;;  %v1687_v10 = vpop.f32.mrb[15].mxu1  ;;  %1955 = vmatmul.mubr.bf16.gmra.mrb[40].mxu1 %v1766_v60  ;;  %v1742_v12 = vmax.f32 %v1682_v63, 0.0 }
 0x25f   : > { %v1688_v11 = vadd.f32 %v1687_v10, %v8808_v7  ;;  %v1743_v14 = vmax.f32 %v1684_v4, 0.0 }
 0x260   : > { %v1744_v13 = vmax.f32 %v1686_v9, 0.0 }
 0x261   : > { %v1745_v15 = vmax.f32 %v1688_v11, 0.0 }
 0x262   : > { %v1768_v16 = vpack.c.bf16 %v1744_v13, %v1742_v12 }
 0x263   : > { %v1769_v17 = vpack.c.bf16 %v1745_v15, %v1743_v14  ;;  %v1691_v18 = vpop.f32.mrb[16].mxu1 }
 0x264   : > { %v1692_v6 = vadd.f32 %v1691_v18, %v8805_v19  ;;  %v1693_v20 = vpop.f32.mrb[17].mxu1 }
 0x265   : > { %v1694_v21 = vadd.f32 %v1693_v20, %v8808_v7  ;;  %v1695_v22 = vpop.f32.mrb[18].mxu1  ;;  %1962 = vmatprep.mubr.bf16.mxu1 %v1769_v17 }
 0x266   : > { %v1696_v23 = vadd.f32 %v1695_v22, %v8805_v19  ;;  %v1697_v24 = vpop.f32.mrb[19].mxu1  ;;  %1963 = vmatmul.mubr.bf16.gmra.mrb[44].mxu1 %v1768_v16  ;;  %v1746_v26 = vmax.f32 %v1692_v6, 0.0  ;;  %v8843_v16 = vand.u32 127, %v649_v1 }
 0x267   : > { %v1698_v25 = vadd.f32 %v1697_v24, %v8808_v7  ;;  %v1747_v28 = vmax.f32 %v1694_v21, 0.0 }
 0x268   : > { %v1748_v27 = vmax.f32 %v1696_v23, 0.0  ;;  %vm2021_vm0 = vcmp.lt.s32.totalorder %v8843_v16, 8  ;;  %v7619_v16 = vld [vmem:[%s8930_s21 + $0x4] ss:$8 sps:$4 sm:$0xff]  }
 0x269   : > { %v1749_v29 = vmax.f32 %v1698_v25, 0.0  ;;  %2286 = vmatprep.subr.bf16.mxu0 %v7619_v16 }
 0x26a   : > { %v1770_v30 = vpack.c.bf16 %v1748_v27, %v1746_v26 }
 0x26b   : > { %v1771_v31 = vpack.c.bf16 %v1749_v29, %v1747_v28  ;;  %v1701_v32 = vpop.f32.mrb[20].mxu1 }
 0x26c   : > { %v1702_v33 = vadd.f32 %v1701_v32, %v8805_v19  ;;  %v1703_v34 = vpop.f32.mrb[21].mxu1 }
 0x26d   : > { %v1704_v35 = vadd.f32 %v1703_v34, %v8808_v7  ;;  %v1705_v36 = vpop.f32.mrb[22].mxu1  ;;  %1970 = vmatprep.mubr.bf16.mxu1 %v1771_v31 }
 0x26e   : > { %v1706_v37 = vadd.f32 %v1705_v36, %v8805_v19  ;;  %v1707_v38 = vpop.f32.mrb[23].mxu1  ;;  %1971 = vmatmul.mubr.bf16.gmra.mrb[48].mxu1 %v1770_v30  ;;  %v1750_v40 = vmax.f32 %v1702_v33, 0.0 }
 0x26f   : > { %v1708_v39 = vadd.f32 %v1707_v38, %v8808_v7  ;;  %v1751_v42 = vmax.f32 %v1704_v35, 0.0 }
 0x270   : > { %v1752_v41 = vmax.f32 %v1706_v37, 0.0 }
 0x271   : > { %v1753_v43 = vmax.f32 %v1708_v39, 0.0 }
 0x272   : > { %v1772_v44 = vpack.c.bf16 %v1752_v41, %v1750_v40 }
 0x273   : > { %v1773_v45 = vpack.c.bf16 %v1753_v43, %v1751_v42  ;;  %v1711_v46 = vpop.f32.mrb[24].mxu1 }
 0x274   : > { %v1712_v47 = vadd.f32 %v1711_v46, %v8805_v19  ;;  %v1713_v48 = vpop.f32.mrb[25].mxu1 }
 0x275   : > { %v1714_v49 = vadd.f32 %v1713_v48, %v8808_v7  ;;  %v1715_v50 = vpop.f32.mrb[26].mxu1  ;;  %1978 = vmatprep.mubr.bf16.mxu1 %v1773_v45 }
 0x276   : > { %v1716_v51 = vadd.f32 %v1715_v50, %v8805_v19  ;;  %v1717_v52 = vpop.f32.mrb[27].mxu1  ;;  %1979 = vmatmul.mubr.bf16.gmra.mrb[52].mxu1 %v1772_v44  ;;  %v1754_v54 = vmax.f32 %v1712_v47, 0.0 }
 0x277   : > { %v1718_v53 = vadd.f32 %v1717_v52, %v8808_v7  ;;  %v1755_v56 = vmax.f32 %v1714_v49, 0.0 }
 0x278   : > { %v1756_v55 = vmax.f32 %v1716_v51, 0.0 }
 0x279   : > { %v1757_v57 = vmax.f32 %v1718_v53, 0.0 }
 0x27a   : > { %v1774_v58 = vpack.c.bf16 %v1756_v55, %v1754_v54 }
 0x27b   : > { %v1775_v59 = vpack.c.bf16 %v1757_v57, %v1755_v56  ;;  %v1721_v60 = vpop.f32.mrb[28].mxu1 }
 0x27c   : > { %v1722_v61 = vadd.f32 %v1721_v60, %v8805_v19  ;;  %v1723_v62 = vpop.f32.mrb[29].mxu1 }
 0x27d   : > { %v1724_v63 = vadd.f32 %v1723_v62, %v8808_v7  ;;  %v1725_v0 = vpop.f32.mrb[30].mxu1  ;;  %1986 = vmatprep.mubr.bf16.mxu1 %v1775_v59 }
 0x27e   : > { %v1726_v4 = vadd.f32 %v1725_v0, %v8805_v19  ;;  %v1727_v8 = vpop.f32.mrb[31].mxu1  ;;  %1987 = vmatmul.mubr.bf16.gmra.mrb[56].mxu1 %v1774_v58  ;;  %v1758_v10 = vmax.f32 %v1722_v61, 0.0 }
 0x27f   : > { %v1728_v9 = vadd.f32 %v1727_v8, %v8808_v7  ;;  %v1759_v12 = vmax.f32 %v1724_v63, 0.0 }
 0x280   : > { %v1760_v11 = vmax.f32 %v1726_v4, 0.0 }
 0x281   : > { %v1761_v13 = vmax.f32 %v1728_v9, 0.0 }
 0x282   : > { %v1776_v14 = vpack.c.bf16 %v1760_v11, %v1758_v10 }
 0x283   : > { %v1777_v15 = vpack.c.bf16 %v1761_v13, %v1759_v12 }
 0x285   : > { %1994 = vmatprep.mubr.bf16.mxu1 %v1777_v15 }
 0x286   : > { %1995 = vmatmul.mubr.bf16.gmra.mrb[60].mxu1 %v1776_v14 }
 0x321   : > { %v6904_v17 = vpop.f32.mrb[32].mxu1 }
 0x322   : > { %v6905_v18 = vpop.f32.mrb[33].mxu1 }
 0x323   : > { %v6906_v6 = vadd.f32 %v6905_v18, %v6904_v17  ;;  %v6907_v20 = vpop.f32.mrb[34].mxu1 }
 0x324   : > { %v6908_v19 = vpop.f32.mrb[35].mxu1 }
 0x325   : > { %v2003_v21 = vmul.f32 0.0625, %v6906_v6  ;;  %v6909_v7 = vadd.f32 %v6908_v19, %v6907_v20 }
 0x327   : > { %v2004_v22 = vmul.f32 0.0625, %v6909_v7  ;;  %v8848_v23 = vsel %vm2021_vm0, %v2003_v21, -1e+30 }
 0x328   : > { %2038 = vmax.xlane.f32.xlu0 %v8848_v23 }
 0x329   : > { %v6910_v24 = vpop.f32.mrb[36].mxu1  ;;  %v8853_v27 = vsel %vm2021_vm0, %v2004_v22, -1e+30 }
 0x32a   : > { %v6911_v25 = vpop.f32.mrb[37].mxu1 }
 0x32b   : > { %v6912_v1 = vadd.f32 %v6911_v25, %v6910_v24  ;;  %v6913_v26 = vpop.f32.mrb[38].mxu1 }
 0x32c   : > { %v6914_v28 = vpop.f32.mrb[39].mxu1  ;;  %2040 = vmax.xlane.f32.xlu0 %v8853_v27 }
 0x32d   : > { %v2005_v29 = vmul.f32 0.0625, %v6912_v1  ;;  %v6915_v30 = vadd.f32 %v6914_v28, %v6913_v26 }
 0x32f   : > { %v2006_v31 = vmul.f32 0.0625, %v6915_v30  ;;  %v8858_v32 = vsel %vm2021_vm0, %v2005_v29, -1e+30 }
 0x330   : > { %2042 = vmax.xlane.f32.xlu1 %v8858_v32 }
 0x331   : > { %v6916_v33 = vpop.f32.mrb[40].mxu1  ;;  %v8863_v37 = vsel %vm2021_vm0, %v2006_v31, -1e+30 }
 0x332   : > { %v6917_v34 = vpop.f32.mrb[41].mxu1 }
 0x333   : > { %v6918_v35 = vadd.f32 %v6917_v34, %v6916_v33  ;;  %v6919_v36 = vpop.f32.mrb[42].mxu1 }
 0x334   : > { %v6920_v38 = vpop.f32.mrb[43].mxu1  ;;  %2044 = vmax.xlane.f32.xlu1 %v8863_v37 }
 0x335   : > { %v2007_v39 = vmul.f32 0.0625, %v6918_v35  ;;  %v6921_v40 = vadd.f32 %v6920_v38, %v6919_v36  ;;  %v7617_v38 = vld [vmem:[%s8930_s21] ss:$8 sps:$4 sm:$0xff]  }
 0x336   : > { %2287 = vmatpush1.bf16.msra.mxu0 %v7617_v38 }
 0x337   : > { %v2008_v41 = vmul.f32 0.0625, %v6921_v40  ;;  %v8868_v42 = vsel %vm2021_vm0, %v2007_v39, -1e+30  ;;  %v7622_v39 = vld [vmem:[%s8930_s21 + $0x14] ss:$8 sps:$4 sm:$0xff]  }
 0x338   : > { %2046 = vmax.xlane.f32.xlu0 %v8868_v42  ;;  %v7620_v40 = vld [vmem:[%s8930_s21 + $0x10] ss:$8 sps:$4 sm:$0xff]   ;;  %2288 = vmatprep.subr.bf16.mxu0 %v7622_v39  ;;  %v7640_v39 = vld [vmem:[%s8930_s21 + $0x74] ss:$8 sps:$4 sm:$0xff]  }
 0x339   : > { %v6922_v43 = vpop.f32.mrb[44].mxu1  ;;  %v8873_v44 = vsel %vm2021_vm0, %v2008_v41, -1e+30  ;;  %v7625_v41 = vld [vmem:[%s8930_s21 + $0x24] ss:$8 sps:$4 sm:$0xff]  }
 0x33a   : > { %v6923_v45 = vpop.f32.mrb[45].mxu1  ;;  %2048 = vmax.xlane.f32.xlu1 %v8873_v44  ;;  %2289 = vmatpush1.bf16.msra.mxu0 %v7620_v40  ;;  %v7638_v40 = vld [vmem:[%s8930_s21 + $0x70] ss:$8 sps:$4 sm:$0xff]  }
 0x33b   : > { %v6924_v46 = vadd.f32 %v6923_v45, %v6922_v43  ;;  %v6925_v47 = vpop.f32.mrb[46].mxu1  ;;  %v7623_v43 = vld [vmem:[%s8930_s21 + $0x20] ss:$8 sps:$4 sm:$0xff]   ;;  %2290 = vmatprep.subr.bf16.mxu0 %v7625_v41  ;;  %v7628_v45 = vld [vmem:[%s8930_s21 + $0x34] ss:$8 sps:$4 sm:$0xff]  }
 0x33c   : > { %v6926_v48 = vpop.f32.mrb[47].mxu1 }
 0x33d   : > { %v2009_v49 = vmul.f32 0.0625, %v6924_v46  ;;  %v6927_v50 = vadd.f32 %v6926_v48, %v6925_v47  ;;  %v7626_v46 = vld [vmem:[%s8930_s21 + $0x30] ss:$8 sps:$4 sm:$0xff]   ;;  %v7631_v47 = vld [vmem:[%s8930_s21 + $0x44] ss:$8 sps:$4 sm:$0xff]  }
 0x33e   : > { %2291 = vmatpush1.bf16.msra.mxu0 %v7623_v43  ;;  %v7629_v48 = vld [vmem:[%s8930_s21 + $0x40] ss:$8 sps:$4 sm:$0xff]  }
 0x33f   : > { %v2010_v51 = vmul.f32 0.0625, %v6927_v50  ;;  %v8878_v52 = vsel %vm2021_vm0, %v2009_v49, -1e+30  ;;  %2292 = vmatprep.subr.bf16.mxu0 %v7628_v45  ;;  %v7634_v49 = vld [vmem:[%s8930_s21 + $0x54] ss:$8 sps:$4 sm:$0xff]   ;;  %v8289_v45 = vmov 0  }
 0x340   : > { %2050 = vmax.xlane.f32.xlu0 %v8878_v52  ;;  %v7632_v50 = vld [vmem:[%s8930_s21 + $0x50] ss:$8 sps:$4 sm:$0xff]   ;;  %2318 = vmatprep.mubr.bf16.mxu0 %v8289_v45 }
 0x341   : > { %v6928_v53 = vpop.f32.mrb[48].mxu1  ;;  %v8883_v54 = vsel %vm2021_vm0, %v2010_v51, -1e+30 }
 0x342   : > { %v6929_v55 = vpop.f32.mrb[49].mxu1  ;;  %2052 = vmax.xlane.f32.xlu1 %v8883_v54  ;;  %2293 = vmatpush1.bf16.msra.mxu0 %v7626_v46 }
 0x343   : > { %v6930_v56 = vadd.f32 %v6929_v55, %v6928_v53  ;;  %v6931_v57 = vpop.f32.mrb[50].mxu1  ;;  %2294 = vmatprep.subr.bf16.mxu0 %v7631_v47 }
 0x344   : > { %v6932_v58 = vpop.f32.mrb[51].mxu1 }
 0x345   : > { %v2011_v59 = vmul.f32 0.0625, %v6930_v56  ;;  %v6933_v60 = vadd.f32 %v6932_v58, %v6931_v57 }
 0x346   : > { %2295 = vmatpush1.bf16.msra.mxu0 %v7629_v48 }
 0x347   : > { %v2012_v61 = vmul.f32 0.0625, %v6933_v60  ;;  %v8888_v62 = vsel %vm2021_vm0, %v2011_v59, -1e+30  ;;  %2296 = vmatprep.subr.bf16.mxu0 %v7634_v49 }
 0x348   : > { %2054 = vmax.xlane.f32.xlu0 %v8888_v62 }
 0x349   : > { %v6934_v63 = vpop.f32.mrb[52].mxu1  ;;  %v8893_v0 = vsel %vm2021_vm0, %v2012_v61, -1e+30 }
 0x34a   : > { %v6935_v4 = vpop.f32.mrb[53].mxu1  ;;  %2056 = vmax.xlane.f32.xlu1 %v8893_v0  ;;  %2297 = vmatpush1.bf16.msra.mxu0 %v7632_v50 }
 0x34b   : > { %v6936_v8 = vadd.f32 %v6935_v4, %v6934_v63  ;;  %v6937_v9 = vpop.f32.mrb[54].mxu1 }
 0x34c   : > { %v6938_v10 = vpop.f32.mrb[55].mxu1 }
 0x34d   : > { %v2013_v11 = vmul.f32 0.0625, %v6936_v8  ;;  %v6939_v12 = vadd.f32 %v6938_v10, %v6937_v9 }
 0x34f   : > { %v2014_v13 = vmul.f32 0.0625, %v6939_v12  ;;  %v8898_v14 = vsel %vm2021_vm0, %v2013_v11, -1e+30 }
 0x350   : > { %2058 = vmax.xlane.f32.xlu0 %v8898_v14 }
 0x351   : > { %v6940_v15 = vpop.f32.mrb[56].mxu1  ;;  %v8903_v17 = vsel %vm2021_vm0, %v2014_v13, -1e+30 }
 0x352   : > { %v6941_v18 = vpop.f32.mrb[57].mxu1  ;;  %2060 = vmax.xlane.f32.xlu1 %v8903_v17 }
 0x353   : > { %v6942_v6 = vadd.f32 %v6941_v18, %v6940_v15  ;;  %v6943_v20 = vpop.f32.mrb[58].mxu1 }
 0x354   : > { %v6944_v19 = vpop.f32.mrb[59].mxu1 }
 0x355   : > { %v2015_v21 = vmul.f32 0.0625, %v6942_v6  ;;  %v6945_v7 = vadd.f32 %v6944_v19, %v6943_v20 }
 0x357   : > { %v2016_v22 = vmul.f32 0.0625, %v6945_v7  ;;  %v8908_v24 = vsel %vm2021_vm0, %v2015_v21, -1e+30 }
 0x358   : > { %2062 = vmax.xlane.f32.xlu0 %v8908_v24 }
 0x359   : > { %v6946_v25 = vpop.f32.mrb[60].mxu1  ;;  %v8913_v1 = vsel %vm2021_vm0, %v2016_v22, -1e+30 }
 0x35a   : > { %v6947_v26 = vpop.f32.mrb[61].mxu1  ;;  %2064 = vmax.xlane.f32.xlu1 %v8913_v1 }
 0x35b   : > { %v6948_v28 = vadd.f32 %v6947_v26, %v6946_v25  ;;  %v6949_v29 = vpop.f32.mrb[62].mxu1 }
 0x35c   : > { %v6950_v30 = vpop.f32.mrb[63].mxu1 }
 0x35d   : > { %v2017_v31 = vmul.f32 0.0625, %v6948_v28  ;;  %v6951_v33 = vadd.f32 %v6950_v30, %v6949_v29  ;;  %v7637_v30 = vld [vmem:[%s8930_s21 + $0x64] ss:$8 sps:$4 sm:$0xff]  }
 0x35e   : > { %2298 = vmatprep.subr.bf16.mxu0 %v7637_v30  ;;  %v7701_v30 = vld [vmem:[%s10590_s7 + $0x140] ss:$16 sps:$4 sm:$0xff]  }
 0x35f   : > { %v2018_v34 = vmul.f32 0.0625, %v6951_v33  ;;  %v8918_v35 = vsel %vm2021_vm0, %v2017_v31, -1e+30  ;;  %v7635_v33 = vld [vmem:[%s8930_s21 + $0x60] ss:$8 sps:$4 sm:$0xff]  }
 0x360   : > { %2066 = vmax.xlane.f32.xlu0 %v8918_v35  ;;  %2299 = vmatpush1.bf16.msra.mxu0 %v7635_v33  ;;  %v7707_v33 = vld [vmem:[%s10590_s7 + $0x160] ss:$16 sps:$4 sm:$0xff]  }
 0x361   : > { %v8923_v36 = vsel %vm2021_vm0, %v2018_v34, -1e+30  ;;  %2300 = vmatprep.subr.bf16.mxu0 %v7640_v39 }
 0x362   : > { %2068 = vmax.xlane.f32.xlu1 %v8923_v36 }
 0x364   : > { %2301 = vmatpush1.bf16.msra.mxu0 %v7638_v40  ;;  %v7727_v40 = vld [vmem:[%s10590_s7 + $0x1c4] ss:$16 sps:$4 sm:$0xff]  }
 0x3b5   : > { %v2039_v51 = vpop.xlane.xlu0 %2038 }
 0x3b6   : > { %v2070_v53 = vsub.f32 %v8848_v23, %v2039_v51 }
 0x3b8   : > { %v2086_v55 = vmul.f32 1.442695, %v2070_v53 }
 0x3b9   : > { %v2041_v56 = vpop.xlane.xlu0 %2040 }
 0x3ba   : > { %8153 = vpow2.f32 %v2086_v55  ;;  %v2071_v57 = vsub.f32 %v8853_v27, %v2041_v56 }
 0x3bc   : > { %v2088_v58 = vmul.f32 1.442695, %v2071_v57 }
 0x3bd   : > { %v2043_v59 = vpop.xlane.xlu1 %2042 }
 0x3be   : > { %8155 = vpow2.f32 %v2088_v58  ;;  %v2072_v60 = vsub.f32 %v8858_v32, %v2043_v59 }
 0x3c0   : > { %v2090_v61 = vmul.f32 1.442695, %v2072_v60 }
 0x3c1   : > { %v2045_v63 = vpop.xlane.xlu1 %2044 }
 0x3c2   : > { %8157 = vpow2.f32 %v2090_v61  ;;  %v2073_v4 = vsub.f32 %v8863_v37, %v2045_v63  ;;  %v7643_v63 = vld [vmem:[%s10590_s7 + $0x4] ss:$16 sps:$4 sm:$0xff]  }
 0x3c3   : > { %2821 = vmatprep.subr.bf16.mxu1 %v7643_v63 }
 0x3c4   : > { %v8948_v8 = vpop.eup %8153  ;;  %v2092_v9 = vmul.f32 1.442695, %v2073_v4  ;;  %v7646_v4 = vld [vmem:[%s10590_s7 + $0xc] ss:$16 sps:$4 sm:$0xff]  }
 0x3c5   : > { %2118 = vadd.xlane.f32.xlu0 %v8948_v8  ;;  %v2047_v23 = vpop.xlane.xlu0 %2046  ;;  %2934 = vmatprep.subr.bf16.mxu0 %v7646_v4 }
 0x3c6   : > { %8159 = vpow2.f32 %v2092_v9  ;;  %v2074_v10 = vsub.f32 %v8868_v42, %v2047_v23  ;;  %v7649_v9 = vld [vmem:[%s10590_s7 + $0x24] ss:$16 sps:$4 sm:$0xff]   ;;  %v7647_v23 = vld [vmem:[%s10590_s7 + $0x20] ss:$16 sps:$4 sm:$0xff]  }
 0x3c7   : > { %v2049_v27 = vpop.xlane.xlu1 %2048 }
 0x3c8   : > { %v8952_v11 = vpop.eup %8155  ;;  %v2094_v12 = vmul.f32 1.442695, %v2074_v10  ;;  %v2075_v32 = vsub.f32 %v8873_v44, %v2049_v27  ;;  %v7655_v10 = vld [vmem:[%s10590_s7 + $0x44] ss:$16 sps:$4 sm:$0xff]   ;;  %v7653_v27 = vld [vmem:[%s10590_s7 + $0x40] ss:$16 sps:$4 sm:$0xff]  }
 0x3c9   : > { %2120 = vadd.xlane.f32.xlu1 %v8952_v11 }
 0x3ca   : > { %8161 = vpow2.f32 %v2094_v12  ;;  %v2096_v13 = vmul.f32 1.442695, %v2075_v32  ;;  %v7661_v12 = vld [vmem:[%s10590_s7 + $0x64] ss:$16 sps:$4 sm:$0xff]   ;;  %v7659_v32 = vld [vmem:[%s10590_s7 + $0x60] ss:$16 sps:$4 sm:$0xff]  }
 0x3cc   : > { %v8956_v37 = vpop.eup %8157  ;;  %8163 = vpow2.f32 %v2096_v13  ;;  %v7667_v13 = vld [vmem:[%s10590_s7 + $0x84] ss:$16 sps:$4 sm:$0xff]  }
 0x3cd   : > { %2122 = vadd.xlane.f32.xlu0 %v8956_v37  ;;  %v2051_v15 = vpop.xlane.xlu0 %2050 }
 0x3ce   : > { %v2076_v18 = vsub.f32 %v8878_v52, %v2051_v15  ;;  %v7665_v15 = vld [vmem:[%s10590_s7 + $0x80] ss:$16 sps:$4 sm:$0xff]  }
 0x3cf   : > { %v2053_v6 = vpop.xlane.xlu1 %2052 }
 0x3d0   : > { %v8960_v42 = vpop.eup %8159  ;;  %v2098_v20 = vmul.f32 1.442695, %v2076_v18  ;;  %v2077_v19 = vsub.f32 %v8883_v54, %v2053_v6  ;;  %v7673_v18 = vld [vmem:[%s10590_s7 + $0xa4] ss:$16 sps:$4 sm:$0xff]   ;;  %v7671_v6 = vld [vmem:[%s10590_s7 + $0xa0] ss:$16 sps:$4 sm:$0xff]  }
 0x3d1   : > { %2124 = vadd.xlane.f32.xlu1 %v8960_v42 }
 0x3d2   : > { %8165 = vpow2.f32 %v2098_v20  ;;  %v2100_v44 = vmul.f32 1.442695, %v2077_v19  ;;  %v7679_v20 = vld [vmem:[%s10590_s7 + $0xc4] ss:$16 sps:$4 sm:$0xff]   ;;  %v7677_v19 = vld [vmem:[%s10590_s7 + $0xc0] ss:$16 sps:$4 sm:$0xff]  }
 0x3d4   : > { %v8964_v21 = vpop.eup %8161  ;;  %8167 = vpow2.f32 %v2100_v44  ;;  %v7685_v44 = vld [vmem:[%s10590_s7 + $0xe4] ss:$16 sps:$4 sm:$0xff]  }
 0x3d5   : > { %2126 = vadd.xlane.f32.xlu0 %v8964_v21  ;;  %v2055_v7 = vpop.xlane.xlu0 %2054 }
 0x3d6   : > { %v8967_v22 = vpop.eup %8163  ;;  %v2078_v52 = vsub.f32 %v8888_v62, %v2055_v7  ;;  %v7683_v7 = vld [vmem:[%s10590_s7 + $0xe0] ss:$16 sps:$4 sm:$0xff]  }
 0x3d7   : > { %v2057_v25 = vpop.xlane.xlu1 %2056  ;;  %2128 = vadd.xlane.f32.xlu1 %v8967_v22 }
 0x3d8   : > { %v2102_v54 = vmul.f32 1.442695, %v2078_v52  ;;  %v2079_v26 = vsub.f32 %v8893_v0, %v2057_v25  ;;  %v7691_v52 = vld [vmem:[%s10590_s7 + $0x104] ss:$16 sps:$4 sm:$0xff]   ;;  %v7689_v25 = vld [vmem:[%s10590_s7 + $0x100] ss:$16 sps:$4 sm:$0xff]  }
 0x3da   : > { %8169 = vpow2.f32 %v2102_v54  ;;  %v2104_v28 = vmul.f32 1.442695, %v2079_v26  ;;  %v7697_v54 = vld [vmem:[%s10590_s7 + $0x124] ss:$16 sps:$4 sm:$0xff]   ;;  %v7695_v26 = vld [vmem:[%s10590_s7 + $0x120] ss:$16 sps:$4 sm:$0xff]  }
 0x3dc   : > { %v8972_v29 = vpop.eup %8165  ;;  %8171 = vpow2.f32 %v2104_v28  ;;  %v7703_v28 = vld [vmem:[%s10590_s7 + $0x144] ss:$16 sps:$4 sm:$0xff]  }
 0x3dd   : > { %2130 = vadd.xlane.f32.xlu0 %v8972_v29  ;;  %v2059_v31 = vpop.xlane.xlu0 %2058 }
 0x3de   : > { %v8977_v34 = vpop.eup %8167  ;;  %v2080_v62 = vsub.f32 %v8898_v14, %v2059_v31  ;;  %v7709_v31 = vld [vmem:[%s10590_s7 + $0x164] ss:$16 sps:$4 sm:$0xff]  }
 0x3df   : > { %v2061_v38 = vpop.xlane.xlu1 %2060  ;;  %2132 = vadd.xlane.f32.xlu1 %v8977_v34 }
 0x3e0   : > { %v2106_v0 = vmul.f32 1.442695, %v2080_v62  ;;  %v2081_v16 = vsub.f32 %v8903_v17, %v2061_v38  ;;  %v7715_v62 = vld [vmem:[%s10590_s7 + $0x184] ss:$16 sps:$4 sm:$0xff]   ;;  %v7713_v38 = vld [vmem:[%s10590_s7 + $0x180] ss:$16 sps:$4 sm:$0xff]  }
 0x3e2   : > { %8173 = vpow2.f32 %v2106_v0  ;;  %v2108_v41 = vmul.f32 1.442695, %v2081_v16  ;;  %v7721_v0 = vld [vmem:[%s10590_s7 + $0x1a4] ss:$16 sps:$4 sm:$0xff]   ;;  %v7719_v16 = vld [vmem:[%s10590_s7 + $0x1a0] ss:$16 sps:$4 sm:$0xff]  }
 0x3e4   : > { %v8984_v43 = vpop.eup %8169  ;;  %8175 = vpow2.f32 %v2108_v41  ;;  %v7725_v41 = vld [vmem:[%s10590_s7 + $0x1c0] ss:$16 sps:$4 sm:$0xff]  }
 0x3e5   : > { %2134 = vadd.xlane.f32.xlu0 %v8984_v43  ;;  %v2063_v14 = vpop.xlane.xlu0 %2062 }
 0x3e6   : > { %v8988_v46 = vpop.eup %8171  ;;  %v2082_v47 = vsub.f32 %v8908_v24, %v2063_v14 }
 0x3e7   : > { %v2065_v17 = vpop.xlane.xlu1 %2064  ;;  %2136 = vadd.xlane.f32.xlu1 %v8988_v46 }
 0x3e8   : > { %v2110_v48 = vmul.f32 1.442695, %v2082_v47  ;;  %v2083_v49 = vsub.f32 %v8913_v1, %v2065_v17 }
 0x3ea   : > { %8177 = vpow2.f32 %v2110_v48  ;;  %v2112_v50 = vmul.f32 1.442695, %v2083_v49 }
 0x3ec   : > { %v8993_v51 = vpop.eup %8173  ;;  %8179 = vpow2.f32 %v2112_v50 }
 0x3ed   : > { %2138 = vadd.xlane.f32.xlu0 %v8993_v51  ;;  %v2067_v53 = vpop.xlane.xlu0 %2066 }
 0x3ee   : > { %v8996_v55 = vpop.eup %8175  ;;  %v2084_v56 = vsub.f32 %v8918_v35, %v2067_v53 }
 0x3ef   : > { %v2069_v57 = vpop.xlane.xlu1 %2068  ;;  %2140 = vadd.xlane.f32.xlu1 %v8996_v55 }
 0x3f0   : > { %v2114_v24 = vmul.f32 1.442695, %v2084_v56  ;;  %v2085_v58 = vsub.f32 %v8923_v36, %v2069_v57  ;;  %v7641_v36 = vld [vmem:[%s10590_s7] ss:$16 sps:$4 sm:$0xff]   ;;  %v7644_v57 = vld [vmem:[%s10590_s7 + $0x8] ss:$16 sps:$4 sm:$0xff]  }
 0x3f1   : > { %2822 = vmatpush1.bf16.msra.mxu1 %v7641_v36 }
 0x3f2   : > { %8181 = vpow2.f32 %v2114_v24  ;;  %v2116_v1 = vmul.f32 1.442695, %v2085_v58  ;;  %2823 = vmatprep.subr.bf16.mxu1 %v7649_v9 }
 0x3f4   : > { %v9001_v59 = vpop.eup %8177  ;;  %8183 = vpow2.f32 %v2116_v1  ;;  %v7652_v1 = vld [vmem:[%s10590_s7 + $0x2c] ss:$16 sps:$4 sm:$0xff]  }
 0x3f5   : > { %2142 = vadd.xlane.f32.xlu0 %v9001_v59  ;;  %2824 = vmatpush1.bf16.msra.mxu1 %v7647_v23 }
 0x3f6   : > { %v9004_v60 = vpop.eup %8179  ;;  %2825 = vmatprep.subr.bf16.mxu1 %v7655_v10  ;;  %v7656_v10 = vld [vmem:[%s10590_s7 + $0x48] ss:$16 sps:$4 sm:$0xff]  }
 0x3f7   : > { %2144 = vadd.xlane.f32.xlu1 %v9004_v60 }
 0x3f9   : > { %2826 = vmatpush1.bf16.msra.mxu1 %v7653_v27 }
 0x3fa   : > { %2827 = vmatprep.subr.bf16.mxu1 %v7661_v12 }
 0x3fc   : > { %v9007_v61 = vpop.eup %8181 }
 0x3fd   : > { %2146 = vadd.xlane.f32.xlu0 %v9007_v61  ;;  %2828 = vmatpush1.bf16.msra.mxu1 %v7659_v32  ;;  %v7664_v32 = vld [vmem:[%s10590_s7 + $0x6c] ss:$16 sps:$4 sm:$0xff]  }
 0x3fe   : > { %v9010_v35 = vpop.eup %8183  ;;  %2829 = vmatprep.subr.bf16.mxu1 %v7667_v13 }
 0x3ff   : > { %2148 = vadd.xlane.f32.xlu1 %v9010_v35 }
 0x401   : > { %2830 = vmatpush1.bf16.msra.mxu1 %v7665_v15 }
 0x402   : > { %2831 = vmatprep.subr.bf16.mxu1 %v7673_v18  ;;  %v7670_v18 = vld [vmem:[%s10590_s7 + $0x8c] ss:$16 sps:$4 sm:$0xff]  }
 0x405   : > { %2832 = vmatpush1.bf16.msra.mxu1 %v7671_v6 }
 0x406   : > { %2833 = vmatprep.subr.bf16.mxu1 %v7679_v20 }
 0x409   : > { %2834 = vmatpush1.bf16.msra.mxu1 %v7677_v19  ;;  %v7668_v19 = vld [vmem:[%s10590_s7 + $0x88] ss:$16 sps:$4 sm:$0xff]  }
 0x40a   : > { %2835 = vmatprep.subr.bf16.mxu1 %v7685_v44 }
 0x40d   : > { %2836 = vmatpush1.bf16.msra.mxu1 %v7683_v7 }
 0x40e   : > { %2837 = vmatprep.subr.bf16.mxu1 %v7691_v52 }
 0x411   : > { %2838 = vmatpush1.bf16.msra.mxu1 %v7689_v25 }
 0x412   : > { %2839 = vmatprep.subr.bf16.mxu1 %v7697_v54 }
 0x415   : > { %2840 = vmatpush1.bf16.msra.mxu1 %v7695_v26  ;;  %v7682_v26 = vld [vmem:[%s10590_s7 + $0xcc] ss:$16 sps:$4 sm:$0xff]  }
 0x416   : > { %2841 = vmatprep.subr.bf16.mxu1 %v7703_v28 }
 0x419   : > { %2842 = vmatpush1.bf16.msra.mxu1 %v7701_v30 }
 0x41a   : > { %2843 = vmatprep.subr.bf16.mxu1 %v7709_v31  ;;  %v7680_v31 = vld [vmem:[%s10590_s7 + $0xc8] ss:$16 sps:$4 sm:$0xff]  }
 0x41d   : > { %2844 = vmatpush1.bf16.msra.mxu1 %v7707_v33 }
 0x41e   : > { %2845 = vmatprep.subr.bf16.mxu1 %v7715_v62 }
 0x421   : > { %2846 = vmatpush1.bf16.msra.mxu1 %v7713_v38 }
 0x422   : > { %2847 = vmatprep.subr.bf16.mxu1 %v7721_v0 }
 0x425   : > { %2848 = vmatpush1.bf16.msra.mxu1 %v7719_v16 }
 0x426   : > { %2849 = vmatprep.subr.bf16.mxu1 %v7727_v40 }
 0x429   : > { %2850 = vmatpush1.bf16.msra.mxu1 %v7725_v41 }
 0x452   : > { %v2119_v39 = vpop.xlane.xlu0 %2118 }
 0x453   : > { %8185 = vrcp.f32 %v2119_v39  ;;  %v7694_v39 = vld [vmem:[%s10590_s7 + $0x10c] ss:$16 sps:$4 sm:$0xff]  }
 0x456   : > { %v2121_v14 = vpop.xlane.xlu1 %2120 }
 0x457   : > { %8187 = vrcp.f32 %v2121_v14  ;;  %v7692_v14 = vld [vmem:[%s10590_s7 + $0x108] ss:$16 sps:$4 sm:$0xff]  }
 0x45a   : > { %v2123_v47 = vpop.xlane.xlu0 %2122 }
 0x45b   : > { %8189 = vrcp.f32 %v2123_v47 }
 0x45d   : > { %v8186_v48 = vpop.eup %8185 }
 0x45e   : > { %v2125_v17 = vpop.xlane.xlu1 %2124  ;;  %v2166_v50 = vmul.f32 %v8186_v48, %v8948_v8  ;;  %v7650_v8 = vld [vmem:[%s10590_s7 + $0x28] ss:$16 sps:$4 sm:$0xff]  }
 0x45f   : > { %8191 = vrcp.f32 %v2125_v17 }
 0x461   : > { %v8188_v49 = vpop.eup %8187 }
 0x462   : > { %v2167_v53 = vmul.f32 %v8188_v49, %v8952_v11  ;;  %v2127_v56 = vpop.xlane.xlu0 %2126  ;;  %v7658_v11 = vld [vmem:[%s10590_s7 + $0x4c] ss:$16 sps:$4 sm:$0xff]  }
 0x463   : > { %8193 = vrcp.f32 %v2127_v56 }
 0x464   : > { %v2129_v24 = vpop.xlane.xlu1 %2128  ;;  %v2182_v58 = vpack.c.bf16 %v2167_v53, %v2166_v50  ;;  %v7706_v53 = vld [vmem:[%s10590_s7 + $0x14c] ss:$16 sps:$4 sm:$0xff]  }
 0x465   : > { %8195 = vrcp.f32 %v2129_v24  ;;  %v8190_v36 = vpop.eup %8189  ;;  %v7704_v24 = vld [vmem:[%s10590_s7 + $0x148] ss:$16 sps:$4 sm:$0xff]  }
 0x466   : > { %2319 = vmatmul.mubr.bf16.vlgmr.msra.gmra.mrb[32].mxu0 %v2182_v58  ;;  %v2168_v9 = vmul.f32 %v8190_v36, %v8956_v37  ;;  %v7662_v37 = vld [vmem:[%s10590_s7 + $0x68] ss:$16 sps:$4 sm:$0xff]  }
 0x467   : > { %2328 = vmatprep.mubr.bf16.mxu0 %v8289_v45  ;;  %2935 = vmatpush1.bf16.msra.mxu0 %v7644_v57 }
 0x468   : > { %2936 = vmatprep.subr.bf16.mxu0 %v7652_v1 }
 0x469   : > { %v8192_v63 = vpop.eup %8191 }
 0x46a   : > { %v2131_v4 = vpop.xlane.xlu0 %2130  ;;  %v2169_v23 = vmul.f32 %v8192_v63, %v8960_v42  ;;  %v7718_v63 = vld [vmem:[%s10590_s7 + $0x18c] ss:$16 sps:$4 sm:$0xff]  }
 0x46b   : > { %2937 = vmatpush1.bf16.msra.mxu0 %v7650_v8  ;;  %8197 = vrcp.f32 %v2131_v4 }
 0x46c   : > { %v2133_v27 = vpop.xlane.xlu1 %2132  ;;  %v2183_v12 = vpack.c.bf16 %v2169_v23, %v2168_v9  ;;  %2938 = vmatprep.subr.bf16.mxu0 %v7658_v11  ;;  %v7716_v9 = vld [vmem:[%s10590_s7 + $0x188] ss:$16 sps:$4 sm:$0xff]  }
 0x46d   : > { %8199 = vrcp.f32 %v2133_v27  ;;  %v8194_v13 = vpop.eup %8193 }
 0x46e   : > { %2329 = vmatmul.mubr.bf16.gmra.mrb[36].mxu0 %v2183_v12  ;;  %v2170_v20 = vmul.f32 %v8194_v13, %v8964_v21  ;;  %v7674_v21 = vld [vmem:[%s10590_s7 + $0xa8] ss:$16 sps:$4 sm:$0xff]  }
 0x46f   : > { %v8196_v15 = vpop.eup %8195  ;;  %2338 = vmatprep.mubr.bf16.mxu0 %v8289_v45  ;;  %2939 = vmatpush1.bf16.msra.mxu0 %v7656_v10  ;;  %v7724_v10 = vld [vmem:[%s10590_s7 + $0x1ac] ss:$16 sps:$4 sm:$0xff]  }
 0x470   : > { %v2171_v42 = vmul.f32 %v8196_v15, %v8967_v22  ;;  %2940 = vmatprep.subr.bf16.mxu0 %v7664_v32  ;;  %v7676_v22 = vld [vmem:[%s10590_s7 + $0xac] ss:$16 sps:$4 sm:$0xff]   ;;  %v7728_v15 = vld [vmem:[%s10590_s7 + $0x1c8] ss:$16 sps:$4 sm:$0xff]  }
 0x471   : > { %v7730_v32 = vld [vmem:[%s10590_s7 + $0x1cc] ss:$16 sps:$4 sm:$0xff]  }
 0x472   : > { %v2135_v6 = vpop.xlane.xlu0 %2134  ;;  %v2184_v7 = vpack.c.bf16 %v2171_v42, %v2170_v20  ;;  %v7734_v42 = vld [vmem:[%s10590_s7 + $0x1e8] ss:$16 sps:$4 sm:$0xff]  }
 0x473   : > { %2941 = vmatpush1.bf16.msra.mxu0 %v7662_v37  ;;  %8201 = vrcp.f32 %v2135_v6  ;;  %v7736_v37 = vld [vmem:[%s10590_s7 + $0x1ec] ss:$16 sps:$4 sm:$0xff]  }
 0x474   : > { %v2137_v44 = vpop.xlane.xlu1 %2136  ;;  %2942 = vmatprep.subr.bf16.mxu0 %v7670_v18  ;;  %v7739_v18 = vld [vmem:[%s10593_s10 + $0x4] ss:$16 sps:$4 sm:$0xff]   ;;  %v7742_v6 = vld [vmem:[%s10593_s10 + $0xc] ss:$16 sps:$4 sm:$0xff]  }
 0x475   : > { %8203 = vrcp.f32 %v2137_v44  ;;  %v8198_v52 = vpop.eup %8197 }
 0x476   : > { %2339 = vmatmul.mubr.bf16.gmra.mrb[40].mxu0 %v2184_v7  ;;  %v2172_v30 = vmul.f32 %v8198_v52, %v8972_v29  ;;  %v7686_v29 = vld [vmem:[%s10590_s7 + $0xe8] ss:$16 sps:$4 sm:$0xff]  }
 0x477   : > { %v8200_v25 = vpop.eup %8199  ;;  %2348 = vmatprep.mubr.bf16.mxu0 %v8289_v45  ;;  %2943 = vmatpush1.bf16.msra.mxu0 %v7668_v19 }
 0x478   : > { %v2173_v54 = vmul.f32 %v8200_v25, %v8977_v34  ;;  %2944 = vmatprep.subr.bf16.mxu0 %v7676_v22  ;;  %v7688_v34 = vld [vmem:[%s10590_s7 + $0xec] ss:$16 sps:$4 sm:$0xff]   ;;  %v7737_v25 = vld [vmem:[%s10593_s10] ss:$16 sps:$4 sm:$0xff]  }
 0x47a   : > { %v2139_v28 = vpop.xlane.xlu0 %2138  ;;  %v2185_v62 = vpack.c.bf16 %v2173_v54, %v2172_v30  ;;  %v7745_v54 = vld [vmem:[%s10593_s10 + $0x24] ss:$16 sps:$4 sm:$0xff]   ;;  %v7743_v30 = vld [vmem:[%s10593_s10 + $0x20] ss:$16 sps:$4 sm:$0xff]  }
 0x47b   : > { %2945 = vmatpush1.bf16.msra.mxu0 %v7674_v21  ;;  %8205 = vrcp.f32 %v2139_v28  ;;  %v7740_v21 = vld [vmem:[%s10593_s10 + $0x8] ss:$16 sps:$4 sm:$0xff]  }
 0x47c   : > { %v2141_v33 = vpop.xlane.xlu1 %2140  ;;  %2946 = vmatprep.subr.bf16.mxu0 %v7682_v26  ;;  %v7748_v26 = vld [vmem:[%s10593_s10 + $0x2c] ss:$16 sps:$4 sm:$0xff]  }
 0x47d   : > { %8207 = vrcp.f32 %v2141_v33  ;;  %v8202_v38 = vpop.eup %8201 }
 0x47e   : > { %2349 = vmatmul.mubr.bf16.gmra.mrb[44].mxu0 %v2185_v62  ;;  %v2174_v41 = vmul.f32 %v8202_v38, %v8984_v43  ;;  %v7698_v43 = vld [vmem:[%s10590_s7 + $0x128] ss:$16 sps:$4 sm:$0xff]   ;;  %v7751_v62 = vld [vmem:[%s10593_s10 + $0x44] ss:$16 sps:$4 sm:$0xff]  }
 0x47f   : > { %v8204_v0 = vpop.eup %8203  ;;  %2358 = vmatprep.mubr.bf16.mxu0 %v8289_v45  ;;  %2947 = vmatpush1.bf16.msra.mxu0 %v7680_v31  ;;  %v7746_v31 = vld [vmem:[%s10593_s10 + $0x28] ss:$16 sps:$4 sm:$0xff]  }
 0x480   : > { %v2175_v16 = vmul.f32 %v8204_v0, %v8988_v46  ;;  %2948 = vmatprep.subr.bf16.mxu0 %v7688_v34  ;;  %v7700_v46 = vld [vmem:[%s10590_s7 + $0x12c] ss:$16 sps:$4 sm:$0xff]  }
 0x481   : > { %v7754_v34 = vld [vmem:[%s10593_s10 + $0x4c] ss:$16 sps:$4 sm:$0xff]  }
 0x482   : > { %v2143_v40 = vpop.xlane.xlu0 %2142  ;;  %v2186_v17 = vpack.c.bf16 %v2175_v16, %v2174_v41  ;;  %v7757_v41 = vld [vmem:[%s10593_s10 + $0x64] ss:$16 sps:$4 sm:$0xff]  }
 0x483   : > { %2949 = vmatpush1.bf16.msra.mxu0 %v7686_v29  ;;  %8209 = vrcp.f32 %v2143_v40  ;;  %v7752_v40 = vld [vmem:[%s10593_s10 + $0x48] ss:$16 sps:$4 sm:$0xff]  }
 0x484   : > { %v2145_v47 = vpop.xlane.xlu1 %2144  ;;  %2950 = vmatprep.subr.bf16.mxu0 %v7694_v39  ;;  %v7749_v39 = vld [vmem:[%s10593_s10 + $0x40] ss:$16 sps:$4 sm:$0xff]  }
 0x485   : > { %8211 = vrcp.f32 %v2145_v47  ;;  %v8206_v48 = vpop.eup %8205 }
 0x486   : > { %2359 = vmatmul.mubr.bf16.gmra.mrb[48].mxu0 %v2186_v17  ;;  %v2176_v57 = vmul.f32 %v8206_v48, %v8993_v51  ;;  %v7710_v51 = vld [vmem:[%s10590_s7 + $0x168] ss:$16 sps:$4 sm:$0xff]   ;;  %v7755_v17 = vld [vmem:[%s10593_s10 + $0x60] ss:$16 sps:$4 sm:$0xff]  }
 0x487   : > { %v8208_v49 = vpop.eup %8207  ;;  %2368 = vmatprep.mubr.bf16.mxu0 %v8289_v45  ;;  %2951 = vmatpush1.bf16.msra.mxu0 %v7692_v14  ;;  %v7760_v14 = vld [vmem:[%s10593_s10 + $0x6c] ss:$16 sps:$4 sm:$0xff]  }
 0x488   : > { %v2177_v50 = vmul.f32 %v8208_v49, %v8996_v55  ;;  %2952 = vmatprep.subr.bf16.mxu0 %v7700_v46  ;;  %v7712_v55 = vld [vmem:[%s10590_s7 + $0x16c] ss:$16 sps:$4 sm:$0xff]   ;;  %v7758_v46 = vld [vmem:[%s10593_s10 + $0x68] ss:$16 sps:$4 sm:$0xff]   ;;  %v7763_v49 = vld [vmem:[%s10593_s10 + $0x84] ss:$16 sps:$4 sm:$0xff]  }
 0x48a   : > { %v2147_v56 = vpop.xlane.xlu0 %2146  ;;  %v2187_v1 = vpack.c.bf16 %v2177_v50, %v2176_v57 }
 0x48b   : > { %2953 = vmatpush1.bf16.msra.mxu0 %v7698_v43  ;;  %8213 = vrcp.f32 %v2147_v56  ;;  %v7766_v43 = vld [vmem:[%s10593_s10 + $0x8c] ss:$16 sps:$4 sm:$0xff]  }
 0x48c   : > { %v2149_v58 = vpop.xlane.xlu1 %2148  ;;  %2954 = vmatprep.subr.bf16.mxu0 %v7706_v53 }
 0x48d   : > { %8215 = vrcp.f32 %v2149_v58  ;;  %v8210_v36 = vpop.eup %8209  ;;  %v7764_v58 = vld [vmem:[%s10593_s10 + $0x88] ss:$16 sps:$4 sm:$0xff]  }
 0x48e   : > { %2369 = vmatmul.mubr.bf16.gmra.mrb[52].mxu0 %v2187_v1  ;;  %v2178_v4 = vmul.f32 %v8210_v36, %v9001_v59  ;;  %v7722_v59 = vld [vmem:[%s10590_s7 + $0x1a8] ss:$16 sps:$4 sm:$0xff]   ;;  %v7769_v1 = vld [vmem:[%s10593_s10 + $0xa4] ss:$16 sps:$4 sm:$0xff]  }
 0x48f   : > { %v8212_v8 = vpop.eup %8211  ;;  %2378 = vmatprep.mubr.bf16.mxu0 %v8289_v45  ;;  %2955 = vmatpush1.bf16.msra.mxu0 %v7704_v24  ;;  %v7761_v24 = vld [vmem:[%s10593_s10 + $0x80] ss:$16 sps:$4 sm:$0xff]  }
 0x490   : > { %v2179_v11 = vmul.f32 %v8212_v8, %v9004_v60  ;;  %2956 = vmatprep.subr.bf16.mxu0 %v7712_v55  ;;  %v7772_v55 = vld [vmem:[%s10593_s10 + $0xac] ss:$16 sps:$4 sm:$0xff]   ;;  %v7767_v8 = vld [vmem:[%s10593_s10 + $0xa0] ss:$16 sps:$4 sm:$0xff]  }
 0x492   : > { %v2188_v23 = vpack.c.bf16 %v2179_v11, %v2178_v4  ;;  %v7778_v4 = vld [vmem:[%s10593_s10 + $0xcc] ss:$16 sps:$4 sm:$0xff]  }
 0x493   : > { %2957 = vmatpush1.bf16.msra.mxu0 %v7710_v51  ;;  %v7770_v51 = vld [vmem:[%s10593_s10 + $0xa8] ss:$16 sps:$4 sm:$0xff]  }
 0x494   : > { %2958 = vmatprep.subr.bf16.mxu0 %v7718_v63  ;;  %v7775_v63 = vld [vmem:[%s10593_s10 + $0xc4] ss:$16 sps:$4 sm:$0xff]  }
 0x495   : > { %v8214_v27 = vpop.eup %8213 }
 0x496   : > { %2379 = vmatmul.mubr.bf16.gmra.mrb[56].mxu0 %v2188_v23  ;;  %v2180_v13 = vmul.f32 %v8214_v27, %v9007_v61  ;;  %v7731_v61 = vld [vmem:[%s10590_s7 + $0x1e0] ss:$16 sps:$4 sm:$0xff]  }
 0x497   : > { %v8216_v60 = vpop.eup %8215  ;;  %2388 = vmatprep.mubr.bf16.mxu0 %v8289_v45  ;;  %2959 = vmatpush1.bf16.msra.mxu0 %v7716_v9 }
 0x498   : > { %v2181_v12 = vmul.f32 %v8216_v60, %v9010_v35  ;;  %2960 = vmatprep.subr.bf16.mxu0 %v7724_v10  ;;  %v7733_v35 = vld [vmem:[%s10590_s7 + $0x1e4] ss:$16 sps:$4 sm:$0xff]   ;;  %v7773_v60 = vld [vmem:[%s10593_s10 + $0xc0] ss:$16 sps:$4 sm:$0xff]  }
 0x499   : > { %2851 = vmatprep.subr.bf16.mxu1 %v7733_v35 }
 0x49a   : > { %v2189_v45 = vpack.c.bf16 %v2181_v12, %v2180_v13  ;;  %2852 = vmatpush1.bf16.msra.mxu1 %v7731_v61  ;;  %v7781_v12 = vld [vmem:[%s10593_s10 + $0xe4] ss:$16 sps:$4 sm:$0xff]   ;;  %v7790_v61 = vld [vmem:[%s10593_s10 + $0x10c] ss:$16 sps:$4 sm:$0xff]  }
 0x49b   : > { %2961 = vmatpush1.bf16.msra.mxu0 %v7722_v59  ;;  %4039 = vmatprep.subr.bf16.mxu1 %v7739_v18  ;;  %v7776_v59 = vld [vmem:[%s10593_s10 + $0xc8] ss:$16 sps:$4 sm:$0xff]  }
 0x49c   : > { %2962 = vmatprep.subr.bf16.mxu0 %v7730_v32  ;;  %v7784_v32 = vld [vmem:[%s10593_s10 + $0xec] ss:$16 sps:$4 sm:$0xff]  }
 0x49e   : > { %2389 = vmatmul.mubr.bf16.gmra.mrb[60].mxu0 %v2189_v45  ;;  %v7782_v45 = vld [vmem:[%s10593_s10 + $0xe8] ss:$16 sps:$4 sm:$0xff]  }
 0x49f   : > { %2963 = vmatpush1.bf16.msra.mxu0 %v7728_v15  ;;  %v7779_v15 = vld [vmem:[%s10593_s10 + $0xe0] ss:$16 sps:$4 sm:$0xff]  }
 0x4a0   : > { %2964 = vmatprep.subr.bf16.mxu0 %v7736_v37  ;;  %v7787_v37 = vld [vmem:[%s10593_s10 + $0x104] ss:$16 sps:$4 sm:$0xff]  }
 0x4a3   : > { %2965 = vmatpush1.bf16.msra.mxu0 %v7734_v42 }
 0x4a4   : > { %4265 = vmatprep.subr.bf16.mxu0 %v7742_v6 }
 0x539   : > { %v2320_v20 = vpop.f32.mrb[32].mxu0 }
 0x53a   : > { %v2322_v19 = vpop.f32.mrb[33].mxu0 }
 0x53b   : > { %v2324_v44 = vpop.f32.mrb[34].mxu0 }
 0x53c   : > { %v2399_v7 = vpack.c.bf16 %v2324_v44, %v2320_v20  ;;  %v2326_v22 = vpop.f32.mrb[35].mxu0  ;;  %v7788_v44 = vld [vmem:[%s10593_s10 + $0x108] ss:$16 sps:$4 sm:$0xff]  }
 0x53d   : > { %v2400_v52 = vpack.c.bf16 %v2326_v22, %v2322_v19  ;;  %v7785_v19 = vld [vmem:[%s10593_s10 + $0x100] ss:$16 sps:$4 sm:$0xff]   ;;  %v7796_v22 = vld [vmem:[%s10593_s10 + $0x12c] ss:$16 sps:$4 sm:$0xff]  }
 0x53f   : > { %2853 = vmatprep.mubr.bf16.mxu1 %v2400_v52  ;;  %2966 = vmatprep.mubr.bf16.mxu0 %v2400_v52 }
 0x540   : > { %2854 = vmatmul.mubr.bf16.vlgmr.msra.gmra.mrb[64].mxu1 %v2399_v7  ;;  %2967 = vmatmul.mubr.bf16.vlgmr.msra.gmra.mrb[64].mxu0 %v2399_v7  ;;  %v7793_v7 = vld [vmem:[%s10593_s10 + $0x124] ss:$16 sps:$4 sm:$0xff]  }
 0x541   : > { %v2330_v28 = vpop.f32.mrb[36].mxu0  ;;  %4040 = vmatpush1.bf16.msra.mxu1 %v7737_v25  ;;  %4266 = vmatpush1.bf16.msra.mxu0 %v7740_v21  ;;  %v7791_v25 = vld [vmem:[%s10593_s10 + $0x120] ss:$16 sps:$4 sm:$0xff]   ;;  %v7794_v21 = vld [vmem:[%s10593_s10 + $0x128] ss:$16 sps:$4 sm:$0xff]  }
 0x542   : > { %v2332_v33 = vpop.f32.mrb[37].mxu0  ;;  %4041 = vmatprep.subr.bf16.mxu1 %v7745_v54  ;;  %4267 = vmatprep.subr.bf16.mxu0 %v7748_v26  ;;  %v7799_v26 = vld [vmem:[%s10593_s10 + $0x144] ss:$16 sps:$4 sm:$0xff]  }
 0x543   : > { %v2334_v38 = vpop.f32.mrb[38].mxu0 }
 0x544   : > { %v2401_v0 = vpack.c.bf16 %v2334_v38, %v2330_v28  ;;  %v2336_v29 = vpop.f32.mrb[39].mxu0  ;;  %v7802_v28 = vld [vmem:[%s10593_s10 + $0x14c] ss:$16 sps:$4 sm:$0xff]   ;;  %v7800_v38 = vld [vmem:[%s10593_s10 + $0x148] ss:$16 sps:$4 sm:$0xff]  }
 0x545   : > { %v2402_v16 = vpack.c.bf16 %v2336_v29, %v2332_v33  ;;  %4042 = vmatpush1.bf16.msra.mxu1 %v7743_v30  ;;  %4268 = vmatpush1.bf16.msra.mxu0 %v7746_v31  ;;  %v7808_v29 = vld [vmem:[%s10593_s10 + $0x16c] ss:$16 sps:$4 sm:$0xff]  }
 0x546   : > { %4043 = vmatprep.subr.bf16.mxu1 %v7751_v62  ;;  %4269 = vmatprep.subr.bf16.mxu0 %v7754_v34  ;;  %v7797_v34 = vld [vmem:[%s10593_s10 + $0x140] ss:$16 sps:$4 sm:$0xff]  }
 0x547   : > { %2863 = vmatprep.mubr.bf16.mxu1 %v2402_v16  ;;  %2976 = vmatprep.mubr.bf16.mxu0 %v2402_v16 }
 0x548   : > { %2864 = vmatmul.mubr.bf16.gmra.mrb[68].mxu1 %v2401_v0  ;;  %2977 = vmatmul.mubr.bf16.gmra.mrb[68].mxu0 %v2401_v0  ;;  %v7805_v0 = vld [vmem:[%s10593_s10 + $0x164] ss:$16 sps:$4 sm:$0xff]  }
 0x549   : > { %v2340_v47 = vpop.f32.mrb[40].mxu0  ;;  %4044 = vmatpush1.bf16.msra.mxu1 %v7749_v39  ;;  %4270 = vmatpush1.bf16.msra.mxu0 %v7752_v40  ;;  %v7803_v39 = vld [vmem:[%s10593_s10 + $0x160] ss:$16 sps:$4 sm:$0xff]   ;;  %v7806_v40 = vld [vmem:[%s10593_s10 + $0x168] ss:$16 sps:$4 sm:$0xff]  }
 0x54a   : > { %v2342_v48 = vpop.f32.mrb[41].mxu0  ;;  %4045 = vmatprep.subr.bf16.mxu1 %v7757_v41  ;;  %4271 = vmatprep.subr.bf16.mxu0 %v7760_v14  ;;  %v7811_v14 = vld [vmem:[%s10593_s10 + $0x184] ss:$16 sps:$4 sm:$0xff]  }
 0x54b   : > { %v2344_v50 = vpop.f32.mrb[42].mxu0 }
 0x54c   : > { %v2403_v53 = vpack.c.bf16 %v2344_v50, %v2340_v47  ;;  %v2346_v56 = vpop.f32.mrb[43].mxu0  ;;  %v7814_v47 = vld [vmem:[%s10593_s10 + $0x18c] ss:$16 sps:$4 sm:$0xff]   ;;  %v7812_v50 = vld [vmem:[%s10593_s10 + $0x188] ss:$16 sps:$4 sm:$0xff]  }
 0x54d   : > { %v2404_v57 = vpack.c.bf16 %v2346_v56, %v2342_v48  ;;  %4046 = vmatpush1.bf16.msra.mxu1 %v7755_v17  ;;  %4272 = vmatpush1.bf16.msra.mxu0 %v7758_v46  ;;  %v7820_v56 = vld [vmem:[%s10593_s10 + $0x1ac] ss:$16 sps:$4 sm:$0xff]  }
 0x54e   : > { %4047 = vmatprep.subr.bf16.mxu1 %v7763_v49  ;;  %4273 = vmatprep.subr.bf16.mxu0 %v7766_v43  ;;  %v7809_v43 = vld [vmem:[%s10593_s10 + $0x180] ss:$16 sps:$4 sm:$0xff]  }
 0x54f   : > { %2873 = vmatprep.mubr.bf16.mxu1 %v2404_v57  ;;  %2986 = vmatprep.mubr.bf16.mxu0 %v2404_v57 }
 0x550   : > { %2874 = vmatmul.mubr.bf16.gmra.mrb[72].mxu1 %v2403_v53  ;;  %2987 = vmatmul.mubr.bf16.gmra.mrb[72].mxu0 %v2403_v53  ;;  %v7817_v53 = vld [vmem:[%s10593_s10 + $0x1a4] ss:$16 sps:$4 sm:$0xff]  }
 0x551   : > { %v2350_v36 = vpop.f32.mrb[44].mxu0  ;;  %4048 = vmatpush1.bf16.msra.mxu1 %v7761_v24  ;;  %4274 = vmatpush1.bf16.msra.mxu0 %v7764_v58  ;;  %v7815_v24 = vld [vmem:[%s10593_s10 + $0x1a0] ss:$16 sps:$4 sm:$0xff]   ;;  %v7818_v58 = vld [vmem:[%s10593_s10 + $0x1a8] ss:$16 sps:$4 sm:$0xff]  }
 0x552   : > { %v2352_v11 = vpop.f32.mrb[45].mxu0  ;;  %4049 = vmatprep.subr.bf16.mxu1 %v7769_v1  ;;  %4275 = vmatprep.subr.bf16.mxu0 %v7772_v55  ;;  %v7823_v55 = vld [vmem:[%s10593_s10 + $0x1c4] ss:$16 sps:$4 sm:$0xff]  }
 0x553   : > { %v2354_v9 = vpop.f32.mrb[46].mxu0 }
 0x554   : > { %v2405_v23 = vpack.c.bf16 %v2354_v9, %v2350_v36  ;;  %v2356_v10 = vpop.f32.mrb[47].mxu0  ;;  %v7826_v36 = vld [vmem:[%s10593_s10 + $0x1cc] ss:$16 sps:$4 sm:$0xff]   ;;  %v7824_v9 = vld [vmem:[%s10593_s10 + $0x1c8] ss:$16 sps:$4 sm:$0xff]  }
 0x555   : > { %v2406_v27 = vpack.c.bf16 %v2356_v10, %v2352_v11  ;;  %4050 = vmatpush1.bf16.msra.mxu1 %v7767_v8  ;;  %4276 = vmatpush1.bf16.msra.mxu0 %v7770_v51  ;;  %v7832_v10 = vld [vmem:[%s10593_s10 + $0x1ec] ss:$16 sps:$4 sm:$0xff]  }
 0x556   : > { %4051 = vmatprep.subr.bf16.mxu1 %v7775_v63  ;;  %4277 = vmatprep.subr.bf16.mxu0 %v7778_v4  ;;  %v7821_v4 = vld [vmem:[%s10593_s10 + $0x1c0] ss:$16 sps:$4 sm:$0xff]  }
 0x557   : > { %2883 = vmatprep.mubr.bf16.mxu1 %v2406_v27  ;;  %2996 = vmatprep.mubr.bf16.mxu0 %v2406_v27  ;;  %v7827_v27 = vld [vmem:[%s10593_s10 + $0x1e0] ss:$16 sps:$4 sm:$0xff]  }
 0x558   : > { %2884 = vmatmul.mubr.bf16.gmra.mrb[76].mxu1 %v2405_v23  ;;  %2997 = vmatmul.mubr.bf16.gmra.mrb[76].mxu0 %v2405_v23  ;;  %v7829_v23 = vld [vmem:[%s10593_s10 + $0x1e4] ss:$16 sps:$4 sm:$0xff]  }
 0x559   : > { %v2360_v13 = vpop.f32.mrb[48].mxu0  ;;  %4052 = vmatpush1.bf16.msra.mxu1 %v7773_v60  ;;  %4278 = vmatpush1.bf16.msra.mxu0 %v7776_v59  ;;  %v7830_v60 = vld [vmem:[%s10593_s10 + $0x1e8] ss:$16 sps:$4 sm:$0xff]   ;;  %v7835_v59 = vld [vmem:[%s10593_s10 + $0x204] ss:$16 sps:$4 sm:$0xff]  }
 0x55a   : > { %v2362_v35 = vpop.f32.mrb[49].mxu0  ;;  %4053 = vmatprep.subr.bf16.mxu1 %v7781_v12  ;;  %4279 = vmatprep.subr.bf16.mxu0 %v7784_v32  ;;  %v7838_v12 = vld [vmem:[%s10593_s10 + $0x20c] ss:$16 sps:$4 sm:$0xff]   ;;  %v8217_v32 = vld [vmem:[%s8443_s26 + $0x4] ss:$16 sps:$4 sm:$0xff]  }
 0x55b   : > { %v2364_v42 = vpop.f32.mrb[50].mxu0 }
 0x55c   : > { %v2407_v18 = vpack.c.bf16 %v2364_v42, %v2360_v13  ;;  %v2366_v6 = vpop.f32.mrb[51].mxu0  ;;  %v7833_v13 = vld [vmem:[%s10593_s10 + $0x200] ss:$16 sps:$4 sm:$0xff]   ;;  %v7842_v42 = vld [vmem:[%s10593_s10 + $0x228] ss:$16 sps:$4 sm:$0xff]  }
 0x55d   : > { %v2408_v20 = vpack.c.bf16 %v2366_v6, %v2362_v35  ;;  %4054 = vmatpush1.bf16.msra.mxu1 %v7779_v15  ;;  %4280 = vmatpush1.bf16.msra.mxu0 %v7782_v45  ;;  %v7836_v15 = vld [vmem:[%s10593_s10 + $0x208] ss:$16 sps:$4 sm:$0xff]   ;;  %v7841_v45 = vld [vmem:[%s10593_s10 + $0x224] ss:$16 sps:$4 sm:$0xff]   ;;  %v7844_v35 = vld [vmem:[%s10593_s10 + $0x22c] ss:$16 sps:$4 sm:$0xff]  }
 0x55e   : > { %4055 = vmatprep.subr.bf16.mxu1 %v7787_v37  ;;  %4281 = vmatprep.subr.bf16.mxu0 %v7790_v61  ;;  %v8218_v37 = vld [vmem:[%s8443_s26] ss:$16 sps:$4 sm:$0xff]   ;;  %v7850_v6 = vld [vmem:[%s10593_s10 + $0x24c] ss:$16 sps:$4 sm:$0xff]  }
 0x55f   : > { %2893 = vmatprep.mubr.bf16.mxu1 %v2408_v20  ;;  %3006 = vmatprep.mubr.bf16.mxu0 %v2408_v20  ;;  %v7839_v61 = vld [vmem:[%s10593_s10 + $0x220] ss:$16 sps:$4 sm:$0xff]   ;;  %v8219_v20 = vld [vmem:[%s8443_s26 + $0x24] ss:$16 sps:$4 sm:$0xff]  }
 0x560   : > { %2894 = vmatmul.mubr.bf16.gmra.mrb[80].mxu1 %v2407_v18  ;;  %3007 = vmatmul.mubr.bf16.gmra.mrb[80].mxu0 %v2407_v18  ;;  %v7847_v18 = vld [vmem:[%s10593_s10 + $0x244] ss:$16 sps:$4 sm:$0xff]  }
 0x561   : > { %v2370_v52 = vpop.f32.mrb[52].mxu0  ;;  %4056 = vmatpush1.bf16.msra.mxu1 %v7785_v19  ;;  %4282 = vmatpush1.bf16.msra.mxu0 %v7788_v44  ;;  %v7845_v19 = vld [vmem:[%s10593_s10 + $0x240] ss:$16 sps:$4 sm:$0xff]   ;;  %v7848_v44 = vld [vmem:[%s10593_s10 + $0x248] ss:$16 sps:$4 sm:$0xff]  }
 0x562   : > { %v2372_v54 = vpop.f32.mrb[53].mxu0  ;;  %4057 = vmatprep.subr.bf16.mxu1 %v7793_v7  ;;  %4283 = vmatprep.subr.bf16.mxu0 %v7796_v22  ;;  %v7853_v7 = vld [vmem:[%s10593_s10 + $0x264] ss:$16 sps:$4 sm:$0xff]   ;;  %v7856_v22 = vld [vmem:[%s10593_s10 + $0x26c] ss:$16 sps:$4 sm:$0xff]  }
 0x563   : > { %v2374_v30 = vpop.f32.mrb[54].mxu0 }
 0x564   : > { %v2409_v31 = vpack.c.bf16 %v2374_v30, %v2370_v52  ;;  %v2376_v33 = vpop.f32.mrb[55].mxu0  ;;  %v8220_v52 = vld [vmem:[%s8443_s26 + $0x20] ss:$16 sps:$4 sm:$0xff]  }
 0x565   : > { %v2410_v62 = vpack.c.bf16 %v2376_v33, %v2372_v54  ;;  %4058 = vmatpush1.bf16.msra.mxu1 %v7791_v25  ;;  %4284 = vmatpush1.bf16.msra.mxu0 %v7794_v21  ;;  %v7851_v25 = vld [vmem:[%s10593_s10 + $0x260] ss:$16 sps:$4 sm:$0xff]   ;;  %v7854_v21 = vld [vmem:[%s10593_s10 + $0x268] ss:$16 sps:$4 sm:$0xff]   ;;  %v7859_v54 = vld [vmem:[%s10593_s10 + $0x284] ss:$16 sps:$4 sm:$0xff]  }
 0x566   : > { %4059 = vmatprep.subr.bf16.mxu1 %v7799_v26  ;;  %4285 = vmatprep.subr.bf16.mxu0 %v7802_v28  ;;  %v7862_v26 = vld [vmem:[%s10593_s10 + $0x28c] ss:$16 sps:$4 sm:$0xff]   ;;  %v8221_v28 = vld [vmem:[%s8443_s26 + $0x44] ss:$16 sps:$4 sm:$0xff]   ;;  %v7857_v30 = vld [vmem:[%s10593_s10 + $0x280] ss:$16 sps:$4 sm:$0xff]  }
 0x567   : > { %2903 = vmatprep.mubr.bf16.mxu1 %v2410_v62  ;;  %3016 = vmatprep.mubr.bf16.mxu0 %v2410_v62  ;;  %v7865_v33 = vld [vmem:[%s10593_s10 + $0x2a4] ss:$16 sps:$4 sm:$0xff]   ;;  %v7868_v62 = vld [vmem:[%s10593_s10 + $0x2ac] ss:$16 sps:$4 sm:$0xff]  }
 0x568   : > { %2904 = vmatmul.mubr.bf16.gmra.mrb[84].mxu1 %v2409_v31  ;;  %3017 = vmatmul.mubr.bf16.gmra.mrb[84].mxu0 %v2409_v31  ;;  %v7860_v31 = vld [vmem:[%s10593_s10 + $0x288] ss:$16 sps:$4 sm:$0xff]  }
 0x569   : > { %v2380_v16 = vpop.f32.mrb[56].mxu0  ;;  %4060 = vmatpush1.bf16.msra.mxu1 %v7797_v34  ;;  %4286 = vmatpush1.bf16.msra.mxu0 %v7800_v38  ;;  %v8222_v34 = vld [vmem:[%s8443_s26 + $0x40] ss:$16 sps:$4 sm:$0xff]  }
 0x56a   : > { %v2382_v41 = vpop.f32.mrb[57].mxu0  ;;  %4061 = vmatprep.subr.bf16.mxu1 %v7805_v0  ;;  %4287 = vmatprep.subr.bf16.mxu0 %v7808_v29  ;;  %v7863_v38 = vld [vmem:[%s10593_s10 + $0x2a0] ss:$16 sps:$4 sm:$0xff]   ;;  %v7866_v0 = vld [vmem:[%s10593_s10 + $0x2a8] ss:$16 sps:$4 sm:$0xff]  }
 0x56b   : > { %v2384_v17 = vpop.f32.mrb[58].mxu0  ;;  %v7871_v29 = vld [vmem:[%s10593_s10 + $0x2c4] ss:$16 sps:$4 sm:$0xff]  }
 0x56c   : > { %v2411_v46 = vpack.c.bf16 %v2384_v17, %v2380_v16  ;;  %v2386_v48 = vpop.f32.mrb[59].mxu0  ;;  %v7874_v16 = vld [vmem:[%s10593_s10 + $0x2cc] ss:$16 sps:$4 sm:$0xff]   ;;  %v8224_v17 = vld [vmem:[%s8443_s26 + $0x60] ss:$16 sps:$4 sm:$0xff]  }
 0x56d   : > { %v2412_v49 = vpack.c.bf16 %v2386_v48, %v2382_v41  ;;  %4062 = vmatpush1.bf16.msra.mxu1 %v7803_v39  ;;  %4288 = vmatpush1.bf16.msra.mxu0 %v7806_v40  ;;  %v8223_v39 = vld [vmem:[%s8443_s26 + $0x64] ss:$16 sps:$4 sm:$0xff]   ;;  %v7869_v40 = vld [vmem:[%s10593_s10 + $0x2c0] ss:$16 sps:$4 sm:$0xff]   ;;  %v7872_v41 = vld [vmem:[%s10593_s10 + $0x2c8] ss:$16 sps:$4 sm:$0xff]  }
 0x56e   : > { %4063 = vmatprep.subr.bf16.mxu1 %v7811_v14  ;;  %4289 = vmatprep.subr.bf16.mxu0 %v7814_v47  ;;  %v7877_v14 = vld [vmem:[%s10593_s10 + $0x2e4] ss:$16 sps:$4 sm:$0xff]   ;;  %v7880_v47 = vld [vmem:[%s10593_s10 + $0x2ec] ss:$16 sps:$4 sm:$0xff]   ;;  %v7878_v48 = vld [vmem:[%s10593_s10 + $0x2e8] ss:$16 sps:$4 sm:$0xff]  }
 0x56f   : > { %2913 = vmatprep.mubr.bf16.mxu1 %v2412_v49  ;;  %3026 = vmatprep.mubr.bf16.mxu0 %v2412_v49  ;;  %v7883_v49 = vld [vmem:[%s10593_s10 + $0x304] ss:$16 sps:$4 sm:$0xff]  }
 0x570   : > { %2914 = vmatmul.mubr.bf16.gmra.mrb[88].mxu1 %v2411_v46  ;;  %3027 = vmatmul.mubr.bf16.gmra.mrb[88].mxu0 %v2411_v46  ;;  %v7875_v46 = vld [vmem:[%s10593_s10 + $0x2e0] ss:$16 sps:$4 sm:$0xff]  }
 0x571   : > { %v2390_v57 = vpop.f32.mrb[60].mxu0  ;;  %4064 = vmatpush1.bf16.msra.mxu1 %v7809_v43  ;;  %4290 = vmatpush1.bf16.msra.mxu0 %v7812_v50  ;;  %v7886_v43 = vld [vmem:[%s10593_s10 + $0x30c] ss:$16 sps:$4 sm:$0xff]   ;;  %v8225_v50 = vld [vmem:[%s8443_s26 + $0x84] ss:$16 sps:$4 sm:$0xff]  }
 0x572   : > { %v2392_v1 = vpop.f32.mrb[61].mxu0  ;;  %4065 = vmatprep.subr.bf16.mxu1 %v7817_v53  ;;  %4291 = vmatprep.subr.bf16.mxu0 %v7820_v56  ;;  %v7881_v53 = vld [vmem:[%s10593_s10 + $0x300] ss:$16 sps:$4 sm:$0xff]   ;;  %v7884_v56 = vld [vmem:[%s10593_s10 + $0x308] ss:$16 sps:$4 sm:$0xff]  }
 0x573   : > { %v2394_v8 = vpop.f32.mrb[62].mxu0 }
 0x574   : > { %v2413_v51 = vpack.c.bf16 %v2394_v8, %v2390_v57  ;;  %v2396_v11 = vpop.f32.mrb[63].mxu0  ;;  %v7889_v57 = vld [vmem:[%s10593_s10 + $0x324] ss:$16 sps:$4 sm:$0xff]   ;;  %v7898_v8 = vld [vmem:[%s10593_s10 + $0x34c] ss:$16 sps:$4 sm:$0xff]  }
 0x575   : > { %v2414_v63 = vpack.c.bf16 %v2396_v11, %v2392_v1  ;;  %4066 = vmatpush1.bf16.msra.mxu1 %v7815_v24  ;;  %4292 = vmatpush1.bf16.msra.mxu0 %v7818_v58  ;;  %v7892_v24 = vld [vmem:[%s10593_s10 + $0x32c] ss:$16 sps:$4 sm:$0xff]   ;;  %v8226_v58 = vld [vmem:[%s8443_s26 + $0x80] ss:$16 sps:$4 sm:$0xff]  }
 0x576   : > { %4067 = vmatprep.subr.bf16.mxu1 %v7823_v55  ;;  %4293 = vmatprep.subr.bf16.mxu0 %v7826_v36  ;;  %v7887_v1 = vld [vmem:[%s10593_s10 + $0x320] ss:$16 sps:$4 sm:$0xff]   ;;  %v7890_v55 = vld [vmem:[%s10593_s10 + $0x328] ss:$16 sps:$4 sm:$0xff]   ;;  %v7895_v36 = vld [vmem:[%s10593_s10 + $0x344] ss:$16 sps:$4 sm:$0xff]  }
 0x577   : > { %2923 = vmatprep.mubr.bf16.mxu1 %v2414_v63  ;;  %3036 = vmatprep.mubr.bf16.mxu0 %v2414_v63  ;;  %v7893_v11 = vld [vmem:[%s10593_s10 + $0x340] ss:$16 sps:$4 sm:$0xff]   ;;  %v7896_v63 = vld [vmem:[%s10593_s10 + $0x348] ss:$16 sps:$4 sm:$0xff]  }
 0x578   : > { %2924 = vmatmul.mubr.bf16.gmra.mrb[92].mxu1 %v2413_v51  ;;  %3037 = vmatmul.mubr.bf16.gmra.mrb[92].mxu0 %v2413_v51  ;;  %v8227_v51 = vld [vmem:[%s8443_s26 + $0xa4] ss:$16 sps:$4 sm:$0xff]  }
 0x579   : > { %4068 = vmatpush1.bf16.msra.mxu1 %v7821_v4  ;;  %4294 = vmatpush1.bf16.msra.mxu0 %v7824_v9  ;;  %v7901_v4 = vld [vmem:[%s10593_s10 + $0x364] ss:$16 sps:$4 sm:$0xff]   ;;  %v7904_v9 = vld [vmem:[%s10593_s10 + $0x36c] ss:$16 sps:$4 sm:$0xff]  }
 0x57a   : > { %4069 = vmatprep.subr.bf16.mxu1 %v7829_v23  ;;  %4295 = vmatprep.subr.bf16.mxu0 %v7832_v10  ;;  %v8228_v23 = vld [vmem:[%s8443_s26 + $0xa0] ss:$16 sps:$4 sm:$0xff]  }
 0x57b   : > { %4071 = vmatprep.mubr.bf16.mxu1 %v8217_v32  ;;  %4297 = vmatprep.mubr.bf16.mxu0 %v8217_v32  ;;  %v7899_v10 = vld [vmem:[%s10593_s10 + $0x360] ss:$16 sps:$4 sm:$0xff]  }
 0x57c   : > { %v7905_v32 = vld [vmem:[%s10593_s10 + $0x380] ss:$16 sps:$4 sm:$0xff]  }
 0x57d   : > { %4070 = vmatpush1.bf16.msra.mxu1 %v7827_v27  ;;  %4296 = vmatpush1.bf16.msra.mxu0 %v7830_v60  ;;  %v7902_v27 = vld [vmem:[%s10593_s10 + $0x368] ss:$16 sps:$4 sm:$0xff]   ;;  %v7907_v60 = vld [vmem:[%s10593_s10 + $0x384] ss:$16 sps:$4 sm:$0xff]  }
 0x57e   : > { %4152 = vmatprep.subr.bf16.mxu1 %v7835_v59  ;;  %4378 = vmatprep.subr.bf16.mxu0 %v7838_v12  ;;  %v7910_v59 = vld [vmem:[%s10593_s10 + $0x38c] ss:$16 sps:$4 sm:$0xff]   ;;  %v8229_v12 = vld [vmem:[%s8443_s26 + $0xc4] ss:$16 sps:$4 sm:$0xff]  }
 0x580   : > { %4072 = vmatmul.mubr.bf16.vlgmr.msra.gmra.mrb[96].mxu1 %v8218_v37  ;;  %4298 = vmatmul.mubr.bf16.vlgmr.msra.gmra.mrb[96].mxu0 %v8218_v37  ;;  %v7911_v37 = vld [vmem:[%s10593_s10 + $0x3a0] ss:$16 sps:$4 sm:$0xff]  }
 0x581   : > { %4153 = vmatpush1.bf16.msra.mxu1 %v7833_v13  ;;  %4379 = vmatpush1.bf16.msra.mxu0 %v7836_v15  ;;  %v7908_v13 = vld [vmem:[%s10593_s10 + $0x388] ss:$16 sps:$4 sm:$0xff]   ;;  %v7913_v15 = vld [vmem:[%s10593_s10 + $0x3a4] ss:$16 sps:$4 sm:$0xff]  }
 0x582   : > { %4154 = vmatprep.subr.bf16.mxu1 %v7841_v45  ;;  %4380 = vmatprep.subr.bf16.mxu0 %v7844_v35  ;;  %v7916_v45 = vld [vmem:[%s10593_s10 + $0x3ac] ss:$16 sps:$4 sm:$0xff]   ;;  %v8230_v35 = vld [vmem:[%s8443_s26 + $0xc0] ss:$16 sps:$4 sm:$0xff]  }
 0x583   : > { %4081 = vmatprep.mubr.bf16.mxu1 %v8219_v20  ;;  %4307 = vmatprep.mubr.bf16.mxu0 %v8219_v20  ;;  %v7917_v20 = vld [vmem:[%s10593_s10 + $0x3c0] ss:$16 sps:$4 sm:$0xff]  }
 0x585   : > { %4155 = vmatpush1.bf16.msra.mxu1 %v7839_v61  ;;  %4381 = vmatpush1.bf16.msra.mxu0 %v7842_v42  ;;  %v7914_v61 = vld [vmem:[%s10593_s10 + $0x3a8] ss:$16 sps:$4 sm:$0xff]   ;;  %v7919_v42 = vld [vmem:[%s10593_s10 + $0x3c4] ss:$16 sps:$4 sm:$0xff]  }
 0x586   : > { %4156 = vmatprep.subr.bf16.mxu1 %v7847_v18  ;;  %4382 = vmatprep.subr.bf16.mxu0 %v7850_v6  ;;  %v7922_v18 = vld [vmem:[%s10593_s10 + $0x3cc] ss:$16 sps:$4 sm:$0xff]   ;;  %v8231_v6 = vld [vmem:[%s8443_s26 + $0xe4] ss:$16 sps:$4 sm:$0xff]  }
 0x588   : > { %4082 = vmatmul.mubr.bf16.gmra.mrb[100].mxu1 %v8220_v52  ;;  %4308 = vmatmul.mubr.bf16.gmra.mrb[100].mxu0 %v8220_v52  ;;  %v7923_v52 = vld [vmem:[%s10593_s10 + $0x3e0] ss:$16 sps:$4 sm:$0xff]  }
 0x589   : > { %4157 = vmatpush1.bf16.msra.mxu1 %v7845_v19  ;;  %4383 = vmatpush1.bf16.msra.mxu0 %v7848_v44  ;;  %v7920_v19 = vld [vmem:[%s10593_s10 + $0x3c8] ss:$16 sps:$4 sm:$0xff]   ;;  %v7925_v44 = vld [vmem:[%s10593_s10 + $0x3e4] ss:$16 sps:$4 sm:$0xff]  }
 0x58a   : > { %4158 = vmatprep.subr.bf16.mxu1 %v7853_v7  ;;  %4384 = vmatprep.subr.bf16.mxu0 %v7856_v22  ;;  %v7928_v7 = vld [vmem:[%s10593_s10 + $0x3ec] ss:$16 sps:$4 sm:$0xff]   ;;  %v8232_v22 = vld [vmem:[%s8443_s26 + $0xe0] ss:$16 sps:$4 sm:$0xff]  }
 0x58b   : > { %4091 = vmatprep.mubr.bf16.mxu1 %v8221_v28  ;;  %4317 = vmatprep.mubr.bf16.mxu0 %v8221_v28  ;;  %v7929_v28 = vld [vmem:[%s10592_s9] ss:$16 sps:$4 sm:$0xff]  }
 0x58d   : > { %4159 = vmatpush1.bf16.msra.mxu1 %v7851_v25  ;;  %4385 = vmatpush1.bf16.msra.mxu0 %v7854_v21  ;;  %v7926_v25 = vld [vmem:[%s10593_s10 + $0x3e8] ss:$16 sps:$4 sm:$0xff]   ;;  %v7931_v21 = vld [vmem:[%s10592_s9 + $0x4] ss:$16 sps:$4 sm:$0xff]  }
 0x58e   : > { %4160 = vmatprep.subr.bf16.mxu1 %v7859_v54  ;;  %4386 = vmatprep.subr.bf16.mxu0 %v7862_v26  ;;  %v7934_v54 = vld [vmem:[%s10592_s9 + $0xc] ss:$16 sps:$4 sm:$0xff]  }
 0x58f   : > { %v8233_v26 = vld [vmem:[%s8443_s26 + $0xc] ss:$16 sps:$4 sm:$0xff]  }
 0x590   : > { %4092 = vmatmul.mubr.bf16.gmra.mrb[104].mxu1 %v8222_v34  ;;  %4318 = vmatmul.mubr.bf16.gmra.mrb[104].mxu0 %v8222_v34  ;;  %v7935_v34 = vld [vmem:[%s10592_s9 + $0x20] ss:$16 sps:$4 sm:$0xff]  }
 0x591   : > { %4161 = vmatpush1.bf16.msra.mxu1 %v7857_v30  ;;  %4387 = vmatpush1.bf16.msra.mxu0 %v7860_v31  ;;  %v7932_v30 = vld [vmem:[%s10592_s9 + $0x8] ss:$16 sps:$4 sm:$0xff]   ;;  %v7937_v31 = vld [vmem:[%s10592_s9 + $0x24] ss:$16 sps:$4 sm:$0xff]  }
 0x592   : > { %4162 = vmatprep.subr.bf16.mxu1 %v7865_v33  ;;  %4388 = vmatprep.subr.bf16.mxu0 %v7868_v62  ;;  %v7940_v33 = vld [vmem:[%s10592_s9 + $0x2c] ss:$16 sps:$4 sm:$0xff]   ;;  %v8234_v62 = vld [vmem:[%s8443_s26 + $0x8] ss:$16 sps:$4 sm:$0xff]  }
 0x593   : > { %4101 = vmatprep.mubr.bf16.mxu1 %v8223_v39  ;;  %4327 = vmatprep.mubr.bf16.mxu0 %v8223_v39  ;;  %v7941_v39 = vld [vmem:[%s10592_s9 + $0x40] ss:$16 sps:$4 sm:$0xff]  }
 0x595   : > { %4163 = vmatpush1.bf16.msra.mxu1 %v7863_v38  ;;  %4389 = vmatpush1.bf16.msra.mxu0 %v7866_v0  ;;  %v7938_v38 = vld [vmem:[%s10592_s9 + $0x28] ss:$16 sps:$4 sm:$0xff]   ;;  %v7943_v0 = vld [vmem:[%s10592_s9 + $0x44] ss:$16 sps:$4 sm:$0xff]  }
 0x596   : > { %4164 = vmatprep.subr.bf16.mxu1 %v7871_v29  ;;  %4390 = vmatprep.subr.bf16.mxu0 %v7874_v16  ;;  %v7946_v29 = vld [vmem:[%s10592_s9 + $0x4c] ss:$16 sps:$4 sm:$0xff]  }
 0x597   : > { %v8235_v16 = vld [vmem:[%s8443_s26 + $0x2c] ss:$16 sps:$4 sm:$0xff]  }
 0x598   : > { %4102 = vmatmul.mubr.bf16.gmra.mrb[108].mxu1 %v8224_v17  ;;  %4328 = vmatmul.mubr.bf16.gmra.mrb[108].mxu0 %v8224_v17  ;;  %v7947_v17 = vld [vmem:[%s10592_s9 + $0x60] ss:$16 sps:$4 sm:$0xff]  }
 0x599   : > { %4165 = vmatpush1.bf16.msra.mxu1 %v7869_v40  ;;  %4391 = vmatpush1.bf16.msra.mxu0 %v7872_v41  ;;  %v7944_v40 = vld [vmem:[%s10592_s9 + $0x48] ss:$16 sps:$4 sm:$0xff]   ;;  %v7949_v41 = vld [vmem:[%s10592_s9 + $0x64] ss:$16 sps:$4 sm:$0xff]  }
 0x59a   : > { %4166 = vmatprep.subr.bf16.mxu1 %v7877_v14  ;;  %4392 = vmatprep.subr.bf16.mxu0 %v7880_v47  ;;  %v7952_v14 = vld [vmem:[%s10592_s9 + $0x6c] ss:$16 sps:$4 sm:$0xff]   ;;  %v8236_v47 = vld [vmem:[%s8443_s26 + $0x28] ss:$16 sps:$4 sm:$0xff]  }
 0x59b   : > { %4111 = vmatprep.mubr.bf16.mxu1 %v8225_v50  ;;  %4337 = vmatprep.mubr.bf16.mxu0 %v8225_v50  ;;  %v7953_v50 = vld [vmem:[%s10592_s9 + $0x80] ss:$16 sps:$4 sm:$0xff]  }
 0x59d   : > { %4167 = vmatpush1.bf16.msra.mxu1 %v7875_v46  ;;  %4393 = vmatpush1.bf16.msra.mxu0 %v7878_v48  ;;  %v7950_v46 = vld [vmem:[%s10592_s9 + $0x68] ss:$16 sps:$4 sm:$0xff]   ;;  %v7955_v48 = vld [vmem:[%s10592_s9 + $0x84] ss:$16 sps:$4 sm:$0xff]  }
 0x59e   : > { %4168 = vmatprep.subr.bf16.mxu1 %v7883_v49  ;;  %4394 = vmatprep.subr.bf16.mxu0 %v7886_v43  ;;  %v7958_v49 = vld [vmem:[%s10592_s9 + $0x8c] ss:$16 sps:$4 sm:$0xff]  }
 0x59f   : > { %v8237_v43 = vld [vmem:[%s8443_s26 + $0x4c] ss:$16 sps:$4 sm:$0xff]  }
 0x5a0   : > { %4112 = vmatmul.mubr.bf16.gmra.mrb[112].mxu1 %v8226_v58  ;;  %4338 = vmatmul.mubr.bf16.gmra.mrb[112].mxu0 %v8226_v58  ;;  %v7959_v58 = vld [vmem:[%s10592_s9 + $0xa0] ss:$16 sps:$4 sm:$0xff]  }
 0x5a1   : > { %4169 = vmatpush1.bf16.msra.mxu1 %v7881_v53  ;;  %4395 = vmatpush1.bf16.msra.mxu0 %v7884_v56  ;;  %v7956_v53 = vld [vmem:[%s10592_s9 + $0x88] ss:$16 sps:$4 sm:$0xff]   ;;  %v7961_v56 = vld [vmem:[%s10592_s9 + $0xa4] ss:$16 sps:$4 sm:$0xff]  }
 0x5a2   : > { %4170 = vmatprep.subr.bf16.mxu1 %v7889_v57  ;;  %4396 = vmatprep.subr.bf16.mxu0 %v7892_v24  ;;  %v7964_v57 = vld [vmem:[%s10592_s9 + $0xac] ss:$16 sps:$4 sm:$0xff]   ;;  %v8238_v24 = vld [vmem:[%s8443_s26 + $0x48] ss:$16 sps:$4 sm:$0xff]  }
 0x5a3   : > { %4121 = vmatprep.mubr.bf16.mxu1 %v8227_v51  ;;  %4347 = vmatprep.mubr.bf16.mxu0 %v8227_v51  ;;  %v7965_v51 = vld [vmem:[%s10592_s9 + $0xc0] ss:$16 sps:$4 sm:$0xff]  }
 0x5a5   : > { %4171 = vmatpush1.bf16.msra.mxu1 %v7887_v1  ;;  %4397 = vmatpush1.bf16.msra.mxu0 %v7890_v55  ;;  %v7962_v1 = vld [vmem:[%s10592_s9 + $0xa8] ss:$16 sps:$4 sm:$0xff]   ;;  %v7967_v55 = vld [vmem:[%s10592_s9 + $0xc4] ss:$16 sps:$4 sm:$0xff]  }
 0x5a6   : > { %4172 = vmatprep.subr.bf16.mxu1 %v7895_v36  ;;  %4398 = vmatprep.subr.bf16.mxu0 %v7898_v8  ;;  %v7970_v36 = vld [vmem:[%s10592_s9 + $0xcc] ss:$16 sps:$4 sm:$0xff]  }
 0x5a7   : > { %v8239_v8 = vld [vmem:[%s8443_s26 + $0x6c] ss:$16 sps:$4 sm:$0xff]  }
 0x5a8   : > { %4122 = vmatmul.mubr.bf16.gmra.mrb[116].mxu1 %v8228_v23  ;;  %4348 = vmatmul.mubr.bf16.gmra.mrb[116].mxu0 %v8228_v23  ;;  %v7971_v23 = vld [vmem:[%s10592_s9 + $0xe0] ss:$16 sps:$4 sm:$0xff]  }
 0x5a9   : > { %4173 = vmatpush1.bf16.msra.mxu1 %v7893_v11  ;;  %4399 = vmatpush1.bf16.msra.mxu0 %v7896_v63  ;;  %v7968_v11 = vld [vmem:[%s10592_s9 + $0xc8] ss:$16 sps:$4 sm:$0xff]   ;;  %v7973_v63 = vld [vmem:[%s10592_s9 + $0xe4] ss:$16 sps:$4 sm:$0xff]  }
 0x5aa   : > { %4174 = vmatprep.subr.bf16.mxu1 %v7901_v4  ;;  %4400 = vmatprep.subr.bf16.mxu0 %v7904_v9  ;;  %v7976_v4 = vld [vmem:[%s10592_s9 + $0xec] ss:$16 sps:$4 sm:$0xff]   ;;  %v8240_v9 = vld [vmem:[%s8443_s26 + $0x68] ss:$16 sps:$4 sm:$0xff]  }
 0x5ab   : > { %4131 = vmatprep.mubr.bf16.mxu1 %v8229_v12  ;;  %4357 = vmatprep.mubr.bf16.mxu0 %v8229_v12  ;;  %v7977_v12 = vld [vmem:[%s10592_s9 + $0x100] ss:$16 sps:$4 sm:$0xff]  }
 0x5ad   : > { %4175 = vmatpush1.bf16.msra.mxu1 %v7899_v10  ;;  %4401 = vmatpush1.bf16.msra.mxu0 %v7902_v27  ;;  %v7974_v10 = vld [vmem:[%s10592_s9 + $0xe8] ss:$16 sps:$4 sm:$0xff]   ;;  %v7979_v27 = vld [vmem:[%s10592_s9 + $0x104] ss:$16 sps:$4 sm:$0xff]  }
 0x5ae   : > { %4176 = vmatprep.subr.bf16.mxu1 %v7907_v60  ;;  %4402 = vmatprep.subr.bf16.mxu0 %v7910_v59  ;;  %v7982_v60 = vld [vmem:[%s10592_s9 + $0x10c] ss:$16 sps:$4 sm:$0xff]  }
 0x5af   : > { %v8241_v59 = vld [vmem:[%s8443_s26 + $0x8c] ss:$16 sps:$4 sm:$0xff]  }
 0x5b0   : > { %4132 = vmatmul.mubr.bf16.gmra.mrb[120].mxu1 %v8230_v35  ;;  %4358 = vmatmul.mubr.bf16.gmra.mrb[120].mxu0 %v8230_v35  ;;  %v7983_v35 = vld [vmem:[%s10592_s9 + $0x120] ss:$16 sps:$4 sm:$0xff]  }
 0x5b1   : > { %4177 = vmatpush1.bf16.msra.mxu1 %v7905_v32  ;;  %4403 = vmatpush1.bf16.msra.mxu0 %v7908_v13  ;;  %v7980_v32 = vld [vmem:[%s10592_s9 + $0x108] ss:$16 sps:$4 sm:$0xff]   ;;  %v7985_v13 = vld [vmem:[%s10592_s9 + $0x124] ss:$16 sps:$4 sm:$0xff]  }
 0x5b2   : > { %4178 = vmatprep.subr.bf16.mxu1 %v7913_v15  ;;  %4404 = vmatprep.subr.bf16.mxu0 %v7916_v45  ;;  %v7988_v15 = vld [vmem:[%s10592_s9 + $0x12c] ss:$16 sps:$4 sm:$0xff]   ;;  %v8242_v45 = vld [vmem:[%s8443_s26 + $0x88] ss:$16 sps:$4 sm:$0xff]  }
 0x5b3   : > { %4141 = vmatprep.mubr.bf16.mxu1 %v8231_v6  ;;  %4367 = vmatprep.mubr.bf16.mxu0 %v8231_v6  ;;  %v7989_v6 = vld [vmem:[%s10592_s9 + $0x140] ss:$16 sps:$4 sm:$0xff]  }
 0x5b5   : > { %4179 = vmatpush1.bf16.msra.mxu1 %v7911_v37  ;;  %4405 = vmatpush1.bf16.msra.mxu0 %v7914_v61  ;;  %v7986_v37 = vld [vmem:[%s10592_s9 + $0x128] ss:$16 sps:$4 sm:$0xff]   ;;  %v7991_v61 = vld [vmem:[%s10592_s9 + $0x144] ss:$16 sps:$4 sm:$0xff]  }
 0x5b6   : > { %4180 = vmatprep.subr.bf16.mxu1 %v7919_v42  ;;  %4406 = vmatprep.subr.bf16.mxu0 %v7922_v18  ;;  %v7994_v42 = vld [vmem:[%s10592_s9 + $0x14c] ss:$16 sps:$4 sm:$0xff]  }
 0x5b7   : > { %v8243_v18 = vld [vmem:[%s8443_s26 + $0xac] ss:$16 sps:$4 sm:$0xff]  }
 0x5b8   : > { %4142 = vmatmul.mubr.bf16.gmra.mrb[124].mxu1 %v8232_v22  ;;  %4368 = vmatmul.mubr.bf16.gmra.mrb[124].mxu0 %v8232_v22  ;;  %v7995_v22 = vld [vmem:[%s10592_s9 + $0x160] ss:$16 sps:$4 sm:$0xff]  }
 0x5b9   : > { %4181 = vmatpush1.bf16.msra.mxu1 %v7917_v20  ;;  %4407 = vmatpush1.bf16.msra.mxu0 %v7920_v19  ;;  %v7992_v20 = vld [vmem:[%s10592_s9 + $0x148] ss:$16 sps:$4 sm:$0xff]   ;;  %v7997_v19 = vld [vmem:[%s10592_s9 + $0x164] ss:$16 sps:$4 sm:$0xff]  }
 0x5ba   : > { %4182 = vmatprep.subr.bf16.mxu1 %v7925_v44  ;;  %4408 = vmatprep.subr.bf16.mxu0 %v7928_v7  ;;  %v8000_v44 = vld [vmem:[%s10592_s9 + $0x16c] ss:$16 sps:$4 sm:$0xff]   ;;  %v8244_v7 = vld [vmem:[%s8443_s26 + $0xa8] ss:$16 sps:$4 sm:$0xff]  }
 0x5bb   : > { %4184 = vmatprep.mubr.bf16.mxu1 %v8233_v26  ;;  %4410 = vmatprep.mubr.bf16.mxu0 %v8233_v26  ;;  %v8001_v26 = vld [vmem:[%s10592_s9 + $0x180] ss:$16 sps:$4 sm:$0xff]  }
 0x5bd   : > { %4183 = vmatpush1.bf16.msra.mxu1 %v7923_v52  ;;  %4409 = vmatpush1.bf16.msra.mxu0 %v7926_v25  ;;  %v7998_v52 = vld [vmem:[%s10592_s9 + $0x168] ss:$16 sps:$4 sm:$0xff]   ;;  %v8003_v25 = vld [vmem:[%s10592_s9 + $0x184] ss:$16 sps:$4 sm:$0xff]  }
 0x5be   : > { %5131 = vmatprep.subr.bf16.mxu1 %v7931_v21  ;;  %5357 = vmatprep.subr.bf16.mxu0 %v7934_v54  ;;  %v8006_v21 = vld [vmem:[%s10592_s9 + $0x18c] ss:$16 sps:$4 sm:$0xff]  }
 0x5bf   : > { %v8245_v54 = vld [vmem:[%s8443_s26 + $0xcc] ss:$16 sps:$4 sm:$0xff]  }
 0x5c0   : > { %4185 = vmatmul.mubr.bf16.vlgmr.msra.gmra.mrb[96].mxu1 %v8234_v62  ;;  %4411 = vmatmul.mubr.bf16.vlgmr.msra.gmra.mrb[96].mxu0 %v8234_v62  ;;  %v8007_v62 = vld [vmem:[%s10592_s9 + $0x1a0] ss:$16 sps:$4 sm:$0xff]  }
 0x5c1   : > { %5132 = vmatpush1.bf16.msra.mxu1 %v7929_v28  ;;  %5358 = vmatpush1.bf16.msra.mxu0 %v7932_v30  ;;  %v8004_v28 = vld [vmem:[%s10592_s9 + $0x188] ss:$16 sps:$4 sm:$0xff]   ;;  %v8009_v30 = vld [vmem:[%s10592_s9 + $0x1a4] ss:$16 sps:$4 sm:$0xff]  }
 0x5c2   : > { %5133 = vmatprep.subr.bf16.mxu1 %v7937_v31  ;;  %5359 = vmatprep.subr.bf16.mxu0 %v7940_v33  ;;  %v8012_v31 = vld [vmem:[%s10592_s9 + $0x1ac] ss:$16 sps:$4 sm:$0xff]   ;;  %v8246_v33 = vld [vmem:[%s8443_s26 + $0xc8] ss:$16 sps:$4 sm:$0xff]  }
 0x5c3   : > { %4194 = vmatprep.mubr.bf16.mxu1 %v8235_v16  ;;  %4420 = vmatprep.mubr.bf16.mxu0 %v8235_v16  ;;  %v8013_v16 = vld [vmem:[%s10592_s9 + $0x1c0] ss:$16 sps:$4 sm:$0xff]  }
 0x5c5   : > { %5134 = vmatpush1.bf16.msra.mxu1 %v7935_v34  ;;  %5360 = vmatpush1.bf16.msra.mxu0 %v7938_v38  ;;  %v8010_v34 = vld [vmem:[%s10592_s9 + $0x1a8] ss:$16 sps:$4 sm:$0xff]   ;;  %v8015_v38 = vld [vmem:[%s10592_s9 + $0x1c4] ss:$16 sps:$4 sm:$0xff]  }
 0x5c6   : > { %5135 = vmatprep.subr.bf16.mxu1 %v7943_v0  ;;  %5361 = vmatprep.subr.bf16.mxu0 %v7946_v29  ;;  %v8018_v0 = vld [vmem:[%s10592_s9 + $0x1cc] ss:$16 sps:$4 sm:$0xff]  }
 0x5c7   : > { %v8247_v29 = vld [vmem:[%s8443_s26 + $0xec] ss:$16 sps:$4 sm:$0xff]  }
 0x5c8   : > { %4195 = vmatmul.mubr.bf16.gmra.mrb[100].mxu1 %v8236_v47  ;;  %4421 = vmatmul.mubr.bf16.gmra.mrb[100].mxu0 %v8236_v47  ;;  %v8019_v47 = vld [vmem:[%s10592_s9 + $0x1e0] ss:$16 sps:$4 sm:$0xff]  }
 0x5c9   : > { %5136 = vmatpush1.bf16.msra.mxu1 %v7941_v39  ;;  %5362 = vmatpush1.bf16.msra.mxu0 %v7944_v40  ;;  %v8016_v39 = vld [vmem:[%s10592_s9 + $0x1c8] ss:$16 sps:$4 sm:$0xff]   ;;  %v8021_v40 = vld [vmem:[%s10592_s9 + $0x1e4] ss:$16 sps:$4 sm:$0xff]  }
 0x5ca   : > { %5137 = vmatprep.subr.bf16.mxu1 %v7949_v41  ;;  %5363 = vmatprep.subr.bf16.mxu0 %v7952_v14  ;;  %v8024_v41 = vld [vmem:[%s10592_s9 + $0x1ec] ss:$16 sps:$4 sm:$0xff]   ;;  %v8248_v14 = vld [vmem:[%s8443_s26 + $0xe8] ss:$16 sps:$4 sm:$0xff]  }
 0x5cb   : > { %4204 = vmatprep.mubr.bf16.mxu1 %v8237_v43  ;;  %4430 = vmatprep.mubr.bf16.mxu0 %v8237_v43  ;;  %v2479_v43 = vld [vmem:[%s10591_s8] sm:$0xf] }
 0x5cd   : > { %5138 = vmatpush1.bf16.msra.mxu1 %v7947_v17  ;;  %5364 = vmatpush1.bf16.msra.mxu0 %v7950_v46  ;;  %v8022_v17 = vld [vmem:[%s10592_s9 + $0x1e8] ss:$16 sps:$4 sm:$0xff]   ;;  %v8027_v46 = vld [vmem:[%s10592_s9 + $0x204] ss:$16 sps:$4 sm:$0xff]  }
 0x5ce   : > { %5139 = vmatprep.subr.bf16.mxu1 %v7955_v48  ;;  %5365 = vmatprep.subr.bf16.mxu0 %v7958_v49  ;;  %v9842_v48 = vld [vmem:[%s10592_s9 + $0x20c] ss:$16 sps:$4 sm:$0xff]   ;;  %v10601_v49 = vsub.s32 2, %v8737_v2 }
 0x5d0   : > { %4205 = vmatmul.mubr.bf16.gmra.mrb[104].mxu1 %v8238_v24  ;;  %4431 = vmatmul.mubr.bf16.gmra.mrb[104].mxu0 %v8238_v24 }
 0x5d1   : > { %5140 = vmatpush1.bf16.msra.mxu1 %v7953_v50  ;;  %5366 = vmatpush1.bf16.msra.mxu0 %v7956_v53  ;;  %v10600_v50 = vsub.s32 3, %v8737_v2  ;;  %v9851_v53 = vrot.slane %v2479_v43, %v8740_v3 }
 0x5d2   : > { %5141 = vmatprep.subr.bf16.mxu1 %v7961_v56  ;;  %5367 = vmatprep.subr.bf16.mxu0 %v7964_v57  ;;  %v9855_v56 = vrot.slane %v2479_v43, %v10601_v49  ;;  %v9858_v57 = vrot.slane %v2479_v43, %v8746_v5 }
 0x5d3   : > { %4214 = vmatprep.mubr.bf16.mxu1 %v8239_v8  ;;  %4440 = vmatprep.mubr.bf16.mxu0 %v8239_v8  ;;  %v9862_v24 = vrot.slane %v2479_v43, %v10600_v50 }
 0x5d5   : > { %5142 = vmatpush1.bf16.msra.mxu1 %v7959_v58  ;;  %5368 = vmatpush1.bf16.msra.mxu0 %v7962_v1 }
 0x5d6   : > { %5143 = vmatprep.subr.bf16.mxu1 %v7967_v55  ;;  %5369 = vmatprep.subr.bf16.mxu0 %v7970_v36 }
 0x5d8   : > { %4215 = vmatmul.mubr.bf16.gmra.mrb[108].mxu1 %v8240_v9  ;;  %4441 = vmatmul.mubr.bf16.gmra.mrb[108].mxu0 %v8240_v9 }
 0x5d9   : > { %5144 = vmatpush1.bf16.msra.mxu1 %v7965_v51  ;;  %5370 = vmatpush1.bf16.msra.mxu0 %v7968_v11 }
 0x5da   : > { %5145 = vmatprep.subr.bf16.mxu1 %v7973_v63  ;;  %5371 = vmatprep.subr.bf16.mxu0 %v7976_v4 }
 0x5db   : > { %4224 = vmatprep.mubr.bf16.mxu1 %v8241_v59  ;;  %4450 = vmatprep.mubr.bf16.mxu0 %v8241_v59 }
 0x5dd   : > { %5146 = vmatpush1.bf16.msra.mxu1 %v7971_v23  ;;  %5372 = vmatpush1.bf16.msra.mxu0 %v7974_v10 }
 0x5de   : > { %5147 = vmatprep.subr.bf16.mxu1 %v7979_v27  ;;  %5373 = vmatprep.subr.bf16.mxu0 %v7982_v60 }
 0x5e0   : > { %4225 = vmatmul.mubr.bf16.gmra.mrb[112].mxu1 %v8242_v45  ;;  %4451 = vmatmul.mubr.bf16.gmra.mrb[112].mxu0 %v8242_v45 }
 0x5e1   : > { %5148 = vmatpush1.bf16.msra.mxu1 %v7977_v12  ;;  %5374 = vmatpush1.bf16.msra.mxu0 %v7980_v32 }
 0x5e2   : > { %5149 = vmatprep.subr.bf16.mxu1 %v7985_v13  ;;  %5375 = vmatprep.subr.bf16.mxu0 %v7988_v15 }
 0x5e3   : > { %4234 = vmatprep.mubr.bf16.mxu1 %v8243_v18  ;;  %4460 = vmatprep.mubr.bf16.mxu0 %v8243_v18 }
 0x5e5   : > { %5150 = vmatpush1.bf16.msra.mxu1 %v7983_v35  ;;  %5376 = vmatpush1.bf16.msra.mxu0 %v7986_v37 }
 0x5e6   : > { %5151 = vmatprep.subr.bf16.mxu1 %v7991_v61  ;;  %5377 = vmatprep.subr.bf16.mxu0 %v7994_v42 }
 0x5e8   : > { %4235 = vmatmul.mubr.bf16.gmra.mrb[116].mxu1 %v8244_v7  ;;  %4461 = vmatmul.mubr.bf16.gmra.mrb[116].mxu0 %v8244_v7 }
 0x5e9   : > { %5152 = vmatpush1.bf16.msra.mxu1 %v7989_v6  ;;  %5378 = vmatpush1.bf16.msra.mxu0 %v7992_v20 }
 0x5ea   : > { %5153 = vmatprep.subr.bf16.mxu1 %v7997_v19  ;;  %5379 = vmatprep.subr.bf16.mxu0 %v8000_v44 }
 0x5eb   : > { %4244 = vmatprep.mubr.bf16.mxu1 %v8245_v54  ;;  %4470 = vmatprep.mubr.bf16.mxu0 %v8245_v54 }
 0x5ed   : > { %5154 = vmatpush1.bf16.msra.mxu1 %v7995_v22  ;;  %5380 = vmatpush1.bf16.msra.mxu0 %v7998_v52  ;;  %v8025_v22 = vld [vmem:[%s10592_s9 + $0x200] ss:$16 sps:$4 sm:$0xff]   ;;  %v9882_v52 = vld [vmem:[%s10592_s9 + $0x208] ss:$16 sps:$4 sm:$0xff]  }
 0x5ee   : > { %5155 = vmatprep.subr.bf16.mxu1 %v8003_v25  ;;  %5381 = vmatprep.subr.bf16.mxu0 %v8006_v21 }
 0x5f0   : > { %4245 = vmatmul.mubr.bf16.gmra.mrb[120].mxu1 %v8246_v33  ;;  %4471 = vmatmul.mubr.bf16.gmra.mrb[120].mxu0 %v8246_v33 }
 0x5f1   : > { %5156 = vmatpush1.bf16.msra.mxu1 %v8001_v26  ;;  %5382 = vmatpush1.bf16.msra.mxu0 %v8004_v28  ;;  %v8033_v28 = vld [vmem:[%s10592_s9 + $0x224] ss:$16 sps:$4 sm:$0xff]  }
 0x5f2   : > { %5157 = vmatprep.subr.bf16.mxu1 %v8009_v30  ;;  %5383 = vmatprep.subr.bf16.mxu0 %v8012_v31  ;;  %v9892_v30 = vld [vmem:[%s10592_s9 + $0x22c] ss:$16 sps:$4 sm:$0xff]  }
 0x5f3   : > { %4254 = vmatprep.mubr.bf16.mxu1 %v8247_v29  ;;  %4480 = vmatprep.mubr.bf16.mxu0 %v8247_v29 }
 0x5f5   : > { %5158 = vmatpush1.bf16.msra.mxu1 %v8007_v62  ;;  %5384 = vmatpush1.bf16.msra.mxu0 %v8010_v34 }
 0x5f6   : > { %5159 = vmatprep.subr.bf16.mxu1 %v8015_v38  ;;  %5385 = vmatprep.subr.bf16.mxu0 %v8018_v0 }
 0x5f8   : > { %4255 = vmatmul.mubr.bf16.gmra.mrb[124].mxu1 %v8248_v14  ;;  %4481 = vmatmul.mubr.bf16.gmra.mrb[124].mxu0 %v8248_v14  ;;  %v9907_v14 = vld [vmem:[%s10592_s9 + $0x228] ss:$16 sps:$4 sm:$0xff]  }
 0x5f9   : > { %5160 = vmatpush1.bf16.msra.mxu1 %v8013_v16  ;;  %5386 = vmatpush1.bf16.msra.mxu0 %v8016_v39 }
 0x5fa   : > { %5161 = vmatprep.subr.bf16.mxu1 %v8021_v40  ;;  %5387 = vmatprep.subr.bf16.mxu0 %v8024_v41  ;;  %v8031_v41 = vld [vmem:[%s10592_s9 + $0x220] ss:$16 sps:$4 sm:$0xff]  }
 0x5fd   : > { %5162 = vmatpush1.bf16.msra.mxu1 %v8019_v47  ;;  %5388 = vmatpush1.bf16.msra.mxu0 %v8022_v17  ;;  %v8039_v47 = vld [vmem:[%s10592_s9 + $0x244] ss:$16 sps:$4 sm:$0xff]  }
 0x5fe   : > { %5244 = vmatprep.subr.bf16.mxu1 %v8027_v46  ;;  %5470 = vmatprep.subr.bf16.mxu0 %v9842_v48 }
 0x613   : > { %v2855_v58 = vpop.f32.mrb[64].mxu1  ;;  %v2968_v1 = vpop.f32.mrb[64].mxu0 }
 0x614   : > { %v2856_v55 = vadd.f32 %v2855_v58, %v9851_v53  ;;  %v2969_v36 = vadd.f32 %v2968_v1, %v9855_v56  ;;  %v2857_v8 = vpop.f32.mrb[65].mxu1  ;;  %v2970_v51 = vpop.f32.mrb[65].mxu0  ;;  %v9916_v1 = vld [vmem:[%s10592_s9 + $0x24c] ss:$16 sps:$4 sm:$0xff]  }
 0x615   : > { %v2858_v11 = vadd.f32 %v2857_v8, %v9858_v57  ;;  %v2971_v63 = vadd.f32 %v2970_v51, %v9862_v24  ;;  %v2859_v4 = vpop.f32.mrb[66].mxu1  ;;  %v2972_v9 = vpop.f32.mrb[66].mxu0 }
 0x616   : > { %v2860_v23 = vadd.f32 %v2859_v4, %v9851_v53  ;;  %v2973_v10 = vadd.f32 %v2972_v9, %v9855_v56  ;;  %v2861_v27 = vpop.f32.mrb[67].mxu1  ;;  %v2974_v60 = vpop.f32.mrb[67].mxu0  ;;  %v3047_v32 = vmax.f32 %v2856_v55, 0.0  ;;  %v3049_v13 = vmax.f32 %v2969_v36, 0.0 }
 0x617   : > { %v2862_v59 = vadd.f32 %v2861_v27, %v9858_v57  ;;  %v2975_v12 = vadd.f32 %v2974_v60, %v9862_v24  ;;  %v3048_v35 = vmax.f32 %v2858_v11, 0.0  ;;  %v3050_v37 = vmax.f32 %v2971_v63, 0.0  ;;  %v8037_v27 = vld [vmem:[%s10592_s9 + $0x240] ss:$16 sps:$4 sm:$0xff]   ;;  %v9929_v60 = vld [vmem:[%s10592_s9 + $0x248] ss:$16 sps:$4 sm:$0xff]  }
 0x618   : > { %v3051_v15 = vmax.f32 %v2860_v23, 0.0  ;;  %v3053_v45 = vmax.f32 %v2973_v10, 0.0 }
 0x619   : > { %v3052_v61 = vmax.f32 %v2862_v59, 0.0  ;;  %v3054_v42 = vmax.f32 %v2975_v12, 0.0 }
 0x61a   : > { %v3111_v18 = vpack.c.bf16 %v3051_v15, %v3047_v32  ;;  %v9872_v6 = vpack.c.bf16 %v3053_v45, %v3049_v13  ;;  %v8045_v15 = vld [vmem:[%s10592_s9 + $0x264] ss:$16 sps:$4 sm:$0xff]   ;;  %v9940_v45 = vld [vmem:[%s10592_s9 + $0x26c] ss:$16 sps:$4 sm:$0xff]  }
 0x61b   : > { %v3112_v20 = vpack.c.bf16 %v3052_v61, %v3048_v35  ;;  %v9874_v19 = vpack.c.bf16 %v3054_v42, %v3050_v37  ;;  %v2865_v44 = vpop.f32.mrb[68].mxu1  ;;  %v2978_v7 = vpop.f32.mrb[68].mxu0 }
 0x61c   : > { %v2866_v25 = vadd.f32 %v2865_v44, %v9851_v53  ;;  %v2979_v21 = vadd.f32 %v2978_v7, %v9855_v56  ;;  %v2867_v54 = vpop.f32.mrb[69].mxu1  ;;  %v2980_v26 = vpop.f32.mrb[69].mxu0 }
 0x61d   : > { %v2868_v31 = vadd.f32 %v2867_v54, %v9858_v57  ;;  %v2981_v33 = vadd.f32 %v2980_v26, %v9862_v24  ;;  %v2869_v62 = vpop.f32.mrb[70].mxu1  ;;  %v2982_v34 = vpop.f32.mrb[70].mxu0  ;;  %5163 = vmatprep.mubr.bf16.mxu1 %v3112_v20  ;;  %5389 = vmatprep.mubr.bf16.mxu0 %v3112_v20  ;;  %v9955_v54 = vld [vmem:[%s10592_s9 + $0x268] ss:$16 sps:$4 sm:$0xff]   ;;  %v8051_v26 = vld [vmem:[%s10592_s9 + $0x284] ss:$16 sps:$4 sm:$0xff]  }
 0x61e   : > { %v2870_v38 = vadd.f32 %v2869_v62, %v9851_v53  ;;  %v2983_v0 = vadd.f32 %v2982_v34, %v9855_v56  ;;  %v2871_v29 = vpop.f32.mrb[71].mxu1  ;;  %v2984_v16 = vpop.f32.mrb[71].mxu0  ;;  %5164 = vmatmul.mubr.bf16.vlgmr.msra.gmra.mrb[96].mxu1 %v3111_v18  ;;  %5390 = vmatmul.mubr.bf16.vlgmr.msra.gmra.mrb[96].mxu0 %v3111_v18  ;;  %v3055_v17 = vmax.f32 %v2866_v25, 0.0  ;;  %v3057_v46 = vmax.f32 %v2979_v21, 0.0  ;;  %v8043_v21 = vld [vmem:[%s10592_s9 + $0x260] ss:$16 sps:$4 sm:$0xff]  }
 0x61f   : > { %v2872_v39 = vadd.f32 %v2871_v29, %v9858_v57  ;;  %v2985_v40 = vadd.f32 %v2984_v16, %v9862_v24  ;;  %5245 = vmatpush1.bf16.msra.mxu1 %v8025_v22  ;;  %5471 = vmatpush1.bf16.msra.mxu0 %v9882_v52  ;;  %v3056_v55 = vmax.f32 %v2868_v31, 0.0  ;;  %v3058_v36 = vmax.f32 %v2981_v33, 0.0  ;;  %v9964_v34 = vld [vmem:[%s10592_s9 + $0x28c] ss:$16 sps:$4 sm:$0xff]  }
 0x620   : > { %v3059_v43 = vmax.f32 %v2870_v38, 0.0  ;;  %v3061_v58 = vmax.f32 %v2983_v0, 0.0  ;;  %5246 = vmatprep.subr.bf16.mxu1 %v8033_v28  ;;  %5472 = vmatprep.subr.bf16.mxu0 %v9892_v30 }
 0x621   : > { %v3060_v8 = vmax.f32 %v2872_v39, 0.0  ;;  %v3062_v51 = vmax.f32 %v2985_v40, 0.0 }
 0x622   : > { %v3115_v11 = vpack.c.bf16 %v3059_v43, %v3055_v17  ;;  %v9918_v63 = vpack.c.bf16 %v3061_v58, %v3057_v46  ;;  %v8049_v43 = vld [vmem:[%s10592_s9 + $0x280] ss:$16 sps:$4 sm:$0xff]   ;;  %v9977_v58 = vld [vmem:[%s10592_s9 + $0x288] ss:$16 sps:$4 sm:$0xff]  }
 0x623   : > { %v3116_v4 = vpack.c.bf16 %v3060_v8, %v3056_v55  ;;  %v9920_v9 = vpack.c.bf16 %v3062_v51, %v3058_v36  ;;  %v2875_v23 = vpop.f32.mrb[72].mxu1  ;;  %v2988_v10 = vpop.f32.mrb[72].mxu0  ;;  %5247 = vmatpush1.bf16.msra.mxu1 %v8031_v41  ;;  %5473 = vmatpush1.bf16.msra.mxu0 %v9907_v14 }
 0x624   : > { %v2876_v59 = vadd.f32 %v2875_v23, %v9851_v53  ;;  %v2989_v12 = vadd.f32 %v2988_v10, %v9855_v56  ;;  %v2877_v32 = vpop.f32.mrb[73].mxu1  ;;  %v2990_v13 = vpop.f32.mrb[73].mxu0  ;;  %5248 = vmatprep.subr.bf16.mxu1 %v8039_v47  ;;  %5474 = vmatprep.subr.bf16.mxu0 %v9916_v1 }
 0x625   : > { %v2878_v35 = vadd.f32 %v2877_v32, %v9858_v57  ;;  %v2991_v37 = vadd.f32 %v2990_v13, %v9862_v24  ;;  %v2879_v61 = vpop.f32.mrb[74].mxu1  ;;  %v2992_v42 = vpop.f32.mrb[74].mxu0  ;;  %5173 = vmatprep.mubr.bf16.mxu1 %v3116_v4  ;;  %5399 = vmatprep.mubr.bf16.mxu0 %v3116_v4  ;;  %v9988_v4 = vld [vmem:[%s10592_s9 + $0x2ac] ss:$16 sps:$4 sm:$0xff]  }
 0x626   : > { %v2880_v18 = vadd.f32 %v2879_v61, %v9851_v53  ;;  %v2993_v20 = vadd.f32 %v2992_v42, %v9855_v56  ;;  %v2881_v44 = vpop.f32.mrb[75].mxu1  ;;  %v2994_v7 = vpop.f32.mrb[75].mxu0  ;;  %5174 = vmatmul.mubr.bf16.gmra.mrb[100].mxu1 %v3115_v11  ;;  %5400 = vmatmul.mubr.bf16.gmra.mrb[100].mxu0 %v3115_v11  ;;  %v3063_v28 = vmax.f32 %v2876_v59, 0.0  ;;  %v3065_v31 = vmax.f32 %v2989_v12, 0.0  ;;  %v8057_v11 = vld [vmem:[%s10592_s9 + $0x2a4] ss:$16 sps:$4 sm:$0xff]  }
 0x627   : > { %v2882_v22 = vadd.f32 %v2881_v44, %v9858_v57  ;;  %v2995_v25 = vadd.f32 %v2994_v7, %v9862_v24  ;;  %5249 = vmatpush1.bf16.msra.mxu1 %v8037_v27  ;;  %5475 = vmatpush1.bf16.msra.mxu0 %v9929_v60  ;;  %v3064_v38 = vmax.f32 %v2878_v35, 0.0  ;;  %v3066_v0 = vmax.f32 %v2991_v37, 0.0  ;;  %v8055_v61 = vld [vmem:[%s10592_s9 + $0x2a0] ss:$16 sps:$4 sm:$0xff]   ;;  %v10003_v42 = vld [vmem:[%s10592_s9 + $0x2a8] ss:$16 sps:$4 sm:$0xff]  }
 0x628   : > { %v3067_v33 = vmax.f32 %v2880_v18, 0.0  ;;  %v3069_v62 = vmax.f32 %v2993_v20, 0.0  ;;  %5250 = vmatprep.subr.bf16.mxu1 %v8045_v15  ;;  %5476 = vmatprep.subr.bf16.mxu0 %v9940_v45  ;;  %v8063_v18 = vld [vmem:[%s10592_s9 + $0x2c4] ss:$16 sps:$4 sm:$0xff]  }
 0x629   : > { %v3068_v29 = vmax.f32 %v2882_v22, 0.0  ;;  %v3070_v16 = vmax.f32 %v2995_v25, 0.0  ;;  %v10012_v25 = vld [vmem:[%s10592_s9 + $0x2cc] ss:$16 sps:$4 sm:$0xff]  }
 0x62a   : > { %v3119_v39 = vpack.c.bf16 %v3067_v33, %v3063_v28  ;;  %v9966_v40 = vpack.c.bf16 %v3069_v62, %v3065_v31 }
 0x62b   : > { %v3120_v41 = vpack.c.bf16 %v3068_v29, %v3064_v38  ;;  %v9968_v47 = vpack.c.bf16 %v3070_v16, %v3066_v0  ;;  %v2885_v17 = vpop.f32.mrb[76].mxu1  ;;  %v2998_v46 = vpop.f32.mrb[76].mxu0  ;;  %5251 = vmatpush1.bf16.msra.mxu1 %v8043_v21  ;;  %5477 = vmatpush1.bf16.msra.mxu0 %v9955_v54 }
 0x62c   : > { %v2886_v55 = vadd.f32 %v2885_v17, %v9851_v53  ;;  %v2999_v36 = vadd.f32 %v2998_v46, %v9855_v56  ;;  %v2887_v8 = vpop.f32.mrb[77].mxu1  ;;  %v3000_v51 = vpop.f32.mrb[77].mxu0  ;;  %5252 = vmatprep.subr.bf16.mxu1 %v8051_v26  ;;  %5478 = vmatprep.subr.bf16.mxu0 %v9964_v34 }
 0x62d   : > { %v2888_v23 = vadd.f32 %v2887_v8, %v9858_v57  ;;  %v3001_v10 = vadd.f32 %v3000_v51, %v9862_v24  ;;  %v2889_v27 = vpop.f32.mrb[78].mxu1  ;;  %v3002_v59 = vpop.f32.mrb[78].mxu0  ;;  %5183 = vmatprep.mubr.bf16.mxu1 %v3120_v41  ;;  %5409 = vmatprep.mubr.bf16.mxu0 %v3120_v41  ;;  %v10025_v41 = vld [vmem:[%s10592_s9 + $0x2c8] ss:$16 sps:$4 sm:$0xff]   ;;  %v10036_v8 = vld [vmem:[%s10592_s9 + $0x2ec] ss:$16 sps:$4 sm:$0xff]  }
 0x62e   : > { %v2890_v12 = vadd.f32 %v2889_v27, %v9851_v53  ;;  %v3003_v32 = vadd.f32 %v3002_v59, %v9855_v56  ;;  %v2891_v13 = vpop.f32.mrb[79].mxu1  ;;  %v3004_v15 = vpop.f32.mrb[79].mxu0  ;;  %5184 = vmatmul.mubr.bf16.gmra.mrb[104].mxu1 %v3119_v39  ;;  %5410 = vmatmul.mubr.bf16.gmra.mrb[104].mxu0 %v3119_v39  ;;  %v3071_v20 = vmax.f32 %v2886_v55, 0.0  ;;  %v3073_v44 = vmax.f32 %v2999_v36, 0.0  ;;  %v8061_v39 = vld [vmem:[%s10592_s9 + $0x2c0] ss:$16 sps:$4 sm:$0xff]  }
 0x62f   : > { %v2892_v35 = vadd.f32 %v2891_v13, %v9858_v57  ;;  %v3005_v37 = vadd.f32 %v3004_v15, %v9862_v24  ;;  %5253 = vmatpush1.bf16.msra.mxu1 %v8049_v43  ;;  %5479 = vmatpush1.bf16.msra.mxu0 %v9977_v58  ;;  %v3072_v21 = vmax.f32 %v2888_v23, 0.0  ;;  %v3074_v26 = vmax.f32 %v3001_v10, 0.0  ;;  %v8069_v36 = vld [vmem:[%s10592_s9 + $0x2e4] ss:$16 sps:$4 sm:$0xff]  }
 0x630   : > { %v3075_v7 = vmax.f32 %v2890_v12, 0.0  ;;  %v3077_v22 = vmax.f32 %v3003_v32, 0.0  ;;  %5254 = vmatprep.subr.bf16.mxu1 %v8057_v11  ;;  %5480 = vmatprep.subr.bf16.mxu0 %v9988_v4 }
 0x631   : > { %v3076_v28 = vmax.f32 %v2892_v35, 0.0  ;;  %v3078_v31 = vmax.f32 %v3005_v37, 0.0  ;;  %v8067_v35 = vld [vmem:[%s10592_s9 + $0x2e0] ss:$16 sps:$4 sm:$0xff]   ;;  %v10051_v37 = vld [vmem:[%s10592_s9 + $0x2e8] ss:$16 sps:$4 sm:$0xff]  }
 0x632   : > { %v3123_v33 = vpack.c.bf16 %v3075_v7, %v3071_v20  ;;  %v10014_v62 = vpack.c.bf16 %v3077_v22, %v3073_v44  ;;  %v10060_v22 = vld [vmem:[%s10592_s9 + $0x30c] ss:$16 sps:$4 sm:$0xff]  }
 0x633   : > { %v3124_v38 = vpack.c.bf16 %v3076_v28, %v3072_v21  ;;  %v10016_v0 = vpack.c.bf16 %v3078_v31, %v3074_v26  ;;  %v2895_v29 = vpop.f32.mrb[80].mxu1  ;;  %v3008_v16 = vpop.f32.mrb[80].mxu0  ;;  %5255 = vmatpush1.bf16.msra.mxu1 %v8055_v61  ;;  %5481 = vmatpush1.bf16.msra.mxu0 %v10003_v42  ;;  %v8075_v61 = vld [vmem:[%s10592_s9 + $0x304] ss:$16 sps:$4 sm:$0xff]  }
 0x634   : > { %v2896_v17 = vadd.f32 %v2895_v29, %v9851_v53  ;;  %v3009_v46 = vadd.f32 %v3008_v16, %v9855_v56  ;;  %v2897_v43 = vpop.f32.mrb[81].mxu1  ;;  %v3010_v55 = vpop.f32.mrb[81].mxu0  ;;  %5256 = vmatprep.subr.bf16.mxu1 %v8063_v18  ;;  %5482 = vmatprep.subr.bf16.mxu0 %v10012_v25 }
 0x635   : > { %v2898_v51 = vadd.f32 %v2897_v43, %v9858_v57  ;;  %v3011_v11 = vadd.f32 %v3010_v55, %v9862_v24  ;;  %v2899_v23 = vpop.f32.mrb[82].mxu1  ;;  %v3012_v10 = vpop.f32.mrb[82].mxu0  ;;  %5193 = vmatprep.mubr.bf16.mxu1 %v3124_v38  ;;  %5419 = vmatprep.mubr.bf16.mxu0 %v3124_v38  ;;  %v10073_v43 = vld [vmem:[%s10592_s9 + $0x308] ss:$16 sps:$4 sm:$0xff]  }
 0x636   : > { %v2900_v27 = vadd.f32 %v2899_v23, %v9851_v53  ;;  %v3013_v59 = vadd.f32 %v3012_v10, %v9855_v56  ;;  %v2901_v12 = vpop.f32.mrb[83].mxu1  ;;  %v3014_v32 = vpop.f32.mrb[83].mxu0  ;;  %5194 = vmatmul.mubr.bf16.gmra.mrb[108].mxu1 %v3123_v33  ;;  %5420 = vmatmul.mubr.bf16.gmra.mrb[108].mxu0 %v3123_v33  ;;  %v3079_v18 = vmax.f32 %v2896_v17, 0.0  ;;  %v3081_v20 = vmax.f32 %v3009_v46, 0.0  ;;  %v8073_v46 = vld [vmem:[%s10592_s9 + $0x300] ss:$16 sps:$4 sm:$0xff]  }
 0x637   : > { %v2902_v13 = vadd.f32 %v2901_v12, %v9858_v57  ;;  %v3015_v15 = vadd.f32 %v3014_v32, %v9862_v24  ;;  %5257 = vmatpush1.bf16.msra.mxu1 %v8061_v39  ;;  %5483 = vmatpush1.bf16.msra.mxu0 %v10025_v41  ;;  %v3080_v21 = vmax.f32 %v2898_v51, 0.0  ;;  %v3082_v26 = vmax.f32 %v3011_v11, 0.0  ;;  %v8081_v23 = vld [vmem:[%s10592_s9 + $0x324] ss:$16 sps:$4 sm:$0xff]   ;;  %v10084_v10 = vld [vmem:[%s10592_s9 + $0x32c] ss:$16 sps:$4 sm:$0xff]  }
 0x638   : > { %v3083_v44 = vmax.f32 %v2900_v27, 0.0  ;;  %v3085_v7 = vmax.f32 %v3013_v59, 0.0  ;;  %5258 = vmatprep.subr.bf16.mxu1 %v8069_v36  ;;  %5484 = vmatprep.subr.bf16.mxu0 %v10036_v8 }
 0x639   : > { %v3084_v28 = vmax.f32 %v2902_v13, 0.0  ;;  %v3086_v31 = vmax.f32 %v3015_v15, 0.0 }
 0x63a   : > { %v3127_v33 = vpack.c.bf16 %v3083_v44, %v3079_v18  ;;  %v10062_v38 = vpack.c.bf16 %v3085_v7, %v3081_v20  ;;  %v8079_v44 = vld [vmem:[%s10592_s9 + $0x320] ss:$16 sps:$4 sm:$0xff]   ;;  %v10099_v7 = vld [vmem:[%s10592_s9 + $0x328] ss:$16 sps:$4 sm:$0xff]  }
 0x63b   : > { %v3128_v29 = vpack.c.bf16 %v3084_v28, %v3080_v21  ;;  %v10064_v16 = vpack.c.bf16 %v3086_v31, %v3082_v26  ;;  %v2905_v39 = vpop.f32.mrb[84].mxu1  ;;  %v3018_v17 = vpop.f32.mrb[84].mxu0  ;;  %5259 = vmatpush1.bf16.msra.mxu1 %v8067_v35  ;;  %5485 = vmatpush1.bf16.msra.mxu0 %v10051_v37  ;;  %v8087_v21 = vld [vmem:[%s10592_s9 + $0x344] ss:$16 sps:$4 sm:$0xff]  }
 0x63c   : > { %v2906_v55 = vadd.f32 %v2905_v39, %v9851_v53  ;;  %v3019_v36 = vadd.f32 %v3018_v17, %v9855_v56  ;;  %v2907_v51 = vpop.f32.mrb[85].mxu1  ;;  %v3020_v11 = vpop.f32.mrb[85].mxu0  ;;  %5260 = vmatprep.subr.bf16.mxu1 %v8075_v61  ;;  %5486 = vmatprep.subr.bf16.mxu0 %v10060_v22 }
 0x63d   : > { %v2908_v27 = vadd.f32 %v2907_v51, %v9858_v57  ;;  %v3021_v59 = vadd.f32 %v3020_v11, %v9862_v24  ;;  %v2909_v12 = vpop.f32.mrb[86].mxu1  ;;  %v3022_v32 = vpop.f32.mrb[86].mxu0  ;;  %5203 = vmatprep.mubr.bf16.mxu1 %v3128_v29  ;;  %5429 = vmatprep.mubr.bf16.mxu0 %v3128_v29  ;;  %v10108_v29 = vld [vmem:[%s10592_s9 + $0x34c] ss:$16 sps:$4 sm:$0xff]  }
 0x63e   : > { %v2910_v13 = vadd.f32 %v2909_v12, %v9851_v53  ;;  %v3023_v15 = vadd.f32 %v3022_v32, %v9855_v56  ;;  %v2911_v35 = vpop.f32.mrb[87].mxu1  ;;  %v3024_v61 = vpop.f32.mrb[87].mxu0  ;;  %5204 = vmatmul.mubr.bf16.gmra.mrb[112].mxu1 %v3127_v33  ;;  %5430 = vmatmul.mubr.bf16.gmra.mrb[112].mxu0 %v3127_v33  ;;  %v3087_v26 = vmax.f32 %v2906_v55, 0.0  ;;  %v3089_v28 = vmax.f32 %v3019_v36, 0.0 }
 0x63f   : > { %v2912_v18 = vadd.f32 %v2911_v35, %v9858_v57  ;;  %v3025_v20 = vadd.f32 %v3024_v61, %v9862_v24  ;;  %5261 = vmatpush1.bf16.msra.mxu1 %v8073_v46  ;;  %5487 = vmatpush1.bf16.msra.mxu0 %v10073_v43  ;;  %v3088_v39 = vmax.f32 %v2908_v27, 0.0  ;;  %v3090_v17 = vmax.f32 %v3021_v59, 0.0  ;;  %v10121_v27 = vld [vmem:[%s10592_s9 + $0x348] ss:$16 sps:$4 sm:$0xff]  }
 0x640   : > { %v3091_v31 = vmax.f32 %v2910_v13, 0.0  ;;  %v3093_v33 = vmax.f32 %v3023_v15, 0.0  ;;  %5262 = vmatprep.subr.bf16.mxu1 %v8081_v23  ;;  %5488 = vmatprep.subr.bf16.mxu0 %v10084_v10  ;;  %v8085_v23 = vld [vmem:[%s10592_s9 + $0x340] ss:$16 sps:$4 sm:$0xff]  }
 0x641   : > { %v3092_v46 = vmax.f32 %v2912_v18, 0.0  ;;  %v3094_v51 = vmax.f32 %v3025_v20, 0.0  ;;  %v8093_v18 = vld [vmem:[%s10592_s9 + $0x364] ss:$16 sps:$4 sm:$0xff]   ;;  %v10132_v20 = vld [vmem:[%s10592_s9 + $0x36c] ss:$16 sps:$4 sm:$0xff]  }
 0x642   : > { %v3131_v11 = vpack.c.bf16 %v3091_v31, %v3087_v26  ;;  %v10110_v12 = vpack.c.bf16 %v3093_v33, %v3089_v28 }
 0x643   : > { %v3132_v32 = vpack.c.bf16 %v3092_v46, %v3088_v39  ;;  %v10112_v55 = vpack.c.bf16 %v3094_v51, %v3090_v17  ;;  %v2915_v36 = vpop.f32.mrb[88].mxu1  ;;  %v3028_v13 = vpop.f32.mrb[88].mxu0  ;;  %5263 = vmatpush1.bf16.msra.mxu1 %v8079_v44  ;;  %5489 = vmatpush1.bf16.msra.mxu0 %v10099_v7 }
 0x644   : > { %v2916_v59 = vadd.f32 %v2915_v36, %v9851_v53  ;;  %v3029_v15 = vadd.f32 %v3028_v13, %v9855_v56  ;;  %v2917_v35 = vpop.f32.mrb[89].mxu1  ;;  %v3030_v61 = vpop.f32.mrb[89].mxu0  ;;  %5264 = vmatprep.subr.bf16.mxu1 %v8087_v21  ;;  %5490 = vmatprep.subr.bf16.mxu0 %v10108_v29  ;;  %v8091_v36 = vld [vmem:[%s10592_s9 + $0x360] ss:$16 sps:$4 sm:$0xff]  }
 0x645   : > { %v2918_v44 = vadd.f32 %v2917_v35, %v9858_v57  ;;  %v3031_v26 = vadd.f32 %v3030_v61, %v9862_v24  ;;  %v2919_v28 = vpop.f32.mrb[90].mxu1  ;;  %v3032_v31 = vpop.f32.mrb[90].mxu0  ;;  %5213 = vmatprep.mubr.bf16.mxu1 %v3132_v32  ;;  %5439 = vmatprep.mubr.bf16.mxu0 %v3132_v32  ;;  %v10147_v32 = vld [vmem:[%s10592_s9 + $0x368] ss:$16 sps:$4 sm:$0xff]  }
 0x646   : > { %v2920_v21 = vadd.f32 %v2919_v28, %v9851_v53  ;;  %v3033_v33 = vadd.f32 %v3032_v31, %v9855_v56  ;;  %v2921_v39 = vpop.f32.mrb[91].mxu1  ;;  %v3034_v17 = vpop.f32.mrb[91].mxu0  ;;  %5214 = vmatmul.mubr.bf16.gmra.mrb[116].mxu1 %v3131_v11  ;;  %5440 = vmatmul.mubr.bf16.gmra.mrb[116].mxu0 %v3131_v11  ;;  %v8099_v11 = vld [vmem:[%s10592_s9 + $0x384] ss:$16 sps:$4 sm:$0xff]   ;;  %v3095_v13 = vmax.f32 %v2916_v59, 0.0  ;;  %v3097_v35 = vmax.f32 %v3029_v15, 0.0 }
 0x647   : > { %v2922_v46 = vadd.f32 %v2921_v39, %v9858_v57  ;;  %v3035_v51 = vadd.f32 %v3034_v17, %v9862_v24  ;;  %5265 = vmatpush1.bf16.msra.mxu1 %v8085_v23  ;;  %5491 = vmatpush1.bf16.msra.mxu0 %v10121_v27  ;;  %v10156_v23 = vld [vmem:[%s10592_s9 + $0x38c] ss:$16 sps:$4 sm:$0xff]   ;;  %v3096_v31 = vmax.f32 %v2918_v44, 0.0  ;;  %v3098_v39 = vmax.f32 %v3031_v26, 0.0  ;;  %v10169_v44 = vld [vmem:[%s10592_s9 + $0x388] ss:$16 sps:$4 sm:$0xff]  }
 0x648   : > { %v3099_v61 = vmax.f32 %v2920_v21, 0.0  ;;  %v3101_v28 = vmax.f32 %v3033_v33, 0.0  ;;  %5266 = vmatprep.subr.bf16.mxu1 %v8093_v18  ;;  %5492 = vmatprep.subr.bf16.mxu0 %v10132_v20  ;;  %v8097_v18 = vld [vmem:[%s10592_s9 + $0x380] ss:$16 sps:$4 sm:$0xff]   ;;  %10614 = vst [vmem:[#allocation9_spill] sm:$0xff] %v10169_v44 }
 0x649   : > { %v3100_v17 = vmax.f32 %v2922_v46, 0.0  ;;  %v3102_v50 = vmax.f32 %v3035_v51, 0.0  ;;  %v8105_v51 = vld [vmem:[%s10592_s9 + $0x3a4] ss:$16 sps:$4 sm:$0xff]  }
 0x64a   : > { %v3135_v49 = vpack.c.bf16 %v3099_v61, %v3095_v13  ;;  %v10158_v5 = vpack.c.bf16 %v3101_v28, %v3097_v35 }
 0x64b   : > { %v3136_v2 = vpack.c.bf16 %v3100_v17, %v3096_v31  ;;  %v10160_v59 = vpack.c.bf16 %v3102_v50, %v3098_v39  ;;  %v2925_v15 = vpop.f32.mrb[92].mxu1  ;;  %v3038_v21 = vpop.f32.mrb[92].mxu0  ;;  %5267 = vmatpush1.bf16.msra.mxu1 %v8091_v36  ;;  %5493 = vmatpush1.bf16.msra.mxu0 %v10147_v32  ;;  %v10180_v36 = vld [vmem:[%s10592_s9 + $0x3ac] ss:$16 sps:$4 sm:$0xff]  }
 0x64c   : > { %v2926_v26 = vadd.f32 %v2925_v15, %v9851_v53  ;;  %v3039_v33 = vadd.f32 %v3038_v21, %v9855_v56  ;;  %v2927_v50 = vpop.f32.mrb[93].mxu1  ;;  %v3040_v46 = vpop.f32.mrb[93].mxu0  ;;  %5268 = vmatprep.subr.bf16.mxu1 %v8099_v11  ;;  %5494 = vmatprep.subr.bf16.mxu0 %v10156_v23 }
 0x64d   : > { %v2928_v13 = vadd.f32 %v2927_v50, %v9858_v57  ;;  %v3041_v35 = vadd.f32 %v3040_v46, %v9862_v24  ;;  %v2929_v61 = vpop.f32.mrb[94].mxu1  ;;  %v3042_v28 = vpop.f32.mrb[94].mxu0  ;;  %5223 = vmatprep.mubr.bf16.mxu1 %v3136_v2  ;;  %5449 = vmatprep.mubr.bf16.mxu0 %v3136_v2  ;;  %v8103_v50 = vld [vmem:[%s10592_s9 + $0x3a0] ss:$16 sps:$4 sm:$0xff]   ;;  %v10195_v2 = vld [vmem:[%s10592_s9 + $0x3a8] ss:$16 sps:$4 sm:$0xff]  }
 0x64e   : > { %v2930_v11 = vadd.f32 %v2929_v61, %v9851_v53  ;;  %v3043_v31 = vadd.f32 %v3042_v28, %v9855_v56  ;;  %v2931_v39 = vpop.f32.mrb[95].mxu1  ;;  %v3044_v17 = vpop.f32.mrb[95].mxu0  ;;  %5224 = vmatmul.mubr.bf16.gmra.mrb[120].mxu1 %v3135_v49  ;;  %5450 = vmatmul.mubr.bf16.gmra.mrb[120].mxu0 %v3135_v49  ;;  %v8111_v49 = vld [vmem:[%s10592_s9 + $0x3c4] ss:$16 sps:$4 sm:$0xff]   ;;  %v3103_v53 = vmax.f32 %v2926_v26, 0.0  ;;  %v3105_v56 = vmax.f32 %v3039_v33, 0.0 }
 0x64f   : > { %v2932_v15 = vadd.f32 %v2931_v39, %v9858_v57  ;;  %v3045_v21 = vadd.f32 %v3044_v17, %v9862_v24  ;;  %5269 = vmatpush1.bf16.msra.mxu1 %v8097_v18  ;;  %5495 = vmatpush1.bf16.msra.mxu0 %v10169_v44  ;;  %v10204_v18 = vld [vmem:[%s10592_s9 + $0x3cc] ss:$16 sps:$4 sm:$0xff]   ;;  %v3104_v46 = vmax.f32 %v2928_v13, 0.0  ;;  %v3106_v61 = vmax.f32 %v3041_v35, 0.0  ;;  %v8109_v33 = vld [vmem:[%s10592_s9 + $0x3c0] ss:$16 sps:$4 sm:$0xff]  }
 0x650   : > { %v3107_v57 = vmax.f32 %v2930_v11, 0.0  ;;  %v3109_v24 = vmax.f32 %v3043_v31, 0.0  ;;  %5270 = vmatprep.subr.bf16.mxu1 %v8105_v51  ;;  %5496 = vmatprep.subr.bf16.mxu0 %v10180_v36  ;;  %v10217_v51 = vld [vmem:[%s10592_s9 + $0x3c8] ss:$16 sps:$4 sm:$0xff]   ;;  %v8117_v13 = vld [vmem:[%s10592_s9 + $0x3e4] ss:$16 sps:$4 sm:$0xff]  }
 0x651   : > { %v3108_v28 = vmax.f32 %v2932_v15, 0.0  ;;  %v3110_v39 = vmax.f32 %v3045_v21, 0.0  ;;  %v10226_v35 = vld [vmem:[%s10592_s9 + $0x3ec] ss:$16 sps:$4 sm:$0xff]   ;;  %v8115_v11 = vld [vmem:[%s10592_s9 + $0x3e0] ss:$16 sps:$4 sm:$0xff]  }
 0x652   : > { %v3139_v17 = vpack.c.bf16 %v3107_v57, %v3103_v53  ;;  %v10206_v3 = vpack.c.bf16 %v3109_v24, %v3105_v56  ;;  %v5583_v56 = vld [vmem:[%s10594_s11] sm:$0xf]  ;;  %v10616_v24 = vld [vmem:[#allocation7_spill] sm:$0xff] }
 0x653   : > { %v3140_v44 = vpack.c.bf16 %v3108_v28, %v3104_v46  ;;  %v10208_v26 = vpack.c.bf16 %v3110_v39, %v3106_v61  ;;  %5271 = vmatpush1.bf16.msra.mxu1 %v8103_v50  ;;  %5497 = vmatpush1.bf16.msra.mxu0 %v10195_v2  ;;  %v10617_v46 = vld [vmem:[#allocation6_spill] sm:$0xff]  ;;  %v10619_v39 = vld [vmem:[#allocation8_spill] sm:$0xff] }
 0x654   : > { %5272 = vmatprep.subr.bf16.mxu1 %v8111_v49  ;;  %5498 = vmatprep.subr.bf16.mxu0 %v10204_v18  ;;  %v10618_v61 = vsub.s32 2, %v10617_v46 }
 0x655   : > { %5233 = vmatprep.mubr.bf16.mxu1 %v3140_v44  ;;  %5459 = vmatprep.mubr.bf16.mxu0 %v3140_v44  ;;  %v8118_v44 = vld [vmem:[%s10592_s9 + $0x3e8] ss:$16 sps:$4 sm:$0xff]  }
 0x656   : > { %5234 = vmatmul.mubr.bf16.gmra.mrb[124].mxu1 %v3139_v17  ;;  %5460 = vmatmul.mubr.bf16.gmra.mrb[124].mxu0 %v3139_v17  ;;  %v10435_v28 = vrot.slane %v5583_v56, %v10618_v61  ;;  %v10438_v17 = vrot.slane %v5583_v56, %v10619_v39 }
 0x657   : > { %5273 = vmatpush1.bf16.msra.mxu1 %v8109_v33  ;;  %5276 = vmatprep.mubr.bf16.mxu1 %v9874_v19 }
 0x658   : > { %5499 = vmatpush1.bf16.msra.mxu0 %v10217_v51  ;;  %5502 = vmatprep.mubr.bf16.mxu0 %v9874_v19  ;;  %v8122_v19 = vld [vmem:[%s10595_s12 + $0xc0] sm:$0xff]  }
 0x659   : > { %5274 = vmatprep.subr.bf16.mxu1 %v8117_v13  ;;  %5500 = vmatprep.subr.bf16.mxu0 %v10226_v35 }
 0x65b   : > { %5275 = vmatpush1.bf16.msra.mxu1 %v8115_v11 }
 0x65c   : > { %5501 = vmatpush1.bf16.msra.mxu0 %v8118_v44  ;;  %7080 = vmatprep.subr.bf16.mxu1 %v9842_v48  ;;  %v10615_v48 = vld [vmem:[#allocation9_spill] sm:$0xff] }
 0x65d   : > { %7016 = vmatprep.subr.bf16.mxu0 %v8122_v19 }
 0x65e   : > { %5277 = vmatmul.mubr.bf16.vlgmr.msra.gmra.mrb[96].mxu1 %v9872_v6 }
 0x65f   : > { %5503 = vmatmul.mubr.bf16.vlgmr.msra.gmra.mrb[96].mxu0 %v9872_v6  ;;  %5286 = vmatprep.mubr.bf16.mxu1 %v9920_v9  ;;  %v8121_v6 = vld [vmem:[%s10595_s12 + $0x40] sm:$0xff]  }
 0x660   : > { %7096 = vmatpush1.bf16.msra.mxu1 %v9882_v52  ;;  %5512 = vmatprep.mubr.bf16.mxu0 %v9920_v9  ;;  %v8123_v52 = vld [vmem:[%s10595_s12] sm:$0xff]   ;;  %v8128_v9 = vld [vmem:[%s10595_s12 + $0x88] sm:$0xff]  }
 0x661   : > { %7081 = vmatprep.subr.bf16.mxu1 %v9892_v30  ;;  %v8124_v30 = vld [vmem:[%s10595_s12 + $0x80] sm:$0xff]  }
 0x662   : > { %7017 = vmatpush3.bf16.msra.mxu0 %v8124_v30 }
 0x664   : > { %7097 = vmatpush1.bf16.msra.mxu1 %v9907_v14  ;;  %v8125_v14 = vld [vmem:[%s10595_s12 + $0x48] sm:$0xff]  }
 0x665   : > { %7082 = vmatprep.subr.bf16.mxu1 %v9916_v1  ;;  %v8126_v1 = vld [vmem:[%s10595_s12 + $0xc8] sm:$0xff]  }
 0x666   : > { %5287 = vmatmul.mubr.bf16.gmra.mrb[100].mxu1 %v9918_v63  ;;  %7018 = vmatprep.subr.bf16.mxu0 %v8126_v1 }
 0x667   : > { %5513 = vmatmul.mubr.bf16.gmra.mrb[100].mxu0 %v9918_v63  ;;  %5296 = vmatprep.mubr.bf16.mxu1 %v9968_v47  ;;  %v8127_v63 = vld [vmem:[%s10595_s12 + $0x8] sm:$0xff]  }
 0x668   : > { %7098 = vmatpush1.bf16.msra.mxu1 %v9929_v60  ;;  %5522 = vmatprep.mubr.bf16.mxu0 %v9968_v47  ;;  %v8129_v60 = vld [vmem:[%s10595_s12 + $0x50] sm:$0xff]   ;;  %v8134_v47 = vld [vmem:[%s10595_s12 + $0xd8] sm:$0xff]  }
 0x669   : > { %7083 = vmatprep.subr.bf16.mxu1 %v9940_v45  ;;  %7019 = vmatpush3.bf16.msra.mxu0 %v8128_v9  ;;  %v8130_v45 = vld [vmem:[%s10595_s12 + $0xd0] sm:$0xff]  }
 0x66a   : > { %7020 = vmatprep.subr.bf16.mxu0 %v8130_v45 }
 0x66c   : > { %7099 = vmatpush1.bf16.msra.mxu1 %v9955_v54  ;;  %v8131_v54 = vld [vmem:[%s10595_s12 + $0x10] sm:$0xff]  }
 0x66d   : > { %7084 = vmatprep.subr.bf16.mxu1 %v9964_v34  ;;  %v8132_v34 = vld [vmem:[%s10595_s12 + $0x90] sm:$0xff]  }
 0x66e   : > { %5297 = vmatmul.mubr.bf16.gmra.mrb[104].mxu1 %v9966_v40  ;;  %7021 = vmatpush3.bf16.msra.mxu0 %v8132_v34 }
 0x66f   : > { %5523 = vmatmul.mubr.bf16.gmra.mrb[104].mxu0 %v9966_v40  ;;  %5306 = vmatprep.mubr.bf16.mxu1 %v10016_v0  ;;  %v8133_v40 = vld [vmem:[%s10595_s12 + $0x58] sm:$0xff]  }
 0x670   : > { %7100 = vmatpush1.bf16.msra.mxu1 %v9977_v58  ;;  %5532 = vmatprep.mubr.bf16.mxu0 %v10016_v0  ;;  %v8135_v58 = vld [vmem:[%s10595_s12 + $0x18] sm:$0xff]   ;;  %v8140_v0 = vld [vmem:[%s10595_s12 + $0xa0] sm:$0xff]  }
 0x671   : > { %7085 = vmatprep.subr.bf16.mxu1 %v9988_v4  ;;  %7022 = vmatprep.subr.bf16.mxu0 %v8134_v47  ;;  %v8136_v4 = vld [vmem:[%s10595_s12 + $0x98] sm:$0xff]  }
 0x672   : > { %7023 = vmatpush3.bf16.msra.mxu0 %v8136_v4 }
 0x674   : > { %7101 = vmatpush1.bf16.msra.mxu1 %v10003_v42  ;;  %v8137_v42 = vld [vmem:[%s10595_s12 + $0x60] sm:$0xff]  }
 0x675   : > { %7086 = vmatprep.subr.bf16.mxu1 %v10012_v25  ;;  %v8138_v25 = vld [vmem:[%s10595_s12 + $0xe0] sm:$0xff]  }
 0x676   : > { %5307 = vmatmul.mubr.bf16.gmra.mrb[108].mxu1 %v10014_v62  ;;  %7024 = vmatprep.subr.bf16.mxu0 %v8138_v25 }
 0x677   : > { %5533 = vmatmul.mubr.bf16.gmra.mrb[108].mxu0 %v10014_v62  ;;  %5316 = vmatprep.mubr.bf16.mxu1 %v10064_v16  ;;  %v8139_v62 = vld [vmem:[%s10595_s12 + $0x20] sm:$0xff]  }
 0x678   : > { %7102 = vmatpush1.bf16.msra.mxu1 %v10025_v41  ;;  %v8141_v41 = vld [vmem:[%s10595_s12 + $0x68] sm:$0xff]   ;;  %7025 = vmatpush3.bf16.msra.mxu0 %v8140_v0 }
 0x679   : > { %7087 = vmatprep.subr.bf16.mxu1 %v10036_v8  ;;  %v8142_v8 = vld [vmem:[%s10595_s12 + $0xe8] sm:$0xff]  }
 0x67a   : > { %7026 = vmatprep.subr.bf16.mxu0 %v8142_v8 }
 0x67c   : > { %7103 = vmatpush1.bf16.msra.mxu1 %v10051_v37  ;;  %v8143_v37 = vld [vmem:[%s10595_s12 + $0x28] sm:$0xff]  }
 0x67d   : > { %7088 = vmatprep.subr.bf16.mxu1 %v10060_v22  ;;  %v8144_v22 = vld [vmem:[%s10595_s12 + $0xa8] sm:$0xff]  }
 0x67e   : > { %5317 = vmatmul.mubr.bf16.gmra.mrb[112].mxu1 %v10062_v38  ;;  %7027 = vmatpush3.bf16.msra.mxu0 %v8144_v22 }
 0x67f   : > { %5326 = vmatprep.mubr.bf16.mxu1 %v10112_v55 }
 0x680   : > { %7104 = vmatpush1.bf16.msra.mxu1 %v10073_v43  ;;  %v8148_v43 = vld [vmem:[%s10595_s12 + $0xb0] sm:$0xff]  }
 0x681   : > { %7089 = vmatprep.subr.bf16.mxu1 %v10084_v10  ;;  %v8149_v10 = vld [vmem:[%s10595_s12 + $0x78] sm:$0xff]  }
 0x684   : > { %7105 = vmatpush1.bf16.msra.mxu1 %v10099_v7  ;;  %v8150_v7 = vld [vmem:[%s10595_s12 + $0xf8] sm:$0xff]  }
 0x685   : > { %7090 = vmatprep.subr.bf16.mxu1 %v10108_v29  ;;  %v8151_v29 = vld [vmem:[%s10595_s12 + $0x38] sm:$0xff]  }
 0x686   : > { %5327 = vmatmul.mubr.bf16.gmra.mrb[116].mxu1 %v10110_v12 }
 0x687   : > { %5336 = vmatprep.mubr.bf16.mxu1 %v10160_v59 }
 0x688   : > { %7106 = vmatpush1.bf16.msra.mxu1 %v10121_v27 }
 0x689   : > { %7091 = vmatprep.subr.bf16.mxu1 %v10132_v20 }
 0x68c   : > { %7107 = vmatpush1.bf16.msra.mxu1 %v10147_v32 }
 0x68d   : > { %7092 = vmatprep.subr.bf16.mxu1 %v10156_v23 }
 0x68e   : > { %5337 = vmatmul.mubr.bf16.gmra.mrb[120].mxu1 %v10158_v5 }
 0x68f   : > { %5346 = vmatprep.mubr.bf16.mxu1 %v10208_v26 }
 0x690   : > { %7108 = vmatpush1.bf16.msra.mxu1 %v10615_v48 }
 0x691   : > { %7093 = vmatprep.subr.bf16.mxu1 %v10180_v36 }
 0x694   : > { %7109 = vmatpush1.bf16.msra.mxu1 %v10195_v2 }
 0x695   : > { %7094 = vmatprep.subr.bf16.mxu1 %v10204_v18  ;;  %v10431_v18 = vrot.slane %v5583_v56, %v10616_v24 }
 0x696   : > { %5347 = vmatmul.mubr.bf16.gmra.mrb[124].mxu1 %v10206_v3 }
 0x697   : > { %5542 = vmatprep.mubr.bf16.mxu1 %v10064_v16  ;;  %v8147_v16 = vld [vmem:[%s10595_s12 + $0x30] sm:$0xff]  }
 0x698   : > { %7110 = vmatpush1.bf16.msra.mxu1 %v10217_v51 }
 0x699   : > { %7095 = vmatprep.subr.bf16.mxu1 %v10226_v35 }
 0x69c   : > { %7111 = vmatpush1.bf16.msra.mxu1 %v8118_v44 }
 0x69d   : > { %6952 = vmatprep.subr.bf16.mxu1 %v8121_v6 }
 0x69f   : > { %5543 = vmatmul.mubr.bf16.vlgmr.msra.gmra.mrb[128].mxu1 %v10062_v38  ;;  %v8145_v38 = vld [vmem:[%s10595_s12 + $0x70] sm:$0xff]  }
 0x6a0   : > { %5552 = vmatprep.mubr.bf16.mxu1 %v10112_v55  ;;  %6953 = vmatpush3.bf16.msra.mxu1 %v8123_v52 }
 0x6a1   : > { %6954 = vmatprep.subr.bf16.mxu1 %v8125_v14 }
 0x6a4   : > { %6955 = vmatpush3.bf16.msra.mxu1 %v8127_v63 }
 0x6a5   : > { %6956 = vmatprep.subr.bf16.mxu1 %v8129_v60 }
 0x6a7   : > { %5553 = vmatmul.mubr.bf16.gmra.mrb[132].mxu1 %v10110_v12  ;;  %v8152_v12 = vld [vmem:[%s10595_s12 + $0xb8] sm:$0xff]  }
 0x6a8   : > { %5562 = vmatprep.mubr.bf16.mxu1 %v10160_v59  ;;  %6957 = vmatpush3.bf16.msra.mxu1 %v8131_v54 }
 0x6a9   : > { %6958 = vmatprep.subr.bf16.mxu1 %v8133_v40 }
 0x6ac   : > { %6959 = vmatpush3.bf16.msra.mxu1 %v8135_v58 }
 0x6ad   : > { %6960 = vmatprep.subr.bf16.mxu1 %v8137_v42 }
 0x6af   : > { %5563 = vmatmul.mubr.bf16.gmra.mrb[136].mxu1 %v10158_v5  ;;  %v8146_v5 = vld [vmem:[%s10595_s12 + $0xf0] sm:$0xff]  }
 0x6b0   : > { %5572 = vmatprep.mubr.bf16.mxu1 %v10208_v26  ;;  %6961 = vmatpush3.bf16.msra.mxu1 %v8139_v62  ;;  %v10620_v26 = vsub.s32 3, %v10617_v46 }
 0x6b1   : > { %6962 = vmatprep.subr.bf16.mxu1 %v8141_v41  ;;  %7028 = vmatprep.subr.bf16.mxu0 %v8146_v5 }
 0x6b2   : > { %7029 = vmatpush3.bf16.msra.mxu0 %v8148_v43  ;;  %v10442_v33 = vrot.slane %v5583_v56, %v10620_v26 }
 0x6b3   : > { %7030 = vmatprep.subr.bf16.mxu0 %v8150_v7 }
 0x6b4   : > { %6963 = vmatpush3.bf16.msra.mxu1 %v8143_v37 }
 0x6b5   : > { %6964 = vmatprep.subr.bf16.mxu1 %v8145_v38 }
 0x6b6   : > { %7031 = vmatpush3.bf16.msra.mxu0 %v8152_v12 }
 0x6b7   : > { %5573 = vmatmul.mubr.bf16.gmra.mrb[140].mxu1 %v10206_v3 }
 0x6b8   : > { %6965 = vmatpush3.bf16.msra.mxu1 %v8147_v16 }
 0x6b9   : > { %6966 = vmatprep.subr.bf16.mxu1 %v8149_v10 }
 0x6bc   : > { %6967 = vmatpush3.bf16.msra.mxu1 %v8151_v29 }
 0x711   : > { %v10395_v3 = vpop.f32.mrb[112].mxu0 }
 0x712   : > { %v10397_v55 = vpop.f32.mrb[113].mxu0 }
 0x713   : > { %v10399_v27 = vpop.f32.mrb[114].mxu0 }
 0x714   : > { %v10401_v20 = vpop.f32.mrb[115].mxu0 }
 0x719   : > { %v10403_v32 = vpop.f32.mrb[116].mxu0 }
 0x71a   : > { %v10405_v23 = vpop.f32.mrb[117].mxu0 }
 0x71b   : > { %v10407_v59 = vpop.f32.mrb[118].mxu0 }
 0x71c   : > { %v10409_v36 = vpop.f32.mrb[119].mxu0 }
 0x721   : > { %v10411_v31 = vpop.f32.mrb[120].mxu0 }
 0x722   : > { %v10413_v15 = vpop.f32.mrb[121].mxu0 }
 0x723   : > { %v10415_v21 = vpop.f32.mrb[122].mxu0 }
 0x724   : > { %v10417_v50 = vpop.f32.mrb[123].mxu0 }
 0x729   : > { %v10419_v2 = vpop.f32.mrb[124].mxu0 }
 0x72a   : > { %v10421_v49 = vpop.f32.mrb[125].mxu0 }
 0x72b   : > { %v10423_v53 = vpop.f32.mrb[126].mxu0 }
 0x72c   : > { %v10428_v57 = vpop.f32.mrb[127].mxu0 }
 0x731   : > { %v5278_v51 = vpop.f32.mrb[96].mxu1 }
 0x732   : > { %v5605_v13 = vadd.f32 %v10431_v18, %v5278_v51  ;;  %v5504_v35 = vpop.f32.mrb[96].mxu0  ;;  %v5280_v11 = vpop.f32.mrb[97].mxu1 }
 0x733   : > { %v5607_v44 = vadd.f32 %v10435_v28, %v5504_v35  ;;  %v5606_v48 = vadd.f32 %v10438_v17, %v5280_v11  ;;  %v5506_v6 = vpop.f32.mrb[97].mxu0  ;;  %v5282_v19 = vpop.f32.mrb[98].mxu1 }
 0x734   : > { %v5608_v52 = vadd.f32 %v10442_v33, %v5506_v6  ;;  %v5609_v30 = vadd.f32 %v10431_v18, %v5282_v19  ;;  %v5508_v14 = vpop.f32.mrb[98].mxu0  ;;  %v5284_v1 = vpop.f32.mrb[99].mxu1  ;;  %v5669_v45 = vmax.f32 %v5605_v13, 0.0 }
 0x735   : > { %v5611_v63 = vadd.f32 %v10435_v28, %v5508_v14  ;;  %v5610_v9 = vadd.f32 %v10438_v17, %v5284_v1  ;;  %v5510_v60 = vpop.f32.mrb[99].mxu0  ;;  %v5671_v40 = vmax.f32 %v5607_v44, 0.0  ;;  %v5670_v47 = vmax.f32 %v5606_v48, 0.0 }
 0x736   : > { %v5673_v54 = vmax.f32 %v5609_v30, 0.0  ;;  %v5612_v34 = vadd.f32 %v10442_v33, %v5510_v60  ;;  %v5672_v42 = vmax.f32 %v5608_v52, 0.0 }
 0x737   : > { %v5675_v58 = vmax.f32 %v5611_v63, 0.0  ;;  %v5674_v4 = vmax.f32 %v5610_v9, 0.0 }
 0x738   : > { %v5733_v25 = vpack.c.bf16 %v5673_v54, %v5669_v45  ;;  %v5676_v62 = vmax.f32 %v5612_v34, 0.0 }
 0x739   : > { %v5735_v0 = vpack.c.bf16 %v5675_v58, %v5671_v40  ;;  %v5734_v41 = vpack.c.bf16 %v5674_v4, %v5670_v47  ;;  %v5288_v8 = vpop.f32.mrb[100].mxu1 }
 0x73a   : > { %v5736_v37 = vpack.c.bf16 %v5676_v62, %v5672_v42  ;;  %v5613_v22 = vadd.f32 %v10431_v18, %v5288_v8  ;;  %v5514_v38 = vpop.f32.mrb[100].mxu0  ;;  %v5290_v5 = vpop.f32.mrb[101].mxu1 }
 0x73b   : > { %v5615_v16 = vadd.f32 %v10435_v28, %v5514_v38  ;;  %v5614_v43 = vadd.f32 %v10438_v17, %v5290_v5  ;;  %v5516_v10 = vpop.f32.mrb[101].mxu0  ;;  %v5292_v7 = vpop.f32.mrb[102].mxu1  ;;  %6060 = vmatprep.mubr.bf16.mxu1 %v5734_v41 }
 0x73c   : > { %v5616_v29 = vadd.f32 %v10442_v33, %v5516_v10  ;;  %v5617_v12 = vadd.f32 %v10431_v18, %v5292_v7  ;;  %v5518_v56 = vpop.f32.mrb[102].mxu0  ;;  %6157 = vmatprep.mubr.bf16.mxu0 %v5736_v37  ;;  %v5294_v24 = vpop.f32.mrb[103].mxu1  ;;  %6061 = vmatmul.mubr.bf16.vlgmr.msra.gmra.mrb[144].mxu1 %v5733_v25  ;;  %v5677_v26 = vmax.f32 %v5613_v22, 0.0 }
 0x73d   : > { %v5619_v46 = vadd.f32 %v10435_v28, %v5518_v56  ;;  %v5618_v61 = vadd.f32 %v10438_v17, %v5294_v24  ;;  %v5520_v39 = vpop.f32.mrb[103].mxu0  ;;  %6158 = vmatmul.mubr.bf16.vlgmr.msra.gmra.mrb[128].mxu0 %v5735_v0  ;;  %v5679_v35 = vmax.f32 %v5615_v16, 0.0  ;;  %v5678_v11 = vmax.f32 %v5614_v43, 0.0 }
 0x73e   : > { %v5681_v51 = vmax.f32 %v5617_v12, 0.0  ;;  %v5620_v13 = vadd.f32 %v10442_v33, %v5520_v39  ;;  %v5680_v6 = vmax.f32 %v5616_v29, 0.0 }
 0x73f   : > { %v5683_v44 = vmax.f32 %v5619_v46, 0.0  ;;  %v5682_v48 = vmax.f32 %v5618_v61, 0.0 }
 0x740   : > { %v5737_v19 = vpack.c.bf16 %v5681_v51, %v5677_v26  ;;  %v5684_v52 = vmax.f32 %v5620_v13, 0.0 }
 0x741   : > { %v5739_v30 = vpack.c.bf16 %v5683_v44, %v5679_v35  ;;  %v5738_v14 = vpack.c.bf16 %v5682_v48, %v5678_v11  ;;  %v5298_v1 = vpop.f32.mrb[104].mxu1 }
 0x742   : > { %v5740_v63 = vpack.c.bf16 %v5684_v52, %v5680_v6  ;;  %v5621_v9 = vadd.f32 %v10431_v18, %v5298_v1  ;;  %v5524_v60 = vpop.f32.mrb[104].mxu0  ;;  %v5300_v45 = vpop.f32.mrb[105].mxu1 }
 0x743   : > { %v5623_v54 = vadd.f32 %v10435_v28, %v5524_v60  ;;  %v5622_v34 = vadd.f32 %v10438_v17, %v5300_v45  ;;  %v5526_v40 = vpop.f32.mrb[105].mxu0  ;;  %v5302_v47 = vpop.f32.mrb[106].mxu1  ;;  %6068 = vmatprep.mubr.bf16.mxu1 %v5738_v14 }
 0x744   : > { %v5624_v58 = vadd.f32 %v10442_v33, %v5526_v40  ;;  %v5625_v4 = vadd.f32 %v10431_v18, %v5302_v47  ;;  %v5528_v42 = vpop.f32.mrb[106].mxu0  ;;  %6165 = vmatprep.mubr.bf16.mxu0 %v5740_v63  ;;  %v5304_v25 = vpop.f32.mrb[107].mxu1  ;;  %6069 = vmatmul.mubr.bf16.gmra.mrb[148].mxu1 %v5737_v19  ;;  %v5685_v8 = vmax.f32 %v5621_v9, 0.0 }
 0x745   : > { %v5627_v62 = vadd.f32 %v10435_v28, %v5528_v42  ;;  %v5626_v0 = vadd.f32 %v10438_v17, %v5304_v25  ;;  %v5530_v41 = vpop.f32.mrb[107].mxu0  ;;  %6166 = vmatmul.mubr.bf16.gmra.mrb[132].mxu0 %v5739_v30  ;;  %v5687_v38 = vmax.f32 %v5623_v54, 0.0  ;;  %v5686_v5 = vmax.f32 %v5622_v34, 0.0 }
 0x746   : > { %v5689_v37 = vmax.f32 %v5625_v4, 0.0  ;;  %v5628_v22 = vadd.f32 %v10442_v33, %v5530_v41  ;;  %v5688_v10 = vmax.f32 %v5624_v58, 0.0 }
 0x747   : > { %v5691_v16 = vmax.f32 %v5627_v62, 0.0  ;;  %v5690_v43 = vmax.f32 %v5626_v0, 0.0 }
 0x748   : > { %v5741_v7 = vpack.c.bf16 %v5689_v37, %v5685_v8  ;;  %v5692_v29 = vmax.f32 %v5628_v22, 0.0 }
 0x749   : > { %v5743_v12 = vpack.c.bf16 %v5691_v16, %v5687_v38  ;;  %v5742_v56 = vpack.c.bf16 %v5690_v43, %v5686_v5  ;;  %v5308_v24 = vpop.f32.mrb[108].mxu1 }
 0x74a   : > { %v5744_v46 = vpack.c.bf16 %v5692_v29, %v5688_v10  ;;  %v5629_v61 = vadd.f32 %v10431_v18, %v5308_v24  ;;  %v5534_v39 = vpop.f32.mrb[108].mxu0  ;;  %v5310_v26 = vpop.f32.mrb[109].mxu1 }
 0x74b   : > { %v5631_v51 = vadd.f32 %v10435_v28, %v5534_v39  ;;  %v5630_v13 = vadd.f32 %v10438_v17, %v5310_v26  ;;  %v5536_v35 = vpop.f32.mrb[109].mxu0  ;;  %v5312_v11 = vpop.f32.mrb[110].mxu1  ;;  %6076 = vmatprep.mubr.bf16.mxu1 %v5742_v56 }
 0x74c   : > { %v5632_v44 = vadd.f32 %v10442_v33, %v5536_v35  ;;  %v5633_v48 = vadd.f32 %v10431_v18, %v5312_v11  ;;  %v5538_v6 = vpop.f32.mrb[110].mxu0  ;;  %6173 = vmatprep.mubr.bf16.mxu0 %v5744_v46  ;;  %v5314_v19 = vpop.f32.mrb[111].mxu1  ;;  %6077 = vmatmul.mubr.bf16.gmra.mrb[152].mxu1 %v5741_v7  ;;  %v5693_v1 = vmax.f32 %v5629_v61, 0.0 }
 0x74d   : > { %v5635_v52 = vadd.f32 %v10435_v28, %v5538_v6  ;;  %v5634_v30 = vadd.f32 %v10438_v17, %v5314_v19  ;;  %v5540_v14 = vpop.f32.mrb[111].mxu0  ;;  %6174 = vmatmul.mubr.bf16.gmra.mrb[136].mxu0 %v5743_v12  ;;  %v5695_v60 = vmax.f32 %v5631_v51, 0.0  ;;  %v5694_v45 = vmax.f32 %v5630_v13, 0.0 }
 0x74e   : > { %v5697_v63 = vmax.f32 %v5633_v48, 0.0  ;;  %v5636_v9 = vadd.f32 %v10442_v33, %v5540_v14  ;;  %v5696_v40 = vmax.f32 %v5632_v44, 0.0 }
 0x74f   : > { %v5699_v54 = vmax.f32 %v5635_v52, 0.0  ;;  %v5698_v34 = vmax.f32 %v5634_v30, 0.0 }
 0x750   : > { %v5745_v47 = vpack.c.bf16 %v5697_v63, %v5693_v1  ;;  %v5700_v58 = vmax.f32 %v5636_v9, 0.0 }
 0x751   : > { %v5747_v4 = vpack.c.bf16 %v5699_v54, %v5695_v60  ;;  %v5746_v42 = vpack.c.bf16 %v5698_v34, %v5694_v45  ;;  %v5318_v25 = vpop.f32.mrb[112].mxu1 }
 0x752   : > { %v5748_v62 = vpack.c.bf16 %v5700_v58, %v5696_v40  ;;  %v5637_v0 = vadd.f32 %v10431_v18, %v5318_v25  ;;  %v5320_v41 = vpop.f32.mrb[113].mxu1 }
 0x753   : > { %v5638_v8 = vadd.f32 %v10438_v17, %v5320_v41  ;;  %v5322_v37 = vpop.f32.mrb[114].mxu1  ;;  %6084 = vmatprep.mubr.bf16.mxu1 %v5746_v42 }
 0x754   : > { %v5641_v22 = vadd.f32 %v10431_v18, %v5322_v37  ;;  %6181 = vmatprep.mubr.bf16.mxu0 %v5748_v62  ;;  %v5324_v38 = vpop.f32.mrb[115].mxu1  ;;  %6085 = vmatmul.mubr.bf16.gmra.mrb[156].mxu1 %v5745_v47  ;;  %v5701_v16 = vmax.f32 %v5637_v0, 0.0 }
 0x755   : > { %v5642_v5 = vadd.f32 %v10438_v17, %v5324_v38  ;;  %6182 = vmatmul.mubr.bf16.gmra.mrb[140].mxu0 %v5747_v4  ;;  %v5702_v10 = vmax.f32 %v5638_v8, 0.0 }
 0x756   : > { %v5705_v43 = vmax.f32 %v5641_v22, 0.0 }
 0x757   : > { %v5706_v7 = vmax.f32 %v5642_v5, 0.0 }
 0x758   : > { %v5749_v29 = vpack.c.bf16 %v5705_v43, %v5701_v16 }
 0x759   : > { %v5750_v12 = vpack.c.bf16 %v5706_v7, %v5702_v10  ;;  %v5328_v56 = vpop.f32.mrb[116].mxu1 }
 0x75a   : > { %v5645_v24 = vadd.f32 %v10431_v18, %v5328_v56  ;;  %v5330_v46 = vpop.f32.mrb[117].mxu1 }
 0x75b   : > { %v5646_v61 = vadd.f32 %v10438_v17, %v5330_v46  ;;  %v5332_v39 = vpop.f32.mrb[118].mxu1  ;;  %6092 = vmatprep.mubr.bf16.mxu1 %v5750_v12 }
 0x75c   : > { %v5649_v26 = vadd.f32 %v10431_v18, %v5332_v39  ;;  %v5334_v51 = vpop.f32.mrb[119].mxu1  ;;  %6093 = vmatmul.mubr.bf16.gmra.mrb[160].mxu1 %v5749_v29  ;;  %v5709_v35 = vmax.f32 %v5645_v24, 0.0 }
 0x75d   : > { %v5650_v13 = vadd.f32 %v10438_v17, %v5334_v51  ;;  %v5710_v44 = vmax.f32 %v5646_v61, 0.0 }
 0x75e   : > { %v5713_v11 = vmax.f32 %v5649_v26, 0.0 }
 0x75f   : > { %v5714_v48 = vmax.f32 %v5650_v13, 0.0 }
 0x760   : > { %v5753_v6 = vpack.c.bf16 %v5713_v11, %v5709_v35 }
 0x761   : > { %v5754_v19 = vpack.c.bf16 %v5714_v48, %v5710_v44  ;;  %v5338_v52 = vpop.f32.mrb[120].mxu1 }
 0x762   : > { %v5653_v30 = vadd.f32 %v10431_v18, %v5338_v52  ;;  %v5340_v14 = vpop.f32.mrb[121].mxu1 }
 0x763   : > { %v5654_v1 = vadd.f32 %v10438_v17, %v5340_v14  ;;  %v5342_v63 = vpop.f32.mrb[122].mxu1  ;;  %6100 = vmatprep.mubr.bf16.mxu1 %v5754_v19 }
 0x764   : > { %v5657_v9 = vadd.f32 %v10431_v18, %v5342_v63  ;;  %v5344_v60 = vpop.f32.mrb[123].mxu1  ;;  %6101 = vmatmul.mubr.bf16.gmra.mrb[164].mxu1 %v5753_v6  ;;  %v5717_v54 = vmax.f32 %v5653_v30, 0.0 }
 0x765   : > { %v5658_v45 = vadd.f32 %v10438_v17, %v5344_v60  ;;  %v5718_v40 = vmax.f32 %v5654_v1, 0.0 }
 0x766   : > { %v5721_v34 = vmax.f32 %v5657_v9, 0.0 }
 0x767   : > { %v5722_v47 = vmax.f32 %v5658_v45, 0.0 }
 0x768   : > { %v5757_v58 = vpack.c.bf16 %v5721_v34, %v5717_v54 }
 0x769   : > { %v5758_v4 = vpack.c.bf16 %v5722_v47, %v5718_v40  ;;  %v5348_v42 = vpop.f32.mrb[124].mxu1 }
 0x76a   : > { %v5661_v25 = vadd.f32 %v10431_v18, %v5348_v42  ;;  %v5350_v62 = vpop.f32.mrb[125].mxu1 }
 0x76b   : > { %v5662_v0 = vadd.f32 %v10438_v17, %v5350_v62  ;;  %v5352_v41 = vpop.f32.mrb[126].mxu1  ;;  %6108 = vmatprep.mubr.bf16.mxu1 %v5758_v4 }
 0x76c   : > { %v5665_v8 = vadd.f32 %v10431_v18, %v5352_v41  ;;  %v5354_v37 = vpop.f32.mrb[127].mxu1  ;;  %6109 = vmatmul.mubr.bf16.gmra.mrb[168].mxu1 %v5757_v58  ;;  %v5725_v38 = vmax.f32 %v5661_v25, 0.0 }
 0x76d   : > { %v5666_v22 = vadd.f32 %v10438_v17, %v5354_v37  ;;  %v5726_v16 = vmax.f32 %v5662_v0, 0.0 }
 0x76e   : > { %v5729_v5 = vmax.f32 %v5665_v8, 0.0 }
 0x76f   : > { %v5730_v43 = vmax.f32 %v5666_v22, 0.0 }
 0x770   : > { %v5761_v10 = vpack.c.bf16 %v5729_v5, %v5725_v38 }
 0x771   : > { %v5762_v7 = vpack.c.bf16 %v5730_v43, %v5726_v16 }
 0x772   : > { %v5544_v29 = vpop.f32.mrb[128].mxu1 }
 0x773   : > { %v7144_v12 = vadd.f32 %v5544_v29, %v10395_v3  ;;  %v5546_v56 = vpop.f32.mrb[129].mxu1  ;;  %6116 = vmatprep.mubr.bf16.mxu1 %v5762_v7 }
 0x774   : > { %v7145_v24 = vadd.f32 %v5546_v56, %v10397_v55  ;;  %v5548_v46 = vpop.f32.mrb[130].mxu1  ;;  %6117 = vmatmul.mubr.bf16.gmra.mrb[172].mxu1 %v5761_v10 }
 0x775   : > { %v5639_v18 = vadd.f32 %v7144_v12, %v10435_v28  ;;  %v7146_v61 = vadd.f32 %v5548_v46, %v10399_v27  ;;  %v5550_v17 = vpop.f32.mrb[131].mxu1 }
 0x776   : > { %v5640_v39 = vadd.f32 %v7145_v24, %v10442_v33  ;;  %v7147_v26 = vadd.f32 %v5550_v17, %v10401_v20 }
 0x777   : > { %v5643_v51 = vadd.f32 %v7146_v61, %v10435_v28  ;;  %v5703_v3 = vmax.f32 %v5639_v18, 0.0 }
 0x778   : > { %v5644_v13 = vadd.f32 %v7147_v26, %v10442_v33  ;;  %v5704_v11 = vmax.f32 %v5640_v39, 0.0 }
 0x779   : > { %v5707_v35 = vmax.f32 %v5643_v51, 0.0 }
 0x77a   : > { %v5708_v44 = vmax.f32 %v5644_v13, 0.0  ;;  %v5554_v55 = vpop.f32.mrb[132].mxu1 }
 0x77b   : > { %v7148_v48 = vadd.f32 %v5554_v55, %v10403_v32  ;;  %v5556_v6 = vpop.f32.mrb[133].mxu1  ;;  %v5751_v19 = vpack.c.bf16 %v5707_v35, %v5703_v3 }
 0x77c   : > { %v7149_v27 = vadd.f32 %v5556_v6, %v10405_v23  ;;  %v5558_v52 = vpop.f32.mrb[134].mxu1  ;;  %v5752_v30 = vpack.c.bf16 %v5708_v44, %v5704_v11 }
 0x77d   : > { %v5647_v14 = vadd.f32 %v7148_v48, %v10435_v28  ;;  %v7150_v20 = vadd.f32 %v5558_v52, %v10407_v59  ;;  %v5560_v1 = vpop.f32.mrb[135].mxu1 }
 0x77e   : > { %v5648_v63 = vadd.f32 %v7149_v27, %v10442_v33  ;;  %v7151_v9 = vadd.f32 %v5560_v1, %v10409_v36  ;;  %6189 = vmatprep.mubr.bf16.mxu0 %v5752_v30 }
 0x77f   : > { %v5651_v60 = vadd.f32 %v7150_v20, %v10435_v28  ;;  %6190 = vmatmul.mubr.bf16.gmra.mrb[144].mxu0 %v5751_v19  ;;  %v5711_v45 = vmax.f32 %v5647_v14, 0.0 }
 0x780   : > { %v5652_v32 = vadd.f32 %v7151_v9, %v10442_v33  ;;  %v5712_v23 = vmax.f32 %v5648_v63, 0.0 }
 0x781   : > { %v5715_v54 = vmax.f32 %v5651_v60, 0.0 }
 0x782   : > { %v5716_v34 = vmax.f32 %v5652_v32, 0.0  ;;  %v5564_v40 = vpop.f32.mrb[136].mxu1 }
 0x783   : > { %v7152_v47 = vadd.f32 %v5564_v40, %v10411_v31  ;;  %v5566_v58 = vpop.f32.mrb[137].mxu1  ;;  %v5755_v59 = vpack.c.bf16 %v5715_v54, %v5711_v45 }
 0x784   : > { %v7153_v4 = vadd.f32 %v5566_v58, %v10413_v15  ;;  %v5568_v42 = vpop.f32.mrb[138].mxu1  ;;  %v5756_v25 = vpack.c.bf16 %v5716_v34, %v5712_v23 }
 0x785   : > { %v5655_v36 = vadd.f32 %v7152_v47, %v10435_v28  ;;  %v7154_v62 = vadd.f32 %v5568_v42, %v10415_v21  ;;  %v5570_v0 = vpop.f32.mrb[139].mxu1 }
 0x786   : > { %v5656_v41 = vadd.f32 %v7153_v4, %v10442_v33  ;;  %v7155_v8 = vadd.f32 %v5570_v0, %v10417_v50  ;;  %6197 = vmatprep.mubr.bf16.mxu0 %v5756_v25 }
 0x787   : > { %v5659_v37 = vadd.f32 %v7154_v62, %v10435_v28  ;;  %6198 = vmatmul.mubr.bf16.gmra.mrb[148].mxu0 %v5755_v59  ;;  %v5719_v22 = vmax.f32 %v5655_v36, 0.0 }
 0x788   : > { %v5660_v31 = vadd.f32 %v7155_v8, %v10442_v33  ;;  %v5720_v15 = vmax.f32 %v5656_v41, 0.0 }
 0x789   : > { %v5723_v38 = vmax.f32 %v5659_v37, 0.0 }
 0x78a   : > { %v5724_v5 = vmax.f32 %v5660_v31, 0.0  ;;  %v5574_v16 = vpop.f32.mrb[140].mxu1 }
 0x78b   : > { %v7156_v43 = vadd.f32 %v5574_v16, %v10419_v2  ;;  %v5576_v10 = vpop.f32.mrb[141].mxu1  ;;  %v5759_v21 = vpack.c.bf16 %v5723_v38, %v5719_v22 }
 0x78c   : > { %v7157_v7 = vadd.f32 %v5576_v10, %v10421_v49  ;;  %v5578_v29 = vpop.f32.mrb[142].mxu1  ;;  %v5760_v12 = vpack.c.bf16 %v5724_v5, %v5720_v15 }
 0x78d   : > { %v5663_v50 = vadd.f32 %v7156_v43, %v10435_v28  ;;  %v7158_v56 = vadd.f32 %v5578_v29, %v10423_v53  ;;  %v5580_v24 = vpop.f32.mrb[143].mxu1 }
 0x78e   : > { %v5664_v46 = vadd.f32 %v7157_v7, %v10442_v33  ;;  %v7159_v18 = vadd.f32 %v5580_v24, %v10428_v57  ;;  %6205 = vmatprep.mubr.bf16.mxu0 %v5760_v12  ;;  %v10529_v57 = vld [vmem:[%s10596_s13] ss:$0 sm:$0xff] }
 0x78f   : > { %v5667_v2 = vadd.f32 %v7158_v56, %v10435_v28  ;;  %6206 = vmatmul.mubr.bf16.gmra.mrb[152].mxu0 %v5759_v21  ;;  %v5727_v49 = vmax.f32 %v5663_v50, 0.0 }
 0x790   : > { %v5668_v61 = vadd.f32 %v7159_v18, %v10442_v33  ;;  %v5728_v39 = vmax.f32 %v5664_v46, 0.0 }
 0x791   : > { %v5731_v17 = vmax.f32 %v5667_v2, 0.0 }
 0x792   : > { %v5732_v26 = vmax.f32 %v5668_v61, 0.0 }
 0x793   : > { %v5763_v51 = vpack.c.bf16 %v5731_v17, %v5727_v49 }
 0x794   : > { %v5764_v13 = vpack.c.bf16 %v5732_v26, %v5728_v39 }
 0x796   : > { %6213 = vmatprep.mubr.bf16.mxu0 %v5764_v13 }
 0x797   : > { %6214 = vmatmul.mubr.bf16.gmra.mrb[156].mxu0 %v5763_v51 }
 0x80f   : > { %v6968_v53 = vpop.f32.mrb[144].mxu1 }
 0x810   : > { %v7032_v3 = vpop.f32.mrb[128].mxu0  ;;  %v6969_v28 = vpop.f32.mrb[145].mxu1 }
 0x811   : > { %v6970_v35 = vadd.f32 %v6969_v28, %v6968_v53  ;;  %v7033_v33 = vpop.f32.mrb[129].mxu0  ;;  %v6971_v11 = vpop.f32.mrb[146].mxu1 }
 0x812   : > { %v7034_v44 = vadd.f32 %v7033_v33, %v7032_v3  ;;  %v7035_v55 = vpop.f32.mrb[130].mxu0  ;;  %v6972_v48 = vpop.f32.mrb[147].mxu1 }
 0x813   : > { %v6063_v6 = vadd.f32 %v6970_v35, %v10529_v57  ;;  %v6973_v19 = vadd.f32 %v6972_v48, %v6971_v11  ;;  %v7036_v27 = vpop.f32.mrb[131].mxu0 }
 0x814   : > { %v7037_v52 = vadd.f32 %v7036_v27, %v7035_v55 }
 0x815   : > { %v6160_v30 = vadd.f32 %v7034_v44, %v6063_v6  ;;  %v6066_v14 = vadd.f32 %v6973_v19, %v10529_v57 }
 0x817   : > { %6222 = vst [vmem:[%s10535_s23] sm:$0xff] %v6160_v30  ;;  %v6163_v20 = vadd.f32 %v7037_v52, %v6066_v14  ;;  %v6974_v1 = vpop.f32.mrb[148].mxu1 }
 0x818   : > { %v7038_v63 = vpop.f32.mrb[132].mxu0  ;;  %v6975_v9 = vpop.f32.mrb[149].mxu1 }
 0x819   : > { %6223 = vst [vmem:[%s10535_s23 + $0x8] sm:$0xff] %v6163_v20  ;;  %v6976_v60 = vadd.f32 %v6975_v9, %v6974_v1  ;;  %v7039_v32 = vpop.f32.mrb[133].mxu0  ;;  %v6977_v45 = vpop.f32.mrb[150].mxu1 }
 0x81a   : > { %v7040_v54 = vadd.f32 %v7039_v32, %v7038_v63  ;;  %v7041_v23 = vpop.f32.mrb[134].mxu0  ;;  %v6978_v34 = vpop.f32.mrb[151].mxu1 }
 0x81b   : > { %v6071_v40 = vadd.f32 %v6976_v60, %v10529_v57  ;;  %v6979_v47 = vadd.f32 %v6978_v34, %v6977_v45  ;;  %v7042_v58 = vpop.f32.mrb[135].mxu0 }
 0x81c   : > { %v7043_v59 = vadd.f32 %v7042_v58, %v7041_v23 }
 0x81d   : > { %v6168_v4 = vadd.f32 %v7040_v54, %v6071_v40  ;;  %v6074_v42 = vadd.f32 %v6979_v47, %v10529_v57 }
 0x81f   : > { %6224 = vst [vmem:[%s10535_s23 + $0x10] sm:$0xff] %v6168_v4  ;;  %v6171_v25 = vadd.f32 %v7043_v59, %v6074_v42  ;;  %v6980_v36 = vpop.f32.mrb[152].mxu1 }
 0x820   : > { %v7044_v62 = vpop.f32.mrb[136].mxu0  ;;  %v6981_v0 = vpop.f32.mrb[153].mxu1 }
 0x821   : > { %6225 = vst [vmem:[%s10535_s23 + $0x18] sm:$0xff] %v6171_v25  ;;  %v6982_v41 = vadd.f32 %v6981_v0, %v6980_v36  ;;  %v7045_v8 = vpop.f32.mrb[137].mxu0  ;;  %v6983_v37 = vpop.f32.mrb[154].mxu1 }
 0x822   : > { %v7046_v31 = vadd.f32 %v7045_v8, %v7044_v62  ;;  %v7047_v22 = vpop.f32.mrb[138].mxu0  ;;  %v6984_v38 = vpop.f32.mrb[155].mxu1 }
 0x823   : > { %v6079_v15 = vadd.f32 %v6982_v41, %v10529_v57  ;;  %v6985_v5 = vadd.f32 %v6984_v38, %v6983_v37  ;;  %v7048_v16 = vpop.f32.mrb[139].mxu0 }
 0x824   : > { %v7049_v43 = vadd.f32 %v7048_v16, %v7047_v22 }
 0x825   : > { %v6176_v10 = vadd.f32 %v7046_v31, %v6079_v15  ;;  %v6082_v21 = vadd.f32 %v6985_v5, %v10529_v57 }
 0x827   : > { %6226 = vst [vmem:[%s10535_s23 + $0x20] sm:$0xff] %v6176_v10  ;;  %v6179_v7 = vadd.f32 %v7049_v43, %v6082_v21  ;;  %v6986_v29 = vpop.f32.mrb[156].mxu1 }
 0x828   : > { %v7050_v12 = vpop.f32.mrb[140].mxu0  ;;  %v6987_v50 = vpop.f32.mrb[157].mxu1 }
 0x829   : > { %6227 = vst [vmem:[%s10535_s23 + $0x28] sm:$0xff] %v6179_v7  ;;  %v6988_v56 = vadd.f32 %v6987_v50, %v6986_v29  ;;  %v7051_v24 = vpop.f32.mrb[141].mxu0  ;;  %v6989_v46 = vpop.f32.mrb[158].mxu1 }
 0x82a   : > { %v7052_v18 = vadd.f32 %v7051_v24, %v7050_v12  ;;  %v7053_v2 = vpop.f32.mrb[142].mxu0  ;;  %v6990_v61 = vpop.f32.mrb[159].mxu1 }
 0x82b   : > { %v6087_v49 = vadd.f32 %v6988_v56, %v10529_v57  ;;  %v6991_v17 = vadd.f32 %v6990_v61, %v6989_v46  ;;  %v7054_v39 = vpop.f32.mrb[143].mxu0 }
 0x82c   : > { %v7055_v26 = vadd.f32 %v7054_v39, %v7053_v2 }
 0x82d   : > { %v6184_v51 = vadd.f32 %v7052_v18, %v6087_v49  ;;  %v6090_v13 = vadd.f32 %v6991_v17, %v10529_v57 }
 0x82f   : > { %6228 = vst [vmem:[%s10535_s23 + $0x30] sm:$0xff] %v6184_v51  ;;  %v6187_v53 = vadd.f32 %v7055_v26, %v6090_v13  ;;  %v6992_v3 = vpop.f32.mrb[160].mxu1 }
 0x830   : > { %v6993_v28 = vpop.f32.mrb[161].mxu1 }
 0x831   : > { %6229 = vst [vmem:[%s10535_s23 + $0x38] sm:$0xff] %v6187_v53  ;;  %v6994_v35 = vadd.f32 %v6993_v28, %v6992_v3  ;;  %v6995_v33 = vpop.f32.mrb[162].mxu1 }
 0x832   : > { %v6996_v11 = vpop.f32.mrb[163].mxu1 }
 0x833   : > { %v6095_v44 = vadd.f32 %v6994_v35, %v10529_v57  ;;  %v6997_v55 = vadd.f32 %v6996_v11, %v6995_v33 }
 0x835   : > { %v6098_v48 = vadd.f32 %v6997_v55, %v10529_v57 }
 0x837   : > { %v6998_v6 = vpop.f32.mrb[164].mxu1 }
 0x838   : > { %v6999_v19 = vpop.f32.mrb[165].mxu1 }
 0x839   : > { %v7000_v27 = vadd.f32 %v6999_v19, %v6998_v6  ;;  %v7001_v52 = vpop.f32.mrb[166].mxu1 }
 0x83a   : > { %v7002_v30 = vpop.f32.mrb[167].mxu1 }
 0x83b   : > { %v6103_v14 = vadd.f32 %v7000_v27, %v10529_v57  ;;  %v7003_v20 = vadd.f32 %v7002_v30, %v7001_v52 }
 0x83d   : > { %v6106_v1 = vadd.f32 %v7003_v20, %v10529_v57 }
 0x83f   : > { %v7004_v63 = vpop.f32.mrb[168].mxu1 }
 0x840   : > { %v7005_v9 = vpop.f32.mrb[169].mxu1 }
 0x841   : > { %v7006_v60 = vadd.f32 %v7005_v9, %v7004_v63  ;;  %v7007_v32 = vpop.f32.mrb[170].mxu1 }
 0x842   : > { %v7008_v45 = vpop.f32.mrb[171].mxu1 }
 0x843   : > { %v6111_v54 = vadd.f32 %v7006_v60, %v10529_v57  ;;  %v7009_v23 = vadd.f32 %v7008_v45, %v7007_v32 }
 0x845   : > { %v6114_v34 = vadd.f32 %v7009_v23, %v10529_v57 }
 0x847   : > { %v7010_v40 = vpop.f32.mrb[172].mxu1 }
 0x848   : > { %v7011_v47 = vpop.f32.mrb[173].mxu1 }
 0x849   : > { %v7012_v58 = vadd.f32 %v7011_v47, %v7010_v40  ;;  %v7013_v59 = vpop.f32.mrb[174].mxu1 }
 0x84a   : > { %v7014_v4 = vpop.f32.mrb[175].mxu1 }
 0x84b   : > { %v6119_v42 = vadd.f32 %v7012_v58, %v10529_v57  ;;  %v7015_v25 = vadd.f32 %v7014_v4, %v7013_v59 }
 0x84d   : > { %v6122_v36 = vadd.f32 %v7015_v25, %v10529_v57 }
 0x852   : > { %v7056_v62 = vpop.f32.mrb[144].mxu0 }
 0x853   : > { %v7057_v0 = vpop.f32.mrb[145].mxu0 }
 0x854   : > { %v7058_v41 = vadd.f32 %v7057_v0, %v7056_v62  ;;  %v7059_v8 = vpop.f32.mrb[146].mxu0 }
 0x855   : > { %v7060_v37 = vpop.f32.mrb[147].mxu0 }
 0x856   : > { %v6192_v31 = vadd.f32 %v7058_v41, %v6095_v44  ;;  %v7061_v22 = vadd.f32 %v7060_v37, %v7059_v8 }
 0x858   : > { %6230 = vst [vmem:[%s10535_s23 + $0x40] sm:$0xff] %v6192_v31  ;;  %v6195_v38 = vadd.f32 %v7061_v22, %v6098_v48 }
 0x85a   : > { %6231 = vst [vmem:[%s10535_s23 + $0x48] sm:$0xff] %v6195_v38  ;;  %v7062_v15 = vpop.f32.mrb[148].mxu0 }
 0x85b   : > { %v7063_v5 = vpop.f32.mrb[149].mxu0 }
 0x85c   : > { %v7064_v16 = vadd.f32 %v7063_v5, %v7062_v15  ;;  %v7065_v43 = vpop.f32.mrb[150].mxu0 }
 0x85d   : > { %v7066_v10 = vpop.f32.mrb[151].mxu0 }
 0x85e   : > { %v6200_v57 = vadd.f32 %v7064_v16, %v6103_v14  ;;  %v7067_v21 = vadd.f32 %v7066_v10, %v7065_v43 }
 0x860   : > { %6232 = vst [vmem:[%s10535_s23 + $0x50] sm:$0xff] %v6200_v57  ;;  %v6203_v7 = vadd.f32 %v7067_v21, %v6106_v1 }
 0x862   : > { %6233 = vst [vmem:[%s10535_s23 + $0x58] sm:$0xff] %v6203_v7  ;;  %v7068_v29 = vpop.f32.mrb[152].mxu0 }
 0x863   : > { %v7069_v12 = vpop.f32.mrb[153].mxu0 }
 0x864   : > { %v7070_v50 = vadd.f32 %v7069_v12, %v7068_v29  ;;  %v7071_v56 = vpop.f32.mrb[154].mxu0 }
 0x865   : > { %v7072_v24 = vpop.f32.mrb[155].mxu0 }
 0x866   : > { %v6208_v46 = vadd.f32 %v7070_v50, %v6111_v54  ;;  %v7073_v18 = vadd.f32 %v7072_v24, %v7071_v56 }
 0x868   : > { %6234 = vst [vmem:[%s10535_s23 + $0x60] sm:$0xff] %v6208_v46  ;;  %v6211_v2 = vadd.f32 %v7073_v18, %v6114_v34 }
 0x86a   : > { %6235 = vst [vmem:[%s10535_s23 + $0x68] sm:$0xff] %v6211_v2  ;;  %v7074_v61 = vpop.f32.mrb[156].mxu0 }
 0x86b   : > { %v7075_v49 = vpop.f32.mrb[157].mxu0 }
 0x86c   : > { %v7076_v17 = vadd.f32 %v7075_v49, %v7074_v61  ;;  %v7077_v39 = vpop.f32.mrb[158].mxu0 }
 0x86d   : > { %v7078_v26 = vpop.f32.mrb[159].mxu0 }
 0x86e   : > { %v6216_v51 = vadd.f32 %v7076_v17, %v6119_v42  ;;  %v7079_v13 = vadd.f32 %v7078_v26, %v7077_v39 }
 0x870   : > { %6236 = vst [vmem:[%s10535_s23 + $0x70] sm:$0xff] %v6216_v51  ;;  %v6219_v53 = vadd.f32 %v7079_v13, %v6122_v36 }
 0x872   : > { %6237 = vst [vmem:[%s10535_s23 + $0x78] sm:$0xff] %v6219_v53 }
 0x873 PF: > { %s24_s17 = sadd.s32 1, %s8287_s17   ;;  %s10621_s29 = sld [smem:[#allocation2_spill]] }
 0x874   : > { %p21_p7 = scmp.ge.s32.totalorder %s24_s17, 6   ;;  %s10622_s30 = sld [smem:[#allocation3_spill]] }
 0x875   : > { %s10623_s15 = sld [smem:[#allocation4_spill]]  ;;  %s10624_s16 = sld [smem:[#allocation5_spill]] }
 0x876   :  { %23 = sbr.rel (!%p21_p7) target bundleno = 3 (0x3), region = 112 }

</bundles_post_ra>
